<compile_context>
chip_gen: v5e
topology: v5e:2x2
jax: 0.10.0
libtpu: 0.0.40
codegen_flags: <defaults>
</compile_context>

<pallas_src>
import functools

import jax
import jax.numpy as jnp
from jax.experimental import pallas as pl
from jax.experimental.pallas import tpu as pltpu


def _round_up(x, m):
    return (x + m - 1) // m * m


def _vmem_limit_bytes():
    """0.75 * physical VMEM, clamped to [32 MiB, 100 MiB]; 64 MiB fallback."""
    try:
        cap = int(pltpu.get_tpu_info().vmem_capacity_bytes)
        return max(32 << 20, min(cap * 3 // 4, 100 << 20))
    except Exception:
        return 64 << 20


_VMEM_LIMIT = _vmem_limit_bytes()


# ---------------------------------------------------------------------------
# Pallas kernels
# ---------------------------------------------------------------------------

def _conv_in_kernel(xf_ref, w_ref, mask_ref, out_ref, *, H, W, d, HWe_out,
                    apply_lrelu):
    """Dilated 3x3 conv (9 per-tap MXU matmuls, f32 acc) + InstanceNorm (+LReLU).

    xf_ref:  (1, C_in, L)        flat padded input, row stride Wp = W + 2d.
    w_ref:   (9, C_blk, C_in)    per-tap weights for this output-channel block.
    mask_ref:(1, HWe_out)        1.0 on the H*W valid columns of the layout.
    out_ref: (1, C_blk, HWe_out) extended-layout output (garbage in pad cols).
    """
    Wp = W + 2 * d

    acc = None
    for ky in range(3):
        for kx in range(3):
            t = ky * 3 + kx
            off = (ky * Wp + kx) * d
            tap = xf_ref[0, :, off:off + HWe_out]            # (C_in, HWe_out)
            part = jnp.dot(w_ref[t], tap,
                           preferred_element_type=jnp.float32)
            acc = part if acc is None else acc + part        # f32 accumulation

    # InstanceNorm2d (affine=False, eps=1e-5): masked single-pass sum /
    # sum-of-squares in f32, rsqrt on the EUP.  (Conv bias omitted: a
    # per-channel constant is exactly cancelled by the mean subtraction.)
    mask = mask_ref[...]                                     # (1, HWe_out) f32
    inv_cnt = 1.0 / (H * W)
    ym = acc * mask
    mean = jnp.sum(ym, axis=-1, keepdims=True) * inv_cnt
    var = jnp.sum(ym * ym, axis=-1, keepdims=True) * inv_cnt - mean * mean
    y = (acc - mean) * jax.lax.rsqrt(jnp.maximum(var, 0.0) + 1e-5)

    if apply_lrelu:
        y = jnp.where(y > 0, y, 0.1 * y)

    out_ref[0] = y.astype(out_ref.dtype)


def _final_conv_kernel(xf_ref, xres_ref, w_ref, b_ref, out_ref, *, W, HWe_out):
    """3x3 conv (zero pad 1) over 3*dim channels + bias + fused residual add."""
    Wp = W + 2
    acc = None
    for ky in range(3):
        for kx in range(3):
            t = ky * 3 + kx
            off = ky * Wp + kx
            tap = xf_ref[0, :, off:off + HWe_out]            # (3C, HWe_out)
            part = jnp.dot(w_ref[t], tap,
                           preferred_element_type=jnp.float32)
            acc = part if acc is None else acc + part
    y = acc + b_ref[...]                                     # (C_blk, 1) bias
    out_ref[0] = (xres_ref[0] + y).astype(out_ref.dtype)


# ---------------------------------------------------------------------------
# Plain-JAX glue (padding / flattening / pallas_call wrappers)
# ---------------------------------------------------------------------------

def _w_taps(w, dtype):
    """(O, I, 3, 3) -> (9, O, I), tap index t = ky*3 + kx."""
    O, I = w.shape[0], w.shape[1]
    return jnp.transpose(w, (2, 3, 0, 1)).reshape(9, O, I).astype(dtype)


def _flatten_padded(xpad, L, dtype):
    """(N, C, Hp, Wp) -> (N, C, L): flatten rows and zero-pad the tail to L."""
    N, C, Hp, Wp = xpad.shape
    xf = xpad.reshape(N, C, Hp * Wp)
    return jnp.pad(xf, ((0, 0), (0, 0), (0, L - Hp * Wp))).astype(dtype)


def _valid_mask(H, W, Wp, HWe_out):
    pos = jnp.arange(HWe_out, dtype=jnp.int32)
    valid = (pos < H * Wp) & (pos % Wp < W)
    return valid.astype(jnp.float32).reshape(1, HWe_out)


def _pick_cblk(C, cblk):
    if cblk is None:
        cblk = C if C <= 128 else 128
    assert C % cblk == 0, "output channels must divide evenly into blocks"
    assert cblk == C or cblk % 8 == 0, "channel block must be a multiple of 8"
    return cblk


def conv_in_layer(x, w, d, apply_lrelu, compute_dtype, cblk):
    """ReflectionPad(d) -> Conv2d(dim,dim,3,dilation=d) -> InstanceNorm (-> LReLU)."""
    N, C, H, W = x.shape
    Cout = w.shape[0]
    Wp = W + 2 * d
    HWe = H * Wp
    HWe_out = _round_up(HWe, 128)        # lane-dense output stores
    L = HWe_out + (2 * Wp + 2) * d       # last tap slice ends exactly at L
    cblk = _pick_cblk(Cout, cblk)

    xpad = jnp.pad(x, ((0, 0), (0, 0), (d, d), (d, d)), mode="reflect")
    xf = _flatten_padded(xpad, L, compute_dtype)             # (N, C, L)
    w9 = _w_taps(w, compute_dtype)                           # (9, Cout, C)
    mask = _valid_mask(H, W, Wp, HWe_out)                    # (1, HWe_out)

    kernel = functools.partial(_conv_in_kernel, H=H, W=W, d=d,
                               HWe_out=HWe_out, apply_lrelu=apply_lrelu)
    out_ext = pl.pallas_call(
        kernel,
        out_shape=jax.ShapeDtypeStruct((N, Cout, HWe_out), compute_dtype),
        grid=(N, Cout // cblk),
        in_specs=[
            pl.BlockSpec((1, C, L), lambda n, cb: (n, 0, 0)),      # resident per n
            pl.BlockSpec((9, cblk, C), lambda n, cb: (0, cb, 0)),  # per-block weights
            pl.BlockSpec((1, HWe_out), lambda n, cb: (0, 0)),      # resident mask
        ],
        out_specs=pl.BlockSpec((1, cblk, HWe_out), lambda n, cb: (n, cb, 0)),
        compiler_params=pltpu.CompilerParams(
            dimension_semantics=("parallel", "parallel"),
            vmem_limit_bytes=_VMEM_LIMIT),
    )(xf, w9, mask)
    # Slice the valid (H, W) window out of the lane-padded extended layout.
    return out_ext[:, :, :HWe].reshape(N, Cout, H, Wp)[:, :, :, :W]


def final_conv_residual(x1, x3, x5, xres, w, b, compute_dtype, cblk):
    """Conv2d(3*dim, dim, 3, padding=1) + bias + residual add (fused)."""
    N, C, H, W = xres.shape
    C3 = 3 * C
    Wp = W + 2
    HWe = H * Wp
    HWe_out = _round_up(HWe, 128)
    L = HWe_out + 2 * Wp + 2
    cblk = _pick_cblk(C, cblk)

    # TODO(synk): have each branch's second conv write straight into this
    # concatenated zero-padded layout (removes ~2 full-tensor HBM passes).
    xcat = jnp.concatenate([x1, x3, x5], axis=1)                  # (N, 3C, H, W)
    xpad = jnp.pad(xcat, ((0, 0), (0, 0), (1, 1), (1, 1)))        # zero pad 1
    xf = _flatten_padded(xpad, L, compute_dtype)                  # (N, 3C, L)
    w9 = _w_taps(w, compute_dtype)                                # (9, C, 3C)
    b2 = b.reshape(C, 1).astype(jnp.float32)
    xres_ext = _flatten_padded(
        jnp.pad(xres, ((0, 0), (0, 0), (0, 0), (0, 2))), HWe_out, jnp.float32)

    kernel = functools.partial(_final_conv_kernel, W=W, HWe_out=HWe_out)
    out_ext = pl.pallas_call(
        kernel,
        out_shape=jax.ShapeDtypeStruct((N, C, HWe_out), jnp.float32),
        grid=(N, C // cblk),
        in_specs=[
            pl.BlockSpec((1, C3, L), lambda n, cb: (n, 0, 0)),
            pl.BlockSpec((1, cblk, HWe_out), lambda n, cb: (n, cb, 0)),
            pl.BlockSpec((9, cblk, C3), lambda n, cb: (0, cb, 0)),
            pl.BlockSpec((cblk, 1), lambda n, cb: (cb, 0)),
        ],
        out_specs=pl.BlockSpec((1, cblk, HWe_out), lambda n, cb: (n, cb, 0)),
        compiler_params=pltpu.CompilerParams(
            dimension_semantics=("parallel", "parallel"),
            vmem_limit_bytes=_VMEM_LIMIT),
    )(xf, xres_ext, w9, b2)
    return out_ext[:, :, :HWe].reshape(N, C, H, Wp)[:, :, :, :W]


def resnet_block_forward(x, params, *, compute_dtype=jnp.bfloat16, cblk=None):
    """Full ResnetBlock forward (dilation 1 / 3 / 5 branches, fuse, residual)."""
    def branch(xb, d):
        y = conv_in_layer(xb, params[f"w{d}a"], d, True, compute_dtype, cblk)
        y = conv_in_layer(y, params[f"w{d}b"], d, False, compute_dtype, cblk)
        return y

    x1 = branch(x, 1)
    x3 = branch(x, 3)
    x5 = branch(x, 5)
    return final_conv_residual(x1, x3, x5, x, params["wf"], params["bf"],
                               compute_dtype, cblk)


# ---------------------------------------------------------------------------
# Deterministic parameter init (Conv2d-style uniform(-k, k), k = 1/sqrt(fan_in))
# (Branch biases exist — use_bias=True — but are cancelled by the affine-free
#  InstanceNorm; the kernels therefore skip them, the reference keeps them.)
# ---------------------------------------------------------------------------

def init_params(key, dim):
    def conv_init(key, cout, cin):
        k = 1.0 / jnp.sqrt(cin * 9.0)
        kw, kb = jax.random.split(key)
        w = jax.random.uniform(kw, (cout, cin, 3, 3), jnp.float32, -k, k)
        b = jax.random.uniform(kb, (cout,), jnp.float32, -k, k)
        return w, b

    params = {}
    keys = jax.random.split(key, 7)
    params["w1a"], params["b1a"] = conv_init(keys[0], dim, dim)
    params["w1b"], params["b1b"] = conv_init(keys[1], dim, dim)
    params["w3a"], params["b3a"] = conv_init(keys[2], dim, dim)
    params["w3b"], params["b3b"] = conv_init(keys[3], dim, dim)
    params["w5a"], params["b5a"] = conv_init(keys[4], dim, dim)
    params["w5b"], params["b5b"] = conv_init(keys[5], dim, dim)
    params["wf"], params["bf"] = conv_init(keys[6], dim, 3 * dim)
    return params


# ---------------------------------------------------------------------------
# Pure-JAX reference (faithful to the PyTorch module; compute_dtype emulates
# the kernel's bf16 matmul operands with f32 accumulation / f32 InstanceNorm)
# ---------------------------------------------------------------------------

def _ref_conv_in(x, w, b, d, lrelu, compute_dtype):
    xpad = jnp.pad(x, ((0, 0), (0, 0), (d, d), (d, d)), mode="reflect")
    y = jax.lax.conv_general_dilated(
        xpad.astype(compute_dtype), w.astype(compute_dtype),
        window_strides=(1, 1), padding="VALID", rhs_dilation=(d, d),
        dimension_numbers=("NCHW", "OIHW", "NCHW"),
        preferred_element_type=jnp.float32)
    y = y + b.reshape(1, -1, 1, 1)
    mean = y.mean(axis=(2, 3), keepdims=True)
    var = ((y - mean) ** 2).mean(axis=(2, 3), keepdims=True)
    y = (y - mean) / jnp.sqrt(var + 1e-5)
    if lrelu:
        y = jnp.where(y > 0, y, 0.1 * y)
    return y


def _ref_forward(x, params, compute_dtype):
    def branch(xb, d):
        y = _ref_conv_in(xb, params[f"w{d}a"], params[f"b{d}a"], d, True,
                         compute_dtype)
        y = _ref_conv_in(y, params[f"w{d}b"], params[f"b{d}b"], d, False,
                         compute_dtype)
        return y

    xcat = jnp.concatenate([branch(x, 1), branch(x, 3), branch(x, 5)], axis=1)
    y = jax.lax.conv_general_dilated(
        xcat.astype(compute_dtype), params["wf"].astype(compute_dtype),
        window_strides=(1, 1), padding=((1, 1), (1, 1)),
        dimension_numbers=("NCHW", "OIHW", "NCHW"),
        preferred_element_type=jnp.float32)
    y = y + params["bf"].reshape(1, -1, 1, 1)
    return x + y


# ---------------------------------------------------------------------------
# Main
# ---------------------------------------------------------------------------

if __name__ == "__main__":
    N, DIM, H, W = 2, 32, 16, 16
    CBLK = 16           # 2 output-channel blocks -> exercises the channel grid axis

    key = jax.random.PRNGKey(0)
    kx_, kp = jax.random.split(key)
    x = jax.random.normal(kx_, (N, DIM, H, W), jnp.float32)
    params = init_params(kp, DIM)

    fwd = jax.jit(functools.partial(resnet_block_forward,
                                    compute_dtype=jnp.bfloat16, cblk=CBLK))
    out = jax.block_until_ready(fwd(x, params))
    assert out.shape == (N, DIM, H, W)

    # Reference emulates the kernel's bf16 matmul operands (f32 accumulation,
    # f32 InstanceNorm), so the comparison isolates indexing/layout correctness.
    ref = jax.block_until_ready(_ref_forward(x, params, jnp.bfloat16))
    err = float(jnp.max(jnp.abs(out - ref)))
    assert bool(jnp.allclose(out, ref, atol=2e-2, rtol=2e-2)), \
        f"max abs err {err}"
    print("KERNEL_OK")
</pallas_src>

<mosaic_0001>
module attributes {stable_mosaic.version = 11 : i64} {
  func.func @_conv_in_kernel(%arg0: i32, %arg1: i32, %arg2: memref<1x32x782xbf16, #tpu.memory_space<vmem>>, %arg3: memref<9x16x32xbf16, #tpu.memory_space<vmem>>, %arg4: memref<1x512xf32, #tpu.memory_space<vmem>>, %arg5: memref<1x16x512xbf16, #tpu.memory_space<vmem>>) attributes {dimension_semantics = [#tpu.dimension_semantics<parallel>, #tpu.dimension_semantics<parallel>], iteration_bounds = array<i64: 2, 2>, scalar_prefetch = 0 : i64, scratch_operands = 0 : i64, tpu.core_type = #tpu.core_type<tc>, window_params = [{transform_indices = @transform_0, window_bounds = array<i64: 1, 32, 782>}, {transform_indices = @transform_1, window_bounds = array<i64: 9, 16, 32>}, {pipeline_mode = #tpu.pipeline_mode<synchronous>, transform_indices = @transform_2, window_bounds = array<i64: 1, 512>}, {transform_indices = @transform_3, window_bounds = array<i64: 1, 16, 512>}]} {
    %c0 = arith.constant 0 : index
    %c0_0 = arith.constant 0 : index
    %c0_1 = arith.constant 0 : index
    %0 = vector.load %arg2[%c0, %c0_0, %c0_1] : memref<1x32x782xbf16, #tpu.memory_space<vmem>>, vector<1x32x512xbf16>
    %1 = vector.shape_cast %0 : vector<1x32x512xbf16> to vector<32x512xbf16>
    %c0_2 = arith.constant 0 : index
    %c0_3 = arith.constant 0 : index
    %c0_4 = arith.constant 0 : index
    %2 = vector.load %arg3[%c0_2, %c0_3, %c0_4] : memref<9x16x32xbf16, #tpu.memory_space<vmem>>, vector<1x16x32xbf16>
    %3 = vector.shape_cast %2 : vector<1x16x32xbf16> to vector<16x32xbf16>
    %cst = arith.constant dense<0.000000e+00> : vector<16x512xf32>
    %4 = tpu.matmul %3, %1, %cst {dimension_numbers = #tpu.dot_dimension_numbers<[1], [0], [0], [1], [0, 0, 1, 1], [], []>} : vector<16x32xbf16>, vector<32x512xbf16>, vector<16x512xf32> -> vector<16x512xf32>
    %c0_5 = arith.constant 0 : index
    %c0_6 = arith.constant 0 : index
    %c5 = arith.constant 5 : index
    %5 = vector.load %arg2[%c0_5, %c0_6, %c5] : memref<1x32x782xbf16, #tpu.memory_space<vmem>>, vector<1x32x512xbf16>
    %6 = vector.shape_cast %5 : vector<1x32x512xbf16> to vector<32x512xbf16>
    %c1 = arith.constant 1 : index
    %c0_7 = arith.constant 0 : index
    %c0_8 = arith.constant 0 : index
    %7 = vector.load %arg3[%c1, %c0_7, %c0_8] : memref<9x16x32xbf16, #tpu.memory_space<vmem>>, vector<1x16x32xbf16>
    %8 = vector.shape_cast %7 : vector<1x16x32xbf16> to vector<16x32xbf16>
    %cst_9 = arith.constant dense<0.000000e+00> : vector<16x512xf32>
    %9 = tpu.matmul %8, %6, %cst_9 {dimension_numbers = #tpu.dot_dimension_numbers<[1], [0], [0], [1], [0, 0, 1, 1], [], []>} : vector<16x32xbf16>, vector<32x512xbf16>, vector<16x512xf32> -> vector<16x512xf32>
    %10 = arith.addf %4, %9 : vector<16x512xf32>
    %c0_10 = arith.constant 0 : index
    %c0_11 = arith.constant 0 : index
    %c10 = arith.constant 10 : index
    %11 = vector.load %arg2[%c0_10, %c0_11, %c10] : memref<1x32x782xbf16, #tpu.memory_space<vmem>>, vector<1x32x512xbf16>
    %12 = vector.shape_cast %11 : vector<1x32x512xbf16> to vector<32x512xbf16>
    %c2 = arith.constant 2 : index
    %c0_12 = arith.constant 0 : index
    %c0_13 = arith.constant 0 : index
    %13 = vector.load %arg3[%c2, %c0_12, %c0_13] : memref<9x16x32xbf16, #tpu.memory_space<vmem>>, vector<1x16x32xbf16>
    %14 = vector.shape_cast %13 : vector<1x16x32xbf16> to vector<16x32xbf16>
    %cst_14 = arith.constant dense<0.000000e+00> : vector<16x512xf32>
    %15 = tpu.matmul %14, %12, %cst_14 {dimension_numbers = #tpu.dot_dimension_numbers<[1], [0], [0], [1], [0, 0, 1, 1], [], []>} : vector<16x32xbf16>, vector<32x512xbf16>, vector<16x512xf32> -> vector<16x512xf32>
    %16 = arith.addf %10, %15 : vector<16x512xf32>
    %c0_15 = arith.constant 0 : index
    %c0_16 = arith.constant 0 : index
    %c130 = arith.constant 130 : index
    %17 = vector.load %arg2[%c0_15, %c0_16, %c130] : memref<1x32x782xbf16, #tpu.memory_space<vmem>>, vector<1x32x512xbf16>
    %18 = vector.shape_cast %17 : vector<1x32x512xbf16> to vector<32x512xbf16>
    %c3 = arith.constant 3 : index
    %c0_17 = arith.constant 0 : index
    %c0_18 = arith.constant 0 : index
    %19 = vector.load %arg3[%c3, %c0_17, %c0_18] : memref<9x16x32xbf16, #tpu.memory_space<vmem>>, vector<1x16x32xbf16>
    %20 = vector.shape_cast %19 : vector<1x16x32xbf16> to vector<16x32xbf16>
    %cst_19 = arith.constant dense<0.000000e+00> : vector<16x512xf32>
    %21 = tpu.matmul %20, %18, %cst_19 {dimension_numbers = #tpu.dot_dimension_numbers<[1], [0], [0], [1], [0, 0, 1, 1], [], []>} : vector<16x32xbf16>, vector<32x512xbf16>, vector<16x512xf32> -> vector<16x512xf32>
    %22 = arith.addf %16, %21 : vector<16x512xf32>
    %c0_20 = arith.constant 0 : index
    %c0_21 = arith.constant 0 : index
    %c135 = arith.constant 135 : index
    %23 = vector.load %arg2[%c0_20, %c0_21, %c135] : memref<1x32x782xbf16, #tpu.memory_space<vmem>>, vector<1x32x512xbf16>
    %24 = vector.shape_cast %23 : vector<1x32x512xbf16> to vector<32x512xbf16>
    %c4 = arith.constant 4 : index
    %c0_22 = arith.constant 0 : index
    %c0_23 = arith.constant 0 : index
    %25 = vector.load %arg3[%c4, %c0_22, %c0_23] : memref<9x16x32xbf16, #tpu.memory_space<vmem>>, vector<1x16x32xbf16>
    %26 = vector.shape_cast %25 : vector<1x16x32xbf16> to vector<16x32xbf16>
    %cst_24 = arith.constant dense<0.000000e+00> : vector<16x512xf32>
    %27 = tpu.matmul %26, %24, %cst_24 {dimension_numbers = #tpu.dot_dimension_numbers<[1], [0], [0], [1], [0, 0, 1, 1], [], []>} : vector<16x32xbf16>, vector<32x512xbf16>, vector<16x512xf32> -> vector<16x512xf32>
    %28 = arith.addf %22, %27 : vector<16x512xf32>
    %c0_25 = arith.constant 0 : index
    %c0_26 = arith.constant 0 : index
    %c140 = arith.constant 140 : index
    %29 = vector.load %arg2[%c0_25, %c0_26, %c140] : memref<1x32x782xbf16, #tpu.memory_space<vmem>>, vector<1x32x512xbf16>
    %30 = vector.shape_cast %29 : vector<1x32x512xbf16> to vector<32x512xbf16>
    %c5_27 = arith.constant 5 : index
    %c0_28 = arith.constant 0 : index
    %c0_29 = arith.constant 0 : index
    %31 = vector.load %arg3[%c5_27, %c0_28, %c0_29] : memref<9x16x32xbf16, #tpu.memory_space<vmem>>, vector<1x16x32xbf16>
    %32 = vector.shape_cast %31 : vector<1x16x32xbf16> to vector<16x32xbf16>
    %cst_30 = arith.constant dense<0.000000e+00> : vector<16x512xf32>
    %33 = tpu.matmul %32, %30, %cst_30 {dimension_numbers = #tpu.dot_dimension_numbers<[1], [0], [0], [1], [0, 0, 1, 1], [], []>} : vector<16x32xbf16>, vector<32x512xbf16>, vector<16x512xf32> -> vector<16x512xf32>
    %34 = arith.addf %28, %33 : vector<16x512xf32>
    %c0_31 = arith.constant 0 : index
    %c0_32 = arith.constant 0 : index
    %c260 = arith.constant 260 : index
    %35 = vector.load %arg2[%c0_31, %c0_32, %c260] : memref<1x32x782xbf16, #tpu.memory_space<vmem>>, vector<1x32x512xbf16>
    %36 = vector.shape_cast %35 : vector<1x32x512xbf16> to vector<32x512xbf16>
    %c6 = arith.constant 6 : index
    %c0_33 = arith.constant 0 : index
    %c0_34 = arith.constant 0 : index
    %37 = vector.load %arg3[%c6, %c0_33, %c0_34] : memref<9x16x32xbf16, #tpu.memory_space<vmem>>, vector<1x16x32xbf16>
    %38 = vector.shape_cast %37 : vector<1x16x32xbf16> to vector<16x32xbf16>
    %cst_35 = arith.constant dense<0.000000e+00> : vector<16x512xf32>
    %39 = tpu.matmul %38, %36, %cst_35 {dimension_numbers = #tpu.dot_dimension_numbers<[1], [0], [0], [1], [0, 0, 1, 1], [], []>} : vector<16x32xbf16>, vector<32x512xbf16>, vector<16x512xf32> -> vector<16x512xf32>
    %40 = arith.addf %34, %39 : vector<16x512xf32>
    %c0_36 = arith.constant 0 : index
    %c0_37 = arith.constant 0 : index
    %c265 = arith.constant 265 : index
    %41 = vector.load %arg2[%c0_36, %c0_37, %c265] : memref<1x32x782xbf16, #tpu.memory_space<vmem>>, vector<1x32x512xbf16>
    %42 = vector.shape_cast %41 : vector<1x32x512xbf16> to vector<32x512xbf16>
    %c7 = arith.constant 7 : index
    %c0_38 = arith.constant 0 : index
    %c0_39 = arith.constant 0 : index
    %43 = vector.load %arg3[%c7, %c0_38, %c0_39] : memref<9x16x32xbf16, #tpu.memory_space<vmem>>, vector<1x16x32xbf16>
    %44 = vector.shape_cast %43 : vector<1x16x32xbf16> to vector<16x32xbf16>
    %cst_40 = arith.constant dense<0.000000e+00> : vector<16x512xf32>
    %45 = tpu.matmul %44, %42, %cst_40 {dimension_numbers = #tpu.dot_dimension_numbers<[1], [0], [0], [1], [0, 0, 1, 1], [], []>} : vector<16x32xbf16>, vector<32x512xbf16>, vector<16x512xf32> -> vector<16x512xf32>
    %46 = arith.addf %40, %45 : vector<16x512xf32>
    %c0_41 = arith.constant 0 : index
    %c0_42 = arith.constant 0 : index
    %c270 = arith.constant 270 : index
    %47 = vector.load %arg2[%c0_41, %c0_42, %c270] : memref<1x32x782xbf16, #tpu.memory_space<vmem>>, vector<1x32x512xbf16>
    %48 = vector.shape_cast %47 : vector<1x32x512xbf16> to vector<32x512xbf16>
    %c8 = arith.constant 8 : index
    %c0_43 = arith.constant 0 : index
    %c0_44 = arith.constant 0 : index
    %49 = vector.load %arg3[%c8, %c0_43, %c0_44] : memref<9x16x32xbf16, #tpu.memory_space<vmem>>, vector<1x16x32xbf16>
    %50 = vector.shape_cast %49 : vector<1x16x32xbf16> to vector<16x32xbf16>
    %cst_45 = arith.constant dense<0.000000e+00> : vector<16x512xf32>
    %51 = tpu.matmul %50, %48, %cst_45 {dimension_numbers = #tpu.dot_dimension_numbers<[1], [0], [0], [1], [0, 0, 1, 1], [], []>} : vector<16x32xbf16>, vector<32x512xbf16>, vector<16x512xf32> -> vector<16x512xf32>
    %52 = arith.addf %46, %51 : vector<16x512xf32>
    %c0_46 = arith.constant 0 : index
    %c0_47 = arith.constant 0 : index
    %53 = vector.load %arg4[%c0_46, %c0_47] : memref<1x512xf32, #tpu.memory_space<vmem>>, vector<1x512xf32>
    %54 = vector.broadcast %53 : vector<1x512xf32> to vector<16x512xf32>
    %55 = arith.mulf %52, %54 : vector<16x512xf32>
    %cst_48 = arith.constant dense<0.000000e+00> : vector<16xf32>
    %56 = vector.multi_reduction <add>, %55, %cst_48 [1] : vector<16x512xf32> to vector<16xf32>
    %57 = vector.shape_cast %56 : vector<16xf32> to vector<16x1xf32>
    %cst_49 = arith.constant 3.906250e-03 : f32
    %58 = vector.broadcast %cst_49 : f32 to vector<16x1xf32>
    %59 = arith.mulf %57, %58 : vector<16x1xf32>
    %60 = arith.mulf %55, %55 : vector<16x512xf32>
    %cst_50 = arith.constant dense<0.000000e+00> : vector<16xf32>
    %61 = vector.multi_reduction <add>, %60, %cst_50 [1] : vector<16x512xf32> to vector<16xf32>
    %62 = vector.shape_cast %61 : vector<16xf32> to vector<16x1xf32>
    %cst_51 = arith.constant 3.906250e-03 : f32
    %63 = vector.broadcast %cst_51 : f32 to vector<16x1xf32>
    %64 = arith.mulf %62, %63 : vector<16x1xf32>
    %65 = arith.mulf %59, %59 : vector<16x1xf32>
    %66 = arith.subf %64, %65 : vector<16x1xf32>
    %67 = vector.broadcast %59 : vector<16x1xf32> to vector<16x512xf32>
    %68 = arith.subf %52, %67 : vector<16x512xf32>
    %cst_52 = arith.constant 0.000000e+00 : f32
    %69 = vector.broadcast %cst_52 : f32 to vector<16x1xf32>
    %70 = arith.maximumf %66, %69 : vector<16x1xf32>
    %cst_53 = arith.constant 9.99999974E-6 : f32
    %71 = vector.broadcast %cst_53 : f32 to vector<16x1xf32>
    %72 = arith.addf %70, %71 : vector<16x1xf32>
    %73 = math.rsqrt %72 : vector<16x1xf32>
    %74 = vector.broadcast %73 : vector<16x1xf32> to vector<16x512xf32>
    %75 = arith.mulf %68, %74 : vector<16x512xf32>
    %cst_54 = arith.constant 0.000000e+00 : f32
    %76 = vector.broadcast %cst_54 : f32 to vector<16x512xf32>
    %77 = arith.cmpf ogt, %75, %76 : vector<16x512xf32>
    %cst_55 = arith.constant 1.000000e-01 : f32
    %78 = vector.broadcast %cst_55 : f32 to vector<16x512xf32>
    %79 = arith.mulf %78, %75 : vector<16x512xf32>
    %80 = arith.select %77, %75, %79 : vector<16x512xi1>, vector<16x512xf32>
    %81 = arith.truncf %80 : vector<16x512xf32> to vector<16x512xbf16>
    %c0_56 = arith.constant 0 : index
    %c0_57 = arith.constant 0 : index
    %c0_58 = arith.constant 0 : index
    %82 = vector.load %arg5[%c0_56, %c0_57, %c0_58] : memref<1x16x512xbf16, #tpu.memory_space<vmem>>, vector<1x16x512xbf16>
    %83 = vector.shape_cast %82 : vector<1x16x512xbf16> to vector<16x512xbf16>
    %84 = vector.shape_cast %81 : vector<16x512xbf16> to vector<1x16x512xbf16>
    tpu.vector_store %arg5[%c0_56, %c0_57, %c0_58], %84 {strides = array<i32>} : memref<1x16x512xbf16, #tpu.memory_space<vmem>>, vector<1x16x512xbf16>,
    return
  }
  func.func @transform_0(%arg0: i32, %arg1: i32) -> (i32, i32, i32) {
    %c0_i32 = arith.constant 0 : i32
    %c0_i32_0 = arith.constant 0 : i32
    %c0_i32_1 = arith.constant 0 : i32
    return %arg0, %c0_i32, %c0_i32_0 : i32, i32, i32
  }
  func.func @transform_1(%arg0: i32, %arg1: i32) -> (i32, i32, i32) {
    %c0_i32 = arith.constant 0 : i32
    %c0_i32_0 = arith.constant 0 : i32
    %c0_i32_1 = arith.constant 0 : i32
    return %c0_i32, %arg1, %c0_i32_0 : i32, i32, i32
  }
  func.func @transform_2(%arg0: i32, %arg1: i32) -> (i32, i32) {
    %c0_i32 = arith.constant 0 : i32
    %c0_i32_0 = arith.constant 0 : i32
    %c0_i32_1 = arith.constant 0 : i32
    return %c0_i32, %c0_i32_0 : i32, i32
  }
  func.func @transform_3(%arg0: i32, %arg1: i32) -> (i32, i32, i32) {
    %c0_i32 = arith.constant 0 : i32
    %c0_i32_0 = arith.constant 0 : i32
    return %arg0, %arg1, %c0_i32 : i32, i32, i32
  }
}

module attributes {stable_mosaic.version = 11 : i64} {
  func.func @_conv_in_kernel(%arg0: i32, %arg1: i32, %arg2: memref<1x32x782xbf16, #tpu.memory_space<vmem>>, %arg3: memref<9x16x32xbf16, #tpu.memory_space<vmem>>, %arg4: memref<1x512xf32, #tpu.memory_space<vmem>>, %arg5: memref<1x16x512xbf16, #tpu.memory_space<vmem>>) attributes {dimension_semantics = [#tpu.dimension_semantics<parallel>, #tpu.dimension_semantics<parallel>], iteration_bounds = array<i64: 2, 2>, scalar_prefetch = 0 : i64, scratch_operands = 0 : i64, tpu.core_type = #tpu.core_type<tc>, window_params = [{transform_indices = @transform_0, window_bounds = array<i64: 1, 32, 782>}, {transform_indices = @transform_1, window_bounds = array<i64: 9, 16, 32>}, {pipeline_mode = #tpu.pipeline_mode<synchronous>, transform_indices = @transform_2, window_bounds = array<i64: 1, 512>}, {transform_indices = @transform_3, window_bounds = array<i64: 1, 16, 512>}]} {
    %c0 = arith.constant 0 : index
    %c0_0 = arith.constant 0 : index
    %c0_1 = arith.constant 0 : index
    %0 = vector.load %arg2[%c0, %c0_0, %c0_1] : memref<1x32x782xbf16, #tpu.memory_space<vmem>>, vector<1x32x512xbf16>
    %1 = vector.shape_cast %0 : vector<1x32x512xbf16> to vector<32x512xbf16>
    %c0_2 = arith.constant 0 : index
    %c0_3 = arith.constant 0 : index
    %c0_4 = arith.constant 0 : index
    %2 = vector.load %arg3[%c0_2, %c0_3, %c0_4] : memref<9x16x32xbf16, #tpu.memory_space<vmem>>, vector<1x16x32xbf16>
    %3 = vector.shape_cast %2 : vector<1x16x32xbf16> to vector<16x32xbf16>
    %cst = arith.constant dense<0.000000e+00> : vector<16x512xf32>
    %4 = tpu.matmul %3, %1, %cst {dimension_numbers = #tpu.dot_dimension_numbers<[1], [0], [0], [1], [0, 0, 1, 1], [], []>} : vector<16x32xbf16>, vector<32x512xbf16>, vector<16x512xf32> -> vector<16x512xf32>
    %c0_5 = arith.constant 0 : index
    %c0_6 = arith.constant 0 : index
    %c5 = arith.constant 5 : index
    %5 = vector.load %arg2[%c0_5, %c0_6, %c5] : memref<1x32x782xbf16, #tpu.memory_space<vmem>>, vector<1x32x512xbf16>
    %6 = vector.shape_cast %5 : vector<1x32x512xbf16> to vector<32x512xbf16>
    %c1 = arith.constant 1 : index
    %c0_7 = arith.constant 0 : index
    %c0_8 = arith.constant 0 : index
    %7 = vector.load %arg3[%c1, %c0_7, %c0_8] : memref<9x16x32xbf16, #tpu.memory_space<vmem>>, vector<1x16x32xbf16>
    %8 = vector.shape_cast %7 : vector<1x16x32xbf16> to vector<16x32xbf16>
    %cst_9 = arith.constant dense<0.000000e+00> : vector<16x512xf32>
    %9 = tpu.matmul %8, %6, %cst_9 {dimension_numbers = #tpu.dot_dimension_numbers<[1], [0], [0], [1], [0, 0, 1, 1], [], []>} : vector<16x32xbf16>, vector<32x512xbf16>, vector<16x512xf32> -> vector<16x512xf32>
    %10 = arith.addf %4, %9 : vector<16x512xf32>
    %c0_10 = arith.constant 0 : index
    %c0_11 = arith.constant 0 : index
    %c10 = arith.constant 10 : index
    %11 = vector.load %arg2[%c0_10, %c0_11, %c10] : memref<1x32x782xbf16, #tpu.memory_space<vmem>>, vector<1x32x512xbf16>
    %12 = vector.shape_cast %11 : vector<1x32x512xbf16> to vector<32x512xbf16>
    %c2 = arith.constant 2 : index
    %c0_12 = arith.constant 0 : index
    %c0_13 = arith.constant 0 : index
    %13 = vector.load %arg3[%c2, %c0_12, %c0_13] : memref<9x16x32xbf16, #tpu.memory_space<vmem>>, vector<1x16x32xbf16>
    %14 = vector.shape_cast %13 : vector<1x16x32xbf16> to vector<16x32xbf16>
    %cst_14 = arith.constant dense<0.000000e+00> : vector<16x512xf32>
    %15 = tpu.matmul %14, %12, %cst_14 {dimension_numbers = #tpu.dot_dimension_numbers<[1], [0], [0], [1], [0, 0, 1, 1], [], []>} : vector<16x32xbf16>, vector<32x512xbf16>, vector<16x512xf32> -> vector<16x512xf32>
    %16 = arith.addf %10, %15 : vector<16x512xf32>
    %c0_15 = arith.constant 0 : index
    %c0_16 = arith.constant 0 : index
    %c130 = arith.constant 130 : index
    %17 = vector.load %arg2[%c0_15, %c0_16, %c130] : memref<1x32x782xbf16, #tpu.memory_space<vmem>>, vector<1x32x512xbf16>
    %18 = vector.shape_cast %17 : vector<1x32x512xbf16> to vector<32x512xbf16>
    %c3 = arith.constant 3 : index
    %c0_17 = arith.constant 0 : index
    %c0_18 = arith.constant 0 : index
    %19 = vector.load %arg3[%c3, %c0_17, %c0_18] : memref<9x16x32xbf16, #tpu.memory_space<vmem>>, vector<1x16x32xbf16>
    %20 = vector.shape_cast %19 : vector<1x16x32xbf16> to vector<16x32xbf16>
    %cst_19 = arith.constant dense<0.000000e+00> : vector<16x512xf32>
    %21 = tpu.matmul %20, %18, %cst_19 {dimension_numbers = #tpu.dot_dimension_numbers<[1], [0], [0], [1], [0, 0, 1, 1], [], []>} : vector<16x32xbf16>, vector<32x512xbf16>, vector<16x512xf32> -> vector<16x512xf32>
    %22 = arith.addf %16, %21 : vector<16x512xf32>
    %c0_20 = arith.constant 0 : index
    %c0_21 = arith.constant 0 : index
    %c135 = arith.constant 135 : index
    %23 = vector.load %arg2[%c0_20, %c0_21, %c135] : memref<1x32x782xbf16, #tpu.memory_space<vmem>>, vector<1x32x512xbf16>
    %24 = vector.shape_cast %23 : vector<1x32x512xbf16> to vector<32x512xbf16>
    %c4 = arith.constant 4 : index
    %c0_22 = arith.constant 0 : index
    %c0_23 = arith.constant 0 : index
    %25 = vector.load %arg3[%c4, %c0_22, %c0_23] : memref<9x16x32xbf16, #tpu.memory_space<vmem>>, vector<1x16x32xbf16>
    %26 = vector.shape_cast %25 : vector<1x16x32xbf16> to vector<16x32xbf16>
    %cst_24 = arith.constant dense<0.000000e+00> : vector<16x512xf32>
    %27 = tpu.matmul %26, %24, %cst_24 {dimension_numbers = #tpu.dot_dimension_numbers<[1], [0], [0], [1], [0, 0, 1, 1], [], []>} : vector<16x32xbf16>, vector<32x512xbf16>, vector<16x512xf32> -> vector<16x512xf32>
    %28 = arith.addf %22, %27 : vector<16x512xf32>
    %c0_25 = arith.constant 0 : index
    %c0_26 = arith.constant 0 : index
    %c140 = arith.constant 140 : index
    %29 = vector.load %arg2[%c0_25, %c0_26, %c140] : memref<1x32x782xbf16, #tpu.memory_space<vmem>>, vector<1x32x512xbf16>
    %30 = vector.shape_cast %29 : vector<1x32x512xbf16> to vector<32x512xbf16>
    %c5_27 = arith.constant 5 : index
    %c0_28 = arith.constant 0 : index
    %c0_29 = arith.constant 0 : index
    %31 = vector.load %arg3[%c5_27, %c0_28, %c0_29] : memref<9x16x32xbf16, #tpu.memory_space<vmem>>, vector<1x16x32xbf16>
    %32 = vector.shape_cast %31 : vector<1x16x32xbf16> to vector<16x32xbf16>
    %cst_30 = arith.constant dense<0.000000e+00> : vector<16x512xf32>
    %33 = tpu.matmul %32, %30, %cst_30 {dimension_numbers = #tpu.dot_dimension_numbers<[1], [0], [0], [1], [0, 0, 1, 1], [], []>} : vector<16x32xbf16>, vector<32x512xbf16>, vector<16x512xf32> -> vector<16x512xf32>
    %34 = arith.addf %28, %33 : vector<16x512xf32>
    %c0_31 = arith.constant 0 : index
    %c0_32 = arith.constant 0 : index
    %c260 = arith.constant 260 : index
    %35 = vector.load %arg2[%c0_31, %c0_32, %c260] : memref<1x32x782xbf16, #tpu.memory_space<vmem>>, vector<1x32x512xbf16>
    %36 = vector.shape_cast %35 : vector<1x32x512xbf16> to vector<32x512xbf16>
    %c6 = arith.constant 6 : index
    %c0_33 = arith.constant 0 : index
    %c0_34 = arith.constant 0 : index
    %37 = vector.load %arg3[%c6, %c0_33, %c0_34] : memref<9x16x32xbf16, #tpu.memory_space<vmem>>, vector<1x16x32xbf16>
    %38 = vector.shape_cast %37 : vector<1x16x32xbf16> to vector<16x32xbf16>
    %cst_35 = arith.constant dense<0.000000e+00> : vector<16x512xf32>
    %39 = tpu.matmul %38, %36, %cst_35 {dimension_numbers = #tpu.dot_dimension_numbers<[1], [0], [0], [1], [0, 0, 1, 1], [], []>} : vector<16x32xbf16>, vector<32x512xbf16>, vector<16x512xf32> -> vector<16x512xf32>
    %40 = arith.addf %34, %39 : vector<16x512xf32>
    %c0_36 = arith.constant 0 : index
    %c0_37 = arith.constant 0 : index
    %c265 = arith.constant 265 : index
    %41 = vector.load %arg2[%c0_36, %c0_37, %c265] : memref<1x32x782xbf16, #tpu.memory_space<vmem>>, vector<1x32x512xbf16>
    %42 = vector.shape_cast %41 : vector<1x32x512xbf16> to vector<32x512xbf16>
    %c7 = arith.constant 7 : index
    %c0_38 = arith.constant 0 : index
    %c0_39 = arith.constant 0 : index
    %43 = vector.load %arg3[%c7, %c0_38, %c0_39] : memref<9x16x32xbf16, #tpu.memory_space<vmem>>, vector<1x16x32xbf16>
    %44 = vector.shape_cast %43 : vector<1x16x32xbf16> to vector<16x32xbf16>
    %cst_40 = arith.constant dense<0.000000e+00> : vector<16x512xf32>
    %45 = tpu.matmul %44, %42, %cst_40 {dimension_numbers = #tpu.dot_dimension_numbers<[1], [0], [0], [1], [0, 0, 1, 1], [], []>} : vector<16x32xbf16>, vector<32x512xbf16>, vector<16x512xf32> -> vector<16x512xf32>
    %46 = arith.addf %40, %45 : vector<16x512xf32>
    %c0_41 = arith.constant 0 : index
    %c0_42 = arith.constant 0 : index
    %c270 = arith.constant 270 : index
    %47 = vector.load %arg2[%c0_41, %c0_42, %c270] : memref<1x32x782xbf16, #tpu.memory_space<vmem>>, vector<1x32x512xbf16>
    %48 = vector.shape_cast %47 : vector<1x32x512xbf16> to vector<32x512xbf16>
    %c8 = arith.constant 8 : index
    %c0_43 = arith.constant 0 : index
    %c0_44 = arith.constant 0 : index
    %49 = vector.load %arg3[%c8, %c0_43, %c0_44] : memref<9x16x32xbf16, #tpu.memory_space<vmem>>, vector<1x16x32xbf16>
    %50 = vector.shape_cast %49 : vector<1x16x32xbf16> to vector<16x32xbf16>
    %cst_45 = arith.constant dense<0.000000e+00> : vector<16x512xf32>
    %51 = tpu.matmul %50, %48, %cst_45 {dimension_numbers = #tpu.dot_dimension_numbers<[1], [0], [0], [1], [0, 0, 1, 1], [], []>} : vector<16x32xbf16>, vector<32x512xbf16>, vector<16x512xf32> -> vector<16x512xf32>
    %52 = arith.addf %46, %51 : vector<16x512xf32>
    %c0_46 = arith.constant 0 : index
    %c0_47 = arith.constant 0 : index
    %53 = vector.load %arg4[%c0_46, %c0_47] : memref<1x512xf32, #tpu.memory_space<vmem>>, vector<1x512xf32>
    %54 = vector.broadcast %53 : vector<1x512xf32> to vector<16x512xf32>
    %55 = arith.mulf %52, %54 : vector<16x512xf32>
    %cst_48 = arith.constant dense<0.000000e+00> : vector<16xf32>
    %56 = vector.multi_reduction <add>, %55, %cst_48 [1] : vector<16x512xf32> to vector<16xf32>
    %57 = vector.shape_cast %56 : vector<16xf32> to vector<16x1xf32>
    %cst_49 = arith.constant 3.906250e-03 : f32
    %58 = vector.broadcast %cst_49 : f32 to vector<16x1xf32>
    %59 = arith.mulf %57, %58 : vector<16x1xf32>
    %60 = arith.mulf %55, %55 : vector<16x512xf32>
    %cst_50 = arith.constant dense<0.000000e+00> : vector<16xf32>
    %61 = vector.multi_reduction <add>, %60, %cst_50 [1] : vector<16x512xf32> to vector<16xf32>
    %62 = vector.shape_cast %61 : vector<16xf32> to vector<16x1xf32>
    %cst_51 = arith.constant 3.906250e-03 : f32
    %63 = vector.broadcast %cst_51 : f32 to vector<16x1xf32>
    %64 = arith.mulf %62, %63 : vector<16x1xf32>
    %65 = arith.mulf %59, %59 : vector<16x1xf32>
    %66 = arith.subf %64, %65 : vector<16x1xf32>
    %67 = vector.broadcast %59 : vector<16x1xf32> to vector<16x512xf32>
    %68 = arith.subf %52, %67 : vector<16x512xf32>
    %cst_52 = arith.constant 0.000000e+00 : f32
    %69 = vector.broadcast %cst_52 : f32 to vector<16x1xf32>
    %70 = arith.maximumf %66, %69 : vector<16x1xf32>
    %cst_53 = arith.constant 9.99999974E-6 : f32
    %71 = vector.broadcast %cst_53 : f32 to vector<16x1xf32>
    %72 = arith.addf %70, %71 : vector<16x1xf32>
    %73 = math.rsqrt %72 : vector<16x1xf32>
    %74 = vector.broadcast %73 : vector<16x1xf32> to vector<16x512xf32>
    %75 = arith.mulf %68, %74 : vector<16x512xf32>
    %76 = arith.truncf %75 : vector<16x512xf32> to vector<16x512xbf16>
    %c0_54 = arith.constant 0 : index
    %c0_55 = arith.constant 0 : index
    %c0_56 = arith.constant 0 : index
    %77 = vector.load %arg5[%c0_54, %c0_55, %c0_56] : memref<1x16x512xbf16, #tpu.memory_space<vmem>>, vector<1x16x512xbf16>
    %78 = vector.shape_cast %77 : vector<1x16x512xbf16> to vector<16x512xbf16>
    %79 = vector.shape_cast %76 : vector<16x512xbf16> to vector<1x16x512xbf16>
    tpu.vector_store %arg5[%c0_54, %c0_55, %c0_56], %79 {strides = array<i32>} : memref<1x16x512xbf16, #tpu.memory_space<vmem>>, vector<1x16x512xbf16>,
    return
  }
  func.func @transform_0(%arg0: i32, %arg1: i32) -> (i32, i32, i32) {
    %c0_i32 = arith.constant 0 : i32
    %c0_i32_0 = arith.constant 0 : i32
    %c0_i32_1 = arith.constant 0 : i32
    return %arg0, %c0_i32, %c0_i32_0 : i32, i32, i32
  }
  func.func @transform_1(%arg0: i32, %arg1: i32) -> (i32, i32, i32) {
    %c0_i32 = arith.constant 0 : i32
    %c0_i32_0 = arith.constant 0 : i32
    %c0_i32_1 = arith.constant 0 : i32
    return %c0_i32, %arg1, %c0_i32_0 : i32, i32, i32
  }
  func.func @transform_2(%arg0: i32, %arg1: i32) -> (i32, i32) {
    %c0_i32 = arith.constant 0 : i32
    %c0_i32_0 = arith.constant 0 : i32
    %c0_i32_1 = arith.constant 0 : i32
    return %c0_i32, %c0_i32_0 : i32, i32
  }
  func.func @transform_3(%arg0: i32, %arg1: i32) -> (i32, i32, i32) {
    %c0_i32 = arith.constant 0 : i32
    %c0_i32_0 = arith.constant 0 : i32
    return %arg0, %arg1, %c0_i32 : i32, i32, i32
  }
}

module attributes {stable_mosaic.version = 11 : i64} {
  func.func @_conv_in_kernel(%arg0: i32, %arg1: i32, %arg2: memref<1x32x522xbf16, #tpu.memory_space<vmem>>, %arg3: memref<9x16x32xbf16, #tpu.memory_space<vmem>>, %arg4: memref<1x384xf32, #tpu.memory_space<vmem>>, %arg5: memref<1x16x384xbf16, #tpu.memory_space<vmem>>) attributes {dimension_semantics = [#tpu.dimension_semantics<parallel>, #tpu.dimension_semantics<parallel>], iteration_bounds = array<i64: 2, 2>, scalar_prefetch = 0 : i64, scratch_operands = 0 : i64, tpu.core_type = #tpu.core_type<tc>, window_params = [{transform_indices = @transform_0, window_bounds = array<i64: 1, 32, 522>}, {transform_indices = @transform_1, window_bounds = array<i64: 9, 16, 32>}, {pipeline_mode = #tpu.pipeline_mode<synchronous>, transform_indices = @transform_2, window_bounds = array<i64: 1, 384>}, {transform_indices = @transform_3, window_bounds = array<i64: 1, 16, 384>}]} {
    %c0 = arith.constant 0 : index
    %c0_0 = arith.constant 0 : index
    %c0_1 = arith.constant 0 : index
    %0 = vector.load %arg2[%c0, %c0_0, %c0_1] : memref<1x32x522xbf16, #tpu.memory_space<vmem>>, vector<1x32x384xbf16>
    %1 = vector.shape_cast %0 : vector<1x32x384xbf16> to vector<32x384xbf16>
    %c0_2 = arith.constant 0 : index
    %c0_3 = arith.constant 0 : index
    %c0_4 = arith.constant 0 : index
    %2 = vector.load %arg3[%c0_2, %c0_3, %c0_4] : memref<9x16x32xbf16, #tpu.memory_space<vmem>>, vector<1x16x32xbf16>
    %3 = vector.shape_cast %2 : vector<1x16x32xbf16> to vector<16x32xbf16>
    %cst = arith.constant dense<0.000000e+00> : vector<16x384xf32>
    %4 = tpu.matmul %3, %1, %cst {dimension_numbers = #tpu.dot_dimension_numbers<[1], [0], [0], [1], [0, 0, 1, 1], [], []>} : vector<16x32xbf16>, vector<32x384xbf16>, vector<16x384xf32> -> vector<16x384xf32>
    %c0_5 = arith.constant 0 : index
    %c0_6 = arith.constant 0 : index
    %c3 = arith.constant 3 : index
    %5 = vector.load %arg2[%c0_5, %c0_6, %c3] : memref<1x32x522xbf16, #tpu.memory_space<vmem>>, vector<1x32x384xbf16>
    %6 = vector.shape_cast %5 : vector<1x32x384xbf16> to vector<32x384xbf16>
    %c1 = arith.constant 1 : index
    %c0_7 = arith.constant 0 : index
    %c0_8 = arith.constant 0 : index
    %7 = vector.load %arg3[%c1, %c0_7, %c0_8] : memref<9x16x32xbf16, #tpu.memory_space<vmem>>, vector<1x16x32xbf16>
    %8 = vector.shape_cast %7 : vector<1x16x32xbf16> to vector<16x32xbf16>
    %cst_9 = arith.constant dense<0.000000e+00> : vector<16x384xf32>
    %9 = tpu.matmul %8, %6, %cst_9 {dimension_numbers = #tpu.dot_dimension_numbers<[1], [0], [0], [1], [0, 0, 1, 1], [], []>} : vector<16x32xbf16>, vector<32x384xbf16>, vector<16x384xf32> -> vector<16x384xf32>
    %10 = arith.addf %4, %9 : vector<16x384xf32>
    %c0_10 = arith.constant 0 : index
    %c0_11 = arith.constant 0 : index
    %c6 = arith.constant 6 : index
    %11 = vector.load %arg2[%c0_10, %c0_11, %c6] : memref<1x32x522xbf16, #tpu.memory_space<vmem>>, vector<1x32x384xbf16>
    %12 = vector.shape_cast %11 : vector<1x32x384xbf16> to vector<32x384xbf16>
    %c2 = arith.constant 2 : index
    %c0_12 = arith.constant 0 : index
    %c0_13 = arith.constant 0 : index
    %13 = vector.load %arg3[%c2, %c0_12, %c0_13] : memref<9x16x32xbf16, #tpu.memory_space<vmem>>, vector<1x16x32xbf16>
    %14 = vector.shape_cast %13 : vector<1x16x32xbf16> to vector<16x32xbf16>
    %cst_14 = arith.constant dense<0.000000e+00> : vector<16x384xf32>
    %15 = tpu.matmul %14, %12, %cst_14 {dimension_numbers = #tpu.dot_dimension_numbers<[1], [0], [0], [1], [0, 0, 1, 1], [], []>} : vector<16x32xbf16>, vector<32x384xbf16>, vector<16x384xf32> -> vector<16x384xf32>
    %16 = arith.addf %10, %15 : vector<16x384xf32>
    %c0_15 = arith.constant 0 : index
    %c0_16 = arith.constant 0 : index
    %c66 = arith.constant 66 : index
    %17 = vector.load %arg2[%c0_15, %c0_16, %c66] : memref<1x32x522xbf16, #tpu.memory_space<vmem>>, vector<1x32x384xbf16>
    %18 = vector.shape_cast %17 : vector<1x32x384xbf16> to vector<32x384xbf16>
    %c3_17 = arith.constant 3 : index
    %c0_18 = arith.constant 0 : index
    %c0_19 = arith.constant 0 : index
    %19 = vector.load %arg3[%c3_17, %c0_18, %c0_19] : memref<9x16x32xbf16, #tpu.memory_space<vmem>>, vector<1x16x32xbf16>
    %20 = vector.shape_cast %19 : vector<1x16x32xbf16> to vector<16x32xbf16>
    %cst_20 = arith.constant dense<0.000000e+00> : vector<16x384xf32>
    %21 = tpu.matmul %20, %18, %cst_20 {dimension_numbers = #tpu.dot_dimension_numbers<[1], [0], [0], [1], [0, 0, 1, 1], [], []>} : vector<16x32xbf16>, vector<32x384xbf16>, vector<16x384xf32> -> vector<16x384xf32>
    %22 = arith.addf %16, %21 : vector<16x384xf32>
    %c0_21 = arith.constant 0 : index
    %c0_22 = arith.constant 0 : index
    %c69 = arith.constant 69 : index
    %23 = vector.load %arg2[%c0_21, %c0_22, %c69] : memref<1x32x522xbf16, #tpu.memory_space<vmem>>, vector<1x32x384xbf16>
    %24 = vector.shape_cast %23 : vector<1x32x384xbf16> to vector<32x384xbf16>
    %c4 = arith.constant 4 : index
    %c0_23 = arith.constant 0 : index
    %c0_24 = arith.constant 0 : index
    %25 = vector.load %arg3[%c4, %c0_23, %c0_24] : memref<9x16x32xbf16, #tpu.memory_space<vmem>>, vector<1x16x32xbf16>
    %26 = vector.shape_cast %25 : vector<1x16x32xbf16> to vector<16x32xbf16>
    %cst_25 = arith.constant dense<0.000000e+00> : vector<16x384xf32>
    %27 = tpu.matmul %26, %24, %cst_25 {dimension_numbers = #tpu.dot_dimension_numbers<[1], [0], [0], [1], [0, 0, 1, 1], [], []>} : vector<16x32xbf16>, vector<32x384xbf16>, vector<16x384xf32> -> vector<16x384xf32>
    %28 = arith.addf %22, %27 : vector<16x384xf32>
    %c0_26 = arith.constant 0 : index
    %c0_27 = arith.constant 0 : index
    %c72 = arith.constant 72 : index
    %29 = vector.load %arg2[%c0_26, %c0_27, %c72] : memref<1x32x522xbf16, #tpu.memory_space<vmem>>, vector<1x32x384xbf16>
    %30 = vector.shape_cast %29 : vector<1x32x384xbf16> to vector<32x384xbf16>
    %c5 = arith.constant 5 : index
    %c0_28 = arith.constant 0 : index
    %c0_29 = arith.constant 0 : index
    %31 = vector.load %arg3[%c5, %c0_28, %c0_29] : memref<9x16x32xbf16, #tpu.memory_space<vmem>>, vector<1x16x32xbf16>
    %32 = vector.shape_cast %31 : vector<1x16x32xbf16> to vector<16x32xbf16>
    %cst_30 = arith.constant dense<0.000000e+00> : vector<16x384xf32>
    %33 = tpu.matmul %32, %30, %cst_30 {dimension_numbers = #tpu.dot_dimension_numbers<[1], [0], [0], [1], [0, 0, 1, 1], [], []>} : vector<16x32xbf16>, vector<32x384xbf16>, vector<16x384xf32> -> vector<16x384xf32>
    %34 = arith.addf %28, %33 : vector<16x384xf32>
    %c0_31 = arith.constant 0 : index
    %c0_32 = arith.constant 0 : index
    %c132 = arith.constant 132 : index
    %35 = vector.load %arg2[%c0_31, %c0_32, %c132] : memref<1x32x522xbf16, #tpu.memory_space<vmem>>, vector<1x32x384xbf16>
    %36 = vector.shape_cast %35 : vector<1x32x384xbf16> to vector<32x384xbf16>
    %c6_33 = arith.constant 6 : index
    %c0_34 = arith.constant 0 : index
    %c0_35 = arith.constant 0 : index
    %37 = vector.load %arg3[%c6_33, %c0_34, %c0_35] : memref<9x16x32xbf16, #tpu.memory_space<vmem>>, vector<1x16x32xbf16>
    %38 = vector.shape_cast %37 : vector<1x16x32xbf16> to vector<16x32xbf16>
    %cst_36 = arith.constant dense<0.000000e+00> : vector<16x384xf32>
    %39 = tpu.matmul %38, %36, %cst_36 {dimension_numbers = #tpu.dot_dimension_numbers<[1], [0], [0], [1], [0, 0, 1, 1], [], []>} : vector<16x32xbf16>, vector<32x384xbf16>, vector<16x384xf32> -> vector<16x384xf32>
    %40 = arith.addf %34, %39 : vector<16x384xf32>
    %c0_37 = arith.constant 0 : index
    %c0_38 = arith.constant 0 : index
    %c135 = arith.constant 135 : index
    %41 = vector.load %arg2[%c0_37, %c0_38, %c135] : memref<1x32x522xbf16, #tpu.memory_space<vmem>>, vector<1x32x384xbf16>
    %42 = vector.shape_cast %41 : vector<1x32x384xbf16> to vector<32x384xbf16>
    %c7 = arith.constant 7 : index
    %c0_39 = arith.constant 0 : index
    %c0_40 = arith.constant 0 : index
    %43 = vector.load %arg3[%c7, %c0_39, %c0_40] : memref<9x16x32xbf16, #tpu.memory_space<vmem>>, vector<1x16x32xbf16>
    %44 = vector.shape_cast %43 : vector<1x16x32xbf16> to vector<16x32xbf16>
    %cst_41 = arith.constant dense<0.000000e+00> : vector<16x384xf32>
    %45 = tpu.matmul %44, %42, %cst_41 {dimension_numbers = #tpu.dot_dimension_numbers<[1], [0], [0], [1], [0, 0, 1, 1], [], []>} : vector<16x32xbf16>, vector<32x384xbf16>, vector<16x384xf32> -> vector<16x384xf32>
    %46 = arith.addf %40, %45 : vector<16x384xf32>
    %c0_42 = arith.constant 0 : index
    %c0_43 = arith.constant 0 : index
    %c138 = arith.constant 138 : index
    %47 = vector.load %arg2[%c0_42, %c0_43, %c138] : memref<1x32x522xbf16, #tpu.memory_space<vmem>>, vector<1x32x384xbf16>
    %48 = vector.shape_cast %47 : vector<1x32x384xbf16> to vector<32x384xbf16>
    %c8 = arith.constant 8 : index
    %c0_44 = arith.constant 0 : index
    %c0_45 = arith.constant 0 : index
    %49 = vector.load %arg3[%c8, %c0_44, %c0_45] : memref<9x16x32xbf16, #tpu.memory_space<vmem>>, vector<1x16x32xbf16>
    %50 = vector.shape_cast %49 : vector<1x16x32xbf16> to vector<16x32xbf16>
    %cst_46 = arith.constant dense<0.000000e+00> : vector<16x384xf32>
    %51 = tpu.matmul %50, %48, %cst_46 {dimension_numbers = #tpu.dot_dimension_numbers<[1], [0], [0], [1], [0, 0, 1, 1], [], []>} : vector<16x32xbf16>, vector<32x384xbf16>, vector<16x384xf32> -> vector<16x384xf32>
    %52 = arith.addf %46, %51 : vector<16x384xf32>
    %c0_47 = arith.constant 0 : index
    %c0_48 = arith.constant 0 : index
    %53 = vector.load %arg4[%c0_47, %c0_48] : memref<1x384xf32, #tpu.memory_space<vmem>>, vector<1x384xf32>
    %54 = vector.broadcast %53 : vector<1x384xf32> to vector<16x384xf32>
    %55 = arith.mulf %52, %54 : vector<16x384xf32>
    %cst_49 = arith.constant dense<0.000000e+00> : vector<16xf32>
    %56 = vector.multi_reduction <add>, %55, %cst_49 [1] : vector<16x384xf32> to vector<16xf32>
    %57 = vector.shape_cast %56 : vector<16xf32> to vector<16x1xf32>
    %cst_50 = arith.constant 3.906250e-03 : f32
    %58 = vector.broadcast %cst_50 : f32 to vector<16x1xf32>
    %59 = arith.mulf %57, %58 : vector<16x1xf32>
    %60 = arith.mulf %55, %55 : vector<16x384xf32>
    %cst_51 = arith.constant dense<0.000000e+00> : vector<16xf32>
    %61 = vector.multi_reduction <add>, %60, %cst_51 [1] : vector<16x384xf32> to vector<16xf32>
    %62 = vector.shape_cast %61 : vector<16xf32> to vector<16x1xf32>
    %cst_52 = arith.constant 3.906250e-03 : f32
    %63 = vector.broadcast %cst_52 : f32 to vector<16x1xf32>
    %64 = arith.mulf %62, %63 : vector<16x1xf32>
    %65 = arith.mulf %59, %59 : vector<16x1xf32>
    %66 = arith.subf %64, %65 : vector<16x1xf32>
    %67 = vector.broadcast %59 : vector<16x1xf32> to vector<16x384xf32>
    %68 = arith.subf %52, %67 : vector<16x384xf32>
    %cst_53 = arith.constant 0.000000e+00 : f32
    %69 = vector.broadcast %cst_53 : f32 to vector<16x1xf32>
    %70 = arith.maximumf %66, %69 : vector<16x1xf32>
    %cst_54 = arith.constant 9.99999974E-6 : f32
    %71 = vector.broadcast %cst_54 : f32 to vector<16x1xf32>
    %72 = arith.addf %70, %71 : vector<16x1xf32>
    %73 = math.rsqrt %72 : vector<16x1xf32>
    %74 = vector.broadcast %73 : vector<16x1xf32> to vector<16x384xf32>
    %75 = arith.mulf %68, %74 : vector<16x384xf32>
    %cst_55 = arith.constant 0.000000e+00 : f32
    %76 = vector.broadcast %cst_55 : f32 to vector<16x384xf32>
    %77 = arith.cmpf ogt, %75, %76 : vector<16x384xf32>
    %cst_56 = arith.constant 1.000000e-01 : f32
    %78 = vector.broadcast %cst_56 : f32 to vector<16x384xf32>
    %79 = arith.mulf %78, %75 : vector<16x384xf32>
    %80 = arith.select %77, %75, %79 : vector<16x384xi1>, vector<16x384xf32>
    %81 = arith.truncf %80 : vector<16x384xf32> to vector<16x384xbf16>
    %c0_57 = arith.constant 0 : index
    %c0_58 = arith.constant 0 : index
    %c0_59 = arith.constant 0 : index
    %82 = vector.load %arg5[%c0_57, %c0_58, %c0_59] : memref<1x16x384xbf16, #tpu.memory_space<vmem>>, vector<1x16x384xbf16>
    %83 = vector.shape_cast %82 : vector<1x16x384xbf16> to vector<16x384xbf16>
    %84 = vector.shape_cast %81 : vector<16x384xbf16> to vector<1x16x384xbf16>
    tpu.vector_store %arg5[%c0_57, %c0_58, %c0_59], %84 {strides = array<i32>} : memref<1x16x384xbf16, #tpu.memory_space<vmem>>, vector<1x16x384xbf16>,
    return
  }
  func.func @transform_0(%arg0: i32, %arg1: i32) -> (i32, i32, i32) {
    %c0_i32 = arith.constant 0 : i32
    %c0_i32_0 = arith.constant 0 : i32
    %c0_i32_1 = arith.constant 0 : i32
    return %arg0, %c0_i32, %c0_i32_0 : i32, i32, i32
  }
  func.func @transform_1(%arg0: i32, %arg1: i32) -> (i32, i32, i32) {
    %c0_i32 = arith.constant 0 : i32
    %c0_i32_0 = arith.constant 0 : i32
    %c0_i32_1 = arith.constant 0 : i32
    return %c0_i32, %arg1, %c0_i32_0 : i32, i32, i32
  }
  func.func @transform_2(%arg0: i32, %arg1: i32) -> (i32, i32) {
    %c0_i32 = arith.constant 0 : i32
    %c0_i32_0 = arith.constant 0 : i32
    %c0_i32_1 = arith.constant 0 : i32
    return %c0_i32, %c0_i32_0 : i32, i32
  }
  func.func @transform_3(%arg0: i32, %arg1: i32) -> (i32, i32, i32) {
    %c0_i32 = arith.constant 0 : i32
    %c0_i32_0 = arith.constant 0 : i32
    return %arg0, %arg1, %c0_i32 : i32, i32, i32
  }
}

module attributes {stable_mosaic.version = 11 : i64} {
  func.func @_conv_in_kernel(%arg0: i32, %arg1: i32, %arg2: memref<1x32x522xbf16, #tpu.memory_space<vmem>>, %arg3: memref<9x16x32xbf16, #tpu.memory_space<vmem>>, %arg4: memref<1x384xf32, #tpu.memory_space<vmem>>, %arg5: memref<1x16x384xbf16, #tpu.memory_space<vmem>>) attributes {dimension_semantics = [#tpu.dimension_semantics<parallel>, #tpu.dimension_semantics<parallel>], iteration_bounds = array<i64: 2, 2>, scalar_prefetch = 0 : i64, scratch_operands = 0 : i64, tpu.core_type = #tpu.core_type<tc>, window_params = [{transform_indices = @transform_0, window_bounds = array<i64: 1, 32, 522>}, {transform_indices = @transform_1, window_bounds = array<i64: 9, 16, 32>}, {pipeline_mode = #tpu.pipeline_mode<synchronous>, transform_indices = @transform_2, window_bounds = array<i64: 1, 384>}, {transform_indices = @transform_3, window_bounds = array<i64: 1, 16, 384>}]} {
    %c0 = arith.constant 0 : index
    %c0_0 = arith.constant 0 : index
    %c0_1 = arith.constant 0 : index
    %0 = vector.load %arg2[%c0, %c0_0, %c0_1] : memref<1x32x522xbf16, #tpu.memory_space<vmem>>, vector<1x32x384xbf16>
    %1 = vector.shape_cast %0 : vector<1x32x384xbf16> to vector<32x384xbf16>
    %c0_2 = arith.constant 0 : index
    %c0_3 = arith.constant 0 : index
    %c0_4 = arith.constant 0 : index
    %2 = vector.load %arg3[%c0_2, %c0_3, %c0_4] : memref<9x16x32xbf16, #tpu.memory_space<vmem>>, vector<1x16x32xbf16>
    %3 = vector.shape_cast %2 : vector<1x16x32xbf16> to vector<16x32xbf16>
    %cst = arith.constant dense<0.000000e+00> : vector<16x384xf32>
    %4 = tpu.matmul %3, %1, %cst {dimension_numbers = #tpu.dot_dimension_numbers<[1], [0], [0], [1], [0, 0, 1, 1], [], []>} : vector<16x32xbf16>, vector<32x384xbf16>, vector<16x384xf32> -> vector<16x384xf32>
    %c0_5 = arith.constant 0 : index
    %c0_6 = arith.constant 0 : index
    %c3 = arith.constant 3 : index
    %5 = vector.load %arg2[%c0_5, %c0_6, %c3] : memref<1x32x522xbf16, #tpu.memory_space<vmem>>, vector<1x32x384xbf16>
    %6 = vector.shape_cast %5 : vector<1x32x384xbf16> to vector<32x384xbf16>
    %c1 = arith.constant 1 : index
    %c0_7 = arith.constant 0 : index
    %c0_8 = arith.constant 0 : index
    %7 = vector.load %arg3[%c1, %c0_7, %c0_8] : memref<9x16x32xbf16, #tpu.memory_space<vmem>>, vector<1x16x32xbf16>
    %8 = vector.shape_cast %7 : vector<1x16x32xbf16> to vector<16x32xbf16>
    %cst_9 = arith.constant dense<0.000000e+00> : vector<16x384xf32>
    %9 = tpu.matmul %8, %6, %cst_9 {dimension_numbers = #tpu.dot_dimension_numbers<[1], [0], [0], [1], [0, 0, 1, 1], [], []>} : vector<16x32xbf16>, vector<32x384xbf16>, vector<16x384xf32> -> vector<16x384xf32>
    %10 = arith.addf %4, %9 : vector<16x384xf32>
    %c0_10 = arith.constant 0 : index
    %c0_11 = arith.constant 0 : index
    %c6 = arith.constant 6 : index
    %11 = vector.load %arg2[%c0_10, %c0_11, %c6] : memref<1x32x522xbf16, #tpu.memory_space<vmem>>, vector<1x32x384xbf16>
    %12 = vector.shape_cast %11 : vector<1x32x384xbf16> to vector<32x384xbf16>
    %c2 = arith.constant 2 : index
    %c0_12 = arith.constant 0 : index
    %c0_13 = arith.constant 0 : index
    %13 = vector.load %arg3[%c2, %c0_12, %c0_13] : memref<9x16x32xbf16, #tpu.memory_space<vmem>>, vector<1x16x32xbf16>
    %14 = vector.shape_cast %13 : vector<1x16x32xbf16> to vector<16x32xbf16>
    %cst_14 = arith.constant dense<0.000000e+00> : vector<16x384xf32>
    %15 = tpu.matmul %14, %12, %cst_14 {dimension_numbers = #tpu.dot_dimension_numbers<[1], [0], [0], [1], [0, 0, 1, 1], [], []>} : vector<16x32xbf16>, vector<32x384xbf16>, vector<16x384xf32> -> vector<16x384xf32>
    %16 = arith.addf %10, %15 : vector<16x384xf32>
    %c0_15 = arith.constant 0 : index
    %c0_16 = arith.constant 0 : index
    %c66 = arith.constant 66 : index
    %17 = vector.load %arg2[%c0_15, %c0_16, %c66] : memref<1x32x522xbf16, #tpu.memory_space<vmem>>, vector<1x32x384xbf16>
    %18 = vector.shape_cast %17 : vector<1x32x384xbf16> to vector<32x384xbf16>
    %c3_17 = arith.constant 3 : index
    %c0_18 = arith.constant 0 : index
    %c0_19 = arith.constant 0 : index
    %19 = vector.load %arg3[%c3_17, %c0_18, %c0_19] : memref<9x16x32xbf16, #tpu.memory_space<vmem>>, vector<1x16x32xbf16>
    %20 = vector.shape_cast %19 : vector<1x16x32xbf16> to vector<16x32xbf16>
    %cst_20 = arith.constant dense<0.000000e+00> : vector<16x384xf32>
    %21 = tpu.matmul %20, %18, %cst_20 {dimension_numbers = #tpu.dot_dimension_numbers<[1], [0], [0], [1], [0, 0, 1, 1], [], []>} : vector<16x32xbf16>, vector<32x384xbf16>, vector<16x384xf32> -> vector<16x384xf32>
    %22 = arith.addf %16, %21 : vector<16x384xf32>
    %c0_21 = arith.constant 0 : index
    %c0_22 = arith.constant 0 : index
    %c69 = arith.constant 69 : index
    %23 = vector.load %arg2[%c0_21, %c0_22, %c69] : memref<1x32x522xbf16, #tpu.memory_space<vmem>>, vector<1x32x384xbf16>
    %24 = vector.shape_cast %23 : vector<1x32x384xbf16> to vector<32x384xbf16>
    %c4 = arith.constant 4 : index
    %c0_23 = arith.constant 0 : index
    %c0_24 = arith.constant 0 : index
    %25 = vector.load %arg3[%c4, %c0_23, %c0_24] : memref<9x16x32xbf16, #tpu.memory_space<vmem>>, vector<1x16x32xbf16>
    %26 = vector.shape_cast %25 : vector<1x16x32xbf16> to vector<16x32xbf16>
    %cst_25 = arith.constant dense<0.000000e+00> : vector<16x384xf32>
    %27 = tpu.matmul %26, %24, %cst_25 {dimension_numbers = #tpu.dot_dimension_numbers<[1], [0], [0], [1], [0, 0, 1, 1], [], []>} : vector<16x32xbf16>, vector<32x384xbf16>, vector<16x384xf32> -> vector<16x384xf32>
    %28 = arith.addf %22, %27 : vector<16x384xf32>
    %c0_26 = arith.constant 0 : index
    %c0_27 = arith.constant 0 : index
    %c72 = arith.constant 72 : index
    %29 = vector.load %arg2[%c0_26, %c0_27, %c72] : memref<1x32x522xbf16, #tpu.memory_space<vmem>>, vector<1x32x384xbf16>
    %30 = vector.shape_cast %29 : vector<1x32x384xbf16> to vector<32x384xbf16>
    %c5 = arith.constant 5 : index
    %c0_28 = arith.constant 0 : index
    %c0_29 = arith.constant 0 : index
    %31 = vector.load %arg3[%c5, %c0_28, %c0_29] : memref<9x16x32xbf16, #tpu.memory_space<vmem>>, vector<1x16x32xbf16>
    %32 = vector.shape_cast %31 : vector<1x16x32xbf16> to vector<16x32xbf16>
    %cst_30 = arith.constant dense<0.000000e+00> : vector<16x384xf32>
    %33 = tpu.matmul %32, %30, %cst_30 {dimension_numbers = #tpu.dot_dimension_numbers<[1], [0], [0], [1], [0, 0, 1, 1], [], []>} : vector<16x32xbf16>, vector<32x384xbf16>, vector<16x384xf32> -> vector<16x384xf32>
    %34 = arith.addf %28, %33 : vector<16x384xf32>
    %c0_31 = arith.constant 0 : index
    %c0_32 = arith.constant 0 : index
    %c132 = arith.constant 132 : index
    %35 = vector.load %arg2[%c0_31, %c0_32, %c132] : memref<1x32x522xbf16, #tpu.memory_space<vmem>>, vector<1x32x384xbf16>
    %36 = vector.shape_cast %35 : vector<1x32x384xbf16> to vector<32x384xbf16>
    %c6_33 = arith.constant 6 : index
    %c0_34 = arith.constant 0 : index
    %c0_35 = arith.constant 0 : index
    %37 = vector.load %arg3[%c6_33, %c0_34, %c0_35] : memref<9x16x32xbf16, #tpu.memory_space<vmem>>, vector<1x16x32xbf16>
    %38 = vector.shape_cast %37 : vector<1x16x32xbf16> to vector<16x32xbf16>
    %cst_36 = arith.constant dense<0.000000e+00> : vector<16x384xf32>
    %39 = tpu.matmul %38, %36, %cst_36 {dimension_numbers = #tpu.dot_dimension_numbers<[1], [0], [0], [1], [0, 0, 1, 1], [], []>} : vector<16x32xbf16>, vector<32x384xbf16>, vector<16x384xf32> -> vector<16x384xf32>
    %40 = arith.addf %34, %39 : vector<16x384xf32>
    %c0_37 = arith.constant 0 : index
    %c0_38 = arith.constant 0 : index
    %c135 = arith.constant 135 : index
    %41 = vector.load %arg2[%c0_37, %c0_38, %c135] : memref<1x32x522xbf16, #tpu.memory_space<vmem>>, vector<1x32x384xbf16>
    %42 = vector.shape_cast %41 : vector<1x32x384xbf16> to vector<32x384xbf16>
    %c7 = arith.constant 7 : index
    %c0_39 = arith.constant 0 : index
    %c0_40 = arith.constant 0 : index
    %43 = vector.load %arg3[%c7, %c0_39, %c0_40] : memref<9x16x32xbf16, #tpu.memory_space<vmem>>, vector<1x16x32xbf16>
    %44 = vector.shape_cast %43 : vector<1x16x32xbf16> to vector<16x32xbf16>
    %cst_41 = arith.constant dense<0.000000e+00> : vector<16x384xf32>
    %45 = tpu.matmul %44, %42, %cst_41 {dimension_numbers = #tpu.dot_dimension_numbers<[1], [0], [0], [1], [0, 0, 1, 1], [], []>} : vector<16x32xbf16>, vector<32x384xbf16>, vector<16x384xf32> -> vector<16x384xf32>
    %46 = arith.addf %40, %45 : vector<16x384xf32>
    %c0_42 = arith.constant 0 : index
    %c0_43 = arith.constant 0 : index
    %c138 = arith.constant 138 : index
    %47 = vector.load %arg2[%c0_42, %c0_43, %c138] : memref<1x32x522xbf16, #tpu.memory_space<vmem>>, vector<1x32x384xbf16>
    %48 = vector.shape_cast %47 : vector<1x32x384xbf16> to vector<32x384xbf16>
    %c8 = arith.constant 8 : index
    %c0_44 = arith.constant 0 : index
    %c0_45 = arith.constant 0 : index
    %49 = vector.load %arg3[%c8, %c0_44, %c0_45] : memref<9x16x32xbf16, #tpu.memory_space<vmem>>, vector<1x16x32xbf16>
    %50 = vector.shape_cast %49 : vector<1x16x32xbf16> to vector<16x32xbf16>
    %cst_46 = arith.constant dense<0.000000e+00> : vector<16x384xf32>
    %51 = tpu.matmul %50, %48, %cst_46 {dimension_numbers = #tpu.dot_dimension_numbers<[1], [0], [0], [1], [0, 0, 1, 1], [], []>} : vector<16x32xbf16>, vector<32x384xbf16>, vector<16x384xf32> -> vector<16x384xf32>
    %52 = arith.addf %46, %51 : vector<16x384xf32>
    %c0_47 = arith.constant 0 : index
    %c0_48 = arith.constant 0 : index
    %53 = vector.load %arg4[%c0_47, %c0_48] : memref<1x384xf32, #tpu.memory_space<vmem>>, vector<1x384xf32>
    %54 = vector.broadcast %53 : vector<1x384xf32> to vector<16x384xf32>
    %55 = arith.mulf %52, %54 : vector<16x384xf32>
    %cst_49 = arith.constant dense<0.000000e+00> : vector<16xf32>
    %56 = vector.multi_reduction <add>, %55, %cst_49 [1] : vector<16x384xf32> to vector<16xf32>
    %57 = vector.shape_cast %56 : vector<16xf32> to vector<16x1xf32>
    %cst_50 = arith.constant 3.906250e-03 : f32
    %58 = vector.broadcast %cst_50 : f32 to vector<16x1xf32>
    %59 = arith.mulf %57, %58 : vector<16x1xf32>
    %60 = arith.mulf %55, %55 : vector<16x384xf32>
    %cst_51 = arith.constant dense<0.000000e+00> : vector<16xf32>
    %61 = vector.multi_reduction <add>, %60, %cst_51 [1] : vector<16x384xf32> to vector<16xf32>
    %62 = vector.shape_cast %61 : vector<16xf32> to vector<16x1xf32>
    %cst_52 = arith.constant 3.906250e-03 : f32
    %63 = vector.broadcast %cst_52 : f32 to vector<16x1xf32>
    %64 = arith.mulf %62, %63 : vector<16x1xf32>
    %65 = arith.mulf %59, %59 : vector<16x1xf32>
    %66 = arith.subf %64, %65 : vector<16x1xf32>
    %67 = vector.broadcast %59 : vector<16x1xf32> to vector<16x384xf32>
    %68 = arith.subf %52, %67 : vector<16x384xf32>
    %cst_53 = arith.constant 0.000000e+00 : f32
    %69 = vector.broadcast %cst_53 : f32 to vector<16x1xf32>
    %70 = arith.maximumf %66, %69 : vector<16x1xf32>
    %cst_54 = arith.constant 9.99999974E-6 : f32
    %71 = vector.broadcast %cst_54 : f32 to vector<16x1xf32>
    %72 = arith.addf %70, %71 : vector<16x1xf32>
    %73 = math.rsqrt %72 : vector<16x1xf32>
    %74 = vector.broadcast %73 : vector<16x1xf32> to vector<16x384xf32>
    %75 = arith.mulf %68, %74 : vector<16x384xf32>
    %76 = arith.truncf %75 : vector<16x384xf32> to vector<16x384xbf16>
    %c0_55 = arith.constant 0 : index
    %c0_56 = arith.constant 0 : index
    %c0_57 = arith.constant 0 : index
    %77 = vector.load %arg5[%c0_55, %c0_56, %c0_57] : memref<1x16x384xbf16, #tpu.memory_space<vmem>>, vector<1x16x384xbf16>
    %78 = vector.shape_cast %77 : vector<1x16x384xbf16> to vector<16x384xbf16>
    %79 = vector.shape_cast %76 : vector<16x384xbf16> to vector<1x16x384xbf16>
    tpu.vector_store %arg5[%c0_55, %c0_56, %c0_57], %79 {strides = array<i32>} : memref<1x16x384xbf16, #tpu.memory_space<vmem>>, vector<1x16x384xbf16>,
    return
  }
  func.func @transform_0(%arg0: i32, %arg1: i32) -> (i32, i32, i32) {
    %c0_i32 = arith.constant 0 : i32
    %c0_i32_0 = arith.constant 0 : i32
    %c0_i32_1 = arith.constant 0 : i32
    return %arg0, %c0_i32, %c0_i32_0 : i32, i32, i32
  }
  func.func @transform_1(%arg0: i32, %arg1: i32) -> (i32, i32, i32) {
    %c0_i32 = arith.constant 0 : i32
    %c0_i32_0 = arith.constant 0 : i32
    %c0_i32_1 = arith.constant 0 : i32
    return %c0_i32, %arg1, %c0_i32_0 : i32, i32, i32
  }
  func.func @transform_2(%arg0: i32, %arg1: i32) -> (i32, i32) {
    %c0_i32 = arith.constant 0 : i32
    %c0_i32_0 = arith.constant 0 : i32
    %c0_i32_1 = arith.constant 0 : i32
    return %c0_i32, %c0_i32_0 : i32, i32
  }
  func.func @transform_3(%arg0: i32, %arg1: i32) -> (i32, i32, i32) {
    %c0_i32 = arith.constant 0 : i32
    %c0_i32_0 = arith.constant 0 : i32
    return %arg0, %arg1, %c0_i32 : i32, i32, i32
  }
}

module attributes {stable_mosaic.version = 11 : i64} {
  func.func @_conv_in_kernel(%arg0: i32, %arg1: i32, %arg2: memref<1x32x422xbf16, #tpu.memory_space<vmem>>, %arg3: memref<9x16x32xbf16, #tpu.memory_space<vmem>>, %arg4: memref<1x384xf32, #tpu.memory_space<vmem>>, %arg5: memref<1x16x384xbf16, #tpu.memory_space<vmem>>) attributes {dimension_semantics = [#tpu.dimension_semantics<parallel>, #tpu.dimension_semantics<parallel>], iteration_bounds = array<i64: 2, 2>, scalar_prefetch = 0 : i64, scratch_operands = 0 : i64, tpu.core_type = #tpu.core_type<tc>, window_params = [{transform_indices = @transform_0, window_bounds = array<i64: 1, 32, 422>}, {transform_indices = @transform_1, window_bounds = array<i64: 9, 16, 32>}, {pipeline_mode = #tpu.pipeline_mode<synchronous>, transform_indices = @transform_2, window_bounds = array<i64: 1, 384>}, {transform_indices = @transform_3, window_bounds = array<i64: 1, 16, 384>}]} {
    %c0 = arith.constant 0 : index
    %c0_0 = arith.constant 0 : index
    %c0_1 = arith.constant 0 : index
    %0 = vector.load %arg2[%c0, %c0_0, %c0_1] : memref<1x32x422xbf16, #tpu.memory_space<vmem>>, vector<1x32x384xbf16>
    %1 = vector.shape_cast %0 : vector<1x32x384xbf16> to vector<32x384xbf16>
    %c0_2 = arith.constant 0 : index
    %c0_3 = arith.constant 0 : index
    %c0_4 = arith.constant 0 : index
    %2 = vector.load %arg3[%c0_2, %c0_3, %c0_4] : memref<9x16x32xbf16, #tpu.memory_space<vmem>>, vector<1x16x32xbf16>
    %3 = vector.shape_cast %2 : vector<1x16x32xbf16> to vector<16x32xbf16>
    %cst = arith.constant dense<0.000000e+00> : vector<16x384xf32>
    %4 = tpu.matmul %3, %1, %cst {dimension_numbers = #tpu.dot_dimension_numbers<[1], [0], [0], [1], [0, 0, 1, 1], [], []>} : vector<16x32xbf16>, vector<32x384xbf16>, vector<16x384xf32> -> vector<16x384xf32>
    %c0_5 = arith.constant 0 : index
    %c0_6 = arith.constant 0 : index
    %c1 = arith.constant 1 : index
    %5 = vector.load %arg2[%c0_5, %c0_6, %c1] : memref<1x32x422xbf16, #tpu.memory_space<vmem>>, vector<1x32x384xbf16>
    %6 = vector.shape_cast %5 : vector<1x32x384xbf16> to vector<32x384xbf16>
    %c1_7 = arith.constant 1 : index
    %c0_8 = arith.constant 0 : index
    %c0_9 = arith.constant 0 : index
    %7 = vector.load %arg3[%c1_7, %c0_8, %c0_9] : memref<9x16x32xbf16, #tpu.memory_space<vmem>>, vector<1x16x32xbf16>
    %8 = vector.shape_cast %7 : vector<1x16x32xbf16> to vector<16x32xbf16>
    %cst_10 = arith.constant dense<0.000000e+00> : vector<16x384xf32>
    %9 = tpu.matmul %8, %6, %cst_10 {dimension_numbers = #tpu.dot_dimension_numbers<[1], [0], [0], [1], [0, 0, 1, 1], [], []>} : vector<16x32xbf16>, vector<32x384xbf16>, vector<16x384xf32> -> vector<16x384xf32>
    %10 = arith.addf %4, %9 : vector<16x384xf32>
    %c0_11 = arith.constant 0 : index
    %c0_12 = arith.constant 0 : index
    %c2 = arith.constant 2 : index
    %11 = vector.load %arg2[%c0_11, %c0_12, %c2] : memref<1x32x422xbf16, #tpu.memory_space<vmem>>, vector<1x32x384xbf16>
    %12 = vector.shape_cast %11 : vector<1x32x384xbf16> to vector<32x384xbf16>
    %c2_13 = arith.constant 2 : index
    %c0_14 = arith.constant 0 : index
    %c0_15 = arith.constant 0 : index
    %13 = vector.load %arg3[%c2_13, %c0_14, %c0_15] : memref<9x16x32xbf16, #tpu.memory_space<vmem>>, vector<1x16x32xbf16>
    %14 = vector.shape_cast %13 : vector<1x16x32xbf16> to vector<16x32xbf16>
    %cst_16 = arith.constant dense<0.000000e+00> : vector<16x384xf32>
    %15 = tpu.matmul %14, %12, %cst_16 {dimension_numbers = #tpu.dot_dimension_numbers<[1], [0], [0], [1], [0, 0, 1, 1], [], []>} : vector<16x32xbf16>, vector<32x384xbf16>, vector<16x384xf32> -> vector<16x384xf32>
    %16 = arith.addf %10, %15 : vector<16x384xf32>
    %c0_17 = arith.constant 0 : index
    %c0_18 = arith.constant 0 : index
    %c18 = arith.constant 18 : index
    %17 = vector.load %arg2[%c0_17, %c0_18, %c18] : memref<1x32x422xbf16, #tpu.memory_space<vmem>>, vector<1x32x384xbf16>
    %18 = vector.shape_cast %17 : vector<1x32x384xbf16> to vector<32x384xbf16>
    %c3 = arith.constant 3 : index
    %c0_19 = arith.constant 0 : index
    %c0_20 = arith.constant 0 : index
    %19 = vector.load %arg3[%c3, %c0_19, %c0_20] : memref<9x16x32xbf16, #tpu.memory_space<vmem>>, vector<1x16x32xbf16>
    %20 = vector.shape_cast %19 : vector<1x16x32xbf16> to vector<16x32xbf16>
    %cst_21 = arith.constant dense<0.000000e+00> : vector<16x384xf32>
    %21 = tpu.matmul %20, %18, %cst_21 {dimension_numbers = #tpu.dot_dimension_numbers<[1], [0], [0], [1], [0, 0, 1, 1], [], []>} : vector<16x32xbf16>, vector<32x384xbf16>, vector<16x384xf32> -> vector<16x384xf32>
    %22 = arith.addf %16, %21 : vector<16x384xf32>
    %c0_22 = arith.constant 0 : index
    %c0_23 = arith.constant 0 : index
    %c19 = arith.constant 19 : index
    %23 = vector.load %arg2[%c0_22, %c0_23, %c19] : memref<1x32x422xbf16, #tpu.memory_space<vmem>>, vector<1x32x384xbf16>
    %24 = vector.shape_cast %23 : vector<1x32x384xbf16> to vector<32x384xbf16>
    %c4 = arith.constant 4 : index
    %c0_24 = arith.constant 0 : index
    %c0_25 = arith.constant 0 : index
    %25 = vector.load %arg3[%c4, %c0_24, %c0_25] : memref<9x16x32xbf16, #tpu.memory_space<vmem>>, vector<1x16x32xbf16>
    %26 = vector.shape_cast %25 : vector<1x16x32xbf16> to vector<16x32xbf16>
    %cst_26 = arith.constant dense<0.000000e+00> : vector<16x384xf32>
    %27 = tpu.matmul %26, %24, %cst_26 {dimension_numbers = #tpu.dot_dimension_numbers<[1], [0], [0], [1], [0, 0, 1, 1], [], []>} : vector<16x32xbf16>, vector<32x384xbf16>, vector<16x384xf32> -> vector<16x384xf32>
    %28 = arith.addf %22, %27 : vector<16x384xf32>
    %c0_27 = arith.constant 0 : index
    %c0_28 = arith.constant 0 : index
    %c20 = arith.constant 20 : index
    %29 = vector.load %arg2[%c0_27, %c0_28, %c20] : memref<1x32x422xbf16, #tpu.memory_space<vmem>>, vector<1x32x384xbf16>
    %30 = vector.shape_cast %29 : vector<1x32x384xbf16> to vector<32x384xbf16>
    %c5 = arith.constant 5 : index
    %c0_29 = arith.constant 0 : index
    %c0_30 = arith.constant 0 : index
    %31 = vector.load %arg3[%c5, %c0_29, %c0_30] : memref<9x16x32xbf16, #tpu.memory_space<vmem>>, vector<1x16x32xbf16>
    %32 = vector.shape_cast %31 : vector<1x16x32xbf16> to vector<16x32xbf16>
    %cst_31 = arith.constant dense<0.000000e+00> : vector<16x384xf32>
    %33 = tpu.matmul %32, %30, %cst_31 {dimension_numbers = #tpu.dot_dimension_numbers<[1], [0], [0], [1], [0, 0, 1, 1], [], []>} : vector<16x32xbf16>, vector<32x384xbf16>, vector<16x384xf32> -> vector<16x384xf32>
    %34 = arith.addf %28, %33 : vector<16x384xf32>
    %c0_32 = arith.constant 0 : index
    %c0_33 = arith.constant 0 : index
    %c36 = arith.constant 36 : index
    %35 = vector.load %arg2[%c0_32, %c0_33, %c36] : memref<1x32x422xbf16, #tpu.memory_space<vmem>>, vector<1x32x384xbf16>
    %36 = vector.shape_cast %35 : vector<1x32x384xbf16> to vector<32x384xbf16>
    %c6 = arith.constant 6 : index
    %c0_34 = arith.constant 0 : index
    %c0_35 = arith.constant 0 : index
    %37 = vector.load %arg3[%c6, %c0_34, %c0_35] : memref<9x16x32xbf16, #tpu.memory_space<vmem>>, vector<1x16x32xbf16>
    %38 = vector.shape_cast %37 : vector<1x16x32xbf16> to vector<16x32xbf16>
    %cst_36 = arith.constant dense<0.000000e+00> : vector<16x384xf32>
    %39 = tpu.matmul %38, %36, %cst_36 {dimension_numbers = #tpu.dot_dimension_numbers<[1], [0], [0], [1], [0, 0, 1, 1], [], []>} : vector<16x32xbf16>, vector<32x384xbf16>, vector<16x384xf32> -> vector<16x384xf32>
    %40 = arith.addf %34, %39 : vector<16x384xf32>
    %c0_37 = arith.constant 0 : index
    %c0_38 = arith.constant 0 : index
    %c37 = arith.constant 37 : index
    %41 = vector.load %arg2[%c0_37, %c0_38, %c37] : memref<1x32x422xbf16, #tpu.memory_space<vmem>>, vector<1x32x384xbf16>
    %42 = vector.shape_cast %41 : vector<1x32x384xbf16> to vector<32x384xbf16>
    %c7 = arith.constant 7 : index
    %c0_39 = arith.constant 0 : index
    %c0_40 = arith.constant 0 : index
    %43 = vector.load %arg3[%c7, %c0_39, %c0_40] : memref<9x16x32xbf16, #tpu.memory_space<vmem>>, vector<1x16x32xbf16>
    %44 = vector.shape_cast %43 : vector<1x16x32xbf16> to vector<16x32xbf16>
    %cst_41 = arith.constant dense<0.000000e+00> : vector<16x384xf32>
    %45 = tpu.matmul %44, %42, %cst_41 {dimension_numbers = #tpu.dot_dimension_numbers<[1], [0], [0], [1], [0, 0, 1, 1], [], []>} : vector<16x32xbf16>, vector<32x384xbf16>, vector<16x384xf32> -> vector<16x384xf32>
    %46 = arith.addf %40, %45 : vector<16x384xf32>
    %c0_42 = arith.constant 0 : index
    %c0_43 = arith.constant 0 : index
    %c38 = arith.constant 38 : index
    %47 = vector.load %arg2[%c0_42, %c0_43, %c38] : memref<1x32x422xbf16, #tpu.memory_space<vmem>>, vector<1x32x384xbf16>
    %48 = vector.shape_cast %47 : vector<1x32x384xbf16> to vector<32x384xbf16>
    %c8 = arith.constant 8 : index
    %c0_44 = arith.constant 0 : index
    %c0_45 = arith.constant 0 : index
    %49 = vector.load %arg3[%c8, %c0_44, %c0_45] : memref<9x16x32xbf16, #tpu.memory_space<vmem>>, vector<1x16x32xbf16>
    %50 = vector.shape_cast %49 : vector<1x16x32xbf16> to vector<16x32xbf16>
    %cst_46 = arith.constant dense<0.000000e+00> : vector<16x384xf32>
    %51 = tpu.matmul %50, %48, %cst_46 {dimension_numbers = #tpu.dot_dimension_numbers<[1], [0], [0], [1], [0, 0, 1, 1], [], []>} : vector<16x32xbf16>, vector<32x384xbf16>, vector<16x384xf32> -> vector<16x384xf32>
    %52 = arith.addf %46, %51 : vector<16x384xf32>
    %c0_47 = arith.constant 0 : index
    %c0_48 = arith.constant 0 : index
    %53 = vector.load %arg4[%c0_47, %c0_48] : memref<1x384xf32, #tpu.memory_space<vmem>>, vector<1x384xf32>
    %54 = vector.broadcast %53 : vector<1x384xf32> to vector<16x384xf32>
    %55 = arith.mulf %52, %54 : vector<16x384xf32>
    %cst_49 = arith.constant dense<0.000000e+00> : vector<16xf32>
    %56 = vector.multi_reduction <add>, %55, %cst_49 [1] : vector<16x384xf32> to vector<16xf32>
    %57 = vector.shape_cast %56 : vector<16xf32> to vector<16x1xf32>
    %cst_50 = arith.constant 3.906250e-03 : f32
    %58 = vector.broadcast %cst_50 : f32 to vector<16x1xf32>
    %59 = arith.mulf %57, %58 : vector<16x1xf32>
    %60 = arith.mulf %55, %55 : vector<16x384xf32>
    %cst_51 = arith.constant dense<0.000000e+00> : vector<16xf32>
    %61 = vector.multi_reduction <add>, %60, %cst_51 [1] : vector<16x384xf32> to vector<16xf32>
    %62 = vector.shape_cast %61 : vector<16xf32> to vector<16x1xf32>
    %cst_52 = arith.constant 3.906250e-03 : f32
    %63 = vector.broadcast %cst_52 : f32 to vector<16x1xf32>
    %64 = arith.mulf %62, %63 : vector<16x1xf32>
    %65 = arith.mulf %59, %59 : vector<16x1xf32>
    %66 = arith.subf %64, %65 : vector<16x1xf32>
    %67 = vector.broadcast %59 : vector<16x1xf32> to vector<16x384xf32>
    %68 = arith.subf %52, %67 : vector<16x384xf32>
    %cst_53 = arith.constant 0.000000e+00 : f32
    %69 = vector.broadcast %cst_53 : f32 to vector<16x1xf32>
    %70 = arith.maximumf %66, %69 : vector<16x1xf32>
    %cst_54 = arith.constant 9.99999974E-6 : f32
    %71 = vector.broadcast %cst_54 : f32 to vector<16x1xf32>
    %72 = arith.addf %70, %71 : vector<16x1xf32>
    %73 = math.rsqrt %72 : vector<16x1xf32>
    %74 = vector.broadcast %73 : vector<16x1xf32> to vector<16x384xf32>
    %75 = arith.mulf %68, %74 : vector<16x384xf32>
    %cst_55 = arith.constant 0.000000e+00 : f32
    %76 = vector.broadcast %cst_55 : f32 to vector<16x384xf32>
    %77 = arith.cmpf ogt, %75, %76 : vector<16x384xf32>
    %cst_56 = arith.constant 1.000000e-01 : f32
    %78 = vector.broadcast %cst_56 : f32 to vector<16x384xf32>
    %79 = arith.mulf %78, %75 : vector<16x384xf32>
    %80 = arith.select %77, %75, %79 : vector<16x384xi1>, vector<16x384xf32>
    %81 = arith.truncf %80 : vector<16x384xf32> to vector<16x384xbf16>
    %c0_57 = arith.constant 0 : index
    %c0_58 = arith.constant 0 : index
    %c0_59 = arith.constant 0 : index
    %82 = vector.load %arg5[%c0_57, %c0_58, %c0_59] : memref<1x16x384xbf16, #tpu.memory_space<vmem>>, vector<1x16x384xbf16>
    %83 = vector.shape_cast %82 : vector<1x16x384xbf16> to vector<16x384xbf16>
    %84 = vector.shape_cast %81 : vector<16x384xbf16> to vector<1x16x384xbf16>
    tpu.vector_store %arg5[%c0_57, %c0_58, %c0_59], %84 {strides = array<i32>} : memref<1x16x384xbf16, #tpu.memory_space<vmem>>, vector<1x16x384xbf16>,
    return
  }
  func.func @transform_0(%arg0: i32, %arg1: i32) -> (i32, i32, i32) {
    %c0_i32 = arith.constant 0 : i32
    %c0_i32_0 = arith.constant 0 : i32
    %c0_i32_1 = arith.constant 0 : i32
    return %arg0, %c0_i32, %c0_i32_0 : i32, i32, i32
  }
  func.func @transform_1(%arg0: i32, %arg1: i32) -> (i32, i32, i32) {
    %c0_i32 = arith.constant 0 : i32
    %c0_i32_0 = arith.constant 0 : i32
    %c0_i32_1 = arith.constant 0 : i32
    return %c0_i32, %arg1, %c0_i32_0 : i32, i32, i32
  }
  func.func @transform_2(%arg0: i32, %arg1: i32) -> (i32, i32) {
    %c0_i32 = arith.constant 0 : i32
    %c0_i32_0 = arith.constant 0 : i32
    %c0_i32_1 = arith.constant 0 : i32
    return %c0_i32, %c0_i32_0 : i32, i32
  }
  func.func @transform_3(%arg0: i32, %arg1: i32) -> (i32, i32, i32) {
    %c0_i32 = arith.constant 0 : i32
    %c0_i32_0 = arith.constant 0 : i32
    return %arg0, %arg1, %c0_i32 : i32, i32, i32
  }
}

module attributes {stable_mosaic.version = 11 : i64} {
  func.func @_conv_in_kernel(%arg0: i32, %arg1: i32, %arg2: memref<1x32x422xbf16, #tpu.memory_space<vmem>>, %arg3: memref<9x16x32xbf16, #tpu.memory_space<vmem>>, %arg4: memref<1x384xf32, #tpu.memory_space<vmem>>, %arg5: memref<1x16x384xbf16, #tpu.memory_space<vmem>>) attributes {dimension_semantics = [#tpu.dimension_semantics<parallel>, #tpu.dimension_semantics<parallel>], iteration_bounds = array<i64: 2, 2>, scalar_prefetch = 0 : i64, scratch_operands = 0 : i64, tpu.core_type = #tpu.core_type<tc>, window_params = [{transform_indices = @transform_0, window_bounds = array<i64: 1, 32, 422>}, {transform_indices = @transform_1, window_bounds = array<i64: 9, 16, 32>}, {pipeline_mode = #tpu.pipeline_mode<synchronous>, transform_indices = @transform_2, window_bounds = array<i64: 1, 384>}, {transform_indices = @transform_3, window_bounds = array<i64: 1, 16, 384>}]} {
    %c0 = arith.constant 0 : index
    %c0_0 = arith.constant 0 : index
    %c0_1 = arith.constant 0 : index
    %0 = vector.load %arg2[%c0, %c0_0, %c0_1] : memref<1x32x422xbf16, #tpu.memory_space<vmem>>, vector<1x32x384xbf16>
    %1 = vector.shape_cast %0 : vector<1x32x384xbf16> to vector<32x384xbf16>
    %c0_2 = arith.constant 0 : index
    %c0_3 = arith.constant 0 : index
    %c0_4 = arith.constant 0 : index
    %2 = vector.load %arg3[%c0_2, %c0_3, %c0_4] : memref<9x16x32xbf16, #tpu.memory_space<vmem>>, vector<1x16x32xbf16>
    %3 = vector.shape_cast %2 : vector<1x16x32xbf16> to vector<16x32xbf16>
    %cst = arith.constant dense<0.000000e+00> : vector<16x384xf32>
    %4 = tpu.matmul %3, %1, %cst {dimension_numbers = #tpu.dot_dimension_numbers<[1], [0], [0], [1], [0, 0, 1, 1], [], []>} : vector<16x32xbf16>, vector<32x384xbf16>, vector<16x384xf32> -> vector<16x384xf32>
    %c0_5 = arith.constant 0 : index
    %c0_6 = arith.constant 0 : index
    %c1 = arith.constant 1 : index
    %5 = vector.load %arg2[%c0_5, %c0_6, %c1] : memref<1x32x422xbf16, #tpu.memory_space<vmem>>, vector<1x32x384xbf16>
    %6 = vector.shape_cast %5 : vector<1x32x384xbf16> to vector<32x384xbf16>
    %c1_7 = arith.constant 1 : index
    %c0_8 = arith.constant 0 : index
    %c0_9 = arith.constant 0 : index
    %7 = vector.load %arg3[%c1_7, %c0_8, %c0_9] : memref<9x16x32xbf16, #tpu.memory_space<vmem>>, vector<1x16x32xbf16>
    %8 = vector.shape_cast %7 : vector<1x16x32xbf16> to vector<16x32xbf16>
    %cst_10 = arith.constant dense<0.000000e+00> : vector<16x384xf32>
    %9 = tpu.matmul %8, %6, %cst_10 {dimension_numbers = #tpu.dot_dimension_numbers<[1], [0], [0], [1], [0, 0, 1, 1], [], []>} : vector<16x32xbf16>, vector<32x384xbf16>, vector<16x384xf32> -> vector<16x384xf32>
    %10 = arith.addf %4, %9 : vector<16x384xf32>
    %c0_11 = arith.constant 0 : index
    %c0_12 = arith.constant 0 : index
    %c2 = arith.constant 2 : index
    %11 = vector.load %arg2[%c0_11, %c0_12, %c2] : memref<1x32x422xbf16, #tpu.memory_space<vmem>>, vector<1x32x384xbf16>
    %12 = vector.shape_cast %11 : vector<1x32x384xbf16> to vector<32x384xbf16>
    %c2_13 = arith.constant 2 : index
    %c0_14 = arith.constant 0 : index
    %c0_15 = arith.constant 0 : index
    %13 = vector.load %arg3[%c2_13, %c0_14, %c0_15] : memref<9x16x32xbf16, #tpu.memory_space<vmem>>, vector<1x16x32xbf16>
    %14 = vector.shape_cast %13 : vector<1x16x32xbf16> to vector<16x32xbf16>
    %cst_16 = arith.constant dense<0.000000e+00> : vector<16x384xf32>
    %15 = tpu.matmul %14, %12, %cst_16 {dimension_numbers = #tpu.dot_dimension_numbers<[1], [0], [0], [1], [0, 0, 1, 1], [], []>} : vector<16x32xbf16>, vector<32x384xbf16>, vector<16x384xf32> -> vector<16x384xf32>
    %16 = arith.addf %10, %15 : vector<16x384xf32>
    %c0_17 = arith.constant 0 : index
    %c0_18 = arith.constant 0 : index
    %c18 = arith.constant 18 : index
    %17 = vector.load %arg2[%c0_17, %c0_18, %c18] : memref<1x32x422xbf16, #tpu.memory_space<vmem>>, vector<1x32x384xbf16>
    %18 = vector.shape_cast %17 : vector<1x32x384xbf16> to vector<32x384xbf16>
    %c3 = arith.constant 3 : index
    %c0_19 = arith.constant 0 : index
    %c0_20 = arith.constant 0 : index
    %19 = vector.load %arg3[%c3, %c0_19, %c0_20] : memref<9x16x32xbf16, #tpu.memory_space<vmem>>, vector<1x16x32xbf16>
    %20 = vector.shape_cast %19 : vector<1x16x32xbf16> to vector<16x32xbf16>
    %cst_21 = arith.constant dense<0.000000e+00> : vector<16x384xf32>
    %21 = tpu.matmul %20, %18, %cst_21 {dimension_numbers = #tpu.dot_dimension_numbers<[1], [0], [0], [1], [0, 0, 1, 1], [], []>} : vector<16x32xbf16>, vector<32x384xbf16>, vector<16x384xf32> -> vector<16x384xf32>
    %22 = arith.addf %16, %21 : vector<16x384xf32>
    %c0_22 = arith.constant 0 : index
    %c0_23 = arith.constant 0 : index
    %c19 = arith.constant 19 : index
    %23 = vector.load %arg2[%c0_22, %c0_23, %c19] : memref<1x32x422xbf16, #tpu.memory_space<vmem>>, vector<1x32x384xbf16>
    %24 = vector.shape_cast %23 : vector<1x32x384xbf16> to vector<32x384xbf16>
    %c4 = arith.constant 4 : index
    %c0_24 = arith.constant 0 : index
    %c0_25 = arith.constant 0 : index
    %25 = vector.load %arg3[%c4, %c0_24, %c0_25] : memref<9x16x32xbf16, #tpu.memory_space<vmem>>, vector<1x16x32xbf16>
    %26 = vector.shape_cast %25 : vector<1x16x32xbf16> to vector<16x32xbf16>
    %cst_26 = arith.constant dense<0.000000e+00> : vector<16x384xf32>
    %27 = tpu.matmul %26, %24, %cst_26 {dimension_numbers = #tpu.dot_dimension_numbers<[1], [0], [0], [1], [0, 0, 1, 1], [], []>} : vector<16x32xbf16>, vector<32x384xbf16>, vector<16x384xf32> -> vector<16x384xf32>
    %28 = arith.addf %22, %27 : vector<16x384xf32>
    %c0_27 = arith.constant 0 : index
    %c0_28 = arith.constant 0 : index
    %c20 = arith.constant 20 : index
    %29 = vector.load %arg2[%c0_27, %c0_28, %c20] : memref<1x32x422xbf16, #tpu.memory_space<vmem>>, vector<1x32x384xbf16>
    %30 = vector.shape_cast %29 : vector<1x32x384xbf16> to vector<32x384xbf16>
    %c5 = arith.constant 5 : index
    %c0_29 = arith.constant 0 : index
    %c0_30 = arith.constant 0 : index
    %31 = vector.load %arg3[%c5, %c0_29, %c0_30] : memref<9x16x32xbf16, #tpu.memory_space<vmem>>, vector<1x16x32xbf16>
    %32 = vector.shape_cast %31 : vector<1x16x32xbf16> to vector<16x32xbf16>
    %cst_31 = arith.constant dense<0.000000e+00> : vector<16x384xf32>
    %33 = tpu.matmul %32, %30, %cst_31 {dimension_numbers = #tpu.dot_dimension_numbers<[1], [0], [0], [1], [0, 0, 1, 1], [], []>} : vector<16x32xbf16>, vector<32x384xbf16>, vector<16x384xf32> -> vector<16x384xf32>
    %34 = arith.addf %28, %33 : vector<16x384xf32>
    %c0_32 = arith.constant 0 : index
    %c0_33 = arith.constant 0 : index
    %c36 = arith.constant 36 : index
    %35 = vector.load %arg2[%c0_32, %c0_33, %c36] : memref<1x32x422xbf16, #tpu.memory_space<vmem>>, vector<1x32x384xbf16>
    %36 = vector.shape_cast %35 : vector<1x32x384xbf16> to vector<32x384xbf16>
    %c6 = arith.constant 6 : index
    %c0_34 = arith.constant 0 : index
    %c0_35 = arith.constant 0 : index
    %37 = vector.load %arg3[%c6, %c0_34, %c0_35] : memref<9x16x32xbf16, #tpu.memory_space<vmem>>, vector<1x16x32xbf16>
    %38 = vector.shape_cast %37 : vector<1x16x32xbf16> to vector<16x32xbf16>
    %cst_36 = arith.constant dense<0.000000e+00> : vector<16x384xf32>
    %39 = tpu.matmul %38, %36, %cst_36 {dimension_numbers = #tpu.dot_dimension_numbers<[1], [0], [0], [1], [0, 0, 1, 1], [], []>} : vector<16x32xbf16>, vector<32x384xbf16>, vector<16x384xf32> -> vector<16x384xf32>
    %40 = arith.addf %34, %39 : vector<16x384xf32>
    %c0_37 = arith.constant 0 : index
    %c0_38 = arith.constant 0 : index
    %c37 = arith.constant 37 : index
    %41 = vector.load %arg2[%c0_37, %c0_38, %c37] : memref<1x32x422xbf16, #tpu.memory_space<vmem>>, vector<1x32x384xbf16>
    %42 = vector.shape_cast %41 : vector<1x32x384xbf16> to vector<32x384xbf16>
    %c7 = arith.constant 7 : index
    %c0_39 = arith.constant 0 : index
    %c0_40 = arith.constant 0 : index
    %43 = vector.load %arg3[%c7, %c0_39, %c0_40] : memref<9x16x32xbf16, #tpu.memory_space<vmem>>, vector<1x16x32xbf16>
    %44 = vector.shape_cast %43 : vector<1x16x32xbf16> to vector<16x32xbf16>
    %cst_41 = arith.constant dense<0.000000e+00> : vector<16x384xf32>
    %45 = tpu.matmul %44, %42, %cst_41 {dimension_numbers = #tpu.dot_dimension_numbers<[1], [0], [0], [1], [0, 0, 1, 1], [], []>} : vector<16x32xbf16>, vector<32x384xbf16>, vector<16x384xf32> -> vector<16x384xf32>
    %46 = arith.addf %40, %45 : vector<16x384xf32>
    %c0_42 = arith.constant 0 : index
    %c0_43 = arith.constant 0 : index
    %c38 = arith.constant 38 : index
    %47 = vector.load %arg2[%c0_42, %c0_43, %c38] : memref<1x32x422xbf16, #tpu.memory_space<vmem>>, vector<1x32x384xbf16>
    %48 = vector.shape_cast %47 : vector<1x32x384xbf16> to vector<32x384xbf16>
    %c8 = arith.constant 8 : index
    %c0_44 = arith.constant 0 : index
    %c0_45 = arith.constant 0 : index
    %49 = vector.load %arg3[%c8, %c0_44, %c0_45] : memref<9x16x32xbf16, #tpu.memory_space<vmem>>, vector<1x16x32xbf16>
    %50 = vector.shape_cast %49 : vector<1x16x32xbf16> to vector<16x32xbf16>
    %cst_46 = arith.constant dense<0.000000e+00> : vector<16x384xf32>
    %51 = tpu.matmul %50, %48, %cst_46 {dimension_numbers = #tpu.dot_dimension_numbers<[1], [0], [0], [1], [0, 0, 1, 1], [], []>} : vector<16x32xbf16>, vector<32x384xbf16>, vector<16x384xf32> -> vector<16x384xf32>
    %52 = arith.addf %46, %51 : vector<16x384xf32>
    %c0_47 = arith.constant 0 : index
    %c0_48 = arith.constant 0 : index
    %53 = vector.load %arg4[%c0_47, %c0_48] : memref<1x384xf32, #tpu.memory_space<vmem>>, vector<1x384xf32>
    %54 = vector.broadcast %53 : vector<1x384xf32> to vector<16x384xf32>
    %55 = arith.mulf %52, %54 : vector<16x384xf32>
    %cst_49 = arith.constant dense<0.000000e+00> : vector<16xf32>
    %56 = vector.multi_reduction <add>, %55, %cst_49 [1] : vector<16x384xf32> to vector<16xf32>
    %57 = vector.shape_cast %56 : vector<16xf32> to vector<16x1xf32>
    %cst_50 = arith.constant 3.906250e-03 : f32
    %58 = vector.broadcast %cst_50 : f32 to vector<16x1xf32>
    %59 = arith.mulf %57, %58 : vector<16x1xf32>
    %60 = arith.mulf %55, %55 : vector<16x384xf32>
    %cst_51 = arith.constant dense<0.000000e+00> : vector<16xf32>
    %61 = vector.multi_reduction <add>, %60, %cst_51 [1] : vector<16x384xf32> to vector<16xf32>
    %62 = vector.shape_cast %61 : vector<16xf32> to vector<16x1xf32>
    %cst_52 = arith.constant 3.906250e-03 : f32
    %63 = vector.broadcast %cst_52 : f32 to vector<16x1xf32>
    %64 = arith.mulf %62, %63 : vector<16x1xf32>
    %65 = arith.mulf %59, %59 : vector<16x1xf32>
    %66 = arith.subf %64, %65 : vector<16x1xf32>
    %67 = vector.broadcast %59 : vector<16x1xf32> to vector<16x384xf32>
    %68 = arith.subf %52, %67 : vector<16x384xf32>
    %cst_53 = arith.constant 0.000000e+00 : f32
    %69 = vector.broadcast %cst_53 : f32 to vector<16x1xf32>
    %70 = arith.maximumf %66, %69 : vector<16x1xf32>
    %cst_54 = arith.constant 9.99999974E-6 : f32
    %71 = vector.broadcast %cst_54 : f32 to vector<16x1xf32>
    %72 = arith.addf %70, %71 : vector<16x1xf32>
    %73 = math.rsqrt %72 : vector<16x1xf32>
    %74 = vector.broadcast %73 : vector<16x1xf32> to vector<16x384xf32>
    %75 = arith.mulf %68, %74 : vector<16x384xf32>
    %76 = arith.truncf %75 : vector<16x384xf32> to vector<16x384xbf16>
    %c0_55 = arith.constant 0 : index
    %c0_56 = arith.constant 0 : index
    %c0_57 = arith.constant 0 : index
    %77 = vector.load %arg5[%c0_55, %c0_56, %c0_57] : memref<1x16x384xbf16, #tpu.memory_space<vmem>>, vector<1x16x384xbf16>
    %78 = vector.shape_cast %77 : vector<1x16x384xbf16> to vector<16x384xbf16>
    %79 = vector.shape_cast %76 : vector<16x384xbf16> to vector<1x16x384xbf16>
    tpu.vector_store %arg5[%c0_55, %c0_56, %c0_57], %79 {strides = array<i32>} : memref<1x16x384xbf16, #tpu.memory_space<vmem>>, vector<1x16x384xbf16>,
    return
  }
  func.func @transform_0(%arg0: i32, %arg1: i32) -> (i32, i32, i32) {
    %c0_i32 = arith.constant 0 : i32
    %c0_i32_0 = arith.constant 0 : i32
    %c0_i32_1 = arith.constant 0 : i32
    return %arg0, %c0_i32, %c0_i32_0 : i32, i32, i32
  }
  func.func @transform_1(%arg0: i32, %arg1: i32) -> (i32, i32, i32) {
    %c0_i32 = arith.constant 0 : i32
    %c0_i32_0 = arith.constant 0 : i32
    %c0_i32_1 = arith.constant 0 : i32
    return %c0_i32, %arg1, %c0_i32_0 : i32, i32, i32
  }
  func.func @transform_2(%arg0: i32, %arg1: i32) -> (i32, i32) {
    %c0_i32 = arith.constant 0 : i32
    %c0_i32_0 = arith.constant 0 : i32
    %c0_i32_1 = arith.constant 0 : i32
    return %c0_i32, %c0_i32_0 : i32, i32
  }
  func.func @transform_3(%arg0: i32, %arg1: i32) -> (i32, i32, i32) {
    %c0_i32 = arith.constant 0 : i32
    %c0_i32_0 = arith.constant 0 : i32
    return %arg0, %arg1, %c0_i32 : i32, i32, i32
  }
}

module attributes {stable_mosaic.version = 11 : i64} {
  func.func @_final_conv_kernel(%arg0: i32, %arg1: i32, %arg2: memref<1x96x422xbf16, #tpu.memory_space<vmem>>, %arg3: memref<1x16x384xf32, #tpu.memory_space<vmem>>, %arg4: memref<9x16x96xbf16, #tpu.memory_space<vmem>>, %arg5: memref<16x1xf32, #tpu.memory_space<vmem>>, %arg6: memref<1x16x384xf32, #tpu.memory_space<vmem>>) attributes {dimension_semantics = [#tpu.dimension_semantics<parallel>, #tpu.dimension_semantics<parallel>], iteration_bounds = array<i64: 2, 2>, scalar_prefetch = 0 : i64, scratch_operands = 0 : i64, tpu.core_type = #tpu.core_type<tc>, window_params = [{transform_indices = @transform_0, window_bounds = array<i64: 1, 96, 422>}, {transform_indices = @transform_1, window_bounds = array<i64: 1, 16, 384>}, {transform_indices = @transform_2, window_bounds = array<i64: 9, 16, 96>}, {transform_indices = @transform_3, window_bounds = array<i64: 16, 1>}, {transform_indices = @transform_4, window_bounds = array<i64: 1, 16, 384>}]} {
    %c0 = arith.constant 0 : index
    %c0_0 = arith.constant 0 : index
    %c0_1 = arith.constant 0 : index
    %0 = vector.load %arg2[%c0, %c0_0, %c0_1] : memref<1x96x422xbf16, #tpu.memory_space<vmem>>, vector<1x96x384xbf16>
    %1 = vector.shape_cast %0 : vector<1x96x384xbf16> to vector<96x384xbf16>
    %c0_2 = arith.constant 0 : index
    %c0_3 = arith.constant 0 : index
    %c0_4 = arith.constant 0 : index
    %2 = vector.load %arg4[%c0_2, %c0_3, %c0_4] : memref<9x16x96xbf16, #tpu.memory_space<vmem>>, vector<1x16x96xbf16>
    %3 = vector.shape_cast %2 : vector<1x16x96xbf16> to vector<16x96xbf16>
    %cst = arith.constant dense<0.000000e+00> : vector<16x384xf32>
    %4 = tpu.matmul %3, %1, %cst {dimension_numbers = #tpu.dot_dimension_numbers<[1], [0], [0], [1], [0, 0, 1, 1], [], []>} : vector<16x96xbf16>, vector<96x384xbf16>, vector<16x384xf32> -> vector<16x384xf32>
    %c0_5 = arith.constant 0 : index
    %c0_6 = arith.constant 0 : index
    %c1 = arith.constant 1 : index
    %5 = vector.load %arg2[%c0_5, %c0_6, %c1] : memref<1x96x422xbf16, #tpu.memory_space<vmem>>, vector<1x96x384xbf16>
    %6 = vector.shape_cast %5 : vector<1x96x384xbf16> to vector<96x384xbf16>
    %c1_7 = arith.constant 1 : index
    %c0_8 = arith.constant 0 : index
    %c0_9 = arith.constant 0 : index
    %7 = vector.load %arg4[%c1_7, %c0_8, %c0_9] : memref<9x16x96xbf16, #tpu.memory_space<vmem>>, vector<1x16x96xbf16>
    %8 = vector.shape_cast %7 : vector<1x16x96xbf16> to vector<16x96xbf16>
    %cst_10 = arith.constant dense<0.000000e+00> : vector<16x384xf32>
    %9 = tpu.matmul %8, %6, %cst_10 {dimension_numbers = #tpu.dot_dimension_numbers<[1], [0], [0], [1], [0, 0, 1, 1], [], []>} : vector<16x96xbf16>, vector<96x384xbf16>, vector<16x384xf32> -> vector<16x384xf32>
    %10 = arith.addf %4, %9 : vector<16x384xf32>
    %c0_11 = arith.constant 0 : index
    %c0_12 = arith.constant 0 : index
    %c2 = arith.constant 2 : index
    %11 = vector.load %arg2[%c0_11, %c0_12, %c2] : memref<1x96x422xbf16, #tpu.memory_space<vmem>>, vector<1x96x384xbf16>
    %12 = vector.shape_cast %11 : vector<1x96x384xbf16> to vector<96x384xbf16>
    %c2_13 = arith.constant 2 : index
    %c0_14 = arith.constant 0 : index
    %c0_15 = arith.constant 0 : index
    %13 = vector.load %arg4[%c2_13, %c0_14, %c0_15] : memref<9x16x96xbf16, #tpu.memory_space<vmem>>, vector<1x16x96xbf16>
    %14 = vector.shape_cast %13 : vector<1x16x96xbf16> to vector<16x96xbf16>
    %cst_16 = arith.constant dense<0.000000e+00> : vector<16x384xf32>
    %15 = tpu.matmul %14, %12, %cst_16 {dimension_numbers = #tpu.dot_dimension_numbers<[1], [0], [0], [1], [0, 0, 1, 1], [], []>} : vector<16x96xbf16>, vector<96x384xbf16>, vector<16x384xf32> -> vector<16x384xf32>
    %16 = arith.addf %10, %15 : vector<16x384xf32>
    %c0_17 = arith.constant 0 : index
    %c0_18 = arith.constant 0 : index
    %c18 = arith.constant 18 : index
    %17 = vector.load %arg2[%c0_17, %c0_18, %c18] : memref<1x96x422xbf16, #tpu.memory_space<vmem>>, vector<1x96x384xbf16>
    %18 = vector.shape_cast %17 : vector<1x96x384xbf16> to vector<96x384xbf16>
    %c3 = arith.constant 3 : index
    %c0_19 = arith.constant 0 : index
    %c0_20 = arith.constant 0 : index
    %19 = vector.load %arg4[%c3, %c0_19, %c0_20] : memref<9x16x96xbf16, #tpu.memory_space<vmem>>, vector<1x16x96xbf16>
    %20 = vector.shape_cast %19 : vector<1x16x96xbf16> to vector<16x96xbf16>
    %cst_21 = arith.constant dense<0.000000e+00> : vector<16x384xf32>
    %21 = tpu.matmul %20, %18, %cst_21 {dimension_numbers = #tpu.dot_dimension_numbers<[1], [0], [0], [1], [0, 0, 1, 1], [], []>} : vector<16x96xbf16>, vector<96x384xbf16>, vector<16x384xf32> -> vector<16x384xf32>
    %22 = arith.addf %16, %21 : vector<16x384xf32>
    %c0_22 = arith.constant 0 : index
    %c0_23 = arith.constant 0 : index
    %c19 = arith.constant 19 : index
    %23 = vector.load %arg2[%c0_22, %c0_23, %c19] : memref<1x96x422xbf16, #tpu.memory_space<vmem>>, vector<1x96x384xbf16>
    %24 = vector.shape_cast %23 : vector<1x96x384xbf16> to vector<96x384xbf16>
    %c4 = arith.constant 4 : index
    %c0_24 = arith.constant 0 : index
    %c0_25 = arith.constant 0 : index
    %25 = vector.load %arg4[%c4, %c0_24, %c0_25] : memref<9x16x96xbf16, #tpu.memory_space<vmem>>, vector<1x16x96xbf16>
    %26 = vector.shape_cast %25 : vector<1x16x96xbf16> to vector<16x96xbf16>
    %cst_26 = arith.constant dense<0.000000e+00> : vector<16x384xf32>
    %27 = tpu.matmul %26, %24, %cst_26 {dimension_numbers = #tpu.dot_dimension_numbers<[1], [0], [0], [1], [0, 0, 1, 1], [], []>} : vector<16x96xbf16>, vector<96x384xbf16>, vector<16x384xf32> -> vector<16x384xf32>
    %28 = arith.addf %22, %27 : vector<16x384xf32>
    %c0_27 = arith.constant 0 : index
    %c0_28 = arith.constant 0 : index
    %c20 = arith.constant 20 : index
    %29 = vector.load %arg2[%c0_27, %c0_28, %c20] : memref<1x96x422xbf16, #tpu.memory_space<vmem>>, vector<1x96x384xbf16>
    %30 = vector.shape_cast %29 : vector<1x96x384xbf16> to vector<96x384xbf16>
    %c5 = arith.constant 5 : index
    %c0_29 = arith.constant 0 : index
    %c0_30 = arith.constant 0 : index
    %31 = vector.load %arg4[%c5, %c0_29, %c0_30] : memref<9x16x96xbf16, #tpu.memory_space<vmem>>, vector<1x16x96xbf16>
    %32 = vector.shape_cast %31 : vector<1x16x96xbf16> to vector<16x96xbf16>
    %cst_31 = arith.constant dense<0.000000e+00> : vector<16x384xf32>
    %33 = tpu.matmul %32, %30, %cst_31 {dimension_numbers = #tpu.dot_dimension_numbers<[1], [0], [0], [1], [0, 0, 1, 1], [], []>} : vector<16x96xbf16>, vector<96x384xbf16>, vector<16x384xf32> -> vector<16x384xf32>
    %34 = arith.addf %28, %33 : vector<16x384xf32>
    %c0_32 = arith.constant 0 : index
    %c0_33 = arith.constant 0 : index
    %c36 = arith.constant 36 : index
    %35 = vector.load %arg2[%c0_32, %c0_33, %c36] : memref<1x96x422xbf16, #tpu.memory_space<vmem>>, vector<1x96x384xbf16>
    %36 = vector.shape_cast %35 : vector<1x96x384xbf16> to vector<96x384xbf16>
    %c6 = arith.constant 6 : index
    %c0_34 = arith.constant 0 : index
    %c0_35 = arith.constant 0 : index
    %37 = vector.load %arg4[%c6, %c0_34, %c0_35] : memref<9x16x96xbf16, #tpu.memory_space<vmem>>, vector<1x16x96xbf16>
    %38 = vector.shape_cast %37 : vector<1x16x96xbf16> to vector<16x96xbf16>
    %cst_36 = arith.constant dense<0.000000e+00> : vector<16x384xf32>
    %39 = tpu.matmul %38, %36, %cst_36 {dimension_numbers = #tpu.dot_dimension_numbers<[1], [0], [0], [1], [0, 0, 1, 1], [], []>} : vector<16x96xbf16>, vector<96x384xbf16>, vector<16x384xf32> -> vector<16x384xf32>
    %40 = arith.addf %34, %39 : vector<16x384xf32>
    %c0_37 = arith.constant 0 : index
    %c0_38 = arith.constant 0 : index
    %c37 = arith.constant 37 : index
    %41 = vector.load %arg2[%c0_37, %c0_38, %c37] : memref<1x96x422xbf16, #tpu.memory_space<vmem>>, vector<1x96x384xbf16>
    %42 = vector.shape_cast %41 : vector<1x96x384xbf16> to vector<96x384xbf16>
    %c7 = arith.constant 7 : index
    %c0_39 = arith.constant 0 : index
    %c0_40 = arith.constant 0 : index
    %43 = vector.load %arg4[%c7, %c0_39, %c0_40] : memref<9x16x96xbf16, #tpu.memory_space<vmem>>, vector<1x16x96xbf16>
    %44 = vector.shape_cast %43 : vector<1x16x96xbf16> to vector<16x96xbf16>
    %cst_41 = arith.constant dense<0.000000e+00> : vector<16x384xf32>
    %45 = tpu.matmul %44, %42, %cst_41 {dimension_numbers = #tpu.dot_dimension_numbers<[1], [0], [0], [1], [0, 0, 1, 1], [], []>} : vector<16x96xbf16>, vector<96x384xbf16>, vector<16x384xf32> -> vector<16x384xf32>
    %46 = arith.addf %40, %45 : vector<16x384xf32>
    %c0_42 = arith.constant 0 : index
    %c0_43 = arith.constant 0 : index
    %c38 = arith.constant 38 : index
    %47 = vector.load %arg2[%c0_42, %c0_43, %c38] : memref<1x96x422xbf16, #tpu.memory_space<vmem>>, vector<1x96x384xbf16>
    %48 = vector.shape_cast %47 : vector<1x96x384xbf16> to vector<96x384xbf16>
    %c8 = arith.constant 8 : index
    %c0_44 = arith.constant 0 : index
    %c0_45 = arith.constant 0 : index
    %49 = vector.load %arg4[%c8, %c0_44, %c0_45] : memref<9x16x96xbf16, #tpu.memory_space<vmem>>, vector<1x16x96xbf16>
    %50 = vector.shape_cast %49 : vector<1x16x96xbf16> to vector<16x96xbf16>
    %cst_46 = arith.constant dense<0.000000e+00> : vector<16x384xf32>
    %51 = tpu.matmul %50, %48, %cst_46 {dimension_numbers = #tpu.dot_dimension_numbers<[1], [0], [0], [1], [0, 0, 1, 1], [], []>} : vector<16x96xbf16>, vector<96x384xbf16>, vector<16x384xf32> -> vector<16x384xf32>
    %52 = arith.addf %46, %51 : vector<16x384xf32>
    %c0_47 = arith.constant 0 : index
    %c0_48 = arith.constant 0 : index
    %53 = vector.load %arg5[%c0_47, %c0_48] : memref<16x1xf32, #tpu.memory_space<vmem>>, vector<16x1xf32>
    %54 = vector.broadcast %53 : vector<16x1xf32> to vector<16x384xf32>
    %55 = arith.addf %52, %54 : vector<16x384xf32>
    %c0_49 = arith.constant 0 : index
    %c0_50 = arith.constant 0 : index
    %c0_51 = arith.constant 0 : index
    %56 = vector.load %arg3[%c0_49, %c0_50, %c0_51] : memref<1x16x384xf32, #tpu.memory_space<vmem>>, vector<1x16x384xf32>
    %57 = vector.shape_cast %56 : vector<1x16x384xf32> to vector<16x384xf32>
    %58 = arith.addf %57, %55 : vector<16x384xf32>
    %c0_52 = arith.constant 0 : index
    %c0_53 = arith.constant 0 : index
    %c0_54 = arith.constant 0 : index
    %59 = vector.load %arg6[%c0_52, %c0_53, %c0_54] : memref<1x16x384xf32, #tpu.memory_space<vmem>>, vector<1x16x384xf32>
    %60 = vector.shape_cast %59 : vector<1x16x384xf32> to vector<16x384xf32>
    %61 = vector.shape_cast %58 : vector<16x384xf32> to vector<1x16x384xf32>
    tpu.vector_store %arg6[%c0_52, %c0_53, %c0_54], %61 {strides = array<i32>} : memref<1x16x384xf32, #tpu.memory_space<vmem>>, vector<1x16x384xf32>,
    return
  }
  func.func @transform_0(%arg0: i32, %arg1: i32) -> (i32, i32, i32) {
    %c0_i32 = arith.constant 0 : i32
    %c0_i32_0 = arith.constant 0 : i32
    %c0_i32_1 = arith.constant 0 : i32
    return %arg0, %c0_i32, %c0_i32_0 : i32, i32, i32
  }
  func.func @transform_1(%arg0: i32, %arg1: i32) -> (i32, i32, i32) {
    %c0_i32 = arith.constant 0 : i32
    %c0_i32_0 = arith.constant 0 : i32
    return %arg0, %arg1, %c0_i32 : i32, i32, i32
  }
  func.func @transform_2(%arg0: i32, %arg1: i32) -> (i32, i32, i32) {
    %c0_i32 = arith.constant 0 : i32
    %c0_i32_0 = arith.constant 0 : i32
    %c0_i32_1 = arith.constant 0 : i32
    return %c0_i32, %arg1, %c0_i32_0 : i32, i32, i32
  }
  func.func @transform_3(%arg0: i32, %arg1: i32) -> (i32, i32) {
    %c0_i32 = arith.constant 0 : i32
    %c0_i32_0 = arith.constant 0 : i32
    return %arg1, %c0_i32 : i32, i32
  }
  func.func @transform_4(%arg0: i32, %arg1: i32) -> (i32, i32, i32) {
    %c0_i32 = arith.constant 0 : i32
    %c0_i32_0 = arith.constant 0 : i32
    return %arg0, %arg1, %c0_i32 : i32, i32, i32
  }
}

</mosaic_0001>

<bundles_post_ra>
// kernel: resnet_block_forward.11
= control target key start
LH: loop header
LB: loop body
LE: loop exit
PB: predicated region body
PF: predicated region fallthrough
CT: control target
= control target key end

     0   :  { %s2106_s12 = smov 0   ;;  %s2108_s13 = smov 0   ;;  %s2590_s0 = inlined_call_operand.vmem [shape: bf16[2,32,782], index: 0, kind: input, shape index: {}]   ;;  %s2591_s1 = inlined_call_operand.vmem [shape: bf16[9,32,32], index: 1, kind: input, shape index: {}]   ;;  %s2592_s2 = inlined_call_operand.vmem [shape: f32[1,512], index: 2, kind: input, shape index: {}]   ;;  %s2593_s3 = inlined_call_operand.vmem [shape: bf16[2,32,512], index: 3, kind: output, shape index: {}]  }
   0x1   :  { %s2110_s14 = smov 0   ;;  %s2112_s15 = smov 0  }
   0x2   :  { %s2114_s16 = smov 0   ;;  %s2116_s17 = smov 0  }
   0x3   :  { %s2118_s18 = smov 0  }
   0x4 LB: > { %s22_s19 = sadd.s32 1, %s2068_s16  ;;  %s25_s20 = sadd.s32 1, %s2072_s17  ;;  %s2076_s18 = sphi %s2118_s18, %s13_s18   ;;  %s2072_s17 = sphi %s2116_s17, %s2599_s17   ;;  %s2068_s16 = sphi %s2114_s16, %s2598_s16   ;;  %s2064_s15 = sphi %s2112_s15, %s2597_s15   ;;  %s2060_s14 = sphi %s2110_s14, %s2596_s14   ;;  %s2056_s13 = sphi %s2108_s13, %s2595_s13   ;;  %s2052_s12 = sphi %s2106_s12, %s2594_s12  }
   0x5   : > { %p23_p0 = scmp.ge.s32.totalorder %s22_s19, 2  ;;  %s58_s21 = sadd.s32 1, %s2056_s13 }
   0x6   : > { %p65_p1 = scmp.ne.s32.totalorder %s2056_s13, %s2052_s12  ;;  %p66_p2 = scmp.eq.s32.totalorder %s2076_s18, 0 }
   0x7   : > { %s2601_s19 = smov (%p23_p0, %s22_s19), 0  ;;  %s2603_s20 = smov (!%p23_p0, %s25_s20), %s2072_s17 }
   0x8   : > { %s55_s22 = ssub.s32 %s2068_s16, %s2601_s19  ;;  %p67_p3 = por %p66_p2, %p65_p1 }
   0x9   : > { %p27_p4 = scmp.ge.s32.totalorder %s2603_s20, 2  ;;  %p56_p5 = scmp.eq.s32.totalorder %s55_s22, 0 }
   0xa   : > { %p1692_p6 = scmp.ge.s32.totalorder %s2076_s18, 4 }
   0xb   : > { %s2605_s20 = smov (%p27_p4, %s2603_s20), 0 }
   0xc   : > { %s2155_s23 = scalar_select %p56_p5, %s2056_s13, %s58_s21  }
   0xd   : > { %143 = sbr.rel (%p1692_p6) target bundleno = 31 (0x1f), region = 20 }
  0x12   : > { %154 = sbr.rel (!%p67_p3) target bundleno = 31 (0x1f), region = 28  ;;  %s156_s24 = sand.u32 (%p67_p3), 1, %s2056_s13  }
  0x13   : > { %s1911_s25 = sshll.u32 (%p67_p3), %s2068_s16, 3  ;;  %s1951_s26 = smul.u32 (%p67_p3), 72, %s156_s24 }
  0x14   : > { %s161_s29 = scalar_lea.vmem (%p67_p3), %s2591_s1, %s1911_s25 }
  0x15   : > { %v178_v0 = vld [vmem:[%s161_s29] sm:$0xff] (%p67_p3)   ;;  %v182_v1 = vld [vmem:[%s161_s29 + $0x10] sm:$0xff] (%p67_p3)   ;;  %s158_s30 = scalar_lea.vmem (%p67_p3), [#allocation2], %s1951_s26 }
  0x16   : > { %v186_v2 = vld [vmem:[%s161_s29 + $0x20] sm:$0xff] (%p67_p3)   ;;  %179 = vst [vmem:[%s158_s30] sm:$0xff] (%p67_p3), %v178_v0   ;;  %v190_v3 = vld [vmem:[%s161_s29 + $0x30] sm:$0xff] (%p67_p3)  }
  0x17   : > { %183 = vst [vmem:[%s158_s30 + $0x8] sm:$0xff] %v182_v1   ;;  %v194_v4 = vld [vmem:[%s161_s29 + $0x40] sm:$0xff]   ;;  %v198_v5 = vld [vmem:[%s161_s29 + $0x50] sm:$0xff]  }
  0x18   : > { %187 = vst [vmem:[%s158_s30 + $0x10] sm:$0xff] %v186_v2   ;;  %v202_v6 = vld [vmem:[%s161_s29 + $0x60] sm:$0xff]   ;;  %v206_v7 = vld [vmem:[%s161_s29 + $0x70] sm:$0xff]  }
  0x19   : > { %191 = vst [vmem:[%s158_s30 + $0x18] sm:$0xff] %v190_v3   ;;  %v210_v8 = vld [vmem:[%s161_s29 + $0x80] sm:$0xff]  }
  0x1a   : > { %195 = vst [vmem:[%s158_s30 + $0x20] sm:$0xff] %v194_v4  }
  0x1b   : > { %199 = vst [vmem:[%s158_s30 + $0x28] sm:$0xff] %v198_v5  }
  0x1c   : > { %203 = vst [vmem:[%s158_s30 + $0x30] sm:$0xff] %v202_v6  }
  0x1d   : > { %207 = vst [vmem:[%s158_s30 + $0x38] sm:$0xff] %v206_v7  }
  0x1e   : > { %211 = vst [vmem:[%s158_s30 + $0x40] sm:$0xff] %v210_v8  }
  0x1f PF: > { %p1695_p7 = scmp.ge.s32.totalorder %s2076_s18, 1  ;;  %p272_p8 = scmp.lt.s32.totalorder %s2076_s18, 5 }
  0x21   : > { %p273_p9 = pnand %p1695_p7, %p272_p8 }
  0x22   : > { %p312_p10 = scmp.lt.s32.totalorder (!%p273_p9), %s2064_s15, 1  ;;  %s2078_s8 = smov (!%p273_p9), 123  }
  0x23   : > { %276 = sbr.rel (%p273_p9) target bundleno = 674 (0x2a2), region = 69  ;;  %s2079_s9 = smov (!%p273_p9), 118  }
  0x24   : > { %s2080_s10 = smov (!%p273_p9), 126   ;;  %s2081_s11 = smov (!%p273_p9), 121  }
  0x25   : > { %s2082_s21 = smov (!%p273_p9), 116   ;;  %s279_s22 = sand.u32 (!%p273_p9), 1, %s2052_s12  }
  0x26   : > { %s1952_s24 = smul.u32 (!%p273_p9), 72, %s279_s22  ;;  %s2083_s25 = smov (!%p273_p9), 124  }
  0x27   : > { %s2084_s26 = smov (!%p273_p9), 119   ;;  %s2085_s27 = smov (!%p273_p9), 114  }
  0x28   : > { %s2607_s15 = smov (!%p312_p10, %s2064_s15), 1  ;;  %vm414_vm0 = vcmask 1006592   ;;  %s2290_s12 = scalar_lea.vmem [#allocation2], %s1952_s24  ;;  %vm431_vm1 = vcmask 261120   ;;  %vm591_vm2 = vcmask 965632   ;;  %vm757_vm3 = vcmask 1031168  }
  0x29   : > { %s1953_s4 = smul.u32 112, %s2607_s15  ;;  %vm869_vm4 = vcmask 990208   ;;  %vm981_vm5 = vcmask 949248   ;;  %vm1147_vm6 = vcmask 1014784   ;;  %vm1259_vm7 = vcmask 973824   ;;  %s1697_s30 = sshll.u32 %s2060_s14, 1 }
  0x2a   : > { %vm1371_vm8 = vcmask 932864   ;;  %p321_p11 = scmp.lt.s32.totalorder %s1697_s30, 3  ;;  %s1699_s5 = sshll.u32 %s2607_s15, 4 }
  0x2b   : > { %s2173_s7 = scalar_lea.vmem %s2590_s0, %s1953_s4 }
  0x2c   : > { %v1745_v9 = vld [vmem:[%s2173_s7 + $0x48] sm:$0xf]  ;;  %v1922_v10 = vld [vmem:[%s2173_s7 + $0x60] sm:$0xf0]  ;;  %v1737_v11 = vld [vmem:[%s2173_s7 + $0x40] sm:$0xf] }
  0x2d   : > { %v1746_v12 = vor.u32 %v1922_v10, %v1745_v9  ;;  %v1919_v13 = vld [vmem:[%s2173_s7 + $0x58] sm:$0xf0]  ;;  %v1913_v15 = vld [vmem:[%s2173_s7 + $0xc] sm:$0xf]  ;;  %v1719_v16 = vld [vmem:[%s2173_s7 + $0x24] sm:$0xf0] }
  0x2e   : > { %v2179_v14 = vor.u32 %v1919_v13, %v1737_v11  ;;  %v1717_v17 = vld [vmem:[%s2173_s7 + $0x8] sm:$0xf]  ;;  %v1915_v18 = vld [vmem:[%s2173_s7 + $0x20] sm:$0xf0]  ;;  %v2188_v19 = vor.u32 %v1913_v15, %v1719_v16  ;;  %v1739_v21 = vld [vmem:[%s2173_s7 + $0x5c] sm:$0xf0] }
  0x2f   : > { %412 = vrot.lane.b32.xlu1 %v1746_v12, %s2078_s8  ;;  %v1917_v20 = vld [vmem:[%s2173_s7 + $0x44] sm:$0xf]  ;;  %v2194_v22 = vor.u32 %v1915_v18, %v1717_v17  ;;  %v1729_v23 = vld [vmem:[%s2173_s7 + $0x38] sm:$0xf]  ;;  %v1918_v24 = vld [vmem:[%s2173_s7 + $0x50] sm:$0xf0] }
  0x30   : > { %408 = vrot.lane.b32.xlu0 %v2179_v14, %s2078_s8  ;;  %400 = vrot.lane.b32.xlu2 %v2188_v19, %s2078_s8  ;;  %v2198_v25 = vor.u32 %v1917_v20, %v1739_v21  ;;  %v2200_v26 = vor.u32 %v1918_v24, %v1729_v23  ;;  %v1725_v27 = vld [vmem:[%s2173_s7 + $0x10] sm:$0xf]  ;;  %v1921_v28 = vld [vmem:[%s2173_s7 + $0x28] sm:$0xf0]  ;;  %s2609_s30 = smov (!%p321_p11, %s1697_s30), 3 }
  0x31   : > { %v1916_v29 = vld [vmem:[%s2173_s7 + $0x3c] sm:$0xf]  ;;  %v1731_v30 = vld [vmem:[%s2173_s7 + $0x54] sm:$0xf0]  ;;  %v1726_v31 = vor.u32 %v1921_v28, %v1725_v27  ;;  %v1709_v32 = vld [vmem:[%s2173_s7] sm:$0xf] }
  0x32   : > { %v1914_v33 = vld [vmem:[%s2173_s7 + $0x18] sm:$0xf0]  ;;  %v2214_v34 = vor.u32 %v1916_v29, %v1731_v30  ;;  %v1912_v36 = vld [vmem:[%s2173_s7 + $0x4] sm:$0xf]  ;;  %v1711_v37 = vld [vmem:[%s2173_s7 + $0x1c] sm:$0xf0] }
  0x33   : > { %v2216_v35 = vor.u32 %v1914_v33, %v1709_v32  ;;  %v2225_v38 = vor.u32 %v1912_v36, %v1711_v37  ;;  %v1805_v39 = vld [vmem:[%s2173_s7 + $0x44] sm:$0xf]  ;;  %v1933_v40 = vld [vmem:[%s2173_s7 + $0x5c] sm:$0xf0]  ;;  %v1813_v42 = vld [vmem:[%s2173_s7 + $0x4c] sm:$0xf] }
  0x34   : > { %v1806_v41 = vor.u32 %v1933_v40, %v1805_v39  ;;  %v1934_v43 = vld [vmem:[%s2173_s7 + $0x64] sm:$0xf0]  ;;  %v1807_v45 = vld [vmem:[%s2173_s7 + $0x60] sm:$0xf0]  ;;  %v1785_v47 = vld [vmem:[%s2173_s7 + $0xc] sm:$0xf] }
  0x35   : > { %v1931_v44 = vld [vmem:[%s2173_s7 + $0x48] sm:$0xf]  ;;  %v1814_v46 = vor.u32 %v1934_v43, %v1813_v42  ;;  %v1797_v51 = vld [vmem:[%s2173_s7 + $0x3c] sm:$0xf]  ;;  %v1932_v52 = vld [vmem:[%s2173_s7 + $0x54] sm:$0xf0] }
  0x36   : > { %v1928_v48 = vld [vmem:[%s2173_s7 + $0x24] sm:$0xf0]  ;;  %v1810_v49 = vor.u32 %v1931_v44, %v1807_v45  ;;  %v1926_v53 = vld [vmem:[%s2173_s7 + $0x10] sm:$0xf]  ;;  %v1787_v54 = vld [vmem:[%s2173_s7 + $0x28] sm:$0xf0]  ;;  %v1798_v55 = vor.u32 %v1932_v52, %v1797_v51 }
  0x37   : > { %398 = vrot.lane.b32.xlu1 %v2194_v22, %s2078_s8  ;;  %v1786_v50 = vor.u32 %v1928_v48, %v1785_v47  ;;  %v1930_v56 = vld [vmem:[%s2173_s7 + $0x40] sm:$0xf]  ;;  %v1799_v57 = vld [vmem:[%s2173_s7 + $0x58] sm:$0xf0]  ;;  %v1790_v58 = vor.u32 %v1926_v53, %v1787_v54  ;;  %v1777_v60 = vld [vmem:[%s2173_s7 + $0x4] sm:$0xf] }
  0x38   : > { %410 = vrot.lane.b32.xlu0 %v2198_v25, %s2078_s8  ;;  %404 = vrot.lane.b32.xlu2 %v2200_v26, %s2078_s8  ;;  %v1802_v59 = vor.u32 %v1930_v56, %v1799_v57  ;;  %v1927_v61 = vld [vmem:[%s2173_s7 + $0x1c] sm:$0xf0]  ;;  %v1793_v62 = vld [vmem:[%s2173_s7 + $0x14] sm:$0xf]  ;;  %s1698_s4 = sshll.u32 %s2609_s30, 2 }
  0x39   : > { %v1929_v63 = vld [vmem:[%s2173_s7 + $0x2c] sm:$0xf0]  ;;  %v1778_v0 = vor.u32 %v1927_v61, %v1777_v60  ;;  %v1925_v1 = vld [vmem:[%s2173_s7 + $0x8] sm:$0xf]  ;;  %v1779_v2 = vld [vmem:[%s2173_s7 + $0x20] sm:$0xf0]  ;;  %s325_s14 = sadd.s32 %s1699_s5, %s1698_s4 }
  0x3a   : > { %v1794_v3 = vor.u32 %v1929_v63, %v1793_v62  ;;  %v1782_v4 = vor.u32 %v1925_v1, %v1779_v2  ;;  %v1875_v16 = vld [vmem:[%s2173_s7 + $0x48] sm:$0xf]  ;;  %v1946_v17 = vld [vmem:[%s2173_s7 + $0x60] sm:$0xf0]  ;;  %v1883_v24 = vld [vmem:[%s2173_s7 + $0x50] sm:$0xf] }
  0x3b   : > { %v2286_v20 = vor.u32 %v1946_v17, %v1875_v16  ;;  %v1923_v23 = vld [vmem:[%s2290_s12 + $0x8] sm:$0xff]  ;;  %v1867_v43 = vld [vmem:[%s2173_s7 + $0x40] sm:$0xf]  ;;  %v1945_v44 = vld [vmem:[%s2173_s7 + $0x58] sm:$0xf0]  ;;  %s1700_s15 = sshll.u32 %s325_s14, 2 }
  0x3c   : > { %v1947_v27 = vld [vmem:[%s2173_s7 + $0x68] sm:$0xf0]  ;;  %v1877_v30 = vld [vmem:[%s2173_s7 + $0x64] sm:$0xf0]  ;;  %v1943_v51 = vld [vmem:[%s2173_s7 + $0x44] sm:$0xf] }
  0x3d   : > { %v1944_v29 = vld [vmem:[%s2173_s7 + $0x4c] sm:$0xf]  ;;  %v2304_v37 = vor.u32 %v1947_v27, %v1883_v24  ;;  %v1940_v56 = vld [vmem:[%s2173_s7 + $0x20] sm:$0xf0] }
  0x3e   : > { %v1941_v39 = vld [vmem:[%s2173_s7 + $0x28] sm:$0xf0]  ;;  %v2309_v40 = vor.u32 %v1944_v29, %v1877_v30 }
  0x3f   : > { %402 = vrot.lane.b32.xlu1 %v1726_v31, %s2078_s8  ;;  %v1920_v57 = vld [vmem:[%s2290_s12] sm:$0xff] }
  0x40   : > { %406 = vrot.lane.b32.xlu0 %v2214_v34, %s2078_s8  ;;  %394 = vrot.lane.b32.xlu2 %v2216_v35, %s2078_s8  ;;  %v1938_v63 = vld [vmem:[%s2173_s7 + $0xc] sm:$0xf] }
  0x47   : > { %585 = vrot.lane.b32.xlu1 %v2179_v14, %s2079_s9 }
  0x48   : > { %396 = vrot.lane.b32.xlu0 %v2225_v38, %s2078_s8  ;;  %587 = vrot.lane.b32.xlu2 %v2198_v25, %s2079_s9  ;;  %s2555_s8 = scalar_lea.vmem %s2593_s3, %s1700_s15 }
  0x4f   : > { %575 = vrot.lane.b32.xlu1 %v2194_v22, %s2079_s9 }
  0x50   : > { %589 = vrot.lane.b32.xlu0 %v1746_v12, %s2079_s9  ;;  %577 = vrot.lane.b32.xlu2 %v2188_v19, %s2079_s9 }
  0x57   : > { %583 = vrot.lane.b32.xlu1 %v2214_v34, %s2079_s9 }
  0x58   : > { %581 = vrot.lane.b32.xlu0 %v2200_v26, %s2079_s9  ;;  %579 = vrot.lane.b32.xlu2 %v1726_v31, %s2079_s9 }
  0x5f   : > { %573 = vrot.lane.b32.xlu1 %v2225_v38, %s2079_s9 }
  0x60   : > { %571 = vrot.lane.b32.xlu0 %v2216_v35, %s2079_s9  ;;  %751 = vrot.lane.b32.xlu2 %v1806_v41, %s2080_s10 }
  0x67   : > { %755 = vrot.lane.b32.xlu1 %v1814_v46, %s2080_s10 }
  0x68   : > { %753 = vrot.lane.b32.xlu0 %v1810_v49, %s2080_s10  ;;  %741 = vrot.lane.b32.xlu2 %v1786_v50, %s2080_s10 }
  0x6f   : > { %747 = vrot.lane.b32.xlu1 %v1798_v55, %s2080_s10 }
  0x70   : > { %743 = vrot.lane.b32.xlu0 %v1790_v58, %s2080_s10  ;;  %749 = vrot.lane.b32.xlu2 %v1802_v59, %s2080_s10 }
  0x77   : > { %737 = vrot.lane.b32.xlu1 %v1778_v0, %s2080_s10 }
  0x78   : > { %745 = vrot.lane.b32.xlu0 %v1794_v3, %s2080_s10  ;;  %739 = vrot.lane.b32.xlu2 %v1782_v4, %s2080_s10 }
  0x7f   : > { %865 = vrot.lane.b32.xlu1 %v1810_v49, %s2081_s11 }
  0x80   : > { %863 = vrot.lane.b32.xlu0 %v1806_v41, %s2081_s11  ;;  %867 = vrot.lane.b32.xlu2 %v1814_v46, %s2081_s11 }
  0x87   : > { %855 = vrot.lane.b32.xlu1 %v1790_v58, %s2081_s11 }
  0x88   : > { %853 = vrot.lane.b32.xlu0 %v1786_v50, %s2081_s11  ;;  %859 = vrot.lane.b32.xlu2 %v1798_v55, %s2081_s11 }
  0x8a   : > { %v401_v5 = vpop.permute.xlu2 %400 }
  0x8f   : > { %857 = vrot.lane.b32.xlu1 %v1794_v3, %s2081_s11 }
  0x90   : > { %861 = vrot.lane.b32.xlu0 %v1802_v59, %s2081_s11  ;;  %849 = vrot.lane.b32.xlu2 %v1778_v0, %s2081_s11 }
  0x92   : > { %v405_v6 = vpop.permute.xlu2 %404 }
  0x97   : > { %975 = vrot.lane.b32.xlu1 %v1806_v41, %s2082_s21 }
  0x98   : > { %851 = vrot.lane.b32.xlu0 %v1782_v4, %s2081_s11  ;;  %977 = vrot.lane.b32.xlu2 %v1810_v49, %s2082_s21 }
  0x9a   : > { %v2269_v7 = vpop.permute.xlu2 %394 }
  0x9f   : > { %965 = vrot.lane.b32.xlu1 %v1786_v50, %s2082_s21  ;;  %v2332_v50 = vor.u32 %v1945_v44, %v1867_v43 }
  0xa0   : > { %979 = vrot.lane.b32.xlu0 %v1814_v46, %s2082_s21  ;;  %967 = vrot.lane.b32.xlu2 %v1790_v58, %s2082_s21  ;;  %v1939_v46 = vld [vmem:[%s2173_s7 + $0x14] sm:$0xf]  ;;  %v1863_v58 = vld [vmem:[%s2173_s7 + $0x18] sm:$0xf] }
  0xa1   : > { %v413_v8 = vpop.permute.xlu1 %412 }
  0xa2   : > { %v409_v9 = vpop.permute.xlu0 %408  ;;  %v2274_v10 = vpop.permute.xlu2 %587 }
  0xa7   : > { %973 = vrot.lane.b32.xlu1 %v1802_v59, %s2082_s21 }
  0xa8   : > { %971 = vrot.lane.b32.xlu0 %v1798_v55, %s2082_s21  ;;  %969 = vrot.lane.b32.xlu2 %v1794_v3, %s2082_s21  ;;  %v1847_v55 = vld [vmem:[%s2173_s7 + $0x8] sm:$0xf] }
  0xa9   : > { %v399_v11 = vpop.permute.xlu1 %398  ;;  %v2363_v62 = vor.u32 %v1940_v56, %v1847_v55 }
  0xaa   : > { %v411_v12 = vpop.permute.xlu0 %410  ;;  %v2284_v18 = vpop.permute.xlu2 %577  ;;  %v417_v21 = vsel %vm414_vm0, %v399_v11, %v401_v5 }
  0xab   : > { %v421_v13 = vsel %vm414_vm0, %v409_v9, %v411_v12  ;;  %v422_v15 = vsel %vm414_vm0, %v411_v12, %v413_v8 }
  0xac   : > { %469 = vmatpush.bf16.msra.mxu2 %v421_v13  ;;  %483 = vmatpush.bf16.msra.mxu3 %v422_v15 }
  0xaf   : > { %963 = vrot.lane.b32.xlu1 %v1782_v4, %s2082_s21 }
  0xb0   : > { %470 = vmatpush.bf16.msra.mxu2 %v417_v21  ;;  %961 = vrot.lane.b32.xlu0 %v1778_v0, %s2082_s21  ;;  %v1849_v0 = vld [vmem:[%s2173_s7 + $0x24] sm:$0xf0] }
  0xb1   : > { %v403_v28 = vpop.permute.xlu1 %402  ;;  %1141 = vrot.lane.b32.xlu2 %v2286_v20, %s2083_s25  ;;  %v2372_v2 = vor.u32 %v1938_v63, %v1849_v0 }
  0xb2   : > { %v407_v31 = vpop.permute.xlu0 %406  ;;  %v418_v32 = vsel %vm414_vm0, %v401_v5, %v403_v28  ;;  %v580_v41 = vpop.permute.xlu2 %579 }
  0xb3   : > { %v419_v33 = vsel %vm414_vm0, %v405_v6, %v407_v31  ;;  %v420_v36 = vsel %vm414_vm0, %v407_v31, %v409_v9  ;;  %484 = vmatpush.bf16.msra.mxu3 %v418_v32  ;;  %1749 = vmatmul.msk.bf16.vlgmr.msra.gmra.mxu2 %vm431_vm1, %v1923_v23  ;;  %v1935_v31 = vld [vmem:[%s2290_s12 + $0x18] sm:$0xff] }
  0xb4   : > { %541 = vmatpush.bf16.msrb.mxu2 %v2179_v14  ;;  %v1855_v14 = vld [vmem:[%s2173_s7 + $0x10] sm:$0xf]  ;;  %441 = vmatpush.bf16.msra.mxu0 %v419_v33 }
  0xb5   : > { %455 = vmatpush.bf16.msra.mxu1 %v420_v36  ;;  %v2314_v42 = vor.u32 %v1941_v39, %v1855_v14 }
  0xb6   : > { %1750 = vmatmul.msk.bf16.vlgmr.msra.gmra.mxu3 %vm431_vm1, %v1923_v23 }
  0xb7   : > { %555 = vmatpush.bf16.msrb.mxu3 %v2198_v25  ;;  %1145 = vrot.lane.b32.xlu1 %v2304_v37, %s2083_s25 }
  0xb8   : > { %542 = vmatpush.bf16.msrb.mxu2 %v2194_v22  ;;  %1143 = vrot.lane.b32.xlu0 %v2309_v40, %s2083_s25  ;;  %v1857_v22 = vld [vmem:[%s2173_s7 + $0x2c] sm:$0xf0] }
  0xb9   : > { %v586_v45 = vpop.permute.xlu1 %585  ;;  %1131 = vrot.lane.b32.xlu2 %v2314_v42, %s2083_s25  ;;  %v2336_v52 = vor.u32 %v1939_v46, %v1857_v22  ;;  %v1936_v22 = vld [vmem:[%s2290_s12 + $0x20] sm:$0xff] }
  0xba   : > { %v598_v25 = vsel %vm591_vm2, %v586_v45, %v2274_v10  ;;  %v397_v47 = vpop.permute.xlu0 %396  ;;  %v2338_v53 = vpop.permute.xlu2 %751 }
  0xbb   : > { %556 = vmatpush.bf16.msrb.mxu3 %v2188_v19  ;;  %v415_v48 = vsel %vm414_vm0, %v2269_v7, %v397_v47  ;;  %v416_v49 = vsel %vm414_vm0, %v397_v47, %v399_v11  ;;  %v1869_v19 = vld [vmem:[%s2173_s7 + $0x5c] sm:$0xf0] }
  0xbc   : > { %645 = vmatpush.bf16.msra.mxu2 %v598_v25  ;;  %442 = vmatpush.bf16.msra.mxu0 %v415_v48  ;;  %v2342_v54 = vor.u32 %v1943_v51, %v1869_v19 }
  0xbd   : > { %456 = vmatpush.bf16.msra.mxu1 %v416_v49 }
  0xbf   : > { %1137 = vrot.lane.b32.xlu1 %v2332_v50, %s2083_s25  ;;  %1747 = vmatmul.msk.bf16.vlgmr.msra.gmra.mxu0 %vm431_vm1, %v1923_v23 }
  0xc0   : > { %513 = vmatpush.bf16.msrb.mxu0 %v2200_v26  ;;  %1133 = vrot.lane.b32.xlu0 %v2336_v52, %s2083_s25 }
  0xc1   : > { %527 = vmatpush.bf16.msrb.mxu1 %v2214_v34  ;;  %v576_v26 = vpop.permute.xlu1 %575  ;;  %v1942_v34 = vld [vmem:[%s2173_s7 + $0x30] sm:$0xf0]  ;;  %1139 = vrot.lane.b32.xlu2 %v2342_v54, %s2083_s25 }
  0xc2   : > { %1748 = vmatmul.msk.bf16.vlgmr.msra.gmra.mxu1 %vm431_vm1, %v1923_v23  ;;  %v590_v59 = vpop.permute.xlu0 %589  ;;  %v594_v60 = vsel %vm591_vm2, %v576_v26, %v2284_v18  ;;  %v2367_v1 = vor.u32 %v1942_v34, %v1863_v58 }
  0xc3   : > { %v599_v61 = vsel %vm591_vm2, %v2274_v10, %v590_v59  ;;  %646 = vmatpush.bf16.msra.mxu2 %v594_v60  ;;  %v1924_v10 = vld [vmem:[%s2290_s12 + $0x10] sm:$0xff]  ;;  %v1937_v59 = vld [vmem:[%s2290_s12 + $0x28] sm:$0xff] }
  0xc4   : > { %514 = vmatpush.bf16.msrb.mxu0 %v2216_v35  ;;  %659 = vmatpush.bf16.msra.mxu3 %v599_v61  ;;  %v742_v35 = vpop.permute.xlu2 %741 }
  0xc5   : > { %528 = vmatpush.bf16.msrb.mxu1 %v2225_v38  ;;  %1757 = vmatmul.msk.bf16.vlgmr.msrb.gmra.mxu2 %vm431_vm1, %v1920_v57  ;;  %v595_v38 = vsel %vm591_vm2, %v2284_v18, %v580_v41 }
  0xc6   : > { %1758 = vmatmul.msk.bf16.vlgmr.msrb.gmra.mxu3 %vm431_vm1, %v1920_v57 }
  0xc7   : > { %1127 = vrot.lane.b32.xlu1 %v2363_v62, %s2083_s25 }
  0xc8   : > { %1135 = vrot.lane.b32.xlu0 %v2367_v1, %s2083_s25  ;;  %660 = vmatpush.bf16.msra.mxu3 %v595_v38 }
  0xc9   : > { %v584_v3 = vpop.permute.xlu1 %583  ;;  %1129 = vrot.lane.b32.xlu2 %v2372_v2, %s2083_s25 }
  0xca   : > { %v597_v4 = vsel %vm591_vm2, %v584_v3, %v586_v45  ;;  %v582_v5 = vpop.permute.xlu0 %581 }
  0xcb   : > { %v596_v6 = vsel %vm591_vm2, %v582_v5, %v584_v3  ;;  %631 = vmatpush.bf16.msra.mxu1 %v597_v4 }
  0xcc   : > { %617 = vmatpush.bf16.msra.mxu0 %v596_v6  ;;  %v750_v7 = vpop.permute.xlu2 %749 }
  0xcd   : > { %v763_v9 = vsel %vm757_vm3, %v750_v7, %v2338_v53 }
  0xcf   : > { %1255 = vrot.lane.b32.xlu1 %v2309_v40, %s2084_s26  ;;  %1755 = vmatmul.msk.bf16.vlgmr.msrb.gmra.mxu0 %vm431_vm1, %v1920_v57 }
  0xd0   : > { %1253 = vrot.lane.b32.xlu0 %v2286_v20, %s2084_s26 }
  0xd1   : > { %v574_v8 = vpop.permute.xlu1 %573  ;;  %1257 = vrot.lane.b32.xlu2 %v2304_v37, %s2084_s26 }
  0xd2   : > { %1756 = vmatmul.msk.bf16.vlgmr.msrb.gmra.mxu1 %vm431_vm1, %v1920_v57  ;;  %v572_v11 = vpop.permute.xlu0 %571  ;;  %v593_v12 = vsel %vm591_vm2, %v574_v8, %v576_v26 }
  0xd3   : > { %v592_v13 = vsel %vm591_vm2, %v572_v11, %v574_v8  ;;  %632 = vmatpush.bf16.msra.mxu1 %v593_v12 }
  0xd4   : > { %618 = vmatpush.bf16.msra.mxu0 %v592_v13  ;;  %v740_v15 = vpop.permute.xlu2 %739 }
  0xd5   : > { %1767 = vmatmul.msk.bf16.vlgmr.msra.gmra.mxu2 %vm431_vm1, %v1924_v10  ;;  %v759_v16 = vsel %vm757_vm3, %v740_v15, %v742_v35 }
  0xd6   : > { %1768 = vmatmul.msk.bf16.vlgmr.msra.gmra.mxu3 %vm431_vm1, %v1924_v10 }
  0xd7   : > { %797 = vmatpush.bf16.msrb.mxu1 %v763_v9  ;;  %1245 = vrot.lane.b32.xlu1 %v2336_v52, %s2084_s26 }
  0xd8   : > { %1243 = vrot.lane.b32.xlu0 %v2314_v42, %s2084_s26 }
  0xd9   : > { %v756_v17 = vpop.permute.xlu1 %755  ;;  %1249 = vrot.lane.b32.xlu2 %v2332_v50, %s2084_s26 }
  0xda   : > { %v754_v18 = vpop.permute.xlu0 %753 }
  0xdb   : > { %798 = vmatpush.bf16.msrb.mxu1 %v759_v16  ;;  %v764_v21 = vsel %vm757_vm3, %v2338_v53, %v754_v18  ;;  %v765_v23 = vsel %vm757_vm3, %v754_v18, %v756_v17  ;;  %v1948_v18 = vld [vmem:[%s2290_s12 + $0x30] sm:$0xff] }
  0xdc   : > { %811 = vmatpush.bf16.msrb.mxu2 %v764_v21  ;;  %825 = vmatpush.bf16.msrb.mxu3 %v765_v23  ;;  %v868_v24 = vpop.permute.xlu2 %867 }
  0xdf   : > { %1247 = vrot.lane.b32.xlu1 %v2367_v1, %s2084_s26  ;;  %1765 = vmatmul.msk.bf16.vlgmr.msra.gmra.mxu0 %vm431_vm1, %v1924_v10 }
  0xe0   : > { %1251 = vrot.lane.b32.xlu0 %v2342_v54, %s2084_s26 }
  0xe1   : > { %v748_v27 = vpop.permute.xlu1 %747  ;;  %1239 = vrot.lane.b32.xlu2 %v2363_v62, %s2084_s26 }
  0xe2   : > { %1766 = vmatmul.msk.bf16.vlgmr.msra.gmra.mxu1 %vm431_vm1, %v1924_v10  ;;  %v762_v28 = vsel %vm757_vm3, %v748_v27, %v750_v7  ;;  %v744_v29 = vpop.permute.xlu0 %743 }
  0xe3   : > { %783 = vmatpush.bf16.msrb.mxu0 %v762_v28  ;;  %v760_v30 = vsel %vm757_vm3, %v742_v35, %v744_v29 }
  0xe4   : > { %812 = vmatpush.bf16.msrb.mxu2 %v760_v30  ;;  %v860_v32 = vpop.permute.xlu2 %859 }
  0xe7   : > { %1365 = vrot.lane.b32.xlu1 %v2286_v20, %s2085_s27  ;;  %1817 = vmatmul.msk.bf16.vlgmr.msrb.gmra.mxu2 %vm431_vm1, %v1935_v31 }
  0xe8   : > { %1241 = vrot.lane.b32.xlu0 %v2372_v2, %s2084_s26 }
  0xe9   : > { %v738_v33 = vpop.permute.xlu1 %737  ;;  %1367 = vrot.lane.b32.xlu2 %v2309_v40, %s2085_s27 }
  0xea   : > { %v746_v36 = vpop.permute.xlu0 %745  ;;  %v758_v14 = vsel %vm757_vm3, %v738_v33, %v740_v15 }
  0xeb   : > { %784 = vmatpush.bf16.msrb.mxu0 %v758_v14  ;;  %v761_v39 = vsel %vm757_vm3, %v744_v29, %v746_v36 }
  0xec   : > { %826 = vmatpush.bf16.msrb.mxu3 %v761_v39  ;;  %v850_v41 = vpop.permute.xlu2 %849 }
  0xef   : > { %1355 = vrot.lane.b32.xlu1 %v2314_v42, %s2085_s27  ;;  %1818 = vmatmul.msk.bf16.vlgmr.msrb.gmra.mxu3 %vm431_vm1, %v1935_v31 }
  0xf0   : > { %1369 = vrot.lane.b32.xlu0 %v2304_v37, %s2085_s27  ;;  %1815 = vmatmul.msk.bf16.vlgmr.msrb.gmra.mxu0 %vm431_vm1, %v1935_v31 }
  0xf1   : > { %v866_v20 = vpop.permute.xlu1 %865  ;;  %1357 = vrot.lane.b32.xlu2 %v2336_v52, %s2085_s27 }
  0xf2   : > { %1816 = vmatmul.msk.bf16.vlgmr.msrb.gmra.mxu1 %vm431_vm1, %v1935_v31  ;;  %v877_v40 = vsel %vm869_vm4, %v866_v20, %v868_v24  ;;  %v864_v43 = vpop.permute.xlu0 %863 }
  0xf3   : > { %v876_v42 = vsel %vm869_vm4, %v864_v43, %v866_v20  ;;  %937 = vmatpush.bf16.msra.mxu3 %v877_v40 }
  0xf4   : > { %923 = vmatpush.bf16.msra.mxu2 %v876_v42  ;;  %v978_v44 = vpop.permute.xlu2 %977 }
  0xf7   : > { %1363 = vrot.lane.b32.xlu1 %v2342_v54, %s2085_s27 }
  0xf8   : > { %1361 = vrot.lane.b32.xlu0 %v2332_v50, %s2085_s27 }
  0xf9   : > { %v856_v37 = vpop.permute.xlu1 %855  ;;  %1359 = vrot.lane.b32.xlu2 %v2367_v1, %s2085_s27 }
  0xfa   : > { %v854_v45 = vpop.permute.xlu0 %853 }
  0xfb   : > { %v872_v46 = vsel %vm869_vm4, %v854_v45, %v856_v37 }
  0xfc   : > { %924 = vmatpush.bf16.msra.mxu2 %v872_v46  ;;  %v968_v25 = vpop.permute.xlu2 %967 }
  0xff   : > { %1827 = vmatmul.msk.bf16.vlgmr.msra.gmra.mxu2 %vm431_vm1, %v1936_v22  ;;  %1353 = vrot.lane.b32.xlu1 %v2372_v2, %s2085_s27 }
 0x100   : > { %1351 = vrot.lane.b32.xlu0 %v2363_v62, %s2085_s27 }
 0x101   : > { %v858_v47 = vpop.permute.xlu1 %857 }
 0x102   : > { %v862_v48 = vpop.permute.xlu0 %861  ;;  %v873_v49 = vsel %vm869_vm4, %v856_v37, %v858_v47 }
 0x103   : > { %v874_v50 = vsel %vm869_vm4, %v860_v32, %v862_v48  ;;  %v875_v51 = vsel %vm869_vm4, %v862_v48, %v864_v43  ;;  %938 = vmatpush.bf16.msra.mxu3 %v873_v49  ;;  %v1949_v49 = vld [vmem:[%s2290_s12 + $0x38] sm:$0xff] }
 0x104   : > { %895 = vmatpush.bf16.msra.mxu0 %v874_v50  ;;  %909 = vmatpush.bf16.msra.mxu1 %v875_v51  ;;  %v970_v19 = vpop.permute.xlu2 %969 }
 0x105   : > { %v985_v62 = vsel %vm981_vm5, %v968_v25, %v970_v19 }
 0x106   : > { %1828 = vmatmul.msk.bf16.vlgmr.msra.gmra.mxu3 %vm431_vm1, %v1936_v22 }
 0x109   : > { %v976_v52 = vpop.permute.xlu1 %975 }
 0x10a   : > { %v988_v53 = vsel %vm981_vm5, %v976_v52, %v978_v44  ;;  %v852_v54 = vpop.permute.xlu0 %851 }
 0x10b   : > { %v870_v55 = vsel %vm869_vm4, %v850_v41, %v852_v54  ;;  %v871_v56 = vsel %vm869_vm4, %v852_v54, %v854_v45  ;;  %1035 = vmatpush.bf16.msrb.mxu2 %v988_v53 }
 0x10c   : > { %896 = vmatpush.bf16.msra.mxu0 %v870_v55  ;;  %910 = vmatpush.bf16.msra.mxu1 %v871_v56  ;;  %v1142_v57 = vpop.permute.xlu2 %1141 }
 0x10f   : > { %1825 = vmatmul.msk.bf16.vlgmr.msra.gmra.mxu0 %vm431_vm1, %v1936_v22  ;;  %1826 = vmatmul.msk.bf16.vlgmr.msra.gmra.mxu1 %vm431_vm1, %v1936_v22 }
 0x111   : > { %v966_v26 = vpop.permute.xlu1 %965 }
 0x112   : > { %v980_v58 = vpop.permute.xlu0 %979  ;;  %v984_v34 = vsel %vm981_vm5, %v966_v26, %v968_v25 }
 0x113   : > { %v989_v60 = vsel %vm981_vm5, %v978_v44, %v980_v58  ;;  %1036 = vmatpush.bf16.msrb.mxu2 %v984_v34 }
 0x114   : > { %1049 = vmatpush.bf16.msrb.mxu3 %v989_v60  ;;  %v1132_v61 = vpop.permute.xlu2 %1131 }
 0x116   : > { %1837 = vmatmul.msk.bf16.vlgmr.msrb.gmra.mxu2 %vm431_vm1, %v1937_v59 }
 0x118   : > { %1050 = vmatpush.bf16.msrb.mxu3 %v985_v62 }
 0x119   : > { %v974_v63 = vpop.permute.xlu1 %973 }
 0x11a   : > { %v987_v0 = vsel %vm981_vm5, %v974_v63, %v976_v52  ;;  %v972_v1 = vpop.permute.xlu0 %971 }
 0x11b   : > { %v986_v35 = vsel %vm981_vm5, %v972_v1, %v974_v63  ;;  %1838 = vmatmul.msk.bf16.vlgmr.msrb.gmra.mxu3 %vm431_vm1, %v1937_v59  ;;  %1021 = vmatpush.bf16.msrb.mxu1 %v987_v0 }
 0x11c   : > { %1007 = vmatpush.bf16.msrb.mxu0 %v986_v35  ;;  %v1140_v38 = vpop.permute.xlu2 %1139 }
 0x11d   : > { %v1153_v3 = vsel %vm1147_vm6, %v1140_v38, %v1142_v57 }
 0x121   : > { %v964_v2 = vpop.permute.xlu1 %963 }
 0x122   : > { %v962_v4 = vpop.permute.xlu0 %961  ;;  %v983_v5 = vsel %vm981_vm5, %v964_v2, %v966_v26 }
 0x123   : > { %v982_v6 = vsel %vm981_vm5, %v962_v4, %v964_v2  ;;  %1022 = vmatpush.bf16.msrb.mxu1 %v983_v5 }
 0x124   : > { %1008 = vmatpush.bf16.msrb.mxu0 %v982_v6  ;;  %v1130_v7 = vpop.permute.xlu2 %1129 }
 0x125   : > { %v1149_v8 = vsel %vm1147_vm6, %v1130_v7, %v1132_v61 }
 0x126   : > { %1836 = vmatmul.msk.bf16.vlgmr.msrb.gmra.mxu1 %vm431_vm1, %v1937_v59 }
 0x127   : > { %1187 = vmatpush.bf16.msra.mxu1 %v1153_v3  ;;  %1835 = vmatmul.msk.bf16.vlgmr.msrb.gmra.mxu0 %vm431_vm1, %v1937_v59 }
 0x129   : > { %v1146_v9 = vpop.permute.xlu1 %1145 }
 0x12a   : > { %v1144_v10 = vpop.permute.xlu0 %1143 }
 0x12b   : > { %1188 = vmatpush.bf16.msra.mxu1 %v1149_v8  ;;  %v1154_v11 = vsel %vm1147_vm6, %v1142_v57, %v1144_v10  ;;  %v1155_v12 = vsel %vm1147_vm6, %v1144_v10, %v1146_v9 }
 0x12c   : > { %1201 = vmatpush.bf16.msra.mxu2 %v1154_v11  ;;  %1215 = vmatpush.bf16.msra.mxu3 %v1155_v12  ;;  %v1258_v13 = vpop.permute.xlu2 %1257 }
 0x131   : > { %v1138_v15 = vpop.permute.xlu1 %1137 }
 0x132   : > { %v1152_v16 = vsel %vm1147_vm6, %v1138_v15, %v1140_v38  ;;  %v1134_v17 = vpop.permute.xlu0 %1133 }
 0x133   : > { %1173 = vmatpush.bf16.msra.mxu0 %v1152_v16  ;;  %v1150_v21 = vsel %vm1147_vm6, %v1132_v61, %v1134_v17 }
 0x134   : > { %1202 = vmatpush.bf16.msra.mxu2 %v1150_v21  ;;  %v1250_v30 = vpop.permute.xlu2 %1249 }
 0x136   : > { %1886 = vmatmul.msk.bf16.vlgmr.msra.gmra.mxu1 %vm431_vm1, %v1948_v18  ;;  %v472_v23 = vpop.f32.mrf.mxu2 }
 0x137   : > { %1887 = vmatmul.msk.bf16.vlgmr.msra.gmra.mxu2 %vm431_vm1, %v1948_v18 }
 0x139   : > { %v1128_v24 = vpop.permute.xlu1 %1127  ;;  %v486_v27 = vpop.f32.mrf.mxu3 }
 0x13a   : > { %v1136_v28 = vpop.permute.xlu0 %1135  ;;  %v1148_v29 = vsel %vm1147_vm6, %v1128_v24, %v1130_v7  ;;  %v1950_v24 = vld [vmem:[%s2290_s12 + $0x40] sm:$0xff] }
 0x13b   : > { %1174 = vmatpush.bf16.msra.mxu0 %v1148_v29  ;;  %v1151_v31 = vsel %vm1147_vm6, %v1134_v17, %v1136_v28 }
 0x13c   : > { %1216 = vmatpush.bf16.msra.mxu3 %v1151_v31  ;;  %v444_v32 = vpop.f32.mrf.mxu0  ;;  %v1240_v42 = vpop.permute.xlu2 %1239 }
 0x13e   : > { %1885 = vmatmul.msk.bf16.vlgmr.msra.gmra.mxu0 %vm431_vm1, %v1948_v18  ;;  %v474_v36 = vpop.f32.mrf.mxu2 }
 0x13f   : > { %v458_v33 = vpop.f32.mrf.mxu1  ;;  %1888 = vmatmul.msk.bf16.vlgmr.msra.gmra.mxu3 %vm431_vm1, %v1948_v18 }
 0x141   : > { %v1256_v14 = vpop.permute.xlu1 %1255  ;;  %v488_v39 = vpop.f32.mrf.mxu3 }
 0x142   : > { %v1267_v41 = vsel %vm1259_vm7, %v1256_v14, %v1258_v13  ;;  %v1254_v20 = vpop.permute.xlu0 %1253 }
 0x143   : > { %v1266_v40 = vsel %vm1259_vm7, %v1254_v20, %v1256_v14  ;;  %1327 = vmatpush.bf16.msrb.mxu3 %v1267_v41 }
 0x144   : > { %1313 = vmatpush.bf16.msrb.mxu2 %v1266_v40  ;;  %v446_v43 = vpop.f32.mrf.mxu0  ;;  %v1368_v53 = vpop.permute.xlu2 %1367 }
 0x147   : > { %v460_v44 = vpop.f32.mrf.mxu1 }
 0x148   : > { %v544_v37 = vpop.f32.mrf.mxu2 }
 0x149   : > { %v545_v45 = vadd.f32 %v544_v37, %v472_v23  ;;  %v1246_v46 = vpop.permute.xlu1 %1245  ;;  %v558_v22 = vpop.f32.mrf.mxu3 }
 0x14a   : > { %v1244_v25 = vpop.permute.xlu0 %1243  ;;  %v559_v47 = vadd.f32 %v558_v22, %v486_v27 }
 0x14b   : > { %v1262_v48 = vsel %vm1259_vm7, %v1244_v25, %v1246_v46 }
 0x14c   : > { %1314 = vmatpush.bf16.msrb.mxu2 %v1262_v48  ;;  %v516_v50 = vpop.f32.mrf.mxu0  ;;  %v1358_v1 = vpop.permute.xlu2 %1357 }
 0x14d   : > { %v517_v51 = vadd.f32 %v516_v50, %v444_v32 }
 0x14f   : > { %v530_v19 = vpop.f32.mrf.mxu1  ;;  %1897 = vmatmul.msk.bf16.vlgmr.msrb.gmra.mxu2 %vm431_vm1, %v1949_v49 }
 0x150   : > { %v531_v52 = vadd.f32 %v530_v19, %v458_v33  ;;  %v546_v54 = vpop.f32.mrf.mxu2 }
 0x151   : > { %v547_v55 = vadd.f32 %v546_v54, %v474_v36  ;;  %v1248_v56 = vpop.permute.xlu1 %1247  ;;  %v560_v57 = vpop.f32.mrf.mxu3 }
 0x152   : > { %v1252_v26 = vpop.permute.xlu0 %1251  ;;  %v1263_v58 = vsel %vm1259_vm7, %v1246_v46, %v1248_v56  ;;  %v561_v34 = vadd.f32 %v560_v57, %v488_v39 }
 0x153   : > { %v1264_v59 = vsel %vm1259_vm7, %v1250_v30, %v1252_v26  ;;  %v1265_v60 = vsel %vm1259_vm7, %v1252_v26, %v1254_v20  ;;  %1328 = vmatpush.bf16.msrb.mxu3 %v1263_v58 }
 0x154   : > { %1285 = vmatpush.bf16.msrb.mxu0 %v1264_v59  ;;  %1299 = vmatpush.bf16.msrb.mxu1 %v1265_v60  ;;  %v518_v61 = vpop.f32.mrf.mxu0  ;;  %v1360_v23 = vpop.permute.xlu2 %1359 }
 0x155   : > { %v519_v62 = vadd.f32 %v518_v61, %v446_v43  ;;  %v1375_v30 = vsel %vm1371_vm8, %v1358_v1, %v1360_v23 }
 0x156   : > { %1898 = vmatmul.msk.bf16.vlgmr.msrb.gmra.mxu3 %vm431_vm1, %v1949_v49 }
 0x157   : > { %v532_v63 = vpop.f32.mrf.mxu1 }
 0x158   : > { %v533_v0 = vadd.f32 %v532_v63, %v460_v44  ;;  %v648_v35 = vpop.f32.mrf.mxu2 }
 0x159   : > { %v1366_v38 = vpop.permute.xlu1 %1365  ;;  %v669_v2 = vadd.f32 %v648_v35, %v545_v45  ;;  %v662_v3 = vpop.f32.mrf.mxu3 }
 0x15a   : > { %v1378_v4 = vsel %vm1371_vm8, %v1366_v38, %v1368_v53  ;;  %v1242_v5 = vpop.permute.xlu0 %1241  ;;  %v670_v6 = vadd.f32 %v662_v3, %v559_v47 }
 0x15b   : > { %v1260_v7 = vsel %vm1259_vm7, %v1240_v42, %v1242_v5  ;;  %v1261_v8 = vsel %vm1259_vm7, %v1242_v5, %v1244_v25  ;;  %1425 = vmatpush.bf16.msra.mxu2 %v1378_v4 }
 0x15c   : > { %1286 = vmatpush.bf16.msrb.mxu0 %v1260_v7  ;;  %1300 = vmatpush.bf16.msrb.mxu1 %v1261_v8  ;;  %v620_v9 = vpop.f32.mrf.mxu0 }
 0x15d   : > { %v667_v10 = vadd.f32 %v620_v9, %v517_v51 }
 0x15f   : > { %v634_v11 = vpop.f32.mrf.mxu1  ;;  %1895 = vmatmul.msk.bf16.vlgmr.msrb.gmra.mxu0 %vm431_vm1, %v1949_v49  ;;  %1896 = vmatmul.msk.bf16.vlgmr.msrb.gmra.mxu1 %vm431_vm1, %v1949_v49 }
 0x160   : > { %v668_v12 = vadd.f32 %v634_v11, %v531_v52  ;;  %v650_v13 = vpop.f32.mrf.mxu2 }
 0x161   : > { %v1356_v15 = vpop.permute.xlu1 %1355  ;;  %v673_v16 = vadd.f32 %v650_v13, %v547_v55  ;;  %v664_v17 = vpop.f32.mrf.mxu3 }
 0x162   : > { %v1370_v18 = vpop.permute.xlu0 %1369  ;;  %v1374_v21 = vsel %vm1371_vm8, %v1356_v15, %v1358_v1  ;;  %v674_v27 = vadd.f32 %v664_v17, %v561_v34 }
 0x163   : > { %v1379_v28 = vsel %vm1371_vm8, %v1368_v53, %v1370_v18  ;;  %1426 = vmatpush.bf16.msra.mxu2 %v1374_v21 }
 0x164   : > { %1439 = vmatpush.bf16.msra.mxu3 %v1379_v28  ;;  %v622_v29 = vpop.f32.mrf.mxu0 }
 0x165   : > { %v671_v31 = vadd.f32 %v622_v29, %v519_v62 }
 0x166   : > { %1907 = vmatmul.msk.bf16.vlgmr.msra.gmra.mxu2 %vm431_vm1, %v1950_v24 }
 0x167   : > { %v636_v32 = vpop.f32.mrf.mxu1 }
 0x168   : > { %v672_v33 = vadd.f32 %v636_v32, %v533_v0  ;;  %1440 = vmatpush.bf16.msra.mxu3 %v1375_v30 }
 0x169   : > { %v1364_v36 = vpop.permute.xlu1 %1363 }
 0x16a   : > { %v1377_v14 = vsel %vm1371_vm8, %v1364_v36, %v1366_v38  ;;  %v1362_v39 = vpop.permute.xlu0 %1361  ;;  %v814_v41 = vpop.f32.mrf.mxu2 }
 0x16b   : > { %v1376_v20 = vsel %vm1371_vm8, %v1362_v39, %v1364_v36  ;;  %1908 = vmatmul.msk.bf16.vlgmr.msra.gmra.mxu3 %vm431_vm1, %v1950_v24  ;;  %1411 = vmatpush.bf16.msra.mxu1 %v1377_v14  ;;  %v835_v40 = vadd.f32 %v814_v41, %v669_v2 }
 0x16c   : > { %1397 = vmatpush.bf16.msra.mxu0 %v1376_v20  ;;  %v1455_v20 = vld [vmem:[%s2592_s2] sm:$0xf] }
 0x16d   : > { %v786_v43 = vpop.f32.mrf.mxu0 }
 0x16e   : > { %v833_v42 = vadd.f32 %v786_v43, %v667_v10 }
 0x16f   : > { %v800_v44 = vpop.f32.mrf.mxu1 }
 0x170   : > { %v834_v37 = vadd.f32 %v800_v44, %v668_v12 }
 0x171   : > { %v1354_v45 = vpop.permute.xlu1 %1353 }
 0x172   : > { %v1352_v46 = vpop.permute.xlu0 %1351  ;;  %v1373_v22 = vsel %vm1371_vm8, %v1354_v45, %v1356_v15  ;;  %v828_v25 = vpop.f32.mrf.mxu3 }
 0x173   : > { %v1372_v47 = vsel %vm1371_vm8, %v1352_v46, %v1354_v45  ;;  %1412 = vmatpush.bf16.msra.mxu1 %v1373_v22  ;;  %v836_v48 = vadd.f32 %v828_v25, %v670_v6  ;;  %v816_v49 = vpop.f32.mrf.mxu2  ;;  %v1458_v25 = vperm.slane %v1455_v20, 1 }
 0x174   : > { %1398 = vmatpush.bf16.msra.mxu0 %v1372_v47  ;;  %v839_v50 = vadd.f32 %v816_v49, %v673_v16  ;;  %v1459_v49 = vperm.slane %v1455_v20, 2 }
 0x175   : > { %v788_v51 = vpop.f32.mrf.mxu0 }
 0x176   : > { %1906 = vmatmul.msk.bf16.vlgmr.msra.gmra.mxu1 %vm431_vm1, %v1950_v24  ;;  %v2511_v19 = vadd.f32 %v788_v51, %v671_v31  ;;  %v1457_v51 = vperm.slane %v1455_v20, 0 }
 0x177   : > { %v802_v52 = vpop.f32.mrf.mxu1  ;;  %1905 = vmatmul.msk.bf16.vlgmr.msra.gmra.mxu0 %vm431_vm1, %v1950_v24 }
 0x178   : > { %v838_v53 = vadd.f32 %v802_v52, %v672_v33 }
 0x17a   : > { %v830_v54 = vpop.f32.mrf.mxu3 }
 0x17b   : > { %v840_v55 = vadd.f32 %v830_v54, %v674_v27 }
 0x182   : > { %v926_v56 = vpop.f32.mrf.mxu2 }
 0x183   : > { %v947_v21 = vadd.f32 %v926_v56, %v835_v40 }
 0x189   : > { %v940_v57 = vpop.f32.mrf.mxu3 }
 0x18a   : > { %v928_v34 = vpop.f32.mrf.mxu2  ;;  %v948_v24 = vadd.f32 %v940_v57, %v836_v48  ;;  %v1460_v57 = vperm.slane %v1455_v20, 3 }
 0x18b   : > { %v951_v44 = vadd.f32 %v928_v34, %v839_v50 }
 0x18c   : > { %v912_v26 = vpop.f32.mrf.mxu1  ;;  %v898_v58 = vpop.f32.mrf.mxu0 }
 0x18d   : > { %v946_v27 = vadd.f32 %v912_v26, %v834_v37  ;;  %v945_v29 = vadd.f32 %v898_v58, %v833_v42 }
 0x191   : > { %v942_v59 = vpop.f32.mrf.mxu3 }
 0x192   : > { %v952_v40 = vadd.f32 %v942_v59, %v840_v55 }
 0x194   : > { %v914_v60 = vpop.f32.mrf.mxu1  ;;  %v900_v61 = vpop.f32.mrf.mxu0 }
 0x195   : > { %v950_v37 = vadd.f32 %v914_v60, %v838_v53  ;;  %v949_v54 = vadd.f32 %v900_v61, %v2511_v19 }
 0x199   : > { %v1038_v62 = vpop.f32.mrf.mxu2 }
 0x19a   : > { %v1059_v30 = vadd.f32 %v1038_v62, %v947_v21 }
 0x19e   : > { %v1052_v63 = vpop.f32.mrf.mxu3 }
 0x19f   : > { %v1060_v31 = vadd.f32 %v1052_v63, %v948_v24 }
 0x1a1   : > { %v1040_v35 = vpop.f32.mrf.mxu2 }
 0x1a2   : > { %v1063_v55 = vadd.f32 %v1040_v35, %v951_v44 }
 0x1a3   : > { %v1024_v0 = vpop.f32.mrf.mxu1 }
 0x1a4   : > { %v1010_v1 = vpop.f32.mrf.mxu0  ;;  %v1058_v32 = vadd.f32 %v1024_v0, %v946_v27 }
 0x1a5   : > { %v1057_v36 = vadd.f32 %v1010_v1, %v945_v29 }
 0x1a6   : > { %v1054_v38 = vpop.f32.mrf.mxu3 }
 0x1a7   : > { %v1064_v34 = vadd.f32 %v1054_v38, %v952_v40 }
 0x1ab   : > { %v1026_v2 = vpop.f32.mrf.mxu1 }
 0x1ac   : > { %v1012_v3 = vpop.f32.mrf.mxu0  ;;  %v1062_v58 = vadd.f32 %v1026_v2, %v950_v37 }
 0x1ad   : > { %v1061_v59 = vadd.f32 %v1012_v3, %v949_v54 }
 0x1b3   : > { %v1190_v6 = vpop.f32.mrf.mxu1 }
 0x1b4   : > { %v1224_v39 = vadd.f32 %v1190_v6, %v1058_v32 }
 0x1ba   : > { %v1204_v4 = vpop.f32.mrf.mxu2 }
 0x1bb   : > { %v1176_v7 = vpop.f32.mrf.mxu0  ;;  %v1192_v10 = vpop.f32.mrf.mxu1  ;;  %v1225_v14 = vadd.f32 %v1204_v4, %v1059_v30 }
 0x1bc   : > { %v1223_v45 = vadd.f32 %v1176_v7, %v1057_v36  ;;  %v1228_v62 = vadd.f32 %v1192_v10, %v1062_v58 }
 0x1c2   : > { %v1218_v5 = vpop.f32.mrf.mxu3  ;;  %v1206_v8 = vpop.f32.mrf.mxu2 }
 0x1c3   : > { %v1178_v11 = vpop.f32.mrf.mxu0  ;;  %v1226_v41 = vadd.f32 %v1218_v5, %v1060_v31  ;;  %v1229_v63 = vadd.f32 %v1206_v8, %v1063_v55 }
 0x1c4   : > { %v1227_v61 = vadd.f32 %v1178_v11, %v1061_v59 }
 0x1ca   : > { %v1220_v9 = vpop.f32.mrf.mxu3 }
 0x1cb   : > { %v1230_v1 = vadd.f32 %v1220_v9, %v1064_v34 }
 0x1d2   : > { %v1316_v12 = vpop.f32.mrf.mxu2 }
 0x1d3   : > { %v1337_v46 = vadd.f32 %v1316_v12, %v1225_v14 }
 0x1d9   : > { %v1330_v13 = vpop.f32.mrf.mxu3 }
 0x1da   : > { %v1318_v17 = vpop.f32.mrf.mxu2  ;;  %v1338_v22 = vadd.f32 %v1330_v13, %v1226_v41 }
 0x1db   : > { %v1341_v35 = vadd.f32 %v1318_v17, %v1229_v63 }
 0x1dc   : > { %v1302_v15 = vpop.f32.mrf.mxu1  ;;  %v1288_v16 = vpop.f32.mrf.mxu0 }
 0x1dd   : > { %v1336_v42 = vadd.f32 %v1302_v15, %v1224_v39  ;;  %v1335_v47 = vadd.f32 %v1288_v16, %v1223_v45 }
 0x1e1   : > { %v1332_v18 = vpop.f32.mrf.mxu3 }
 0x1e2   : > { %v1342_v12 = vadd.f32 %v1332_v18, %v1230_v1 }
 0x1e4   : > { %v1304_v23 = vpop.f32.mrf.mxu1  ;;  %v1290_v28 = vpop.f32.mrf.mxu0 }
 0x1e5   : > { %v1339_v38 = vadd.f32 %v1290_v28, %v1227_v61  ;;  %v1340_v3 = vadd.f32 %v1304_v23, %v1228_v62 }
 0x1e9   : > { %v1428_v33 = vpop.f32.mrf.mxu2 }
 0x1ea   : > { %v2517_v48 = vadd.f32 %v1428_v33, %v1337_v46 }
 0x1ec   : > { %v1467_v0 = vmul.f32 %v1459_v49, %v2517_v48 }
 0x1ee   : > { %v1442_v43 = vpop.f32.mrf.mxu3  ;;  %v1487_v15 = vmul.f32 %v1467_v0, %v1467_v0 }
 0x1ef   : > { %v2520_v56 = vadd.f32 %v1442_v43, %v1338_v22 }
 0x1f1   : > { %v1468_v4 = vmul.f32 %v1460_v57, %v2520_v56  ;;  %v1430_v5 = vpop.f32.mrf.mxu2 }
 0x1f2   : > { %v2530_v10 = vadd.f32 %v1430_v5, %v1341_v35 }
 0x1f3   : > { %v1414_v52 = vpop.f32.mrf.mxu1  ;;  %v1488_v9 = vmul.f32 %v1468_v4, %v1468_v4 }
 0x1f4   : > { %v1400_v26 = vpop.f32.mrf.mxu0  ;;  %v2522_v50 = vadd.f32 %v1414_v52, %v1336_v42  ;;  %v1471_v23 = vmul.f32 %v1459_v49, %v2530_v10 }
 0x1f5   : > { %v2524_v53 = vadd.f32 %v1400_v26, %v1335_v47 }
 0x1f6   : > { %v1466_v60 = vmul.f32 %v1458_v25, %v2522_v50  ;;  %v1444_v13 = vpop.f32.mrf.mxu3  ;;  %v1491_v39 = vmul.f32 %v1471_v23, %v1471_v23 }
 0x1f7   : > { %v1465_v19 = vmul.f32 %v1457_v51, %v2524_v53  ;;  %v2534_v27 = vadd.f32 %v1444_v13, %v1342_v12 }
 0x1f8   : > { %v1486_v6 = vmul.f32 %v1466_v60, %v1466_v60 }
 0x1f9   : > { %v1485_v2 = vmul.f32 %v1465_v19, %v1465_v19  ;;  %v1473_v7 = vadd.f32 %v1466_v60, %v1465_v19  ;;  %v1472_v33 = vmul.f32 %v1460_v57, %v2534_v27 }
 0x1fb   : > { %v1416_v8 = vpop.f32.mrf.mxu1  ;;  %v1474_v16 = vadd.f32 %v1473_v7, %v1467_v0  ;;  %v1493_v21 = vadd.f32 %v1486_v6, %v1485_v2  ;;  %v1492_v44 = vmul.f32 %v1472_v33, %v1472_v33 }
 0x1fc   : > { %v1402_v24 = vpop.f32.mrf.mxu0  ;;  %v2532_v11 = vadd.f32 %v1416_v8, %v1340_v3 }
 0x1fd   : > { %v2536_v29 = vadd.f32 %v1402_v24, %v1339_v38  ;;  %v1475_v17 = vadd.f32 %v1474_v16, %v1468_v4  ;;  %v1494_v30 = vadd.f32 %v1493_v21, %v1487_v15 }
 0x1fe   : > { %v1470_v18 = vmul.f32 %v1458_v25, %v2532_v11 }
 0x1ff   : > { %v1469_v28 = vmul.f32 %v1457_v51, %v2536_v29  ;;  %1476 = vadd.xlane.f32.xlu2 %v1475_v17  ;;  %v1495_v31 = vadd.f32 %v1494_v30, %v1488_v9 }
 0x200   : > { %v1490_v32 = vmul.f32 %v1470_v18, %v1470_v18 }
 0x201   : > { %v1489_v36 = vmul.f32 %v1469_v28, %v1469_v28  ;;  %v1478_v14 = vadd.f32 %v1470_v18, %v1469_v28  ;;  %1496 = vadd.xlane.f32.xlu1 %v1495_v31 }
 0x203   : > { %v1479_v41 = vadd.f32 %v1478_v14, %v1471_v23  ;;  %v1498_v20 = vadd.f32 %v1490_v32, %v1489_v36 }
 0x205   : > { %v1480_v43 = vadd.f32 %v1479_v41, %v1472_v33  ;;  %v1499_v40 = vadd.f32 %v1498_v20, %v1491_v39 }
 0x207   : > { %1481 = vadd.xlane.f32.xlu0 %v1480_v43  ;;  %v1500_v45 = vadd.f32 %v1499_v40, %v1492_v44 }
 0x209   : > { %1501 = vadd.xlane.f32.xlu2 %v1500_v45 }
 0x272   : > { %v1477_v46 = vpop.xlane.xlu2 %1476 }
 0x273   : > { %v1483_v37 = vmul.f32 0.00390625, %v1477_v46 }
 0x274   : > { %v1497_v22 = vpop.xlane.xlu1 %1496 }
 0x275   : > { %v1503_v42 = vmul.f32 0.00390625, %v1497_v22  ;;  %v1505_v25 = vmul.f32 %v1483_v37, %v1483_v37  ;;  %v1509_v5 = vsub.f32 %v2524_v53, %v1483_v37  ;;  %v1510_v6 = vsub.f32 %v2522_v50, %v1483_v37 }
 0x276   : > { %v1511_v35 = vsub.f32 %v2517_v48, %v1483_v37  ;;  %v1512_v2 = vsub.f32 %v2520_v56, %v1483_v37 }
 0x277   : > { %v1507_v47 = vsub.f32 %v1503_v42, %v1505_v25 }
 0x279   : > { %v1517_v49 = vmax.f32 %v1507_v47, 0.0 }
 0x27a   : > { %v1482_v51 = vpop.xlane.xlu0 %1481 }
 0x27b   : > { %v2542_v52 = vmul.f32 0.00390625, %v1482_v51  ;;  %v1519_v54 = vadd.f32 1e-05, %v1517_v49 }
 0x27c   : > { %v1502_v57 = vpop.xlane.xlu2 %1501 }
 0x27d   : > { %2018 = vrsqrt.f32 %v1519_v54  ;;  %v1506_v26 = vmul.f32 %v2542_v52, %v2542_v52  ;;  %v1504_v55 = vmul.f32 0.00390625, %v1502_v57  ;;  %vm1527_vm10 = vweird.f32 %v1519_v54 }
 0x27e   : > { %v1513_v17 = vsub.f32 %v2536_v29, %v2542_v52  ;;  %v1514_v31 = vsub.f32 %v2532_v11, %v2542_v52  ;;  %v1515_v32 = vsub.f32 %v2530_v10, %v2542_v52  ;;  %v1516_v33 = vsub.f32 %v2534_v27, %v2542_v52 }
 0x27f   : > { %v1508_v58 = vsub.f32 %v1504_v55, %v1506_v26 }
 0x281   : > { %v1518_v34 = vmax.f32 %v1508_v58, 0.0 }
 0x283   : > { %v2019_v59 = vpop.eup %2018  ;;  %v1520_v60 = vadd.f32 1e-05, %v1518_v34 }
 0x284   : > { %v1522_v62 = vmul.f32 %v2019_v59, %v1519_v54  ;;  %vm1528_vm9 = vweird.f32 %v2019_v59 }
 0x285   : > { %2020 = vrsqrt.f32 %v1520_v60  ;;  %vm1529_vm11 = vmor %vm1527_vm10, %vm1528_vm9  ;;  %vm1537_vm1 = vweird.f32 %v1520_v60 }
 0x286   : > { %v1523_v63 = vmul.f32 %v2019_v59, %v1522_v62 }
 0x288   : > { %v1524_v0 = vmul.f32 0.5, %v1523_v63 }
 0x28a   : > { %v1525_v19 = vsub.f32 1.5, %v1524_v0 }
 0x28b   : > { %v2021_v61 = vpop.eup %2020 }
 0x28c   : > { %v1526_v1 = vmul.f32 %v2019_v59, %v1525_v19  ;;  %v1532_v4 = vmul.f32 %v2021_v61, %v1520_v60  ;;  %vm1538_vm0 = vweird.f32 %v2021_v61 }
 0x28d   : > { %vm1539_vm2 = vmor %vm1537_vm1, %vm1538_vm0 }
 0x28e   : > { %v1530_v7 = vsel %vm1529_vm11, %v2019_v59, %v1526_v1  ;;  %v1533_v12 = vmul.f32 %v2021_v61, %v1532_v4 }
 0x28f   : > { %v1541_v38 = vmul.f32 %v1530_v7, %v1509_v5  ;;  %v1542_v3 = vmul.f32 %v1530_v7, %v1510_v6  ;;  %v1543_v13 = vmul.f32 %v1530_v7, %v1511_v35  ;;  %v1544_v15 = vmul.f32 %v1530_v7, %v1512_v2 }
 0x290   : > { %v1534_v8 = vmul.f32 0.5, %v1533_v12 }
 0x291   : > { %vm1549_vm12 = vcmp.gt.f32.partialorder %v1541_v38, 0.0  ;;  %vm1550_vm13 = vcmp.gt.f32.partialorder %v1542_v3, 0.0  ;;  %vm1551_vm14 = vcmp.gt.f32.partialorder %v1543_v13, 0.0  ;;  %vm1552_vm15 = vcmp.gt.f32.partialorder %v1544_v15, 0.0 }
 0x292   : > { %v1557_v53 = vmul.f32 0.1, %v1541_v38  ;;  %v1558_v50 = vmul.f32 0.1, %v1542_v3  ;;  %v1559_v16 = vmul.f32 0.1, %v1543_v13 }
 0x293   : > { %v1560_v48 = vmul.f32 0.1, %v1544_v15  ;;  %v1535_v21 = vsub.f32 1.5, %v1534_v8 }
 0x294   : > { %v1565_v56 = vsel %vm1549_vm12, %v1541_v38, %v1557_v53  ;;  %v1566_v24 = vsel %vm1550_vm13, %v1542_v3, %v1558_v50  ;;  %v1567_v9 = vsel %vm1551_vm14, %v1543_v13, %v1559_v16 }
 0x295   : > { %v1568_v30 = vsel %vm1552_vm15, %v1544_v15, %v1560_v48  ;;  %v1573_v18 = vpack.c.bf16 %v1566_v24, %v1565_v56  ;;  %v1536_v23 = vmul.f32 %v2021_v61, %v1535_v21 }
 0x296   : > { %v1574_v28 = vpack.c.bf16 %v1568_v30, %v1567_v9 }
 0x297   : > { %1577 = vst [vmem:[%s2555_s8] sm:$0xff] %v1573_v18  ;;  %v1540_v36 = vsel %vm1539_vm2, %v2021_v61, %v1536_v23 }
 0x298   : > { %1578 = vst [vmem:[%s2555_s8 + $0x8] sm:$0xff] %v1574_v28  ;;  %v1545_v14 = vmul.f32 %v1540_v36, %v1513_v17  ;;  %v1546_v29 = vmul.f32 %v1540_v36, %v1514_v31  ;;  %v1547_v39 = vmul.f32 %v1540_v36, %v1515_v32  ;;  %v1548_v41 = vmul.f32 %v1540_v36, %v1516_v33 }
 0x29a   : > { %vm1553_vm3 = vcmp.gt.f32.partialorder %v1545_v14, 0.0  ;;  %vm1554_vm4 = vcmp.gt.f32.partialorder %v1546_v29, 0.0  ;;  %vm1555_vm5 = vcmp.gt.f32.partialorder %v1547_v39, 0.0  ;;  %vm1556_vm6 = vcmp.gt.f32.partialorder %v1548_v41, 0.0 }
 0x29b   : > { %v1561_v11 = vmul.f32 0.1, %v1545_v14  ;;  %v1562_v20 = vmul.f32 0.1, %v1546_v29  ;;  %v1563_v10 = vmul.f32 0.1, %v1547_v39 }
 0x29c   : > { %v1564_v43 = vmul.f32 0.1, %v1548_v41 }
 0x29d   : > { %v1569_v44 = vsel %vm1553_vm3, %v1545_v14, %v1561_v11  ;;  %v1570_v27 = vsel %vm1554_vm4, %v1546_v29, %v1562_v20  ;;  %v1571_v40 = vsel %vm1555_vm5, %v1547_v39, %v1563_v10 }
 0x29e   : > { %v1572_v45 = vsel %vm1556_vm6, %v1548_v41, %v1564_v43  ;;  %v1575_v46 = vpack.c.bf16 %v1570_v27, %v1569_v44 }
 0x29f   : > { %v1576_v37 = vpack.c.bf16 %v1572_v45, %v1571_v40 }
 0x2a0   : > { %1579 = vst [vmem:[%s2555_s8 + $0x10] sm:$0xff] %v1575_v46 }
 0x2a1   : > { %1580 = vst [vmem:[%s2555_s8 + $0x18] sm:$0xff] %v1576_v37 }
 0x2a2 PF: > { %s13_s18 = sadd.s32 1, %s2076_s18   ;;  %s2594_s12 = smov %s2056_s13 }
 0x2a3   : > { %p10_p12 = scmp.ge.s32.totalorder %s13_s18, 6   ;;  %s2595_s13 = smov %s2155_s23 }
 0x2a4   : > { %s2596_s14 = smov %s2068_s16  ;;  %s2597_s15 = smov %s2072_s17 }
 0x2a5   : > { %s2598_s16 = smov %s2601_s19  ;;  %s2599_s17 = smov %s2605_s20 }
 0x2a6   :  { %12 = sbr.rel (!%p10_p12) target bundleno = 4 (0x4), region = 119 }

// kernel: resnet_block_forward.12
= control target key start
LH: loop header
LB: loop body
LE: loop exit
PB: predicated region body
PF: predicated region fallthrough
CT: control target
= control target key end

     0   :  { %s2082_s12 = smov 0   ;;  %s2084_s13 = smov 0   ;;  %s2552_s0 = inlined_call_operand.vmem [shape: bf16[2,32,782], index: 0, kind: input, shape index: {}]   ;;  %s2553_s1 = inlined_call_operand.vmem [shape: bf16[9,32,32], index: 1, kind: input, shape index: {}]   ;;  %s2554_s2 = inlined_call_operand.vmem [shape: f32[1,512], index: 2, kind: input, shape index: {}]   ;;  %s2555_s3 = inlined_call_operand.vmem [shape: bf16[2,32,512], index: 3, kind: output, shape index: {}]  }
   0x1   :  { %s2086_s14 = smov 0   ;;  %s2088_s15 = smov 0  }
   0x2   :  { %s2090_s16 = smov 0   ;;  %s2092_s17 = smov 0  }
   0x3   :  { %s2094_s18 = smov 0  }
   0x4 LB: > { %s22_s19 = sadd.s32 1, %s2044_s16  ;;  %s25_s20 = sadd.s32 1, %s2048_s17  ;;  %s2052_s18 = sphi %s2094_s18, %s13_s18   ;;  %s2048_s17 = sphi %s2092_s17, %s2561_s17   ;;  %s2044_s16 = sphi %s2090_s16, %s2560_s16   ;;  %s2040_s15 = sphi %s2088_s15, %s2559_s15   ;;  %s2036_s14 = sphi %s2086_s14, %s2558_s14   ;;  %s2032_s13 = sphi %s2084_s13, %s2557_s13   ;;  %s2028_s12 = sphi %s2082_s12, %s2556_s12  }
   0x5   : > { %p23_p0 = scmp.ge.s32.totalorder %s22_s19, 2  ;;  %s58_s21 = sadd.s32 1, %s2032_s13 }
   0x6   : > { %p65_p1 = scmp.ne.s32.totalorder %s2032_s13, %s2028_s12  ;;  %p66_p2 = scmp.eq.s32.totalorder %s2052_s18, 0 }
   0x7   : > { %s2563_s19 = smov (%p23_p0, %s22_s19), 0  ;;  %s2565_s20 = smov (!%p23_p0, %s25_s20), %s2048_s17 }
   0x8   : > { %s55_s22 = ssub.s32 %s2044_s16, %s2563_s19  ;;  %p67_p3 = por %p66_p2, %p65_p1 }
   0x9   : > { %p27_p4 = scmp.ge.s32.totalorder %s2565_s20, 2  ;;  %p56_p5 = scmp.eq.s32.totalorder %s55_s22, 0 }
   0xa   : > { %p1668_p6 = scmp.ge.s32.totalorder %s2052_s18, 4 }
   0xb   : > { %s2567_s20 = smov (%p27_p4, %s2565_s20), 0 }
   0xc   : > { %s2131_s23 = scalar_select %p56_p5, %s2032_s13, %s58_s21  }
   0xd   : > { %143 = sbr.rel (%p1668_p6) target bundleno = 31 (0x1f), region = 20 }
  0x12   : > { %154 = sbr.rel (!%p67_p3) target bundleno = 31 (0x1f), region = 28  ;;  %s156_s24 = sand.u32 (%p67_p3), 1, %s2032_s13  }
  0x13   : > { %s1887_s25 = sshll.u32 (%p67_p3), %s2044_s16, 3  ;;  %s1927_s26 = smul.u32 (%p67_p3), 72, %s156_s24 }
  0x14   : > { %s161_s29 = scalar_lea.vmem (%p67_p3), %s2553_s1, %s1887_s25 }
  0x15   : > { %v178_v0 = vld [vmem:[%s161_s29] sm:$0xff] (%p67_p3)   ;;  %v182_v1 = vld [vmem:[%s161_s29 + $0x10] sm:$0xff] (%p67_p3)   ;;  %s158_s30 = scalar_lea.vmem (%p67_p3), [#allocation2], %s1927_s26 }
  0x16   : > { %v186_v2 = vld [vmem:[%s161_s29 + $0x20] sm:$0xff] (%p67_p3)   ;;  %179 = vst [vmem:[%s158_s30] sm:$0xff] (%p67_p3), %v178_v0   ;;  %v190_v3 = vld [vmem:[%s161_s29 + $0x30] sm:$0xff] (%p67_p3)  }
  0x17   : > { %183 = vst [vmem:[%s158_s30 + $0x8] sm:$0xff] %v182_v1   ;;  %v194_v4 = vld [vmem:[%s161_s29 + $0x40] sm:$0xff]   ;;  %v198_v5 = vld [vmem:[%s161_s29 + $0x50] sm:$0xff]  }
  0x18   : > { %187 = vst [vmem:[%s158_s30 + $0x10] sm:$0xff] %v186_v2   ;;  %v202_v6 = vld [vmem:[%s161_s29 + $0x60] sm:$0xff]   ;;  %v206_v7 = vld [vmem:[%s161_s29 + $0x70] sm:$0xff]  }
  0x19   : > { %191 = vst [vmem:[%s158_s30 + $0x18] sm:$0xff] %v190_v3   ;;  %v210_v8 = vld [vmem:[%s161_s29 + $0x80] sm:$0xff]  }
  0x1a   : > { %195 = vst [vmem:[%s158_s30 + $0x20] sm:$0xff] %v194_v4  }
  0x1b   : > { %199 = vst [vmem:[%s158_s30 + $0x28] sm:$0xff] %v198_v5  }
  0x1c   : > { %203 = vst [vmem:[%s158_s30 + $0x30] sm:$0xff] %v202_v6  }
  0x1d   : > { %207 = vst [vmem:[%s158_s30 + $0x38] sm:$0xff] %v206_v7  }
  0x1e   : > { %211 = vst [vmem:[%s158_s30 + $0x40] sm:$0xff] %v210_v8  }
  0x1f PF: > { %p1671_p7 = scmp.ge.s32.totalorder %s2052_s18, 1  ;;  %p272_p8 = scmp.lt.s32.totalorder %s2052_s18, 5 }
  0x21   : > { %p273_p9 = pnand %p1671_p7, %p272_p8 }
  0x22   : > { %p312_p10 = scmp.lt.s32.totalorder (!%p273_p9), %s2040_s15, 1  ;;  %s2054_s8 = smov (!%p273_p9), 123  }
  0x23   : > { %276 = sbr.rel (%p273_p9) target bundleno = 669 (0x29d), region = 69  ;;  %s2055_s9 = smov (!%p273_p9), 118  }
  0x24   : > { %s2056_s10 = smov (!%p273_p9), 126   ;;  %s2057_s11 = smov (!%p273_p9), 121  }
  0x25   : > { %s2058_s21 = smov (!%p273_p9), 116   ;;  %s279_s22 = sand.u32 (!%p273_p9), 1, %s2028_s12  }
  0x26   : > { %s1928_s24 = smul.u32 (!%p273_p9), 72, %s279_s22  ;;  %s2059_s25 = smov (!%p273_p9), 124  }
  0x27   : > { %s2060_s26 = smov (!%p273_p9), 119   ;;  %s2061_s27 = smov (!%p273_p9), 114  }
  0x28   : > { %s2569_s15 = smov (!%p312_p10, %s2040_s15), 1  ;;  %vm414_vm0 = vcmask 1006592   ;;  %s2266_s12 = scalar_lea.vmem [#allocation2], %s1928_s24  ;;  %vm431_vm1 = vcmask 261120   ;;  %vm591_vm2 = vcmask 965632   ;;  %vm757_vm3 = vcmask 1031168  }
  0x29   : > { %s1929_s4 = smul.u32 112, %s2569_s15  ;;  %vm869_vm4 = vcmask 990208   ;;  %vm981_vm5 = vcmask 949248   ;;  %vm1147_vm6 = vcmask 1014784   ;;  %vm1259_vm7 = vcmask 973824   ;;  %s1673_s30 = sshll.u32 %s2036_s14, 1 }
  0x2a   : > { %vm1371_vm8 = vcmask 932864   ;;  %p321_p11 = scmp.lt.s32.totalorder %s1673_s30, 3  ;;  %s1675_s5 = sshll.u32 %s2569_s15, 4 }
  0x2b   : > { %s2149_s7 = scalar_lea.vmem %s2552_s0, %s1929_s4 }
  0x2c   : > { %v1721_v9 = vld [vmem:[%s2149_s7 + $0x48] sm:$0xf]  ;;  %v1898_v10 = vld [vmem:[%s2149_s7 + $0x60] sm:$0xf0]  ;;  %v1713_v11 = vld [vmem:[%s2149_s7 + $0x40] sm:$0xf] }
  0x2d   : > { %v1722_v12 = vor.u32 %v1898_v10, %v1721_v9  ;;  %v1895_v13 = vld [vmem:[%s2149_s7 + $0x58] sm:$0xf0]  ;;  %v1889_v15 = vld [vmem:[%s2149_s7 + $0xc] sm:$0xf]  ;;  %v1695_v16 = vld [vmem:[%s2149_s7 + $0x24] sm:$0xf0] }
  0x2e   : > { %v2155_v14 = vor.u32 %v1895_v13, %v1713_v11  ;;  %v1693_v17 = vld [vmem:[%s2149_s7 + $0x8] sm:$0xf]  ;;  %v1891_v18 = vld [vmem:[%s2149_s7 + $0x20] sm:$0xf0]  ;;  %v2164_v19 = vor.u32 %v1889_v15, %v1695_v16  ;;  %v1715_v21 = vld [vmem:[%s2149_s7 + $0x5c] sm:$0xf0] }
  0x2f   : > { %412 = vrot.lane.b32.xlu1 %v1722_v12, %s2054_s8  ;;  %v1893_v20 = vld [vmem:[%s2149_s7 + $0x44] sm:$0xf]  ;;  %v2170_v22 = vor.u32 %v1891_v18, %v1693_v17  ;;  %v1705_v23 = vld [vmem:[%s2149_s7 + $0x38] sm:$0xf]  ;;  %v1894_v24 = vld [vmem:[%s2149_s7 + $0x50] sm:$0xf0] }
  0x30   : > { %408 = vrot.lane.b32.xlu0 %v2155_v14, %s2054_s8  ;;  %400 = vrot.lane.b32.xlu2 %v2164_v19, %s2054_s8  ;;  %v2174_v25 = vor.u32 %v1893_v20, %v1715_v21  ;;  %v2176_v26 = vor.u32 %v1894_v24, %v1705_v23  ;;  %v1701_v27 = vld [vmem:[%s2149_s7 + $0x10] sm:$0xf]  ;;  %v1897_v28 = vld [vmem:[%s2149_s7 + $0x28] sm:$0xf0]  ;;  %s2571_s30 = smov (!%p321_p11, %s1673_s30), 3 }
  0x31   : > { %v1892_v29 = vld [vmem:[%s2149_s7 + $0x3c] sm:$0xf]  ;;  %v1707_v30 = vld [vmem:[%s2149_s7 + $0x54] sm:$0xf0]  ;;  %v1702_v31 = vor.u32 %v1897_v28, %v1701_v27  ;;  %v1685_v32 = vld [vmem:[%s2149_s7] sm:$0xf] }
  0x32   : > { %v1890_v33 = vld [vmem:[%s2149_s7 + $0x18] sm:$0xf0]  ;;  %v2190_v34 = vor.u32 %v1892_v29, %v1707_v30  ;;  %v1888_v36 = vld [vmem:[%s2149_s7 + $0x4] sm:$0xf]  ;;  %v1687_v37 = vld [vmem:[%s2149_s7 + $0x1c] sm:$0xf0] }
  0x33   : > { %v2192_v35 = vor.u32 %v1890_v33, %v1685_v32  ;;  %v2201_v38 = vor.u32 %v1888_v36, %v1687_v37  ;;  %v1781_v39 = vld [vmem:[%s2149_s7 + $0x44] sm:$0xf]  ;;  %v1909_v40 = vld [vmem:[%s2149_s7 + $0x5c] sm:$0xf0]  ;;  %v1789_v42 = vld [vmem:[%s2149_s7 + $0x4c] sm:$0xf] }
  0x34   : > { %v1782_v41 = vor.u32 %v1909_v40, %v1781_v39  ;;  %v1910_v43 = vld [vmem:[%s2149_s7 + $0x64] sm:$0xf0]  ;;  %v1783_v45 = vld [vmem:[%s2149_s7 + $0x60] sm:$0xf0]  ;;  %v1761_v47 = vld [vmem:[%s2149_s7 + $0xc] sm:$0xf] }
  0x35   : > { %v1907_v44 = vld [vmem:[%s2149_s7 + $0x48] sm:$0xf]  ;;  %v1790_v46 = vor.u32 %v1910_v43, %v1789_v42  ;;  %v1773_v51 = vld [vmem:[%s2149_s7 + $0x3c] sm:$0xf]  ;;  %v1908_v52 = vld [vmem:[%s2149_s7 + $0x54] sm:$0xf0] }
  0x36   : > { %v1904_v48 = vld [vmem:[%s2149_s7 + $0x24] sm:$0xf0]  ;;  %v1786_v49 = vor.u32 %v1907_v44, %v1783_v45  ;;  %v1902_v53 = vld [vmem:[%s2149_s7 + $0x10] sm:$0xf]  ;;  %v1763_v54 = vld [vmem:[%s2149_s7 + $0x28] sm:$0xf0]  ;;  %v1774_v55 = vor.u32 %v1908_v52, %v1773_v51 }
  0x37   : > { %398 = vrot.lane.b32.xlu1 %v2170_v22, %s2054_s8  ;;  %v1762_v50 = vor.u32 %v1904_v48, %v1761_v47  ;;  %v1906_v56 = vld [vmem:[%s2149_s7 + $0x40] sm:$0xf]  ;;  %v1775_v57 = vld [vmem:[%s2149_s7 + $0x58] sm:$0xf0]  ;;  %v1766_v58 = vor.u32 %v1902_v53, %v1763_v54  ;;  %v1753_v60 = vld [vmem:[%s2149_s7 + $0x4] sm:$0xf] }
  0x38   : > { %410 = vrot.lane.b32.xlu0 %v2174_v25, %s2054_s8  ;;  %404 = vrot.lane.b32.xlu2 %v2176_v26, %s2054_s8  ;;  %v1778_v59 = vor.u32 %v1906_v56, %v1775_v57  ;;  %v1903_v61 = vld [vmem:[%s2149_s7 + $0x1c] sm:$0xf0]  ;;  %v1769_v62 = vld [vmem:[%s2149_s7 + $0x14] sm:$0xf]  ;;  %s1674_s4 = sshll.u32 %s2571_s30, 2 }
  0x39   : > { %v1905_v63 = vld [vmem:[%s2149_s7 + $0x2c] sm:$0xf0]  ;;  %v1754_v0 = vor.u32 %v1903_v61, %v1753_v60  ;;  %v1901_v1 = vld [vmem:[%s2149_s7 + $0x8] sm:$0xf]  ;;  %v1755_v2 = vld [vmem:[%s2149_s7 + $0x20] sm:$0xf0]  ;;  %s325_s6 = sadd.s32 %s1675_s5, %s1674_s4 }
  0x3a   : > { %v1770_v3 = vor.u32 %v1905_v63, %v1769_v62  ;;  %v1758_v4 = vor.u32 %v1901_v1, %v1755_v2  ;;  %v1851_v16 = vld [vmem:[%s2149_s7 + $0x48] sm:$0xf]  ;;  %v1922_v17 = vld [vmem:[%s2149_s7 + $0x60] sm:$0xf0]  ;;  %v1859_v24 = vld [vmem:[%s2149_s7 + $0x50] sm:$0xf] }
  0x3b   : > { %v2262_v20 = vor.u32 %v1922_v17, %v1851_v16  ;;  %v1899_v23 = vld [vmem:[%s2266_s12 + $0x8] sm:$0xff]  ;;  %v1843_v43 = vld [vmem:[%s2149_s7 + $0x40] sm:$0xf]  ;;  %v1921_v44 = vld [vmem:[%s2149_s7 + $0x58] sm:$0xf0]  ;;  %s1676_s14 = sshll.u32 %s325_s6, 2 }
  0x3c   : > { %v1923_v27 = vld [vmem:[%s2149_s7 + $0x68] sm:$0xf0]  ;;  %v1853_v30 = vld [vmem:[%s2149_s7 + $0x64] sm:$0xf0]  ;;  %v1919_v51 = vld [vmem:[%s2149_s7 + $0x44] sm:$0xf] }
  0x3d   : > { %v1920_v29 = vld [vmem:[%s2149_s7 + $0x4c] sm:$0xf]  ;;  %v2280_v37 = vor.u32 %v1923_v27, %v1859_v24  ;;  %v1916_v56 = vld [vmem:[%s2149_s7 + $0x20] sm:$0xf0] }
  0x3e   : > { %v1917_v39 = vld [vmem:[%s2149_s7 + $0x28] sm:$0xf0]  ;;  %v2285_v40 = vor.u32 %v1920_v29, %v1853_v30 }
  0x3f   : > { %402 = vrot.lane.b32.xlu1 %v1702_v31, %s2054_s8  ;;  %v1896_v57 = vld [vmem:[%s2266_s12] sm:$0xff] }
  0x40   : > { %406 = vrot.lane.b32.xlu0 %v2190_v34, %s2054_s8  ;;  %394 = vrot.lane.b32.xlu2 %v2192_v35, %s2054_s8  ;;  %v1914_v63 = vld [vmem:[%s2149_s7 + $0xc] sm:$0xf] }
  0x47   : > { %585 = vrot.lane.b32.xlu1 %v2155_v14, %s2055_s9 }
  0x48   : > { %396 = vrot.lane.b32.xlu0 %v2201_v38, %s2054_s8  ;;  %587 = vrot.lane.b32.xlu2 %v2174_v25, %s2055_s9  ;;  %s327_s8 = scalar_lea.vmem %s2555_s3, %s1676_s14 }
  0x4f   : > { %575 = vrot.lane.b32.xlu1 %v2170_v22, %s2055_s9 }
  0x50   : > { %589 = vrot.lane.b32.xlu0 %v1722_v12, %s2055_s9  ;;  %577 = vrot.lane.b32.xlu2 %v2164_v19, %s2055_s9 }
  0x57   : > { %583 = vrot.lane.b32.xlu1 %v2190_v34, %s2055_s9 }
  0x58   : > { %581 = vrot.lane.b32.xlu0 %v2176_v26, %s2055_s9  ;;  %579 = vrot.lane.b32.xlu2 %v1702_v31, %s2055_s9 }
  0x5f   : > { %573 = vrot.lane.b32.xlu1 %v2201_v38, %s2055_s9 }
  0x60   : > { %571 = vrot.lane.b32.xlu0 %v2192_v35, %s2055_s9  ;;  %751 = vrot.lane.b32.xlu2 %v1782_v41, %s2056_s10 }
  0x67   : > { %755 = vrot.lane.b32.xlu1 %v1790_v46, %s2056_s10 }
  0x68   : > { %753 = vrot.lane.b32.xlu0 %v1786_v49, %s2056_s10  ;;  %741 = vrot.lane.b32.xlu2 %v1762_v50, %s2056_s10 }
  0x6f   : > { %747 = vrot.lane.b32.xlu1 %v1774_v55, %s2056_s10 }
  0x70   : > { %743 = vrot.lane.b32.xlu0 %v1766_v58, %s2056_s10  ;;  %749 = vrot.lane.b32.xlu2 %v1778_v59, %s2056_s10 }
  0x77   : > { %737 = vrot.lane.b32.xlu1 %v1754_v0, %s2056_s10 }
  0x78   : > { %745 = vrot.lane.b32.xlu0 %v1770_v3, %s2056_s10  ;;  %739 = vrot.lane.b32.xlu2 %v1758_v4, %s2056_s10 }
  0x7f   : > { %865 = vrot.lane.b32.xlu1 %v1786_v49, %s2057_s11 }
  0x80   : > { %863 = vrot.lane.b32.xlu0 %v1782_v41, %s2057_s11  ;;  %867 = vrot.lane.b32.xlu2 %v1790_v46, %s2057_s11 }
  0x87   : > { %855 = vrot.lane.b32.xlu1 %v1766_v58, %s2057_s11 }
  0x88   : > { %853 = vrot.lane.b32.xlu0 %v1762_v50, %s2057_s11  ;;  %859 = vrot.lane.b32.xlu2 %v1774_v55, %s2057_s11 }
  0x8a   : > { %v401_v5 = vpop.permute.xlu2 %400 }
  0x8f   : > { %857 = vrot.lane.b32.xlu1 %v1770_v3, %s2057_s11 }
  0x90   : > { %861 = vrot.lane.b32.xlu0 %v1778_v59, %s2057_s11  ;;  %849 = vrot.lane.b32.xlu2 %v1754_v0, %s2057_s11 }
  0x92   : > { %v405_v6 = vpop.permute.xlu2 %404 }
  0x97   : > { %975 = vrot.lane.b32.xlu1 %v1782_v41, %s2058_s21 }
  0x98   : > { %851 = vrot.lane.b32.xlu0 %v1758_v4, %s2057_s11  ;;  %977 = vrot.lane.b32.xlu2 %v1786_v49, %s2058_s21 }
  0x9a   : > { %v2245_v7 = vpop.permute.xlu2 %394 }
  0x9f   : > { %965 = vrot.lane.b32.xlu1 %v1762_v50, %s2058_s21  ;;  %v2308_v50 = vor.u32 %v1921_v44, %v1843_v43 }
  0xa0   : > { %979 = vrot.lane.b32.xlu0 %v1790_v46, %s2058_s21  ;;  %967 = vrot.lane.b32.xlu2 %v1766_v58, %s2058_s21  ;;  %v1915_v46 = vld [vmem:[%s2149_s7 + $0x14] sm:$0xf]  ;;  %v1839_v58 = vld [vmem:[%s2149_s7 + $0x18] sm:$0xf] }
  0xa1   : > { %v413_v8 = vpop.permute.xlu1 %412 }
  0xa2   : > { %v409_v9 = vpop.permute.xlu0 %408  ;;  %v2250_v10 = vpop.permute.xlu2 %587 }
  0xa7   : > { %973 = vrot.lane.b32.xlu1 %v1778_v59, %s2058_s21 }
  0xa8   : > { %971 = vrot.lane.b32.xlu0 %v1774_v55, %s2058_s21  ;;  %969 = vrot.lane.b32.xlu2 %v1770_v3, %s2058_s21  ;;  %v1823_v55 = vld [vmem:[%s2149_s7 + $0x8] sm:$0xf] }
  0xa9   : > { %v399_v11 = vpop.permute.xlu1 %398  ;;  %v2339_v62 = vor.u32 %v1916_v56, %v1823_v55 }
  0xaa   : > { %v411_v12 = vpop.permute.xlu0 %410  ;;  %v2260_v18 = vpop.permute.xlu2 %577  ;;  %v417_v21 = vsel %vm414_vm0, %v399_v11, %v401_v5 }
  0xab   : > { %v421_v13 = vsel %vm414_vm0, %v409_v9, %v411_v12  ;;  %v422_v15 = vsel %vm414_vm0, %v411_v12, %v413_v8 }
  0xac   : > { %469 = vmatpush.bf16.msra.mxu2 %v421_v13  ;;  %483 = vmatpush.bf16.msra.mxu3 %v422_v15 }
  0xaf   : > { %963 = vrot.lane.b32.xlu1 %v1758_v4, %s2058_s21 }
  0xb0   : > { %470 = vmatpush.bf16.msra.mxu2 %v417_v21  ;;  %961 = vrot.lane.b32.xlu0 %v1754_v0, %s2058_s21  ;;  %v1825_v0 = vld [vmem:[%s2149_s7 + $0x24] sm:$0xf0] }
  0xb1   : > { %v403_v28 = vpop.permute.xlu1 %402  ;;  %1141 = vrot.lane.b32.xlu2 %v2262_v20, %s2059_s25  ;;  %v2348_v2 = vor.u32 %v1914_v63, %v1825_v0 }
  0xb2   : > { %v407_v31 = vpop.permute.xlu0 %406  ;;  %v418_v32 = vsel %vm414_vm0, %v401_v5, %v403_v28  ;;  %v580_v41 = vpop.permute.xlu2 %579 }
  0xb3   : > { %v419_v33 = vsel %vm414_vm0, %v405_v6, %v407_v31  ;;  %v420_v36 = vsel %vm414_vm0, %v407_v31, %v409_v9  ;;  %484 = vmatpush.bf16.msra.mxu3 %v418_v32  ;;  %1725 = vmatmul.msk.bf16.vlgmr.msra.gmra.mxu2 %vm431_vm1, %v1899_v23  ;;  %v1911_v31 = vld [vmem:[%s2266_s12 + $0x18] sm:$0xff] }
  0xb4   : > { %541 = vmatpush.bf16.msrb.mxu2 %v2155_v14  ;;  %v1831_v14 = vld [vmem:[%s2149_s7 + $0x10] sm:$0xf]  ;;  %441 = vmatpush.bf16.msra.mxu0 %v419_v33 }
  0xb5   : > { %455 = vmatpush.bf16.msra.mxu1 %v420_v36  ;;  %v2290_v42 = vor.u32 %v1917_v39, %v1831_v14 }
  0xb6   : > { %1726 = vmatmul.msk.bf16.vlgmr.msra.gmra.mxu3 %vm431_vm1, %v1899_v23 }
  0xb7   : > { %555 = vmatpush.bf16.msrb.mxu3 %v2174_v25  ;;  %1145 = vrot.lane.b32.xlu1 %v2280_v37, %s2059_s25 }
  0xb8   : > { %542 = vmatpush.bf16.msrb.mxu2 %v2170_v22  ;;  %1143 = vrot.lane.b32.xlu0 %v2285_v40, %s2059_s25  ;;  %v1833_v22 = vld [vmem:[%s2149_s7 + $0x2c] sm:$0xf0] }
  0xb9   : > { %v586_v45 = vpop.permute.xlu1 %585  ;;  %1131 = vrot.lane.b32.xlu2 %v2290_v42, %s2059_s25  ;;  %v2312_v52 = vor.u32 %v1915_v46, %v1833_v22  ;;  %v1912_v22 = vld [vmem:[%s2266_s12 + $0x20] sm:$0xff] }
  0xba   : > { %v598_v25 = vsel %vm591_vm2, %v586_v45, %v2250_v10  ;;  %v397_v47 = vpop.permute.xlu0 %396  ;;  %v2314_v53 = vpop.permute.xlu2 %751 }
  0xbb   : > { %556 = vmatpush.bf16.msrb.mxu3 %v2164_v19  ;;  %v415_v48 = vsel %vm414_vm0, %v2245_v7, %v397_v47  ;;  %v416_v49 = vsel %vm414_vm0, %v397_v47, %v399_v11  ;;  %v1845_v19 = vld [vmem:[%s2149_s7 + $0x5c] sm:$0xf0] }
  0xbc   : > { %645 = vmatpush.bf16.msra.mxu2 %v598_v25  ;;  %442 = vmatpush.bf16.msra.mxu0 %v415_v48  ;;  %v2318_v54 = vor.u32 %v1919_v51, %v1845_v19 }
  0xbd   : > { %456 = vmatpush.bf16.msra.mxu1 %v416_v49 }
  0xbf   : > { %1137 = vrot.lane.b32.xlu1 %v2308_v50, %s2059_s25  ;;  %1723 = vmatmul.msk.bf16.vlgmr.msra.gmra.mxu0 %vm431_vm1, %v1899_v23 }
  0xc0   : > { %513 = vmatpush.bf16.msrb.mxu0 %v2176_v26  ;;  %1133 = vrot.lane.b32.xlu0 %v2312_v52, %s2059_s25 }
  0xc1   : > { %527 = vmatpush.bf16.msrb.mxu1 %v2190_v34  ;;  %v576_v26 = vpop.permute.xlu1 %575  ;;  %v1918_v34 = vld [vmem:[%s2149_s7 + $0x30] sm:$0xf0]  ;;  %1139 = vrot.lane.b32.xlu2 %v2318_v54, %s2059_s25 }
  0xc2   : > { %1724 = vmatmul.msk.bf16.vlgmr.msra.gmra.mxu1 %vm431_vm1, %v1899_v23  ;;  %v590_v59 = vpop.permute.xlu0 %589  ;;  %v594_v60 = vsel %vm591_vm2, %v576_v26, %v2260_v18  ;;  %v2343_v1 = vor.u32 %v1918_v34, %v1839_v58 }
  0xc3   : > { %v599_v61 = vsel %vm591_vm2, %v2250_v10, %v590_v59  ;;  %646 = vmatpush.bf16.msra.mxu2 %v594_v60  ;;  %v1900_v10 = vld [vmem:[%s2266_s12 + $0x10] sm:$0xff]  ;;  %v1913_v59 = vld [vmem:[%s2266_s12 + $0x28] sm:$0xff] }
  0xc4   : > { %514 = vmatpush.bf16.msrb.mxu0 %v2192_v35  ;;  %659 = vmatpush.bf16.msra.mxu3 %v599_v61  ;;  %v742_v35 = vpop.permute.xlu2 %741 }
  0xc5   : > { %528 = vmatpush.bf16.msrb.mxu1 %v2201_v38  ;;  %1733 = vmatmul.msk.bf16.vlgmr.msrb.gmra.mxu2 %vm431_vm1, %v1896_v57  ;;  %v595_v38 = vsel %vm591_vm2, %v2260_v18, %v580_v41 }
  0xc6   : > { %1734 = vmatmul.msk.bf16.vlgmr.msrb.gmra.mxu3 %vm431_vm1, %v1896_v57 }
  0xc7   : > { %1127 = vrot.lane.b32.xlu1 %v2339_v62, %s2059_s25 }
  0xc8   : > { %1135 = vrot.lane.b32.xlu0 %v2343_v1, %s2059_s25  ;;  %660 = vmatpush.bf16.msra.mxu3 %v595_v38 }
  0xc9   : > { %v584_v3 = vpop.permute.xlu1 %583  ;;  %1129 = vrot.lane.b32.xlu2 %v2348_v2, %s2059_s25 }
  0xca   : > { %v597_v4 = vsel %vm591_vm2, %v584_v3, %v586_v45  ;;  %v582_v5 = vpop.permute.xlu0 %581 }
  0xcb   : > { %v596_v6 = vsel %vm591_vm2, %v582_v5, %v584_v3  ;;  %631 = vmatpush.bf16.msra.mxu1 %v597_v4 }
  0xcc   : > { %617 = vmatpush.bf16.msra.mxu0 %v596_v6  ;;  %v750_v7 = vpop.permute.xlu2 %749 }
  0xcd   : > { %v763_v9 = vsel %vm757_vm3, %v750_v7, %v2314_v53 }
  0xcf   : > { %1255 = vrot.lane.b32.xlu1 %v2285_v40, %s2060_s26  ;;  %1731 = vmatmul.msk.bf16.vlgmr.msrb.gmra.mxu0 %vm431_vm1, %v1896_v57 }
  0xd0   : > { %1253 = vrot.lane.b32.xlu0 %v2262_v20, %s2060_s26 }
  0xd1   : > { %v574_v8 = vpop.permute.xlu1 %573  ;;  %1257 = vrot.lane.b32.xlu2 %v2280_v37, %s2060_s26 }
  0xd2   : > { %1732 = vmatmul.msk.bf16.vlgmr.msrb.gmra.mxu1 %vm431_vm1, %v1896_v57  ;;  %v572_v11 = vpop.permute.xlu0 %571  ;;  %v593_v12 = vsel %vm591_vm2, %v574_v8, %v576_v26 }
  0xd3   : > { %v592_v13 = vsel %vm591_vm2, %v572_v11, %v574_v8  ;;  %632 = vmatpush.bf16.msra.mxu1 %v593_v12 }
  0xd4   : > { %618 = vmatpush.bf16.msra.mxu0 %v592_v13  ;;  %v740_v15 = vpop.permute.xlu2 %739 }
  0xd5   : > { %1743 = vmatmul.msk.bf16.vlgmr.msra.gmra.mxu2 %vm431_vm1, %v1900_v10  ;;  %v759_v16 = vsel %vm757_vm3, %v740_v15, %v742_v35 }
  0xd6   : > { %1744 = vmatmul.msk.bf16.vlgmr.msra.gmra.mxu3 %vm431_vm1, %v1900_v10 }
  0xd7   : > { %797 = vmatpush.bf16.msrb.mxu1 %v763_v9  ;;  %1245 = vrot.lane.b32.xlu1 %v2312_v52, %s2060_s26 }
  0xd8   : > { %1243 = vrot.lane.b32.xlu0 %v2290_v42, %s2060_s26 }
  0xd9   : > { %v756_v17 = vpop.permute.xlu1 %755  ;;  %1249 = vrot.lane.b32.xlu2 %v2308_v50, %s2060_s26 }
  0xda   : > { %v754_v18 = vpop.permute.xlu0 %753 }
  0xdb   : > { %798 = vmatpush.bf16.msrb.mxu1 %v759_v16  ;;  %v764_v21 = vsel %vm757_vm3, %v2314_v53, %v754_v18  ;;  %v765_v23 = vsel %vm757_vm3, %v754_v18, %v756_v17  ;;  %v1924_v18 = vld [vmem:[%s2266_s12 + $0x30] sm:$0xff] }
  0xdc   : > { %811 = vmatpush.bf16.msrb.mxu2 %v764_v21  ;;  %825 = vmatpush.bf16.msrb.mxu3 %v765_v23  ;;  %v868_v24 = vpop.permute.xlu2 %867 }
  0xdf   : > { %1247 = vrot.lane.b32.xlu1 %v2343_v1, %s2060_s26  ;;  %1741 = vmatmul.msk.bf16.vlgmr.msra.gmra.mxu0 %vm431_vm1, %v1900_v10 }
  0xe0   : > { %1251 = vrot.lane.b32.xlu0 %v2318_v54, %s2060_s26 }
  0xe1   : > { %v748_v27 = vpop.permute.xlu1 %747  ;;  %1239 = vrot.lane.b32.xlu2 %v2339_v62, %s2060_s26 }
  0xe2   : > { %1742 = vmatmul.msk.bf16.vlgmr.msra.gmra.mxu1 %vm431_vm1, %v1900_v10  ;;  %v762_v28 = vsel %vm757_vm3, %v748_v27, %v750_v7  ;;  %v744_v29 = vpop.permute.xlu0 %743 }
  0xe3   : > { %783 = vmatpush.bf16.msrb.mxu0 %v762_v28  ;;  %v760_v30 = vsel %vm757_vm3, %v742_v35, %v744_v29 }
  0xe4   : > { %812 = vmatpush.bf16.msrb.mxu2 %v760_v30  ;;  %v860_v32 = vpop.permute.xlu2 %859 }
  0xe7   : > { %1365 = vrot.lane.b32.xlu1 %v2262_v20, %s2061_s27  ;;  %1793 = vmatmul.msk.bf16.vlgmr.msrb.gmra.mxu2 %vm431_vm1, %v1911_v31 }
  0xe8   : > { %1241 = vrot.lane.b32.xlu0 %v2348_v2, %s2060_s26 }
  0xe9   : > { %v738_v33 = vpop.permute.xlu1 %737  ;;  %1367 = vrot.lane.b32.xlu2 %v2285_v40, %s2061_s27 }
  0xea   : > { %v746_v36 = vpop.permute.xlu0 %745  ;;  %v758_v14 = vsel %vm757_vm3, %v738_v33, %v740_v15 }
  0xeb   : > { %784 = vmatpush.bf16.msrb.mxu0 %v758_v14  ;;  %v761_v39 = vsel %vm757_vm3, %v744_v29, %v746_v36 }
  0xec   : > { %826 = vmatpush.bf16.msrb.mxu3 %v761_v39  ;;  %v850_v41 = vpop.permute.xlu2 %849 }
  0xef   : > { %1355 = vrot.lane.b32.xlu1 %v2290_v42, %s2061_s27  ;;  %1794 = vmatmul.msk.bf16.vlgmr.msrb.gmra.mxu3 %vm431_vm1, %v1911_v31 }
  0xf0   : > { %1369 = vrot.lane.b32.xlu0 %v2280_v37, %s2061_s27  ;;  %1791 = vmatmul.msk.bf16.vlgmr.msrb.gmra.mxu0 %vm431_vm1, %v1911_v31 }
  0xf1   : > { %v866_v20 = vpop.permute.xlu1 %865  ;;  %1357 = vrot.lane.b32.xlu2 %v2312_v52, %s2061_s27 }
  0xf2   : > { %1792 = vmatmul.msk.bf16.vlgmr.msrb.gmra.mxu1 %vm431_vm1, %v1911_v31  ;;  %v877_v40 = vsel %vm869_vm4, %v866_v20, %v868_v24  ;;  %v864_v43 = vpop.permute.xlu0 %863 }
  0xf3   : > { %v876_v42 = vsel %vm869_vm4, %v864_v43, %v866_v20  ;;  %937 = vmatpush.bf16.msra.mxu3 %v877_v40 }
  0xf4   : > { %923 = vmatpush.bf16.msra.mxu2 %v876_v42  ;;  %v978_v44 = vpop.permute.xlu2 %977 }
  0xf7   : > { %1363 = vrot.lane.b32.xlu1 %v2318_v54, %s2061_s27 }
  0xf8   : > { %1361 = vrot.lane.b32.xlu0 %v2308_v50, %s2061_s27 }
  0xf9   : > { %v856_v37 = vpop.permute.xlu1 %855  ;;  %1359 = vrot.lane.b32.xlu2 %v2343_v1, %s2061_s27 }
  0xfa   : > { %v854_v45 = vpop.permute.xlu0 %853 }
  0xfb   : > { %v872_v46 = vsel %vm869_vm4, %v854_v45, %v856_v37 }
  0xfc   : > { %924 = vmatpush.bf16.msra.mxu2 %v872_v46  ;;  %v968_v25 = vpop.permute.xlu2 %967 }
  0xff   : > { %1803 = vmatmul.msk.bf16.vlgmr.msra.gmra.mxu2 %vm431_vm1, %v1912_v22  ;;  %1353 = vrot.lane.b32.xlu1 %v2348_v2, %s2061_s27 }
 0x100   : > { %1351 = vrot.lane.b32.xlu0 %v2339_v62, %s2061_s27 }
 0x101   : > { %v858_v47 = vpop.permute.xlu1 %857 }
 0x102   : > { %v862_v48 = vpop.permute.xlu0 %861  ;;  %v873_v49 = vsel %vm869_vm4, %v856_v37, %v858_v47 }
 0x103   : > { %v874_v50 = vsel %vm869_vm4, %v860_v32, %v862_v48  ;;  %v875_v51 = vsel %vm869_vm4, %v862_v48, %v864_v43  ;;  %938 = vmatpush.bf16.msra.mxu3 %v873_v49  ;;  %v1925_v49 = vld [vmem:[%s2266_s12 + $0x38] sm:$0xff] }
 0x104   : > { %895 = vmatpush.bf16.msra.mxu0 %v874_v50  ;;  %909 = vmatpush.bf16.msra.mxu1 %v875_v51  ;;  %v970_v19 = vpop.permute.xlu2 %969 }
 0x105   : > { %v985_v62 = vsel %vm981_vm5, %v968_v25, %v970_v19 }
 0x106   : > { %1804 = vmatmul.msk.bf16.vlgmr.msra.gmra.mxu3 %vm431_vm1, %v1912_v22 }
 0x109   : > { %v976_v52 = vpop.permute.xlu1 %975 }
 0x10a   : > { %v988_v53 = vsel %vm981_vm5, %v976_v52, %v978_v44  ;;  %v852_v54 = vpop.permute.xlu0 %851 }
 0x10b   : > { %v870_v55 = vsel %vm869_vm4, %v850_v41, %v852_v54  ;;  %v871_v56 = vsel %vm869_vm4, %v852_v54, %v854_v45  ;;  %1035 = vmatpush.bf16.msrb.mxu2 %v988_v53 }
 0x10c   : > { %896 = vmatpush.bf16.msra.mxu0 %v870_v55  ;;  %910 = vmatpush.bf16.msra.mxu1 %v871_v56  ;;  %v1142_v57 = vpop.permute.xlu2 %1141 }
 0x10f   : > { %1801 = vmatmul.msk.bf16.vlgmr.msra.gmra.mxu0 %vm431_vm1, %v1912_v22  ;;  %1802 = vmatmul.msk.bf16.vlgmr.msra.gmra.mxu1 %vm431_vm1, %v1912_v22 }
 0x111   : > { %v966_v26 = vpop.permute.xlu1 %965 }
 0x112   : > { %v980_v58 = vpop.permute.xlu0 %979  ;;  %v984_v34 = vsel %vm981_vm5, %v966_v26, %v968_v25 }
 0x113   : > { %v989_v60 = vsel %vm981_vm5, %v978_v44, %v980_v58  ;;  %1036 = vmatpush.bf16.msrb.mxu2 %v984_v34 }
 0x114   : > { %1049 = vmatpush.bf16.msrb.mxu3 %v989_v60  ;;  %v1132_v61 = vpop.permute.xlu2 %1131 }
 0x116   : > { %1813 = vmatmul.msk.bf16.vlgmr.msrb.gmra.mxu2 %vm431_vm1, %v1913_v59 }
 0x118   : > { %1050 = vmatpush.bf16.msrb.mxu3 %v985_v62 }
 0x119   : > { %v974_v63 = vpop.permute.xlu1 %973 }
 0x11a   : > { %v987_v0 = vsel %vm981_vm5, %v974_v63, %v976_v52  ;;  %v972_v1 = vpop.permute.xlu0 %971 }
 0x11b   : > { %v986_v35 = vsel %vm981_vm5, %v972_v1, %v974_v63  ;;  %1814 = vmatmul.msk.bf16.vlgmr.msrb.gmra.mxu3 %vm431_vm1, %v1913_v59  ;;  %1021 = vmatpush.bf16.msrb.mxu1 %v987_v0 }
 0x11c   : > { %1007 = vmatpush.bf16.msrb.mxu0 %v986_v35  ;;  %v1140_v38 = vpop.permute.xlu2 %1139 }
 0x11d   : > { %v1153_v3 = vsel %vm1147_vm6, %v1140_v38, %v1142_v57 }
 0x121   : > { %v964_v2 = vpop.permute.xlu1 %963 }
 0x122   : > { %v962_v4 = vpop.permute.xlu0 %961  ;;  %v983_v5 = vsel %vm981_vm5, %v964_v2, %v966_v26 }
 0x123   : > { %v982_v6 = vsel %vm981_vm5, %v962_v4, %v964_v2  ;;  %1022 = vmatpush.bf16.msrb.mxu1 %v983_v5 }
 0x124   : > { %1008 = vmatpush.bf16.msrb.mxu0 %v982_v6  ;;  %v1130_v7 = vpop.permute.xlu2 %1129 }
 0x125   : > { %v1149_v8 = vsel %vm1147_vm6, %v1130_v7, %v1132_v61 }
 0x126   : > { %1812 = vmatmul.msk.bf16.vlgmr.msrb.gmra.mxu1 %vm431_vm1, %v1913_v59 }
 0x127   : > { %1187 = vmatpush.bf16.msra.mxu1 %v1153_v3  ;;  %1811 = vmatmul.msk.bf16.vlgmr.msrb.gmra.mxu0 %vm431_vm1, %v1913_v59 }
 0x129   : > { %v1146_v9 = vpop.permute.xlu1 %1145 }
 0x12a   : > { %v1144_v10 = vpop.permute.xlu0 %1143 }
 0x12b   : > { %1188 = vmatpush.bf16.msra.mxu1 %v1149_v8  ;;  %v1154_v11 = vsel %vm1147_vm6, %v1142_v57, %v1144_v10  ;;  %v1155_v12 = vsel %vm1147_vm6, %v1144_v10, %v1146_v9 }
 0x12c   : > { %1201 = vmatpush.bf16.msra.mxu2 %v1154_v11  ;;  %1215 = vmatpush.bf16.msra.mxu3 %v1155_v12  ;;  %v1258_v13 = vpop.permute.xlu2 %1257 }
 0x131   : > { %v1138_v15 = vpop.permute.xlu1 %1137 }
 0x132   : > { %v1152_v16 = vsel %vm1147_vm6, %v1138_v15, %v1140_v38  ;;  %v1134_v17 = vpop.permute.xlu0 %1133 }
 0x133   : > { %1173 = vmatpush.bf16.msra.mxu0 %v1152_v16  ;;  %v1150_v21 = vsel %vm1147_vm6, %v1132_v61, %v1134_v17 }
 0x134   : > { %1202 = vmatpush.bf16.msra.mxu2 %v1150_v21  ;;  %v1250_v30 = vpop.permute.xlu2 %1249 }
 0x136   : > { %1862 = vmatmul.msk.bf16.vlgmr.msra.gmra.mxu1 %vm431_vm1, %v1924_v18  ;;  %v472_v23 = vpop.f32.mrf.mxu2 }
 0x137   : > { %1863 = vmatmul.msk.bf16.vlgmr.msra.gmra.mxu2 %vm431_vm1, %v1924_v18 }
 0x139   : > { %v1128_v24 = vpop.permute.xlu1 %1127  ;;  %v486_v27 = vpop.f32.mrf.mxu3 }
 0x13a   : > { %v1136_v28 = vpop.permute.xlu0 %1135  ;;  %v1148_v29 = vsel %vm1147_vm6, %v1128_v24, %v1130_v7  ;;  %v1926_v24 = vld [vmem:[%s2266_s12 + $0x40] sm:$0xff] }
 0x13b   : > { %1174 = vmatpush.bf16.msra.mxu0 %v1148_v29  ;;  %v1151_v31 = vsel %vm1147_vm6, %v1134_v17, %v1136_v28 }
 0x13c   : > { %1216 = vmatpush.bf16.msra.mxu3 %v1151_v31  ;;  %v444_v32 = vpop.f32.mrf.mxu0  ;;  %v1240_v42 = vpop.permute.xlu2 %1239 }
 0x13e   : > { %1861 = vmatmul.msk.bf16.vlgmr.msra.gmra.mxu0 %vm431_vm1, %v1924_v18  ;;  %v474_v36 = vpop.f32.mrf.mxu2 }
 0x13f   : > { %v458_v33 = vpop.f32.mrf.mxu1  ;;  %1864 = vmatmul.msk.bf16.vlgmr.msra.gmra.mxu3 %vm431_vm1, %v1924_v18 }
 0x141   : > { %v1256_v14 = vpop.permute.xlu1 %1255  ;;  %v488_v39 = vpop.f32.mrf.mxu3 }
 0x142   : > { %v1267_v41 = vsel %vm1259_vm7, %v1256_v14, %v1258_v13  ;;  %v1254_v20 = vpop.permute.xlu0 %1253 }
 0x143   : > { %v1266_v40 = vsel %vm1259_vm7, %v1254_v20, %v1256_v14  ;;  %1327 = vmatpush.bf16.msrb.mxu3 %v1267_v41 }
 0x144   : > { %1313 = vmatpush.bf16.msrb.mxu2 %v1266_v40  ;;  %v446_v43 = vpop.f32.mrf.mxu0  ;;  %v1368_v53 = vpop.permute.xlu2 %1367 }
 0x147   : > { %v460_v44 = vpop.f32.mrf.mxu1 }
 0x148   : > { %v544_v37 = vpop.f32.mrf.mxu2 }
 0x149   : > { %v545_v45 = vadd.f32 %v544_v37, %v472_v23  ;;  %v1246_v46 = vpop.permute.xlu1 %1245  ;;  %v558_v22 = vpop.f32.mrf.mxu3 }
 0x14a   : > { %v1244_v25 = vpop.permute.xlu0 %1243  ;;  %v559_v47 = vadd.f32 %v558_v22, %v486_v27 }
 0x14b   : > { %v1262_v48 = vsel %vm1259_vm7, %v1244_v25, %v1246_v46 }
 0x14c   : > { %1314 = vmatpush.bf16.msrb.mxu2 %v1262_v48  ;;  %v516_v50 = vpop.f32.mrf.mxu0  ;;  %v1358_v1 = vpop.permute.xlu2 %1357 }
 0x14d   : > { %v517_v51 = vadd.f32 %v516_v50, %v444_v32 }
 0x14f   : > { %v530_v19 = vpop.f32.mrf.mxu1  ;;  %1873 = vmatmul.msk.bf16.vlgmr.msrb.gmra.mxu2 %vm431_vm1, %v1925_v49 }
 0x150   : > { %v531_v52 = vadd.f32 %v530_v19, %v458_v33  ;;  %v546_v54 = vpop.f32.mrf.mxu2 }
 0x151   : > { %v547_v55 = vadd.f32 %v546_v54, %v474_v36  ;;  %v1248_v56 = vpop.permute.xlu1 %1247  ;;  %v560_v57 = vpop.f32.mrf.mxu3 }
 0x152   : > { %v1252_v26 = vpop.permute.xlu0 %1251  ;;  %v1263_v58 = vsel %vm1259_vm7, %v1246_v46, %v1248_v56  ;;  %v561_v34 = vadd.f32 %v560_v57, %v488_v39 }
 0x153   : > { %v1264_v59 = vsel %vm1259_vm7, %v1250_v30, %v1252_v26  ;;  %v1265_v60 = vsel %vm1259_vm7, %v1252_v26, %v1254_v20  ;;  %1328 = vmatpush.bf16.msrb.mxu3 %v1263_v58 }
 0x154   : > { %1285 = vmatpush.bf16.msrb.mxu0 %v1264_v59  ;;  %1299 = vmatpush.bf16.msrb.mxu1 %v1265_v60  ;;  %v518_v61 = vpop.f32.mrf.mxu0  ;;  %v1360_v23 = vpop.permute.xlu2 %1359 }
 0x155   : > { %v519_v62 = vadd.f32 %v518_v61, %v446_v43  ;;  %v1375_v30 = vsel %vm1371_vm8, %v1358_v1, %v1360_v23 }
 0x156   : > { %1874 = vmatmul.msk.bf16.vlgmr.msrb.gmra.mxu3 %vm431_vm1, %v1925_v49 }
 0x157   : > { %v532_v63 = vpop.f32.mrf.mxu1 }
 0x158   : > { %v533_v0 = vadd.f32 %v532_v63, %v460_v44  ;;  %v648_v35 = vpop.f32.mrf.mxu2 }
 0x159   : > { %v1366_v38 = vpop.permute.xlu1 %1365  ;;  %v669_v2 = vadd.f32 %v648_v35, %v545_v45  ;;  %v662_v3 = vpop.f32.mrf.mxu3 }
 0x15a   : > { %v1378_v4 = vsel %vm1371_vm8, %v1366_v38, %v1368_v53  ;;  %v1242_v5 = vpop.permute.xlu0 %1241  ;;  %v670_v6 = vadd.f32 %v662_v3, %v559_v47 }
 0x15b   : > { %v1260_v7 = vsel %vm1259_vm7, %v1240_v42, %v1242_v5  ;;  %v1261_v8 = vsel %vm1259_vm7, %v1242_v5, %v1244_v25  ;;  %1425 = vmatpush.bf16.msra.mxu2 %v1378_v4 }
 0x15c   : > { %1286 = vmatpush.bf16.msrb.mxu0 %v1260_v7  ;;  %1300 = vmatpush.bf16.msrb.mxu1 %v1261_v8  ;;  %v620_v9 = vpop.f32.mrf.mxu0 }
 0x15d   : > { %v667_v10 = vadd.f32 %v620_v9, %v517_v51 }
 0x15f   : > { %v634_v11 = vpop.f32.mrf.mxu1  ;;  %1871 = vmatmul.msk.bf16.vlgmr.msrb.gmra.mxu0 %vm431_vm1, %v1925_v49  ;;  %1872 = vmatmul.msk.bf16.vlgmr.msrb.gmra.mxu1 %vm431_vm1, %v1925_v49 }
 0x160   : > { %v668_v12 = vadd.f32 %v634_v11, %v531_v52  ;;  %v650_v13 = vpop.f32.mrf.mxu2 }
 0x161   : > { %v1356_v15 = vpop.permute.xlu1 %1355  ;;  %v673_v16 = vadd.f32 %v650_v13, %v547_v55  ;;  %v664_v17 = vpop.f32.mrf.mxu3 }
 0x162   : > { %v1370_v18 = vpop.permute.xlu0 %1369  ;;  %v1374_v21 = vsel %vm1371_vm8, %v1356_v15, %v1358_v1  ;;  %v674_v27 = vadd.f32 %v664_v17, %v561_v34 }
 0x163   : > { %v1379_v28 = vsel %vm1371_vm8, %v1368_v53, %v1370_v18  ;;  %1426 = vmatpush.bf16.msra.mxu2 %v1374_v21 }
 0x164   : > { %1439 = vmatpush.bf16.msra.mxu3 %v1379_v28  ;;  %v622_v29 = vpop.f32.mrf.mxu0 }
 0x165   : > { %v671_v31 = vadd.f32 %v622_v29, %v519_v62 }
 0x166   : > { %1883 = vmatmul.msk.bf16.vlgmr.msra.gmra.mxu2 %vm431_vm1, %v1926_v24 }
 0x167   : > { %v636_v32 = vpop.f32.mrf.mxu1 }
 0x168   : > { %v672_v33 = vadd.f32 %v636_v32, %v533_v0  ;;  %1440 = vmatpush.bf16.msra.mxu3 %v1375_v30 }
 0x169   : > { %v1364_v36 = vpop.permute.xlu1 %1363 }
 0x16a   : > { %v1377_v14 = vsel %vm1371_vm8, %v1364_v36, %v1366_v38  ;;  %v1362_v39 = vpop.permute.xlu0 %1361  ;;  %v814_v41 = vpop.f32.mrf.mxu2 }
 0x16b   : > { %v1376_v20 = vsel %vm1371_vm8, %v1362_v39, %v1364_v36  ;;  %1884 = vmatmul.msk.bf16.vlgmr.msra.gmra.mxu3 %vm431_vm1, %v1926_v24  ;;  %1411 = vmatpush.bf16.msra.mxu1 %v1377_v14  ;;  %v835_v40 = vadd.f32 %v814_v41, %v669_v2 }
 0x16c   : > { %1397 = vmatpush.bf16.msra.mxu0 %v1376_v20  ;;  %v1455_v20 = vld [vmem:[%s2554_s2] sm:$0xf] }
 0x16d   : > { %v786_v43 = vpop.f32.mrf.mxu0 }
 0x16e   : > { %v833_v42 = vadd.f32 %v786_v43, %v667_v10 }
 0x16f   : > { %v800_v44 = vpop.f32.mrf.mxu1 }
 0x170   : > { %v834_v37 = vadd.f32 %v800_v44, %v668_v12 }
 0x171   : > { %v1354_v45 = vpop.permute.xlu1 %1353 }
 0x172   : > { %v1352_v46 = vpop.permute.xlu0 %1351  ;;  %v1373_v22 = vsel %vm1371_vm8, %v1354_v45, %v1356_v15  ;;  %v828_v25 = vpop.f32.mrf.mxu3 }
 0x173   : > { %v1372_v47 = vsel %vm1371_vm8, %v1352_v46, %v1354_v45  ;;  %1412 = vmatpush.bf16.msra.mxu1 %v1373_v22  ;;  %v836_v48 = vadd.f32 %v828_v25, %v670_v6  ;;  %v816_v49 = vpop.f32.mrf.mxu2  ;;  %v1458_v25 = vperm.slane %v1455_v20, 1 }
 0x174   : > { %1398 = vmatpush.bf16.msra.mxu0 %v1372_v47  ;;  %v839_v50 = vadd.f32 %v816_v49, %v673_v16  ;;  %v1459_v49 = vperm.slane %v1455_v20, 2 }
 0x175   : > { %v788_v51 = vpop.f32.mrf.mxu0 }
 0x176   : > { %1882 = vmatmul.msk.bf16.vlgmr.msra.gmra.mxu1 %vm431_vm1, %v1926_v24  ;;  %v2487_v19 = vadd.f32 %v788_v51, %v671_v31  ;;  %v1457_v51 = vperm.slane %v1455_v20, 0 }
 0x177   : > { %v802_v52 = vpop.f32.mrf.mxu1  ;;  %1881 = vmatmul.msk.bf16.vlgmr.msra.gmra.mxu0 %vm431_vm1, %v1926_v24 }
 0x178   : > { %v838_v53 = vadd.f32 %v802_v52, %v672_v33 }
 0x17a   : > { %v830_v54 = vpop.f32.mrf.mxu3 }
 0x17b   : > { %v840_v55 = vadd.f32 %v830_v54, %v674_v27 }
 0x182   : > { %v926_v56 = vpop.f32.mrf.mxu2 }
 0x183   : > { %v947_v21 = vadd.f32 %v926_v56, %v835_v40 }
 0x189   : > { %v940_v57 = vpop.f32.mrf.mxu3 }
 0x18a   : > { %v928_v34 = vpop.f32.mrf.mxu2  ;;  %v948_v24 = vadd.f32 %v940_v57, %v836_v48  ;;  %v1460_v57 = vperm.slane %v1455_v20, 3 }
 0x18b   : > { %v951_v44 = vadd.f32 %v928_v34, %v839_v50 }
 0x18c   : > { %v912_v26 = vpop.f32.mrf.mxu1  ;;  %v898_v58 = vpop.f32.mrf.mxu0 }
 0x18d   : > { %v946_v27 = vadd.f32 %v912_v26, %v834_v37  ;;  %v945_v29 = vadd.f32 %v898_v58, %v833_v42 }
 0x191   : > { %v942_v59 = vpop.f32.mrf.mxu3 }
 0x192   : > { %v952_v40 = vadd.f32 %v942_v59, %v840_v55 }
 0x194   : > { %v914_v60 = vpop.f32.mrf.mxu1  ;;  %v900_v61 = vpop.f32.mrf.mxu0 }
 0x195   : > { %v950_v37 = vadd.f32 %v914_v60, %v838_v53  ;;  %v949_v54 = vadd.f32 %v900_v61, %v2487_v19 }
 0x199   : > { %v1038_v62 = vpop.f32.mrf.mxu2 }
 0x19a   : > { %v1059_v30 = vadd.f32 %v1038_v62, %v947_v21 }
 0x19e   : > { %v1052_v63 = vpop.f32.mrf.mxu3 }
 0x19f   : > { %v1060_v31 = vadd.f32 %v1052_v63, %v948_v24 }
 0x1a1   : > { %v1040_v35 = vpop.f32.mrf.mxu2 }
 0x1a2   : > { %v1063_v55 = vadd.f32 %v1040_v35, %v951_v44 }
 0x1a3   : > { %v1024_v0 = vpop.f32.mrf.mxu1 }
 0x1a4   : > { %v1010_v1 = vpop.f32.mrf.mxu0  ;;  %v1058_v32 = vadd.f32 %v1024_v0, %v946_v27 }
 0x1a5   : > { %v1057_v36 = vadd.f32 %v1010_v1, %v945_v29 }
 0x1a6   : > { %v1054_v38 = vpop.f32.mrf.mxu3 }
 0x1a7   : > { %v1064_v34 = vadd.f32 %v1054_v38, %v952_v40 }
 0x1ab   : > { %v1026_v2 = vpop.f32.mrf.mxu1 }
 0x1ac   : > { %v1012_v3 = vpop.f32.mrf.mxu0  ;;  %v1062_v58 = vadd.f32 %v1026_v2, %v950_v37 }
 0x1ad   : > { %v1061_v59 = vadd.f32 %v1012_v3, %v949_v54 }
 0x1b3   : > { %v1190_v6 = vpop.f32.mrf.mxu1 }
 0x1b4   : > { %v1224_v39 = vadd.f32 %v1190_v6, %v1058_v32 }
 0x1ba   : > { %v1204_v4 = vpop.f32.mrf.mxu2 }
 0x1bb   : > { %v1176_v7 = vpop.f32.mrf.mxu0  ;;  %v1192_v10 = vpop.f32.mrf.mxu1  ;;  %v1225_v14 = vadd.f32 %v1204_v4, %v1059_v30 }
 0x1bc   : > { %v1223_v45 = vadd.f32 %v1176_v7, %v1057_v36  ;;  %v1228_v62 = vadd.f32 %v1192_v10, %v1062_v58 }
 0x1c2   : > { %v1218_v5 = vpop.f32.mrf.mxu3  ;;  %v1206_v8 = vpop.f32.mrf.mxu2 }
 0x1c3   : > { %v1178_v11 = vpop.f32.mrf.mxu0  ;;  %v1226_v41 = vadd.f32 %v1218_v5, %v1060_v31  ;;  %v1229_v63 = vadd.f32 %v1206_v8, %v1063_v55 }
 0x1c4   : > { %v1227_v61 = vadd.f32 %v1178_v11, %v1061_v59 }
 0x1ca   : > { %v1220_v9 = vpop.f32.mrf.mxu3 }
 0x1cb   : > { %v1230_v1 = vadd.f32 %v1220_v9, %v1064_v34 }
 0x1d2   : > { %v1316_v12 = vpop.f32.mrf.mxu2 }
 0x1d3   : > { %v1337_v46 = vadd.f32 %v1316_v12, %v1225_v14 }
 0x1d9   : > { %v1330_v13 = vpop.f32.mrf.mxu3 }
 0x1da   : > { %v1318_v17 = vpop.f32.mrf.mxu2  ;;  %v1338_v22 = vadd.f32 %v1330_v13, %v1226_v41 }
 0x1db   : > { %v1341_v35 = vadd.f32 %v1318_v17, %v1229_v63 }
 0x1dc   : > { %v1302_v15 = vpop.f32.mrf.mxu1  ;;  %v1288_v16 = vpop.f32.mrf.mxu0 }
 0x1dd   : > { %v1336_v42 = vadd.f32 %v1302_v15, %v1224_v39  ;;  %v1335_v47 = vadd.f32 %v1288_v16, %v1223_v45 }
 0x1e1   : > { %v1332_v18 = vpop.f32.mrf.mxu3 }
 0x1e2   : > { %v1342_v12 = vadd.f32 %v1332_v18, %v1230_v1 }
 0x1e4   : > { %v1304_v23 = vpop.f32.mrf.mxu1  ;;  %v1290_v28 = vpop.f32.mrf.mxu0 }
 0x1e5   : > { %v1339_v38 = vadd.f32 %v1290_v28, %v1227_v61  ;;  %v1340_v3 = vadd.f32 %v1304_v23, %v1228_v62 }
 0x1e9   : > { %v1428_v33 = vpop.f32.mrf.mxu2 }
 0x1ea   : > { %v2493_v48 = vadd.f32 %v1428_v33, %v1337_v46 }
 0x1ec   : > { %v1467_v0 = vmul.f32 %v1459_v49, %v2493_v48 }
 0x1ee   : > { %v1442_v43 = vpop.f32.mrf.mxu3  ;;  %v1487_v15 = vmul.f32 %v1467_v0, %v1467_v0 }
 0x1ef   : > { %v2496_v56 = vadd.f32 %v1442_v43, %v1338_v22 }
 0x1f1   : > { %v1468_v4 = vmul.f32 %v1460_v57, %v2496_v56  ;;  %v1430_v5 = vpop.f32.mrf.mxu2 }
 0x1f2   : > { %v2506_v10 = vadd.f32 %v1430_v5, %v1341_v35 }
 0x1f3   : > { %v1414_v52 = vpop.f32.mrf.mxu1  ;;  %v1488_v9 = vmul.f32 %v1468_v4, %v1468_v4 }
 0x1f4   : > { %v1400_v26 = vpop.f32.mrf.mxu0  ;;  %v2498_v50 = vadd.f32 %v1414_v52, %v1336_v42  ;;  %v1471_v23 = vmul.f32 %v1459_v49, %v2506_v10 }
 0x1f5   : > { %v2500_v53 = vadd.f32 %v1400_v26, %v1335_v47 }
 0x1f6   : > { %v1466_v60 = vmul.f32 %v1458_v25, %v2498_v50  ;;  %v1444_v13 = vpop.f32.mrf.mxu3  ;;  %v1491_v39 = vmul.f32 %v1471_v23, %v1471_v23 }
 0x1f7   : > { %v1465_v19 = vmul.f32 %v1457_v51, %v2500_v53  ;;  %v2510_v27 = vadd.f32 %v1444_v13, %v1342_v12 }
 0x1f8   : > { %v1486_v6 = vmul.f32 %v1466_v60, %v1466_v60 }
 0x1f9   : > { %v1485_v2 = vmul.f32 %v1465_v19, %v1465_v19  ;;  %v1473_v7 = vadd.f32 %v1466_v60, %v1465_v19  ;;  %v1472_v33 = vmul.f32 %v1460_v57, %v2510_v27 }
 0x1fb   : > { %v1416_v8 = vpop.f32.mrf.mxu1  ;;  %v1474_v16 = vadd.f32 %v1473_v7, %v1467_v0  ;;  %v1493_v21 = vadd.f32 %v1486_v6, %v1485_v2  ;;  %v1492_v44 = vmul.f32 %v1472_v33, %v1472_v33 }
 0x1fc   : > { %v1402_v24 = vpop.f32.mrf.mxu0  ;;  %v2508_v11 = vadd.f32 %v1416_v8, %v1340_v3 }
 0x1fd   : > { %v2512_v29 = vadd.f32 %v1402_v24, %v1339_v38  ;;  %v1475_v17 = vadd.f32 %v1474_v16, %v1468_v4  ;;  %v1494_v30 = vadd.f32 %v1493_v21, %v1487_v15 }
 0x1fe   : > { %v1470_v18 = vmul.f32 %v1458_v25, %v2508_v11 }
 0x1ff   : > { %v1469_v28 = vmul.f32 %v1457_v51, %v2512_v29  ;;  %1476 = vadd.xlane.f32.xlu2 %v1475_v17  ;;  %v1495_v31 = vadd.f32 %v1494_v30, %v1488_v9 }
 0x200   : > { %v1490_v32 = vmul.f32 %v1470_v18, %v1470_v18 }
 0x201   : > { %v1489_v36 = vmul.f32 %v1469_v28, %v1469_v28  ;;  %v1478_v14 = vadd.f32 %v1470_v18, %v1469_v28  ;;  %1496 = vadd.xlane.f32.xlu1 %v1495_v31 }
 0x203   : > { %v1479_v41 = vadd.f32 %v1478_v14, %v1471_v23  ;;  %v1498_v20 = vadd.f32 %v1490_v32, %v1489_v36 }
 0x205   : > { %v1480_v43 = vadd.f32 %v1479_v41, %v1472_v33  ;;  %v1499_v40 = vadd.f32 %v1498_v20, %v1491_v39 }
 0x207   : > { %1481 = vadd.xlane.f32.xlu0 %v1480_v43  ;;  %v1500_v45 = vadd.f32 %v1499_v40, %v1492_v44 }
 0x209   : > { %1501 = vadd.xlane.f32.xlu2 %v1500_v45 }
 0x272   : > { %v1477_v46 = vpop.xlane.xlu2 %1476 }
 0x273   : > { %v1483_v37 = vmul.f32 0.00390625, %v1477_v46 }
 0x274   : > { %v1497_v22 = vpop.xlane.xlu1 %1496 }
 0x275   : > { %v1503_v42 = vmul.f32 0.00390625, %v1497_v22  ;;  %v1505_v25 = vmul.f32 %v1483_v37, %v1483_v37  ;;  %v1509_v5 = vsub.f32 %v2500_v53, %v1483_v37  ;;  %v1510_v6 = vsub.f32 %v2498_v50, %v1483_v37 }
 0x276   : > { %v1511_v35 = vsub.f32 %v2493_v48, %v1483_v37  ;;  %v1512_v2 = vsub.f32 %v2496_v56, %v1483_v37 }
 0x277   : > { %v1507_v47 = vsub.f32 %v1503_v42, %v1505_v25 }
 0x279   : > { %v1517_v49 = vmax.f32 %v1507_v47, 0.0 }
 0x27a   : > { %v1482_v51 = vpop.xlane.xlu0 %1481 }
 0x27b   : > { %v1484_v52 = vmul.f32 0.00390625, %v1482_v51  ;;  %v1519_v54 = vadd.f32 1e-05, %v1517_v49 }
 0x27c   : > { %v1502_v57 = vpop.xlane.xlu2 %1501 }
 0x27d   : > { %1994 = vrsqrt.f32 %v1519_v54  ;;  %v1506_v26 = vmul.f32 %v1484_v52, %v1484_v52  ;;  %v1504_v55 = vmul.f32 0.00390625, %v1502_v57  ;;  %vm1527_vm10 = vweird.f32 %v1519_v54 }
 0x27e   : > { %v1513_v56 = vsub.f32 %v2512_v29, %v1484_v52  ;;  %v1514_v21 = vsub.f32 %v2508_v11, %v1484_v52  ;;  %v1515_v24 = vsub.f32 %v2506_v10, %v1484_v52  ;;  %v1516_v9 = vsub.f32 %v2510_v27, %v1484_v52 }
 0x27f   : > { %v1508_v58 = vsub.f32 %v1504_v55, %v1506_v26 }
 0x281   : > { %v1518_v34 = vmax.f32 %v1508_v58, 0.0 }
 0x283   : > { %v1995_v59 = vpop.eup %1994  ;;  %v1520_v60 = vadd.f32 1e-05, %v1518_v34 }
 0x284   : > { %v1522_v62 = vmul.f32 %v1995_v59, %v1519_v54  ;;  %vm1528_vm9 = vweird.f32 %v1995_v59 }
 0x285   : > { %1996 = vrsqrt.f32 %v1520_v60  ;;  %vm1529_vm11 = vmor %vm1527_vm10, %vm1528_vm9  ;;  %vm1537_vm13 = vweird.f32 %v1520_v60 }
 0x286   : > { %v1523_v63 = vmul.f32 %v1995_v59, %v1522_v62 }
 0x288   : > { %v1524_v0 = vmul.f32 0.5, %v1523_v63 }
 0x28a   : > { %v1525_v19 = vsub.f32 1.5, %v1524_v0 }
 0x28b   : > { %v1997_v61 = vpop.eup %1996 }
 0x28c   : > { %v1526_v1 = vmul.f32 %v1995_v59, %v1525_v19  ;;  %v1532_v4 = vmul.f32 %v1997_v61, %v1520_v60  ;;  %vm1538_vm12 = vweird.f32 %v1997_v61 }
 0x28d   : > { %vm1539_vm14 = vmor %vm1537_vm13, %vm1538_vm12 }
 0x28e   : > { %v1530_v7 = vsel %vm1529_vm11, %v1995_v59, %v1526_v1  ;;  %v1533_v12 = vmul.f32 %v1997_v61, %v1532_v4 }
 0x28f   : > { %v1541_v38 = vmul.f32 %v1530_v7, %v1509_v5  ;;  %v1542_v3 = vmul.f32 %v1530_v7, %v1510_v6  ;;  %v1543_v13 = vmul.f32 %v1530_v7, %v1511_v35  ;;  %v1544_v15 = vmul.f32 %v1530_v7, %v1512_v2 }
 0x290   : > { %v1534_v8 = vmul.f32 0.5, %v1533_v12 }
 0x291   : > { %v1549_v53 = vpack.c.bf16 %v1542_v3, %v1541_v38  ;;  %v1550_v16 = vpack.c.bf16 %v1544_v15, %v1543_v13 }
 0x292   : > { %v1535_v50 = vsub.f32 1.5, %v1534_v8 }
 0x293   : > { %1553 = vst [vmem:[%s327_s8] sm:$0xff] %v1549_v53 }
 0x294   : > { %1554 = vst [vmem:[%s327_s8 + $0x8] sm:$0xff] %v1550_v16  ;;  %v1536_v48 = vmul.f32 %v1997_v61, %v1535_v50 }
 0x296   : > { %v1540_v17 = vsel %vm1539_vm14, %v1997_v61, %v1536_v48 }
 0x297   : > { %v1545_v30 = vmul.f32 %v1540_v17, %v1513_v56  ;;  %v1546_v18 = vmul.f32 %v1540_v17, %v1514_v21  ;;  %v1547_v23 = vmul.f32 %v1540_v17, %v1515_v24  ;;  %v1548_v28 = vmul.f32 %v1540_v17, %v1516_v9 }
 0x299   : > { %v1551_v31 = vpack.c.bf16 %v1546_v18, %v1545_v30  ;;  %v1552_v32 = vpack.c.bf16 %v1548_v28, %v1547_v23 }
 0x29b   : > { %1555 = vst [vmem:[%s327_s8 + $0x10] sm:$0xff] %v1551_v31 }
 0x29c   : > { %1556 = vst [vmem:[%s327_s8 + $0x18] sm:$0xff] %v1552_v32 }
 0x29d PF: > { %s13_s18 = sadd.s32 1, %s2052_s18   ;;  %s2556_s12 = smov %s2032_s13 }
 0x29e   : > { %p10_p12 = scmp.ge.s32.totalorder %s13_s18, 6   ;;  %s2557_s13 = smov %s2131_s23 }
 0x29f   : > { %s2558_s14 = smov %s2044_s16  ;;  %s2559_s15 = smov %s2048_s17 }
 0x2a0   : > { %s2560_s16 = smov %s2563_s19  ;;  %s2561_s17 = smov %s2567_s20 }
 0x2a1   :  { %12 = sbr.rel (!%p10_p12) target bundleno = 4 (0x4), region = 119 }

// kernel: resnet_block_forward.9
= control target key start
LH: loop header
LB: loop body
LE: loop exit
PB: predicated region body
PF: predicated region fallthrough
CT: control target
= control target key end

     0   :  { %s1743_s12 = smov 0   ;;  %s1745_s13 = smov 0   ;;  %s2120_s0 = inlined_call_operand.vmem [shape: bf16[2,32,522], index: 0, kind: input, shape index: {}]   ;;  %s2121_s1 = inlined_call_operand.vmem [shape: bf16[9,32,32], index: 1, kind: input, shape index: {}]   ;;  %s2122_s2 = inlined_call_operand.vmem [shape: f32[1,384], index: 2, kind: input, shape index: {}]   ;;  %s2123_s3 = inlined_call_operand.vmem [shape: bf16[2,32,384], index: 3, kind: output, shape index: {}]  }
   0x1   :  { %s1747_s14 = smov 0   ;;  %s1749_s15 = smov 0  }
   0x2   :  { %s1751_s16 = smov 0   ;;  %s1753_s17 = smov 0  }
   0x3   :  { %s1755_s18 = smov 0  }
   0x4 LB: > { %s22_s19 = sadd.s32 1, %s1705_s16  ;;  %s25_s20 = sadd.s32 1, %s1709_s17  ;;  %s1713_s18 = sphi %s1755_s18, %s13_s18   ;;  %s1709_s17 = sphi %s1753_s17, %s2129_s17   ;;  %s1705_s16 = sphi %s1751_s16, %s2128_s16   ;;  %s1701_s15 = sphi %s1749_s15, %s2127_s15   ;;  %s1697_s14 = sphi %s1747_s14, %s2126_s14   ;;  %s1693_s13 = sphi %s1745_s13, %s2125_s13   ;;  %s1689_s12 = sphi %s1743_s12, %s2124_s12  }
   0x5   : > { %p23_p0 = scmp.ge.s32.totalorder %s22_s19, 2  ;;  %s58_s21 = sadd.s32 1, %s1693_s13 }
   0x6   : > { %p65_p1 = scmp.ne.s32.totalorder %s1693_s13, %s1689_s12  ;;  %p66_p2 = scmp.eq.s32.totalorder %s1713_s18, 0 }
   0x7   : > { %s2131_s19 = smov (%p23_p0, %s22_s19), 0  ;;  %s2133_s20 = smov (!%p23_p0, %s25_s20), %s1709_s17 }
   0x8   : > { %s55_s22 = ssub.s32 %s1705_s16, %s2131_s19  ;;  %p67_p3 = por %p66_p2, %p65_p1 }
   0x9   : > { %p27_p4 = scmp.ge.s32.totalorder %s2133_s20, 2  ;;  %p56_p5 = scmp.eq.s32.totalorder %s55_s22, 0 }
   0xa   : > { %p1398_p6 = scmp.ge.s32.totalorder %s1713_s18, 4 }
   0xb   : > { %s2135_s20 = smov (%p27_p4, %s2133_s20), 0 }
   0xc   : > { %s1792_s23 = scalar_select %p56_p5, %s1693_s13, %s58_s21  }
   0xd   : > { %143 = sbr.rel (%p1398_p6) target bundleno = 31 (0x1f), region = 20 }
  0x12   : > { %154 = sbr.rel (!%p67_p3) target bundleno = 31 (0x1f), region = 28  ;;  %s156_s24 = sand.u32 (%p67_p3), 1, %s1693_s13  }
  0x13   : > { %s1558_s25 = sshll.u32 (%p67_p3), %s1705_s16, 3  ;;  %s1586_s26 = smul.u32 (%p67_p3), 72, %s156_s24 }
  0x14   : > { %s161_s29 = scalar_lea.vmem (%p67_p3), %s2121_s1, %s1558_s25 }
  0x15   : > { %v178_v0 = vld [vmem:[%s161_s29] sm:$0xff] (%p67_p3)   ;;  %v182_v1 = vld [vmem:[%s161_s29 + $0x10] sm:$0xff] (%p67_p3)   ;;  %s158_s30 = scalar_lea.vmem (%p67_p3), [#allocation2], %s1586_s26 }
  0x16   : > { %v186_v2 = vld [vmem:[%s161_s29 + $0x20] sm:$0xff] (%p67_p3)   ;;  %179 = vst [vmem:[%s158_s30] sm:$0xff] (%p67_p3), %v178_v0   ;;  %v190_v3 = vld [vmem:[%s161_s29 + $0x30] sm:$0xff] (%p67_p3)  }
  0x17   : > { %183 = vst [vmem:[%s158_s30 + $0x8] sm:$0xff] %v182_v1   ;;  %v194_v4 = vld [vmem:[%s161_s29 + $0x40] sm:$0xff]   ;;  %v198_v5 = vld [vmem:[%s161_s29 + $0x50] sm:$0xff]  }
  0x18   : > { %187 = vst [vmem:[%s158_s30 + $0x10] sm:$0xff] %v186_v2   ;;  %v202_v6 = vld [vmem:[%s161_s29 + $0x60] sm:$0xff]   ;;  %v206_v7 = vld [vmem:[%s161_s29 + $0x70] sm:$0xff]  }
  0x19   : > { %191 = vst [vmem:[%s158_s30 + $0x18] sm:$0xff] %v190_v3   ;;  %v210_v8 = vld [vmem:[%s161_s29 + $0x80] sm:$0xff]  }
  0x1a   : > { %195 = vst [vmem:[%s158_s30 + $0x20] sm:$0xff] %v194_v4  }
  0x1b   : > { %199 = vst [vmem:[%s158_s30 + $0x28] sm:$0xff] %v198_v5  }
  0x1c   : > { %203 = vst [vmem:[%s158_s30 + $0x30] sm:$0xff] %v202_v6  }
  0x1d   : > { %207 = vst [vmem:[%s158_s30 + $0x38] sm:$0xff] %v206_v7  }
  0x1e   : > { %211 = vst [vmem:[%s158_s30 + $0x40] sm:$0xff] %v210_v8  }
  0x1f PF: > { %p1401_p7 = scmp.ge.s32.totalorder %s1713_s18, 1  ;;  %p272_p8 = scmp.lt.s32.totalorder %s1713_s18, 5 }
  0x21   : > { %p273_p9 = pnand %p1401_p7, %p272_p8 }
  0x22   : > { %p312_p10 = scmp.lt.s32.totalorder (!%p273_p9), %s1701_s15, 1  ;;  %s1715_s8 = smov (!%p273_p9), 125  }
  0x23   : > { %276 = sbr.rel (%p273_p9) target bundleno = 636 (0x27c), region = 69  ;;  %s1716_s9 = smov (!%p273_p9), 122  }
  0x24   : > { %s1717_s10 = smov (!%p273_p9), 62   ;;  %s1718_s11 = smov (!%p273_p9), 59  }
  0x25   : > { %s1719_s21 = smov (!%p273_p9), 56   ;;  %s1720_s22 = smov (!%p273_p9), 124  }
  0x26   : > { %s279_s24 = sand.u32 (!%p273_p9), 1, %s1689_s12   ;;  %s1721_s26 = smov (!%p273_p9), 121  }
  0x27   : > { %s1587_s25 = smul.u32 (!%p273_p9), 72, %s279_s24  ;;  %s1722_s27 = smov (!%p273_p9), 118  }
  0x28   : > { %s2137_s15 = smov (!%p312_p10, %s1701_s15), 1  ;;  %vm400_vm0 = vcmask 1022976   ;;  %vm413_vm1 = vcmask 261120   ;;  %vm549_vm2 = vcmask 998400   ;;  %vm637_vm3 = vcmask 506880   ;;  %s1403_s30 = sshll.u32 %s1697_s14, 1 }
  0x29   : > { %s1588_s4 = smul.u32 80, %s2137_s15  ;;  %s1917_s12 = scalar_lea.vmem [#allocation2], %s1587_s25  ;;  %vm725_vm4 = vcmask 482304   ;;  %vm813_vm5 = vcmask 457728   ;;  %vm941_vm6 = vcmask 1014784   ;;  %vm1029_vm7 = vcmask 990208  }
  0x2a   : > { %v1920_v58 = vld [vmem:[%s1917_s12] sm:$0xff]  ;;  %v1570_v4 = vld [vmem:[%s1917_s12 + $0x8] sm:$0xff]  ;;  %vm1117_vm8 = vcmask 965632   ;;  %p321_p11 = scmp.lt.s32.totalorder %s1403_s30, 3 }
  0x2b   : > { %s1810_s7 = scalar_lea.vmem %s2120_s0, %s1588_s4  ;;  %s1590_s4 = smul.u32 12, %s2137_s15 }
  0x2c   : > { %v1437_v9 = vld [vmem:[%s1810_s7 + $0x30] sm:$0xf]  ;;  %v1569_v10 = vld [vmem:[%s1810_s7 + $0x40] sm:$0xf0]  ;;  %v1421_v11 = vld [vmem:[%s1810_s7 + $0x8] sm:$0xf] }
  0x2d   : > { %v1815_v12 = vor.u32 %v1569_v10, %v1437_v9  ;;  %v1567_v13 = vld [vmem:[%s1810_s7 + $0x18] sm:$0xf0]  ;;  %v1429_v15 = vld [vmem:[%s1810_s7 + $0x28] sm:$0xf]  ;;  %v1568_v17 = vld [vmem:[%s1810_s7 + $0x34] sm:$0xf] }
  0x2e   : > { %v1818_v14 = vor.u32 %v1567_v13, %v1421_v11  ;;  %v1563_v16 = vld [vmem:[%s1810_s7 + $0x38] sm:$0xf0]  ;;  %v1439_v18 = vld [vmem:[%s1810_s7 + $0x44] sm:$0xf0]  ;;  %v1566_v19 = vld [vmem:[%s1810_s7 + $0xc] sm:$0xf] }
  0x2f   : > { %396 = vrot.lane.b32.xlu0 %v1815_v12, %s1715_s8  ;;  %v1430_v20 = vor.u32 %v1563_v16, %v1429_v15  ;;  %v1423_v21 = vld [vmem:[%s1810_s7 + $0x1c] sm:$0xf0]  ;;  %v1560_v23 = vld [vmem:[%s1810_s7 + $0x10] sm:$0xf0]  ;;  %v1830_v24 = vor.u32 %v1568_v17, %v1439_v18  ;;  %v1562_v25 = vld [vmem:[%s1810_s7 + $0x2c] sm:$0xf] }
  0x30   : > { %388 = vrot.lane.b32.xlu1 %v1818_v14, %s1715_s8  ;;  %v1413_v22 = vld [vmem:[%s1810_s7] sm:$0xf]  ;;  %v1834_v27 = vor.u32 %v1566_v19, %v1423_v21  ;;  %v1559_v30 = vld [vmem:[%s1810_s7 + $0x4] sm:$0xf]  ;;  %v1415_v31 = vld [vmem:[%s1810_s7 + $0x14] sm:$0xf0] }
  0x31   : > { %392 = vrot.lane.b32.xlu2 %v1430_v20, %s1715_s8  ;;  %489 = vmatpush.bf16.msra.mxu3 %v1430_v20  ;;  %v1431_v26 = vld [vmem:[%s1810_s7 + $0x3c] sm:$0xf0]  ;;  %v1414_v28 = vor.u32 %v1560_v23, %v1413_v22  ;;  %v1843_v32 = vor.u32 %v1559_v30, %v1415_v31  ;;  %v1521_v33 = vld [vmem:[%s1810_s7 + $0x2c] sm:$0xf]  ;;  %v1579_v35 = vld [vmem:[%s1810_s7 + $0x30] sm:$0xf] }
  0x32   : > { %v1836_v29 = vor.u32 %v1562_v25, %v1431_v26  ;;  %v1581_v34 = vld [vmem:[%s1810_s7 + $0x3c] sm:$0xf0]  ;;  %v1523_v36 = vld [vmem:[%s1810_s7 + $0x40] sm:$0xf0]  ;;  %v1577_v41 = vld [vmem:[%s1810_s7 + $0x14] sm:$0xf0] }
  0x33   : > { %v1869_v37 = vor.u32 %v1581_v34, %v1521_v33  ;;  %v1871_v38 = vor.u32 %v1579_v35, %v1523_v36  ;;  %v1505_v40 = vld [vmem:[%s1810_s7 + $0x4] sm:$0xf]  ;;  %v1575_v42 = vld [vmem:[%s1810_s7 + $0x8] sm:$0xf]  ;;  %v1507_v43 = vld [vmem:[%s1810_s7 + $0x18] sm:$0xf0] }
  0x34   : > { %v1888_v44 = vor.u32 %v1577_v41, %v1505_v40  ;;  %v1891_v47 = vor.u32 %v1575_v42, %v1507_v43  ;;  %v1529_v48 = vld [vmem:[%s1810_s7 + $0x34] sm:$0xf]  ;;  %v1582_v49 = vld [vmem:[%s1810_s7 + $0x44] sm:$0xf0]  ;;  %v1513_v55 = vld [vmem:[%s1810_s7 + $0xc] sm:$0xf] }
  0x35   : > { %490 = vmatpush.bf16.msra.mxu3 %v1414_v28  ;;  %v1904_v51 = vor.u32 %v1582_v49, %v1529_v48  ;;  %v1578_v56 = vld [vmem:[%s1810_s7 + $0x1c] sm:$0xf0]  ;;  %v1580_v60 = vld [vmem:[%s1810_s7 + $0x38] sm:$0xf]  ;;  %v1531_v61 = vld [vmem:[%s1810_s7 + $0x48] sm:$0xf0] }
  0x36   : > { %v1922_v59 = vor.u32 %v1578_v56, %v1513_v55  ;;  %v1534_v1 = vor.u32 %v1580_v60, %v1531_v61  ;;  %v1456_v5 = vld [vmem:[%s1810_s7 + $0x30] sm:$0xf]  ;;  %v1564_v6 = vld [vmem:[%s1810_s7 + $0x40] sm:$0xf0]  ;;  %v1561_v13 = vld [vmem:[%s1810_s7 + $0x18] sm:$0xf0] }
  0x37   : > { %398 = vrot.lane.b32.xlu0 %v1830_v24, %s1715_s8  ;;  %v1576_v8 = vld [vmem:[%s1810_s7 + $0x10] sm:$0xf]  ;;  %v1515_v9 = vld [vmem:[%s1810_s7 + $0x20] sm:$0xf0]  ;;  %v1457_v10 = vor.u32 %v1564_v6, %v1456_v5  ;;  %s2139_s30 = smov (!%p321_p11, %s1403_s30), 3 }
  0x38   : > { %390 = vrot.lane.b32.xlu1 %v1834_v27, %s1715_s8  ;;  %1458 = vmatmul.msk.bf16.vlgmr.msra.gmra.mxu3 %vm413_vm1, %v1920_v58  ;;  %v1518_v16 = vor.u32 %v1576_v8, %v1515_v9  ;;  %v1572_v41 = vld [vmem:[%s1917_s12 + $0x18] sm:$0xff]  ;;  %v1573_v56 = vld [vmem:[%s1917_s12 + $0x20] sm:$0xff]  ;;  %s1589_s5 = smul.u32 3, %s2139_s30 }
  0x39   : > { %394 = vrot.lane.b32.xlu2 %v1836_v29, %s1715_s8 }
  0x3a   : > { %s325_s14 = sadd.s32 %s1590_s4, %s1589_s5 }
  0x3b   : > { %s1404_s15 = sshll.u32 %s325_s14, 2 }
  0x3f   : > { %384 = vrot.lane.b32.xlu0 %v1414_v28, %s1715_s8 }
  0x40   : > { %386 = vrot.lane.b32.xlu1 %v1843_v32, %s1715_s8  ;;  %s2090_s8 = scalar_lea.vmem %s2123_s3, %s1404_s15 }
  0x41   : > { %541 = vrot.lane.b32.xlu2 %v1430_v20, %s1716_s9 }
  0x47   : > { %543 = vrot.lane.b32.xlu0 %v1836_v29, %s1716_s9 }
  0x48   : > { %533 = vrot.lane.b32.xlu1 %v1414_v28, %s1716_s9 }
  0x49   : > { %535 = vrot.lane.b32.xlu2 %v1843_v32, %s1716_s9 }
  0x4f   : > { %545 = vrot.lane.b32.xlu0 %v1815_v12, %s1716_s9 }
  0x50   : > { %631 = vrot.lane.b32.xlu1 %v1836_v29, %s1717_s10 }
  0x51   : > { %633 = vrot.lane.b32.xlu2 %v1815_v12, %s1717_s10 }
  0x57   : > { %537 = vrot.lane.b32.xlu0 %v1818_v14, %s1716_s9 }
  0x58   : > { %547 = vrot.lane.b32.xlu1 %v1830_v24, %s1716_s9 }
  0x59   : > { %623 = vrot.lane.b32.xlu2 %v1843_v32, %s1717_s10 }
  0x5f   : > { %625 = vrot.lane.b32.xlu0 %v1818_v14, %s1717_s10 }
  0x60   : > { %629 = vrot.lane.b32.xlu1 %v1430_v20, %s1717_s10 }
  0x61   : > { %539 = vrot.lane.b32.xlu2 %v1834_v27, %s1716_s9 }
  0x67   : > { %621 = vrot.lane.b32.xlu0 %v1414_v28, %s1717_s10 }
  0x68   : > { %635 = vrot.lane.b32.xlu1 %v1830_v24, %s1717_s10 }
  0x69   : > { %721 = vrot.lane.b32.xlu2 %v1815_v12, %s1718_s11 }
  0x6f   : > { %723 = vrot.lane.b32.xlu0 %v1830_v24, %s1718_s11 }
  0x70   : > { %627 = vrot.lane.b32.xlu1 %v1834_v27, %s1717_s10 }
  0x71   : > { %713 = vrot.lane.b32.xlu2 %v1818_v14, %s1718_s11 }
  0x77   : > { %715 = vrot.lane.b32.xlu0 %v1834_v27, %s1718_s11 }
  0x78   : > { %717 = vrot.lane.b32.xlu1 %v1430_v20, %s1718_s11 }
  0x79   : > { %719 = vrot.lane.b32.xlu2 %v1836_v29, %s1718_s11 }
  0x7f   : > { %709 = vrot.lane.b32.xlu0 %v1414_v28, %s1718_s11 }
  0x80   : > { %711 = vrot.lane.b32.xlu1 %v1843_v32, %s1718_s11 }
  0x81   : > { %805 = vrot.lane.b32.xlu2 %v1430_v20, %s1719_s21 }
  0x87   : > { %807 = vrot.lane.b32.xlu0 %v1836_v29, %s1719_s21 }
  0x88   : > { %933 = vrot.lane.b32.xlu1 %v1869_v37, %s1720_s22 }
  0x89   : > { %935 = vrot.lane.b32.xlu2 %v1871_v38, %s1720_s22 }
  0x8b   : > { %v393_v39 = vpop.permute.xlu2 %392 }
  0x8f   : > { %797 = vrot.lane.b32.xlu0 %v1414_v28, %s1719_s21 }
  0x90   : > { %799 = vrot.lane.b32.xlu1 %v1843_v32, %s1719_s21 }
  0x91   : > { %809 = vrot.lane.b32.xlu2 %v1815_v12, %s1719_s21  ;;  %v1452_v12 = vld [vmem:[%s1810_s7 + $0x8] sm:$0xf] }
  0x92   : > { %v1453_v18 = vor.u32 %v1561_v13, %v1452_v12 }
  0x93   : > { %v395_v45 = vpop.permute.xlu2 %394 }
  0x94   : > { %v404_v46 = vsel %vm400_vm0, %v393_v39, %v395_v45 }
  0x95   : > { %423 = vmatpush.bf16.msra.mxu0 %v404_v46 }
  0x97   : > { %811 = vrot.lane.b32.xlu0 %v1830_v24, %s1719_s21  ;;  %v1571_v24 = vld [vmem:[%s1917_s12 + $0x10] sm:$0xff] }
  0x98   : > { %925 = vrot.lane.b32.xlu1 %v1888_v44, %s1720_s22 }
  0x99   : > { %927 = vrot.lane.b32.xlu2 %v1891_v47, %s1720_s22 }
  0x9b   : > { %v1901_v50 = vpop.permute.xlu2 %541 }
  0x9f   : > { %801 = vrot.lane.b32.xlu0 %v1818_v14, %s1719_s21 }
  0xa0   : > { %803 = vrot.lane.b32.xlu1 %v1834_v27, %s1719_s21 }
  0xa1   : > { %v397_v52 = vpop.permute.xlu0 %396  ;;  %937 = vrot.lane.b32.xlu2 %v1904_v51, %s1720_s22 }
  0xa2   : > { %v389_v53 = vpop.permute.xlu1 %388  ;;  %v405_v54 = vsel %vm400_vm0, %v395_v45, %v397_v52 }
  0xa3   : > { %437 = vmatpush.bf16.msra.mxu1 %v405_v54  ;;  %v1915_v57 = vpop.permute.xlu2 %535 }
  0xa7   : > { %1023 = vrot.lane.b32.xlu0 %v1871_v38, %s1721_s26 }
  0xa8   : > { %1025 = vrot.lane.b32.xlu1 %v1904_v51, %s1721_s26 }
  0xa9   : > { %v399_v62 = vpop.permute.xlu0 %398  ;;  %929 = vrot.lane.b32.xlu2 %v1922_v59, %s1720_s22 }
  0xaa   : > { %v391_v63 = vpop.permute.xlu1 %390  ;;  %v406_v0 = vsel %vm400_vm0, %v397_v52, %v399_v62 }
  0xab   : > { %451 = vmatpush.bf16.msra.mxu2 %v406_v0  ;;  %v1935_v2 = vpop.permute.xlu2 %633  ;;  %v403_v3 = vsel %vm400_vm0, %v389_v53, %v391_v63 }
  0xaf   : > { %452 = vmatpush.bf16.msra.mxu2 %v403_v3  ;;  %939 = vrot.lane.b32.xlu0 %v1534_v1, %s1720_s22 }
  0xb0   : > { %1015 = vrot.lane.b32.xlu1 %v1891_v47, %s1721_s26 }
  0xb1   : > { %v385_v7 = vpop.permute.xlu0 %384  ;;  %1017 = vrot.lane.b32.xlu2 %v1922_v59, %s1721_s26 }
  0xb2   : > { %v387_v11 = vpop.permute.xlu1 %386  ;;  %1445 = vmatmul.msk.bf16.vlgmr.msra.gmra.mxu2 %vm413_vm1, %v1570_v4 }
  0xb3   : > { %v401_v14 = vsel %vm400_vm0, %v385_v7, %v387_v11  ;;  %v402_v15 = vsel %vm400_vm0, %v387_v11, %v389_v53  ;;  %v1953_v17 = vpop.permute.xlu2 %623 }
  0xb4   : > { %424 = vmatpush.bf16.msra.mxu0 %v401_v14  ;;  %438 = vmatpush.bf16.msra.mxu1 %v402_v15 }
  0xb7   : > { %1021 = vrot.lane.b32.xlu0 %v1869_v37, %s1721_s26  ;;  %1443 = vmatmul.msk.bf16.vlgmr.msra.gmra.mxu0 %vm413_vm1, %v1570_v4 }
  0xb8   : > { %503 = vmatpush.bf16.msrb.mxu0 %v1836_v29  ;;  %517 = vmatpush.bf16.msrb.mxu1 %v1457_v10  ;;  %v1574_v10 = vld [vmem:[%s1917_s12 + $0x28] sm:$0xff] }
  0xb9   : > { %931 = vrot.lane.b32.xlu1 %v1518_v16, %s1720_s22  ;;  %1444 = vmatmul.msk.bf16.vlgmr.msra.gmra.mxu1 %vm413_vm1, %v1570_v4  ;;  %v544_v19 = vpop.permute.xlu0 %543 }
  0xba   : > { %v534_v20 = vpop.permute.xlu1 %533  ;;  %v553_v21 = vsel %vm549_vm2, %v1901_v50, %v544_v19  ;;  %1013 = vrot.lane.b32.xlu2 %v1888_v44, %s1721_s26 }
  0xbb   : > { %571 = vmatpush.bf16.msrb.mxu2 %v553_v21  ;;  %v550_v22 = vsel %vm549_vm2, %v534_v20, %v1915_v57  ;;  %v540_v23 = vpop.permute.xlu2 %539 }
  0xbc   : > { %504 = vmatpush.bf16.msrb.mxu0 %v1843_v32  ;;  %518 = vmatpush.bf16.msrb.mxu1 %v1453_v18 }
  0xbf   : > { %1027 = vrot.lane.b32.xlu0 %v1534_v1, %s1721_s26  ;;  %572 = vmatpush.bf16.msrb.mxu2 %v550_v22 }
  0xc1   : > { %1113 = vrot.lane.b32.xlu1 %v1904_v51, %s1722_s27  ;;  %v546_v25 = vpop.permute.xlu0 %545 }
  0xc2   : > { %v632_v26 = vpop.permute.xlu1 %631  ;;  %v554_v27 = vsel %vm549_vm2, %v544_v19, %v546_v25  ;;  %1467 = vmatmul.msk.bf16.vlgmr.msrb.gmra.mxu2 %vm413_vm1, %v1571_v24  ;;  %1115 = vrot.lane.b32.xlu2 %v1534_v1, %s1722_s27 }
  0xc3   : > { %v642_v28 = vsel %vm637_vm3, %v632_v26, %v1935_v2  ;;  %585 = vmatpush.bf16.msrb.mxu3 %v554_v27  ;;  %v722_v29 = vpop.permute.xlu2 %721 }
  0xc4   : > { %673 = vmatpush.bf16.msra.mxu2 %v642_v28 }
  0xc7   : > { %1019 = vrot.lane.b32.xlu0 %v1518_v16, %s1721_s26  ;;  %1459 = vmatmul.msk.bf16.vlgmr.msrb.gmra.mxu0 %vm413_vm1, %v1920_v58 }
  0xc9   : > { %1105 = vrot.lane.b32.xlu1 %v1922_v59, %s1722_s27  ;;  %1460 = vmatmul.msk.bf16.vlgmr.msrb.gmra.mxu1 %vm413_vm1, %v1920_v58  ;;  %v538_v30 = vpop.permute.xlu0 %537 }
  0xca   : > { %v548_v31 = vpop.permute.xlu1 %547  ;;  %v551_v32 = vsel %vm549_vm2, %v1915_v57, %v538_v30  ;;  %1107 = vrot.lane.b32.xlu2 %v1518_v16, %s1722_s27  ;;  %v552_v35 = vsel %vm549_vm2, %v538_v30, %v540_v23  ;;  %v1584_v30 = vld [vmem:[%s1917_s12 + $0x38] sm:$0xff] }
  0xcb   : > { %v555_v33 = vsel %vm549_vm2, %v546_v25, %v548_v31  ;;  %586 = vmatpush.bf16.msrb.mxu3 %v551_v32  ;;  %v714_v34 = vpop.permute.xlu2 %713 }
  0xcc   : > { %599 = vmatpush.bf16.msra.mxu0 %v555_v33 }
  0xce   : > { %1468 = vmatmul.msk.bf16.vlgmr.msrb.gmra.mxu3 %vm413_vm1, %v1571_v24 }
  0xcf   : > { %1109 = vrot.lane.b32.xlu0 %v1869_v37, %s1722_s27 }
  0xd0   : > { %600 = vmatpush.bf16.msra.mxu0 %v552_v35 }
  0xd1   : > { %1111 = vrot.lane.b32.xlu1 %v1871_v38, %s1722_s27  ;;  %v626_v36 = vpop.permute.xlu0 %625 }
  0xd2   : > { %v630_v39 = vpop.permute.xlu1 %629  ;;  %v639_v40 = vsel %vm637_vm3, %v1953_v17, %v626_v36  ;;  %1101 = vrot.lane.b32.xlu2 %v1888_v44, %s1722_s27 }
  0xd3   : > { %v641_v42 = vsel %vm637_vm3, %v630_v39, %v632_v26  ;;  %674 = vmatpush.bf16.msra.mxu2 %v639_v40  ;;  %v720_v37 = vpop.permute.xlu2 %719 }
  0xd4   : > { %659 = vmatpush.bf16.msra.mxu1 %v641_v42  ;;  %v730_v43 = vsel %vm725_vm4, %v720_v37, %v722_v29 }
  0xd6   : > { %1477 = vmatmul.msk.bf16.vlgmr.msra.gmra.mxu2 %vm413_vm1, %v1572_v41 }
  0xd7   : > { %1103 = vrot.lane.b32.xlu0 %v1891_v47, %s1722_s27  ;;  %1469 = vmatmul.msk.bf16.vlgmr.msra.gmra.mxu0 %vm413_vm1, %v1571_v24 }
  0xd9   : > { %v622_v38 = vpop.permute.xlu0 %621 }
  0xda   : > { %v636_v45 = vpop.permute.xlu1 %635  ;;  %v638_v44 = vsel %vm637_vm3, %v622_v38, %v1953_v17  ;;  %v1583_v17 = vld [vmem:[%s1917_s12 + $0x30] sm:$0xff] }
  0xdb   : > { %v643_v46 = vsel %vm637_vm3, %v1935_v2, %v636_v45  ;;  %660 = vmatpush.bf16.msra.mxu1 %v638_v44  ;;  %v806_v48 = vpop.permute.xlu2 %805 }
  0xdc   : > { %687 = vmatpush.bf16.msra.mxu3 %v643_v46 }
  0xde   : > { %1476 = vmatmul.msk.bf16.vlgmr.msra.gmra.mxu1 %vm413_vm1, %v1572_v41 }
  0xdf   : > { %761 = vmatpush.bf16.msrb.mxu1 %v730_v43 }
  0xe1   : > { %v724_v47 = vpop.permute.xlu0 %723 }
  0xe2   : > { %v731_v49 = vsel %vm725_vm4, %v722_v29, %v724_v47  ;;  %v628_v50 = vpop.permute.xlu1 %627 }
  0xe3   : > { %v640_v51 = vsel %vm637_vm3, %v626_v36, %v628_v50  ;;  %775 = vmatpush.bf16.msrb.mxu2 %v731_v49  ;;  %v936_v52 = vpop.permute.xlu2 %935 }
  0xe4   : > { %688 = vmatpush.bf16.msra.mxu3 %v640_v51 }
  0xe7   : > { %1478 = vmatmul.msk.bf16.vlgmr.msra.gmra.mxu3 %vm413_vm1, %v1572_v41 }
  0xe9   : > { %v716_v53 = vpop.permute.xlu0 %715 }
  0xea   : > { %v718_v54 = vpop.permute.xlu1 %717  ;;  %v728_v55 = vsel %vm725_vm4, %v714_v34, %v716_v53 }
  0xeb   : > { %v729_v57 = vsel %vm725_vm4, %v718_v54, %v720_v37  ;;  %776 = vmatpush.bf16.msrb.mxu2 %v728_v55  ;;  %v810_v58 = vpop.permute.xlu2 %809  ;;  %v492_v37 = vpop.f32.mrf.mxu3 }
  0xec   : > { %747 = vmatpush.bf16.msrb.mxu0 %v729_v57 }
  0xee   : > { %1487 = vmatmul.msk.bf16.vlgmr.msrb.gmra.mxu2 %vm413_vm1, %v1573_v56 }
  0xf1   : > { %v710_v59 = vpop.permute.xlu0 %709 }
  0xf2   : > { %v712_v60 = vpop.permute.xlu1 %711 }
  0xf3   : > { %v726_v61 = vsel %vm725_vm4, %v710_v59, %v712_v60  ;;  %v727_v62 = vsel %vm725_vm4, %v712_v60, %v714_v34  ;;  %v928_v63 = vpop.permute.xlu2 %927  ;;  %v494_v54 = vpop.f32.mrf.mxu3 }
  0xf4   : > { %748 = vmatpush.bf16.msrb.mxu0 %v726_v61  ;;  %762 = vmatpush.bf16.msrb.mxu1 %v727_v62 }
  0xf7   : > { %1485 = vmatmul.msk.bf16.vlgmr.msrb.gmra.mxu0 %vm413_vm1, %v1573_v56  ;;  %1486 = vmatmul.msk.bf16.vlgmr.msrb.gmra.mxu1 %vm413_vm1, %v1573_v56 }
  0xf9   : > { %v808_v0 = vpop.permute.xlu0 %807 }
  0xfa   : > { %v817_v1 = vsel %vm813_vm5, %v806_v48, %v808_v0  ;;  %v818_v2 = vsel %vm813_vm5, %v808_v0, %v810_v58  ;;  %v934_v3 = vpop.permute.xlu1 %933 }
  0xfb   : > { %v945_v4 = vsel %vm941_vm6, %v934_v3, %v936_v52  ;;  %835 = vmatpush.bf16.msrb.mxu3 %v817_v1  ;;  %849 = vmatpush.bf16.msra.mxu0 %v818_v2  ;;  %v938_v5 = vpop.permute.xlu2 %937 }
  0xfc   : > { %963 = vmatpush.bf16.msra.mxu2 %v945_v4  ;;  %v946_v7 = vsel %vm941_vm6, %v936_v52, %v938_v5  ;;  %v1585_v52 = vld [vmem:[%s1917_s12 + $0x40] sm:$0xff] }
 0x101   : > { %v798_v6 = vpop.permute.xlu0 %797 }
 0x102   : > { %v800_v8 = vpop.permute.xlu1 %799 }
 0x103   : > { %v814_v9 = vsel %vm813_vm5, %v798_v6, %v800_v8  ;;  %v930_v11 = vpop.permute.xlu2 %929 }
 0x104   : > { %836 = vmatpush.bf16.msrb.mxu3 %v814_v9  ;;  %v943_v12 = vsel %vm941_vm6, %v928_v63, %v930_v11 }
 0x107   : > { %1494 = vmatmul.msk.bf16.vlgmr.msrb.gmra.mxu3 %vm413_vm1, %v1574_v10 }
 0x108   : > { %977 = vmatpush.bf16.msra.mxu3 %v946_v7 }
 0x109   : > { %v812_v13 = vpop.permute.xlu0 %811 }
 0x10a   : > { %v819_v14 = vsel %vm813_vm5, %v810_v58, %v812_v13  ;;  %v926_v15 = vpop.permute.xlu1 %925 }
 0x10b   : > { %863 = vmatpush.bf16.msra.mxu1 %v819_v14  ;;  %v942_v16 = vsel %vm941_vm6, %v926_v15, %v928_v63  ;;  %v1018_v25 = vpop.permute.xlu2 %1017 }
 0x10c   : > { %978 = vmatpush.bf16.msra.mxu3 %v943_v12  ;;  %964 = vmatpush.bf16.msra.mxu2 %v942_v16 }
 0x10f   : > { %1535 = vmatmul.msk.bf16.vlgmr.msra.gmra.mxu2 %vm413_vm1, %v1583_v17 }
 0x111   : > { %v802_v18 = vpop.permute.xlu0 %801 }
 0x112   : > { %v804_v19 = vpop.permute.xlu1 %803  ;;  %v815_v20 = vsel %vm813_vm5, %v800_v8, %v802_v18 }
 0x113   : > { %850 = vmatpush.bf16.msra.mxu0 %v815_v20  ;;  %v816_v21 = vsel %vm813_vm5, %v802_v18, %v804_v19 }
 0x114   : > { %864 = vmatpush.bf16.msra.mxu1 %v816_v21  ;;  %v1014_v31 = vpop.permute.xlu2 %1013 }
 0x116   : > { %1495 = vmatmul.msk.bf16.vlgmr.msra.gmra.mxu0 %vm413_vm1, %v1574_v10 }
 0x117   : > { %1496 = vmatmul.msk.bf16.vlgmr.msra.gmra.mxu1 %vm413_vm1, %v1574_v10  ;;  %1536 = vmatmul.msk.bf16.vlgmr.msra.gmra.mxu3 %vm413_vm1, %v1583_v17 }
 0x119   : > { %v1024_v22 = vpop.permute.xlu0 %1023 }
 0x11a   : > { %v1026_v23 = vpop.permute.xlu1 %1025 }
 0x11b   : > { %v1034_v24 = vsel %vm1029_vm7, %v1024_v22, %v1026_v23 }
 0x11c   : > { %1065 = vmatpush.bf16.msrb.mxu2 %v1034_v24  ;;  %v1116_v39 = vpop.permute.xlu2 %1115 }
 0x121   : > { %v940_v26 = vpop.permute.xlu0 %939 }
 0x122   : > { %v947_v27 = vsel %vm941_vm6, %v938_v5, %v940_v26  ;;  %v1016_v28 = vpop.permute.xlu1 %1015 }
 0x123   : > { %991 = vmatpush.bf16.msrb.mxu0 %v947_v27  ;;  %v1031_v29 = vsel %vm1029_vm7, %v1016_v28, %v1018_v25  ;;  %v1030_v36 = vsel %vm1029_vm7, %v1014_v31, %v1016_v28 }
 0x124   : > { %1066 = vmatpush.bf16.msrb.mxu2 %v1031_v29  ;;  %v1108_v48 = vpop.permute.xlu2 %1107 }
 0x127   : > { %1545 = vmatmul.msk.bf16.vlgmr.msrb.gmra.mxu2 %vm413_vm1, %v1584_v30 }
 0x129   : > { %v1022_v32 = vpop.permute.xlu0 %1021 }
 0x12a   : > { %v1033_v33 = vsel %vm1029_vm7, %v1022_v32, %v1024_v22 }
 0x12b   : > { %v932_v34 = vpop.permute.xlu1 %931  ;;  %1051 = vmatpush.bf16.msrb.mxu1 %v1033_v33 }
 0x12c   : > { %v944_v35 = vsel %vm941_vm6, %v930_v11, %v932_v34  ;;  %v1102_v4 = vpop.permute.xlu2 %1101 }
 0x12d   : > { %992 = vmatpush.bf16.msrb.mxu0 %v944_v35 }
 0x12f   : > { %1052 = vmatpush.bf16.msrb.mxu1 %v1030_v36 }
 0x130   : > { %1537 = vmatmul.msk.bf16.vlgmr.msrb.gmra.mxu0 %vm413_vm1, %v1583_v17 }
 0x131   : > { %v1028_v40 = vpop.permute.xlu0 %1027 }
 0x132   : > { %v1035_v41 = vsel %vm1029_vm7, %v1026_v23, %v1028_v40  ;;  %1544 = vmatmul.msk.bf16.vlgmr.msrb.gmra.mxu1 %vm413_vm1, %v1584_v30 }
 0x133   : > { %v1114_v42 = vpop.permute.xlu1 %1113  ;;  %1079 = vmatpush.bf16.msrb.mxu3 %v1035_v41 }
 0x134   : > { %v1123_v38 = vsel %vm1117_vm8, %v1114_v42, %v1116_v39  ;;  %v426_v43 = vpop.f32.mrf.mxu0 }
 0x135   : > { %1167 = vmatpush.bf16.msra.mxu2 %v1123_v38  ;;  %v454_v45 = vpop.f32.mrf.mxu2  ;;  %v493_v46 = vadd.f32 %v492_v37, %v426_v43 }
 0x136   : > { %v440_v44 = vpop.f32.mrf.mxu1 }
 0x139   : > { %v1020_v47 = vpop.permute.xlu0 %1019 }
 0x13a   : > { %v1032_v50 = vsel %vm1029_vm7, %v1018_v25, %v1020_v47 }
 0x13b   : > { %v1106_v49 = vpop.permute.xlu1 %1105  ;;  %1080 = vmatpush.bf16.msrb.mxu3 %v1032_v50 }
 0x13c   : > { %v1120_v51 = vsel %vm1117_vm8, %v1106_v49, %v1108_v48  ;;  %v428_v53 = vpop.f32.mrf.mxu0 }
 0x13d   : > { %1168 = vmatpush.bf16.msra.mxu2 %v1120_v51  ;;  %v456_v55 = vpop.f32.mrf.mxu2  ;;  %v495_v57 = vadd.f32 %v494_v54, %v428_v53 }
 0x13e   : > { %v442_v56 = vpop.f32.mrf.mxu1  ;;  %1546 = vmatmul.msk.bf16.vlgmr.msrb.gmra.mxu3 %vm413_vm1, %v1584_v30 }
 0x140   : > { %1555 = vmatmul.msk.bf16.vlgmr.msra.gmra.mxu2 %vm413_vm1, %v1585_v52 }
 0x141   : > { %v1110_v58 = vpop.permute.xlu0 %1109 }
 0x143   : > { %v1112_v59 = vpop.permute.xlu1 %1111 }
 0x144   : > { %v1121_v60 = vsel %vm1117_vm8, %v1110_v58, %v1112_v59  ;;  %v1122_v61 = vsel %vm1117_vm8, %v1112_v59, %v1114_v42  ;;  %v506_v62 = vpop.f32.mrf.mxu0 }
 0x145   : > { %1139 = vmatpush.bf16.msra.mxu0 %v1121_v60  ;;  %1153 = vmatpush.bf16.msra.mxu1 %v1122_v61  ;;  %v574_v63 = vpop.f32.mrf.mxu2  ;;  %v507_v0 = vadd.f32 %v506_v62, %v440_v44  ;;  %v1181_v62 = vld [vmem:[%s2122_s2] sm:$0x7] }
 0x146   : > { %v520_v1 = vpop.f32.mrf.mxu1  ;;  %v607_v2 = vadd.f32 %v574_v63, %v493_v46 }
 0x147   : > { %v521_v3 = vadd.f32 %v520_v1, %v454_v45 }
 0x149   : > { %v1104_v5 = vpop.permute.xlu0 %1103 }
 0x14a   : > { %v1118_v6 = vsel %vm1117_vm8, %v1102_v4, %v1104_v5  ;;  %v1119_v7 = vsel %vm1117_vm8, %v1104_v5, %v1106_v49 }
 0x14b   : > { %1140 = vmatpush.bf16.msra.mxu0 %v1118_v6  ;;  %1154 = vmatpush.bf16.msra.mxu1 %v1119_v7  ;;  %v1185_v7 = vperm.slane %v1181_v62, 2 }
 0x14c   : > { %v508_v8 = vpop.f32.mrf.mxu0 }
 0x14d   : > { %v576_v9 = vpop.f32.mrf.mxu2  ;;  %v509_v10 = vadd.f32 %v508_v8, %v442_v56 }
 0x14e   : > { %v522_v11 = vpop.f32.mrf.mxu1  ;;  %1553 = vmatmul.msk.bf16.vlgmr.msra.gmra.mxu0 %vm413_vm1, %v1585_v52  ;;  %1554 = vmatmul.msk.bf16.vlgmr.msra.gmra.mxu1 %vm413_vm1, %v1585_v52  ;;  %v610_v12 = vadd.f32 %v576_v9, %v495_v57 }
 0x14f   : > { %v523_v13 = vadd.f32 %v522_v11, %v456_v55  ;;  %v1184_v11 = vperm.slane %v1181_v62, 1 }
 0x151   : > { %v588_v14 = vpop.f32.mrf.mxu3 }
 0x152   : > { %v608_v44 = vadd.f32 %v588_v14, %v507_v0 }
 0x154   : > { %v602_v16 = vpop.f32.mrf.mxu0 }
 0x155   : > { %v609_v42 = vadd.f32 %v602_v16, %v521_v3 }
 0x159   : > { %v676_v15 = vpop.f32.mrf.mxu2  ;;  %v590_v18 = vpop.f32.mrf.mxu3 }
 0x15a   : > { %v696_v47 = vadd.f32 %v676_v15, %v608_v44  ;;  %v611_v56 = vadd.f32 %v590_v18, %v509_v10  ;;  %v1183_v10 = vperm.slane %v1181_v62, 0 }
 0x15b   : > { %v662_v17 = vpop.f32.mrf.mxu1 }
 0x15c   : > { %v604_v20 = vpop.f32.mrf.mxu0  ;;  %v695_v49 = vadd.f32 %v662_v17, %v607_v2 }
 0x15d   : > { %v612_v52 = vadd.f32 %v604_v20, %v523_v13 }
 0x161   : > { %v678_v19 = vpop.f32.mrf.mxu2 }
 0x162   : > { %v699_v2 = vadd.f32 %v678_v19, %v611_v56 }
 0x163   : > { %v664_v21 = vpop.f32.mrf.mxu1 }
 0x164   : > { %v698_v4 = vadd.f32 %v664_v21, %v610_v12 }
 0x16a   : > { %v690_v22 = vpop.f32.mrf.mxu3 }
 0x16b   : > { %v697_v45 = vadd.f32 %v690_v22, %v609_v42 }
 0x171   : > { %v778_v23 = vpop.f32.mrf.mxu2 }
 0x172   : > { %v692_v26 = vpop.f32.mrf.mxu3  ;;  %v785_v48 = vadd.f32 %v778_v23, %v697_v45 }
 0x173   : > { %v700_v63 = vadd.f32 %v692_v26, %v612_v52 }
 0x174   : > { %v750_v24 = vpop.f32.mrf.mxu0  ;;  %v764_v25 = vpop.f32.mrf.mxu1 }
 0x175   : > { %v784_v53 = vadd.f32 %v764_v25, %v696_v47  ;;  %v783_v57 = vadd.f32 %v750_v24, %v695_v49 }
 0x179   : > { %v780_v27 = vpop.f32.mrf.mxu2 }
 0x17a   : > { %v788_v5 = vadd.f32 %v780_v27, %v700_v63 }
 0x17c   : > { %v752_v29 = vpop.f32.mrf.mxu0  ;;  %v766_v30 = vpop.f32.mrf.mxu1 }
 0x17d   : > { %v786_v13 = vadd.f32 %v752_v29, %v698_v4  ;;  %v787_v14 = vadd.f32 %v766_v30, %v699_v2 }
 0x18a   : > { %v838_v28 = vpop.f32.mrf.mxu3 }
 0x18b   : > { %v871_v60 = vadd.f32 %v838_v28, %v783_v57 }
 0x192   : > { %v966_v31 = vpop.f32.mrf.mxu2  ;;  %v840_v33 = vpop.f32.mrf.mxu3 }
 0x193   : > { %v852_v32 = vpop.f32.mrf.mxu0  ;;  %v999_v3 = vadd.f32 %v966_v31, %v871_v60  ;;  %v874_v19 = vadd.f32 %v840_v33, %v786_v13 }
 0x194   : > { %v866_v34 = vpop.f32.mrf.mxu1  ;;  %v872_v59 = vadd.f32 %v852_v32, %v784_v53 }
 0x195   : > { %v873_v50 = vadd.f32 %v866_v34, %v785_v48 }
 0x19a   : > { %v968_v35 = vpop.f32.mrf.mxu2  ;;  %v980_v39 = vpop.f32.mrf.mxu3 }
 0x19b   : > { %v854_v36 = vpop.f32.mrf.mxu0  ;;  %v1000_v0 = vadd.f32 %v980_v39, %v872_v59  ;;  %v1002_v26 = vadd.f32 %v968_v35, %v874_v19 }
 0x19c   : > { %v868_v40 = vpop.f32.mrf.mxu1  ;;  %v875_v22 = vadd.f32 %v854_v36, %v787_v14 }
 0x19d   : > { %v876_v17 = vadd.f32 %v868_v40, %v788_v5 }
 0x1a2   : > { %v982_v43 = vpop.f32.mrf.mxu3 }
 0x1a3   : > { %v1003_v27 = vadd.f32 %v982_v43, %v875_v22 }
 0x1aa   : > { %v1068_v41 = vpop.f32.mrf.mxu2 }
 0x1ab   : > { %v1088_v6 = vadd.f32 %v1068_v41, %v1000_v0 }
 0x1ad   : > { %v994_v37 = vpop.f32.mrf.mxu0 }
 0x1ae   : > { %v1001_v58 = vadd.f32 %v994_v37, %v873_v50 }
 0x1af   : > { %v1054_v38 = vpop.f32.mrf.mxu1 }
 0x1b0   : > { %v1087_v8 = vadd.f32 %v1054_v38, %v999_v3 }
 0x1b2   : > { %v1070_v46 = vpop.f32.mrf.mxu2 }
 0x1b3   : > { %v1091_v32 = vadd.f32 %v1070_v46, %v1003_v27 }
 0x1b5   : > { %v996_v51 = vpop.f32.mrf.mxu0 }
 0x1b6   : > { %v1004_v21 = vadd.f32 %v996_v51, %v876_v17 }
 0x1b7   : > { %v1056_v54 = vpop.f32.mrf.mxu1 }
 0x1b8   : > { %v1090_v39 = vadd.f32 %v1056_v54, %v1002_v26 }
 0x1c1   : > { %v1082_v55 = vpop.f32.mrf.mxu3 }
 0x1c2   : > { %v1089_v61 = vadd.f32 %v1082_v55, %v1001_v58 }
 0x1c3   : > { %v1170_v1 = vpop.f32.mrf.mxu2 }
 0x1c4   : > { %v2064_v9 = vadd.f32 %v1170_v1, %v1089_v61 }
 0x1c6   : > { %v1191_v23 = vmul.f32 %v1185_v7, %v2064_v9 }
 0x1c8   : > { %v1207_v33 = vmul.f32 %v1191_v23, %v1191_v23 }
 0x1c9   : > { %v1084_v12 = vpop.f32.mrf.mxu3 }
 0x1ca   : > { %v1092_v28 = vadd.f32 %v1084_v12, %v1004_v21 }
 0x1cb   : > { %v1142_v15 = vpop.f32.mrf.mxu0  ;;  %v1156_v16 = vpop.f32.mrf.mxu1 }
 0x1cc   : > { %v2066_v18 = vadd.f32 %v1142_v15, %v1087_v8  ;;  %v2068_v20 = vadd.f32 %v1156_v16, %v1088_v6  ;;  %v1172_v34 = vpop.f32.mrf.mxu2 }
 0x1cd   : > { %v2073_v37 = vadd.f32 %v1172_v34, %v1092_v28 }
 0x1ce   : > { %v1189_v24 = vmul.f32 %v1183_v10, %v2066_v18  ;;  %v1190_v25 = vmul.f32 %v1184_v11, %v2068_v20 }
 0x1cf   : > { %v1194_v46 = vmul.f32 %v1185_v7, %v2073_v37 }
 0x1d0   : > { %v1205_v29 = vmul.f32 %v1189_v24, %v1189_v24  ;;  %v1206_v30 = vmul.f32 %v1190_v25, %v1190_v25  ;;  %v1195_v31 = vadd.f32 %v1190_v25, %v1189_v24 }
 0x1d1   : > { %v1210_v52 = vmul.f32 %v1194_v46, %v1194_v46 }
 0x1d2   : > { %v1196_v40 = vadd.f32 %v1195_v31, %v1191_v23  ;;  %v1211_v36 = vadd.f32 %v1206_v30, %v1205_v29 }
 0x1d3   : > { %v1144_v41 = vpop.f32.mrf.mxu0  ;;  %v1158_v42 = vpop.f32.mrf.mxu1 }
 0x1d4   : > { %v2075_v38 = vadd.f32 %v1144_v41, %v1090_v39  ;;  %v2077_v45 = vadd.f32 %v1158_v42, %v1091_v32  ;;  %1197 = vadd.xlane.f32.xlu1 %v1196_v40  ;;  %v1212_v35 = vadd.f32 %v1211_v36, %v1207_v33 }
 0x1d6   : > { %v1192_v43 = vmul.f32 %v1183_v10, %v2075_v38  ;;  %v1193_v44 = vmul.f32 %v1184_v11, %v2077_v45  ;;  %1213 = vadd.xlane.f32.xlu0 %v1212_v35 }
 0x1d8   : > { %v1199_v48 = vadd.f32 %v1193_v44, %v1192_v43  ;;  %v1208_v47 = vmul.f32 %v1192_v43, %v1192_v43  ;;  %v1209_v49 = vmul.f32 %v1193_v44, %v1193_v44 }
 0x1da   : > { %v1200_v50 = vadd.f32 %v1199_v48, %v1194_v46  ;;  %v1215_v51 = vadd.f32 %v1209_v49, %v1208_v47 }
 0x1dc   : > { %1201 = vadd.xlane.f32.xlu2 %v1200_v50  ;;  %v1216_v53 = vadd.f32 %v1215_v51, %v1210_v52 }
 0x1e4   : > { %1217 = vadd.xlane.f32.xlu2 %v1216_v53 }
 0x247   : > { %v1198_v54 = vpop.xlane.xlu1 %1197 }
 0x248   : > { %v1203_v55 = vmul.f32 0.00390625, %v1198_v54 }
 0x249   : > { %v1214_v56 = vpop.xlane.xlu0 %1213 }
 0x24a   : > { %v1219_v57 = vmul.f32 0.00390625, %v1214_v56  ;;  %v1221_v58 = vmul.f32 %v1203_v55, %v1203_v55  ;;  %v1225_v14 = vsub.f32 %v2066_v18, %v1203_v55  ;;  %v1226_v15 = vsub.f32 %v2068_v20, %v1203_v55 }
 0x24b   : > { %v1227_v16 = vsub.f32 %v2064_v9, %v1203_v55 }
 0x24c   : > { %v1223_v59 = vsub.f32 %v1219_v57, %v1221_v58 }
 0x24e   : > { %v1231_v60 = vmax.f32 %v1223_v59, 0.0 }
 0x24f   : > { %v1202_v61 = vpop.xlane.xlu2 %1201 }
 0x250   : > { %v1233_v62 = vadd.f32 1e-05, %v1231_v60  ;;  %v1204_v63 = vmul.f32 0.00390625, %v1202_v61 }
 0x252   : > { %1655 = vrsqrt.f32 %v1233_v62  ;;  %v1222_v1 = vmul.f32 %v1204_v63, %v1204_v63  ;;  %vm1241_vm10 = vweird.f32 %v1233_v62  ;;  %v1228_v34 = vsub.f32 %v2075_v38, %v1204_v63 }
 0x253   : > { %v1229_v39 = vsub.f32 %v2077_v45, %v1204_v63  ;;  %v1230_v40 = vsub.f32 %v2073_v37, %v1204_v63 }
 0x257   : > { %v1218_v0 = vpop.xlane.xlu2 %1217 }
 0x258   : > { %v1220_v2 = vmul.f32 0.00390625, %v1218_v0  ;;  %v1656_v3 = vpop.eup %1655 }
 0x259   : > { %v1236_v4 = vmul.f32 %v1656_v3, %v1233_v62  ;;  %vm1242_vm9 = vweird.f32 %v1656_v3 }
 0x25a   : > { %v1224_v5 = vsub.f32 %v1220_v2, %v1222_v1  ;;  %vm1243_vm11 = vmor %vm1241_vm10, %vm1242_vm9 }
 0x25b   : > { %v1237_v6 = vmul.f32 %v1656_v3, %v1236_v4 }
 0x25c   : > { %v1232_v7 = vmax.f32 %v1224_v5, 0.0 }
 0x25d   : > { %v1238_v8 = vmul.f32 0.5, %v1237_v6 }
 0x25e   : > { %v1234_v10 = vadd.f32 1e-05, %v1232_v7 }
 0x25f   : > { %v1239_v11 = vsub.f32 1.5, %v1238_v8 }
 0x260   : > { %1657 = vrsqrt.f32 %v1234_v10  ;;  %vm1251_vm0 = vweird.f32 %v1234_v10 }
 0x261   : > { %v1240_v13 = vmul.f32 %v1656_v3, %v1239_v11 }
 0x263   : > { %v1244_v17 = vsel %vm1243_vm11, %v1656_v3, %v1240_v13 }
 0x264   : > { %v1255_v19 = vmul.f32 %v1244_v17, %v1225_v14  ;;  %v1256_v22 = vmul.f32 %v1244_v17, %v1226_v15  ;;  %v1257_v12 = vmul.f32 %v1244_v17, %v1227_v16 }
 0x266   : > { %v1658_v21 = vpop.eup %1657  ;;  %vm1261_vm12 = vcmp.gt.f32.partialorder %v1255_v19, 0.0  ;;  %vm1262_vm13 = vcmp.gt.f32.partialorder %v1256_v22, 0.0  ;;  %vm1263_vm14 = vcmp.gt.f32.partialorder %v1257_v12, 0.0  ;;  %v1267_v23 = vmul.f32 0.1, %v1255_v19 }
 0x267   : > { %v1268_v24 = vmul.f32 0.1, %v1256_v22  ;;  %v1269_v25 = vmul.f32 0.1, %v1257_v12  ;;  %v1246_v26 = vmul.f32 %v1658_v21, %v1234_v10  ;;  %vm1252_vm15 = vweird.f32 %v1658_v21 }
 0x268   : > { %v1273_v18 = vsel %vm1261_vm12, %v1255_v19, %v1267_v23  ;;  %vm1253_vm1 = vmor %vm1251_vm0, %vm1252_vm15 }
 0x269   : > { %v1274_v9 = vsel %vm1262_vm13, %v1256_v22, %v1268_v24  ;;  %v1275_v20 = vsel %vm1263_vm14, %v1257_v12, %v1269_v25  ;;  %v1247_v27 = vmul.f32 %v1658_v21, %v1246_v26 }
 0x26a   : > { %v1279_v28 = vpack.c.bf16 %v1274_v9, %v1273_v18  ;;  %v1280_v29 = vpack.c.bf16 %v1275_v20, %v1275_v20 }
 0x26b   : > { %v1248_v30 = vmul.f32 0.5, %v1247_v27 }
 0x26c   : > { %1283 = vst [vmem:[%s2090_s8] sm:$0xff] %v1279_v28 }
 0x26d   : > { %1284 = vst [vmem:[%s2090_s8 + $0x8] sm:$0xf] %v1280_v29  ;;  %v1249_v31 = vsub.f32 1.5, %v1248_v30 }
 0x26f   : > { %v1250_v32 = vmul.f32 %v1658_v21, %v1249_v31 }
 0x271   : > { %v1254_v33 = vsel %vm1253_vm1, %v1658_v21, %v1250_v32 }
 0x272   : > { %v1258_v36 = vmul.f32 %v1254_v33, %v1228_v34  ;;  %v1259_v41 = vmul.f32 %v1254_v33, %v1229_v39  ;;  %v1260_v42 = vmul.f32 %v1254_v33, %v1230_v40 }
 0x274   : > { %vm1264_vm2 = vcmp.gt.f32.partialorder %v1258_v36, 0.0  ;;  %vm1265_vm3 = vcmp.gt.f32.partialorder %v1259_v41, 0.0  ;;  %vm1266_vm4 = vcmp.gt.f32.partialorder %v1260_v42, 0.0  ;;  %v1270_v35 = vmul.f32 0.1, %v1258_v36 }
 0x275   : > { %v1271_v43 = vmul.f32 0.1, %v1259_v41  ;;  %v1272_v44 = vmul.f32 0.1, %v1260_v42 }
 0x276   : > { %v1276_v46 = vsel %vm1264_vm2, %v1258_v36, %v1270_v35 }
 0x277   : > { %v1277_v48 = vsel %vm1265_vm3, %v1259_v41, %v1271_v43  ;;  %v1278_v38 = vsel %vm1266_vm4, %v1260_v42, %v1272_v44 }
 0x278   : > { %v1281_v47 = vpack.c.bf16 %v1277_v48, %v1276_v46  ;;  %v1282_v45 = vpack.c.bf16 %v1278_v38, %v1278_v38 }
 0x27a   : > { %1285 = vst [vmem:[%s2090_s8 + $0xc] sm:$0xff] %v1281_v47 }
 0x27b   : > { %1286 = vst [vmem:[%s2090_s8 + $0x14] sm:$0xf] %v1282_v45 }
 0x27c PF: > { %s13_s18 = sadd.s32 1, %s1713_s18   ;;  %s2124_s12 = smov %s1693_s13 }
 0x27d   : > { %p10_p12 = scmp.ge.s32.totalorder %s13_s18, 6   ;;  %s2125_s13 = smov %s1792_s23 }
 0x27e   : > { %s2126_s14 = smov %s1705_s16  ;;  %s2127_s15 = smov %s1709_s17 }
 0x27f   : > { %s2128_s16 = smov %s2131_s19  ;;  %s2129_s17 = smov %s2135_s20 }
 0x280   :  { %12 = sbr.rel (!%p10_p12) target bundleno = 4 (0x4), region = 119 }

// kernel: resnet_block_forward.10
= control target key start
LH: loop header
LB: loop body
LE: loop exit
PB: predicated region body
PF: predicated region fallthrough
CT: control target
= control target key end

     0   :  { %s1725_s12 = smov 0   ;;  %s1727_s13 = smov 0   ;;  %s2096_s0 = inlined_call_operand.vmem [shape: bf16[2,32,522], index: 0, kind: input, shape index: {}]   ;;  %s2097_s1 = inlined_call_operand.vmem [shape: bf16[9,32,32], index: 1, kind: input, shape index: {}]   ;;  %s2098_s2 = inlined_call_operand.vmem [shape: f32[1,384], index: 2, kind: input, shape index: {}]   ;;  %s2099_s3 = inlined_call_operand.vmem [shape: bf16[2,32,384], index: 3, kind: output, shape index: {}]  }
   0x1   :  { %s1729_s14 = smov 0   ;;  %s1731_s15 = smov 0  }
   0x2   :  { %s1733_s16 = smov 0   ;;  %s1735_s17 = smov 0  }
   0x3   :  { %s1737_s18 = smov 0  }
   0x4 LB: > { %s22_s19 = sadd.s32 1, %s1687_s16  ;;  %s25_s20 = sadd.s32 1, %s1691_s17  ;;  %s1695_s18 = sphi %s1737_s18, %s13_s18   ;;  %s1691_s17 = sphi %s1735_s17, %s2105_s17   ;;  %s1687_s16 = sphi %s1733_s16, %s2104_s16   ;;  %s1683_s15 = sphi %s1731_s15, %s2103_s15   ;;  %s1679_s14 = sphi %s1729_s14, %s2102_s14   ;;  %s1675_s13 = sphi %s1727_s13, %s2101_s13   ;;  %s1671_s12 = sphi %s1725_s12, %s2100_s12  }
   0x5   : > { %p23_p0 = scmp.ge.s32.totalorder %s22_s19, 2  ;;  %s58_s21 = sadd.s32 1, %s1675_s13 }
   0x6   : > { %p65_p1 = scmp.ne.s32.totalorder %s1675_s13, %s1671_s12  ;;  %p66_p2 = scmp.eq.s32.totalorder %s1695_s18, 0 }
   0x7   : > { %s2107_s19 = smov (%p23_p0, %s22_s19), 0  ;;  %s2109_s20 = smov (!%p23_p0, %s25_s20), %s1691_s17 }
   0x8   : > { %s55_s22 = ssub.s32 %s1687_s16, %s2107_s19  ;;  %p67_p3 = por %p66_p2, %p65_p1 }
   0x9   : > { %p27_p4 = scmp.ge.s32.totalorder %s2109_s20, 2  ;;  %p56_p5 = scmp.eq.s32.totalorder %s55_s22, 0 }
   0xa   : > { %p1380_p6 = scmp.ge.s32.totalorder %s1695_s18, 4 }
   0xb   : > { %s2111_s20 = smov (%p27_p4, %s2109_s20), 0 }
   0xc   : > { %s1774_s23 = scalar_select %p56_p5, %s1675_s13, %s58_s21  }
   0xd   : > { %143 = sbr.rel (%p1380_p6) target bundleno = 31 (0x1f), region = 20 }
  0x12   : > { %154 = sbr.rel (!%p67_p3) target bundleno = 31 (0x1f), region = 28  ;;  %s156_s24 = sand.u32 (%p67_p3), 1, %s1675_s13  }
  0x13   : > { %s1540_s25 = sshll.u32 (%p67_p3), %s1687_s16, 3  ;;  %s1568_s26 = smul.u32 (%p67_p3), 72, %s156_s24 }
  0x14   : > { %s161_s29 = scalar_lea.vmem (%p67_p3), %s2097_s1, %s1540_s25 }
  0x15   : > { %v178_v0 = vld [vmem:[%s161_s29] sm:$0xff] (%p67_p3)   ;;  %v182_v1 = vld [vmem:[%s161_s29 + $0x10] sm:$0xff] (%p67_p3)   ;;  %s158_s30 = scalar_lea.vmem (%p67_p3), [#allocation2], %s1568_s26 }
  0x16   : > { %v186_v2 = vld [vmem:[%s161_s29 + $0x20] sm:$0xff] (%p67_p3)   ;;  %179 = vst [vmem:[%s158_s30] sm:$0xff] (%p67_p3), %v178_v0   ;;  %v190_v3 = vld [vmem:[%s161_s29 + $0x30] sm:$0xff] (%p67_p3)  }
  0x17   : > { %183 = vst [vmem:[%s158_s30 + $0x8] sm:$0xff] %v182_v1   ;;  %v194_v4 = vld [vmem:[%s161_s29 + $0x40] sm:$0xff]   ;;  %v198_v5 = vld [vmem:[%s161_s29 + $0x50] sm:$0xff]  }
  0x18   : > { %187 = vst [vmem:[%s158_s30 + $0x10] sm:$0xff] %v186_v2   ;;  %v202_v6 = vld [vmem:[%s161_s29 + $0x60] sm:$0xff]   ;;  %v206_v7 = vld [vmem:[%s161_s29 + $0x70] sm:$0xff]  }
  0x19   : > { %191 = vst [vmem:[%s158_s30 + $0x18] sm:$0xff] %v190_v3   ;;  %v210_v8 = vld [vmem:[%s161_s29 + $0x80] sm:$0xff]  }
  0x1a   : > { %195 = vst [vmem:[%s158_s30 + $0x20] sm:$0xff] %v194_v4  }
  0x1b   : > { %199 = vst [vmem:[%s158_s30 + $0x28] sm:$0xff] %v198_v5  }
  0x1c   : > { %203 = vst [vmem:[%s158_s30 + $0x30] sm:$0xff] %v202_v6  }
  0x1d   : > { %207 = vst [vmem:[%s158_s30 + $0x38] sm:$0xff] %v206_v7  }
  0x1e   : > { %211 = vst [vmem:[%s158_s30 + $0x40] sm:$0xff] %v210_v8  }
  0x1f PF: > { %p1383_p7 = scmp.ge.s32.totalorder %s1695_s18, 1  ;;  %p272_p8 = scmp.lt.s32.totalorder %s1695_s18, 5 }
  0x21   : > { %p273_p9 = pnand %p1383_p7, %p272_p8 }
  0x22   : > { %p312_p10 = scmp.lt.s32.totalorder (!%p273_p9), %s1683_s15, 1  ;;  %s1697_s8 = smov (!%p273_p9), 125  }
  0x23   : > { %276 = sbr.rel (%p273_p9) target bundleno = 632 (0x278), region = 69  ;;  %s1698_s9 = smov (!%p273_p9), 122  }
  0x24   : > { %s1699_s10 = smov (!%p273_p9), 62   ;;  %s1700_s11 = smov (!%p273_p9), 59  }
  0x25   : > { %s1701_s21 = smov (!%p273_p9), 56   ;;  %s1702_s22 = smov (!%p273_p9), 124  }
  0x26   : > { %s279_s24 = sand.u32 (!%p273_p9), 1, %s1671_s12   ;;  %s1703_s26 = smov (!%p273_p9), 121  }
  0x27   : > { %s1569_s25 = smul.u32 (!%p273_p9), 72, %s279_s24  ;;  %s1704_s27 = smov (!%p273_p9), 118  }
  0x28   : > { %s2113_s15 = smov (!%p312_p10, %s1683_s15), 1  ;;  %vm400_vm0 = vcmask 1022976   ;;  %vm413_vm1 = vcmask 261120   ;;  %vm549_vm2 = vcmask 998400   ;;  %vm637_vm3 = vcmask 506880   ;;  %s1385_s30 = sshll.u32 %s1679_s14, 1 }
  0x29   : > { %s1570_s4 = smul.u32 80, %s2113_s15  ;;  %s1899_s12 = scalar_lea.vmem [#allocation2], %s1569_s25  ;;  %vm725_vm4 = vcmask 482304   ;;  %vm813_vm5 = vcmask 457728   ;;  %vm941_vm6 = vcmask 1014784   ;;  %vm1029_vm7 = vcmask 990208  }
  0x2a   : > { %v1902_v58 = vld [vmem:[%s1899_s12] sm:$0xff]  ;;  %v1552_v4 = vld [vmem:[%s1899_s12 + $0x8] sm:$0xff]  ;;  %vm1117_vm8 = vcmask 965632   ;;  %p321_p11 = scmp.lt.s32.totalorder %s1385_s30, 3 }
  0x2b   : > { %s1792_s7 = scalar_lea.vmem %s2096_s0, %s1570_s4  ;;  %s1572_s4 = smul.u32 12, %s2113_s15 }
  0x2c   : > { %v1419_v9 = vld [vmem:[%s1792_s7 + $0x30] sm:$0xf]  ;;  %v1551_v10 = vld [vmem:[%s1792_s7 + $0x40] sm:$0xf0]  ;;  %v1403_v11 = vld [vmem:[%s1792_s7 + $0x8] sm:$0xf] }
  0x2d   : > { %v1797_v12 = vor.u32 %v1551_v10, %v1419_v9  ;;  %v1549_v13 = vld [vmem:[%s1792_s7 + $0x18] sm:$0xf0]  ;;  %v1411_v15 = vld [vmem:[%s1792_s7 + $0x28] sm:$0xf]  ;;  %v1550_v17 = vld [vmem:[%s1792_s7 + $0x34] sm:$0xf] }
  0x2e   : > { %v1800_v14 = vor.u32 %v1549_v13, %v1403_v11  ;;  %v1545_v16 = vld [vmem:[%s1792_s7 + $0x38] sm:$0xf0]  ;;  %v1421_v18 = vld [vmem:[%s1792_s7 + $0x44] sm:$0xf0]  ;;  %v1548_v19 = vld [vmem:[%s1792_s7 + $0xc] sm:$0xf] }
  0x2f   : > { %396 = vrot.lane.b32.xlu0 %v1797_v12, %s1697_s8  ;;  %v1412_v20 = vor.u32 %v1545_v16, %v1411_v15  ;;  %v1405_v21 = vld [vmem:[%s1792_s7 + $0x1c] sm:$0xf0]  ;;  %v1542_v23 = vld [vmem:[%s1792_s7 + $0x10] sm:$0xf0]  ;;  %v1812_v24 = vor.u32 %v1550_v17, %v1421_v18  ;;  %v1544_v25 = vld [vmem:[%s1792_s7 + $0x2c] sm:$0xf] }
  0x30   : > { %388 = vrot.lane.b32.xlu1 %v1800_v14, %s1697_s8  ;;  %v1395_v22 = vld [vmem:[%s1792_s7] sm:$0xf]  ;;  %v1816_v27 = vor.u32 %v1548_v19, %v1405_v21  ;;  %v1541_v30 = vld [vmem:[%s1792_s7 + $0x4] sm:$0xf]  ;;  %v1397_v31 = vld [vmem:[%s1792_s7 + $0x14] sm:$0xf0] }
  0x31   : > { %392 = vrot.lane.b32.xlu2 %v1412_v20, %s1697_s8  ;;  %489 = vmatpush.bf16.msra.mxu3 %v1412_v20  ;;  %v1413_v26 = vld [vmem:[%s1792_s7 + $0x3c] sm:$0xf0]  ;;  %v1396_v28 = vor.u32 %v1542_v23, %v1395_v22  ;;  %v1825_v32 = vor.u32 %v1541_v30, %v1397_v31  ;;  %v1503_v33 = vld [vmem:[%s1792_s7 + $0x2c] sm:$0xf]  ;;  %v1561_v35 = vld [vmem:[%s1792_s7 + $0x30] sm:$0xf] }
  0x32   : > { %v1818_v29 = vor.u32 %v1544_v25, %v1413_v26  ;;  %v1563_v34 = vld [vmem:[%s1792_s7 + $0x3c] sm:$0xf0]  ;;  %v1505_v36 = vld [vmem:[%s1792_s7 + $0x40] sm:$0xf0]  ;;  %v1559_v41 = vld [vmem:[%s1792_s7 + $0x14] sm:$0xf0] }
  0x33   : > { %v1851_v37 = vor.u32 %v1563_v34, %v1503_v33  ;;  %v1853_v38 = vor.u32 %v1561_v35, %v1505_v36  ;;  %v1487_v40 = vld [vmem:[%s1792_s7 + $0x4] sm:$0xf]  ;;  %v1557_v42 = vld [vmem:[%s1792_s7 + $0x8] sm:$0xf]  ;;  %v1489_v43 = vld [vmem:[%s1792_s7 + $0x18] sm:$0xf0] }
  0x34   : > { %v1870_v44 = vor.u32 %v1559_v41, %v1487_v40  ;;  %v1873_v47 = vor.u32 %v1557_v42, %v1489_v43  ;;  %v1511_v48 = vld [vmem:[%s1792_s7 + $0x34] sm:$0xf]  ;;  %v1564_v49 = vld [vmem:[%s1792_s7 + $0x44] sm:$0xf0]  ;;  %v1495_v55 = vld [vmem:[%s1792_s7 + $0xc] sm:$0xf] }
  0x35   : > { %490 = vmatpush.bf16.msra.mxu3 %v1396_v28  ;;  %v1886_v51 = vor.u32 %v1564_v49, %v1511_v48  ;;  %v1560_v56 = vld [vmem:[%s1792_s7 + $0x1c] sm:$0xf0]  ;;  %v1562_v60 = vld [vmem:[%s1792_s7 + $0x38] sm:$0xf]  ;;  %v1513_v61 = vld [vmem:[%s1792_s7 + $0x48] sm:$0xf0] }
  0x36   : > { %v1904_v59 = vor.u32 %v1560_v56, %v1495_v55  ;;  %v1516_v1 = vor.u32 %v1562_v60, %v1513_v61  ;;  %v1438_v5 = vld [vmem:[%s1792_s7 + $0x30] sm:$0xf]  ;;  %v1546_v6 = vld [vmem:[%s1792_s7 + $0x40] sm:$0xf0]  ;;  %v1543_v13 = vld [vmem:[%s1792_s7 + $0x18] sm:$0xf0] }
  0x37   : > { %398 = vrot.lane.b32.xlu0 %v1812_v24, %s1697_s8  ;;  %v1558_v8 = vld [vmem:[%s1792_s7 + $0x10] sm:$0xf]  ;;  %v1497_v9 = vld [vmem:[%s1792_s7 + $0x20] sm:$0xf0]  ;;  %v1439_v10 = vor.u32 %v1546_v6, %v1438_v5  ;;  %s2115_s30 = smov (!%p321_p11, %s1385_s30), 3 }
  0x38   : > { %390 = vrot.lane.b32.xlu1 %v1816_v27, %s1697_s8  ;;  %1440 = vmatmul.msk.bf16.vlgmr.msra.gmra.mxu3 %vm413_vm1, %v1902_v58  ;;  %v1500_v16 = vor.u32 %v1558_v8, %v1497_v9  ;;  %v1554_v41 = vld [vmem:[%s1899_s12 + $0x18] sm:$0xff]  ;;  %v1555_v56 = vld [vmem:[%s1899_s12 + $0x20] sm:$0xff]  ;;  %s1571_s5 = smul.u32 3, %s2115_s30 }
  0x39   : > { %394 = vrot.lane.b32.xlu2 %v1818_v29, %s1697_s8 }
  0x3a   : > { %s325_s6 = sadd.s32 %s1572_s4, %s1571_s5 }
  0x3b   : > { %s1386_s14 = sshll.u32 %s325_s6, 2 }
  0x3f   : > { %384 = vrot.lane.b32.xlu0 %v1396_v28, %s1697_s8 }
  0x40   : > { %386 = vrot.lane.b32.xlu1 %v1825_v32, %s1697_s8  ;;  %s327_s8 = scalar_lea.vmem %s2099_s3, %s1386_s14 }
  0x41   : > { %541 = vrot.lane.b32.xlu2 %v1412_v20, %s1698_s9 }
  0x47   : > { %543 = vrot.lane.b32.xlu0 %v1818_v29, %s1698_s9 }
  0x48   : > { %533 = vrot.lane.b32.xlu1 %v1396_v28, %s1698_s9 }
  0x49   : > { %535 = vrot.lane.b32.xlu2 %v1825_v32, %s1698_s9 }
  0x4f   : > { %545 = vrot.lane.b32.xlu0 %v1797_v12, %s1698_s9 }
  0x50   : > { %631 = vrot.lane.b32.xlu1 %v1818_v29, %s1699_s10 }
  0x51   : > { %633 = vrot.lane.b32.xlu2 %v1797_v12, %s1699_s10 }
  0x57   : > { %537 = vrot.lane.b32.xlu0 %v1800_v14, %s1698_s9 }
  0x58   : > { %547 = vrot.lane.b32.xlu1 %v1812_v24, %s1698_s9 }
  0x59   : > { %623 = vrot.lane.b32.xlu2 %v1825_v32, %s1699_s10 }
  0x5f   : > { %625 = vrot.lane.b32.xlu0 %v1800_v14, %s1699_s10 }
  0x60   : > { %629 = vrot.lane.b32.xlu1 %v1412_v20, %s1699_s10 }
  0x61   : > { %539 = vrot.lane.b32.xlu2 %v1816_v27, %s1698_s9 }
  0x67   : > { %621 = vrot.lane.b32.xlu0 %v1396_v28, %s1699_s10 }
  0x68   : > { %635 = vrot.lane.b32.xlu1 %v1812_v24, %s1699_s10 }
  0x69   : > { %721 = vrot.lane.b32.xlu2 %v1797_v12, %s1700_s11 }
  0x6f   : > { %723 = vrot.lane.b32.xlu0 %v1812_v24, %s1700_s11 }
  0x70   : > { %627 = vrot.lane.b32.xlu1 %v1816_v27, %s1699_s10 }
  0x71   : > { %713 = vrot.lane.b32.xlu2 %v1800_v14, %s1700_s11 }
  0x77   : > { %715 = vrot.lane.b32.xlu0 %v1816_v27, %s1700_s11 }
  0x78   : > { %717 = vrot.lane.b32.xlu1 %v1412_v20, %s1700_s11 }
  0x79   : > { %719 = vrot.lane.b32.xlu2 %v1818_v29, %s1700_s11 }
  0x7f   : > { %709 = vrot.lane.b32.xlu0 %v1396_v28, %s1700_s11 }
  0x80   : > { %711 = vrot.lane.b32.xlu1 %v1825_v32, %s1700_s11 }
  0x81   : > { %805 = vrot.lane.b32.xlu2 %v1412_v20, %s1701_s21 }
  0x87   : > { %807 = vrot.lane.b32.xlu0 %v1818_v29, %s1701_s21 }
  0x88   : > { %933 = vrot.lane.b32.xlu1 %v1851_v37, %s1702_s22 }
  0x89   : > { %935 = vrot.lane.b32.xlu2 %v1853_v38, %s1702_s22 }
  0x8b   : > { %v393_v39 = vpop.permute.xlu2 %392 }
  0x8f   : > { %797 = vrot.lane.b32.xlu0 %v1396_v28, %s1701_s21 }
  0x90   : > { %799 = vrot.lane.b32.xlu1 %v1825_v32, %s1701_s21 }
  0x91   : > { %809 = vrot.lane.b32.xlu2 %v1797_v12, %s1701_s21  ;;  %v1434_v12 = vld [vmem:[%s1792_s7 + $0x8] sm:$0xf] }
  0x92   : > { %v1435_v18 = vor.u32 %v1543_v13, %v1434_v12 }
  0x93   : > { %v395_v45 = vpop.permute.xlu2 %394 }
  0x94   : > { %v404_v46 = vsel %vm400_vm0, %v393_v39, %v395_v45 }
  0x95   : > { %423 = vmatpush.bf16.msra.mxu0 %v404_v46 }
  0x97   : > { %811 = vrot.lane.b32.xlu0 %v1812_v24, %s1701_s21  ;;  %v1553_v24 = vld [vmem:[%s1899_s12 + $0x10] sm:$0xff] }
  0x98   : > { %925 = vrot.lane.b32.xlu1 %v1870_v44, %s1702_s22 }
  0x99   : > { %927 = vrot.lane.b32.xlu2 %v1873_v47, %s1702_s22 }
  0x9b   : > { %v1883_v50 = vpop.permute.xlu2 %541 }
  0x9f   : > { %801 = vrot.lane.b32.xlu0 %v1800_v14, %s1701_s21 }
  0xa0   : > { %803 = vrot.lane.b32.xlu1 %v1816_v27, %s1701_s21 }
  0xa1   : > { %v397_v52 = vpop.permute.xlu0 %396  ;;  %937 = vrot.lane.b32.xlu2 %v1886_v51, %s1702_s22 }
  0xa2   : > { %v389_v53 = vpop.permute.xlu1 %388  ;;  %v405_v54 = vsel %vm400_vm0, %v395_v45, %v397_v52 }
  0xa3   : > { %437 = vmatpush.bf16.msra.mxu1 %v405_v54  ;;  %v1897_v57 = vpop.permute.xlu2 %535 }
  0xa7   : > { %1023 = vrot.lane.b32.xlu0 %v1853_v38, %s1703_s26 }
  0xa8   : > { %1025 = vrot.lane.b32.xlu1 %v1886_v51, %s1703_s26 }
  0xa9   : > { %v399_v62 = vpop.permute.xlu0 %398  ;;  %929 = vrot.lane.b32.xlu2 %v1904_v59, %s1702_s22 }
  0xaa   : > { %v391_v63 = vpop.permute.xlu1 %390  ;;  %v406_v0 = vsel %vm400_vm0, %v397_v52, %v399_v62 }
  0xab   : > { %451 = vmatpush.bf16.msra.mxu2 %v406_v0  ;;  %v1917_v2 = vpop.permute.xlu2 %633  ;;  %v403_v3 = vsel %vm400_vm0, %v389_v53, %v391_v63 }
  0xaf   : > { %452 = vmatpush.bf16.msra.mxu2 %v403_v3  ;;  %939 = vrot.lane.b32.xlu0 %v1516_v1, %s1702_s22 }
  0xb0   : > { %1015 = vrot.lane.b32.xlu1 %v1873_v47, %s1703_s26 }
  0xb1   : > { %v385_v7 = vpop.permute.xlu0 %384  ;;  %1017 = vrot.lane.b32.xlu2 %v1904_v59, %s1703_s26 }
  0xb2   : > { %v387_v11 = vpop.permute.xlu1 %386  ;;  %1427 = vmatmul.msk.bf16.vlgmr.msra.gmra.mxu2 %vm413_vm1, %v1552_v4 }
  0xb3   : > { %v401_v14 = vsel %vm400_vm0, %v385_v7, %v387_v11  ;;  %v402_v15 = vsel %vm400_vm0, %v387_v11, %v389_v53  ;;  %v1935_v17 = vpop.permute.xlu2 %623 }
  0xb4   : > { %424 = vmatpush.bf16.msra.mxu0 %v401_v14  ;;  %438 = vmatpush.bf16.msra.mxu1 %v402_v15 }
  0xb7   : > { %1021 = vrot.lane.b32.xlu0 %v1851_v37, %s1703_s26  ;;  %1425 = vmatmul.msk.bf16.vlgmr.msra.gmra.mxu0 %vm413_vm1, %v1552_v4 }
  0xb8   : > { %503 = vmatpush.bf16.msrb.mxu0 %v1818_v29  ;;  %517 = vmatpush.bf16.msrb.mxu1 %v1439_v10  ;;  %v1556_v10 = vld [vmem:[%s1899_s12 + $0x28] sm:$0xff] }
  0xb9   : > { %931 = vrot.lane.b32.xlu1 %v1500_v16, %s1702_s22  ;;  %1426 = vmatmul.msk.bf16.vlgmr.msra.gmra.mxu1 %vm413_vm1, %v1552_v4  ;;  %v544_v19 = vpop.permute.xlu0 %543 }
  0xba   : > { %v534_v20 = vpop.permute.xlu1 %533  ;;  %v553_v21 = vsel %vm549_vm2, %v1883_v50, %v544_v19  ;;  %1013 = vrot.lane.b32.xlu2 %v1870_v44, %s1703_s26 }
  0xbb   : > { %571 = vmatpush.bf16.msrb.mxu2 %v553_v21  ;;  %v550_v22 = vsel %vm549_vm2, %v534_v20, %v1897_v57  ;;  %v540_v23 = vpop.permute.xlu2 %539 }
  0xbc   : > { %504 = vmatpush.bf16.msrb.mxu0 %v1825_v32  ;;  %518 = vmatpush.bf16.msrb.mxu1 %v1435_v18 }
  0xbf   : > { %1027 = vrot.lane.b32.xlu0 %v1516_v1, %s1703_s26  ;;  %572 = vmatpush.bf16.msrb.mxu2 %v550_v22 }
  0xc1   : > { %1113 = vrot.lane.b32.xlu1 %v1886_v51, %s1704_s27  ;;  %v546_v25 = vpop.permute.xlu0 %545 }
  0xc2   : > { %v632_v26 = vpop.permute.xlu1 %631  ;;  %v554_v27 = vsel %vm549_vm2, %v544_v19, %v546_v25  ;;  %1449 = vmatmul.msk.bf16.vlgmr.msrb.gmra.mxu2 %vm413_vm1, %v1553_v24  ;;  %1115 = vrot.lane.b32.xlu2 %v1516_v1, %s1704_s27 }
  0xc3   : > { %v642_v28 = vsel %vm637_vm3, %v632_v26, %v1917_v2  ;;  %585 = vmatpush.bf16.msrb.mxu3 %v554_v27  ;;  %v722_v29 = vpop.permute.xlu2 %721 }
  0xc4   : > { %673 = vmatpush.bf16.msra.mxu2 %v642_v28 }
  0xc7   : > { %1019 = vrot.lane.b32.xlu0 %v1500_v16, %s1703_s26  ;;  %1441 = vmatmul.msk.bf16.vlgmr.msrb.gmra.mxu0 %vm413_vm1, %v1902_v58 }
  0xc9   : > { %1105 = vrot.lane.b32.xlu1 %v1904_v59, %s1704_s27  ;;  %1442 = vmatmul.msk.bf16.vlgmr.msrb.gmra.mxu1 %vm413_vm1, %v1902_v58  ;;  %v538_v30 = vpop.permute.xlu0 %537 }
  0xca   : > { %v548_v31 = vpop.permute.xlu1 %547  ;;  %v551_v32 = vsel %vm549_vm2, %v1897_v57, %v538_v30  ;;  %1107 = vrot.lane.b32.xlu2 %v1500_v16, %s1704_s27  ;;  %v552_v35 = vsel %vm549_vm2, %v538_v30, %v540_v23  ;;  %v1566_v30 = vld [vmem:[%s1899_s12 + $0x38] sm:$0xff] }
  0xcb   : > { %v555_v33 = vsel %vm549_vm2, %v546_v25, %v548_v31  ;;  %586 = vmatpush.bf16.msrb.mxu3 %v551_v32  ;;  %v714_v34 = vpop.permute.xlu2 %713 }
  0xcc   : > { %599 = vmatpush.bf16.msra.mxu0 %v555_v33 }
  0xce   : > { %1450 = vmatmul.msk.bf16.vlgmr.msrb.gmra.mxu3 %vm413_vm1, %v1553_v24 }
  0xcf   : > { %1109 = vrot.lane.b32.xlu0 %v1851_v37, %s1704_s27 }
  0xd0   : > { %600 = vmatpush.bf16.msra.mxu0 %v552_v35 }
  0xd1   : > { %1111 = vrot.lane.b32.xlu1 %v1853_v38, %s1704_s27  ;;  %v626_v36 = vpop.permute.xlu0 %625 }
  0xd2   : > { %v630_v39 = vpop.permute.xlu1 %629  ;;  %v639_v40 = vsel %vm637_vm3, %v1935_v17, %v626_v36  ;;  %1101 = vrot.lane.b32.xlu2 %v1870_v44, %s1704_s27 }
  0xd3   : > { %v641_v42 = vsel %vm637_vm3, %v630_v39, %v632_v26  ;;  %674 = vmatpush.bf16.msra.mxu2 %v639_v40  ;;  %v720_v37 = vpop.permute.xlu2 %719 }
  0xd4   : > { %659 = vmatpush.bf16.msra.mxu1 %v641_v42  ;;  %v730_v43 = vsel %vm725_vm4, %v720_v37, %v722_v29 }
  0xd6   : > { %1459 = vmatmul.msk.bf16.vlgmr.msra.gmra.mxu2 %vm413_vm1, %v1554_v41 }
  0xd7   : > { %1103 = vrot.lane.b32.xlu0 %v1873_v47, %s1704_s27  ;;  %1451 = vmatmul.msk.bf16.vlgmr.msra.gmra.mxu0 %vm413_vm1, %v1553_v24 }
  0xd9   : > { %v622_v38 = vpop.permute.xlu0 %621 }
  0xda   : > { %v636_v45 = vpop.permute.xlu1 %635  ;;  %v638_v44 = vsel %vm637_vm3, %v622_v38, %v1935_v17  ;;  %v1565_v17 = vld [vmem:[%s1899_s12 + $0x30] sm:$0xff] }
  0xdb   : > { %v643_v46 = vsel %vm637_vm3, %v1917_v2, %v636_v45  ;;  %660 = vmatpush.bf16.msra.mxu1 %v638_v44  ;;  %v806_v48 = vpop.permute.xlu2 %805 }
  0xdc   : > { %687 = vmatpush.bf16.msra.mxu3 %v643_v46 }
  0xde   : > { %1458 = vmatmul.msk.bf16.vlgmr.msra.gmra.mxu1 %vm413_vm1, %v1554_v41 }
  0xdf   : > { %761 = vmatpush.bf16.msrb.mxu1 %v730_v43 }
  0xe1   : > { %v724_v47 = vpop.permute.xlu0 %723 }
  0xe2   : > { %v731_v49 = vsel %vm725_vm4, %v722_v29, %v724_v47  ;;  %v628_v50 = vpop.permute.xlu1 %627 }
  0xe3   : > { %v640_v51 = vsel %vm637_vm3, %v626_v36, %v628_v50  ;;  %775 = vmatpush.bf16.msrb.mxu2 %v731_v49  ;;  %v936_v52 = vpop.permute.xlu2 %935 }
  0xe4   : > { %688 = vmatpush.bf16.msra.mxu3 %v640_v51 }
  0xe7   : > { %1460 = vmatmul.msk.bf16.vlgmr.msra.gmra.mxu3 %vm413_vm1, %v1554_v41 }
  0xe9   : > { %v716_v53 = vpop.permute.xlu0 %715 }
  0xea   : > { %v718_v54 = vpop.permute.xlu1 %717  ;;  %v728_v55 = vsel %vm725_vm4, %v714_v34, %v716_v53 }
  0xeb   : > { %v729_v57 = vsel %vm725_vm4, %v718_v54, %v720_v37  ;;  %776 = vmatpush.bf16.msrb.mxu2 %v728_v55  ;;  %v810_v58 = vpop.permute.xlu2 %809  ;;  %v492_v37 = vpop.f32.mrf.mxu3 }
  0xec   : > { %747 = vmatpush.bf16.msrb.mxu0 %v729_v57 }
  0xee   : > { %1469 = vmatmul.msk.bf16.vlgmr.msrb.gmra.mxu2 %vm413_vm1, %v1555_v56 }
  0xf1   : > { %v710_v59 = vpop.permute.xlu0 %709 }
  0xf2   : > { %v712_v60 = vpop.permute.xlu1 %711 }
  0xf3   : > { %v726_v61 = vsel %vm725_vm4, %v710_v59, %v712_v60  ;;  %v727_v62 = vsel %vm725_vm4, %v712_v60, %v714_v34  ;;  %v928_v63 = vpop.permute.xlu2 %927  ;;  %v494_v54 = vpop.f32.mrf.mxu3 }
  0xf4   : > { %748 = vmatpush.bf16.msrb.mxu0 %v726_v61  ;;  %762 = vmatpush.bf16.msrb.mxu1 %v727_v62 }
  0xf7   : > { %1467 = vmatmul.msk.bf16.vlgmr.msrb.gmra.mxu0 %vm413_vm1, %v1555_v56  ;;  %1468 = vmatmul.msk.bf16.vlgmr.msrb.gmra.mxu1 %vm413_vm1, %v1555_v56 }
  0xf9   : > { %v808_v0 = vpop.permute.xlu0 %807 }
  0xfa   : > { %v817_v1 = vsel %vm813_vm5, %v806_v48, %v808_v0  ;;  %v818_v2 = vsel %vm813_vm5, %v808_v0, %v810_v58  ;;  %v934_v3 = vpop.permute.xlu1 %933 }
  0xfb   : > { %v945_v4 = vsel %vm941_vm6, %v934_v3, %v936_v52  ;;  %835 = vmatpush.bf16.msrb.mxu3 %v817_v1  ;;  %849 = vmatpush.bf16.msra.mxu0 %v818_v2  ;;  %v938_v5 = vpop.permute.xlu2 %937 }
  0xfc   : > { %963 = vmatpush.bf16.msra.mxu2 %v945_v4  ;;  %v946_v7 = vsel %vm941_vm6, %v936_v52, %v938_v5  ;;  %v1567_v52 = vld [vmem:[%s1899_s12 + $0x40] sm:$0xff] }
 0x101   : > { %v798_v6 = vpop.permute.xlu0 %797 }
 0x102   : > { %v800_v8 = vpop.permute.xlu1 %799 }
 0x103   : > { %v814_v9 = vsel %vm813_vm5, %v798_v6, %v800_v8  ;;  %v930_v11 = vpop.permute.xlu2 %929 }
 0x104   : > { %836 = vmatpush.bf16.msrb.mxu3 %v814_v9  ;;  %v943_v12 = vsel %vm941_vm6, %v928_v63, %v930_v11 }
 0x107   : > { %1476 = vmatmul.msk.bf16.vlgmr.msrb.gmra.mxu3 %vm413_vm1, %v1556_v10 }
 0x108   : > { %977 = vmatpush.bf16.msra.mxu3 %v946_v7 }
 0x109   : > { %v812_v13 = vpop.permute.xlu0 %811 }
 0x10a   : > { %v819_v14 = vsel %vm813_vm5, %v810_v58, %v812_v13  ;;  %v926_v15 = vpop.permute.xlu1 %925 }
 0x10b   : > { %863 = vmatpush.bf16.msra.mxu1 %v819_v14  ;;  %v942_v16 = vsel %vm941_vm6, %v926_v15, %v928_v63  ;;  %v1018_v25 = vpop.permute.xlu2 %1017 }
 0x10c   : > { %978 = vmatpush.bf16.msra.mxu3 %v943_v12  ;;  %964 = vmatpush.bf16.msra.mxu2 %v942_v16 }
 0x10f   : > { %1517 = vmatmul.msk.bf16.vlgmr.msra.gmra.mxu2 %vm413_vm1, %v1565_v17 }
 0x111   : > { %v802_v18 = vpop.permute.xlu0 %801 }
 0x112   : > { %v804_v19 = vpop.permute.xlu1 %803  ;;  %v815_v20 = vsel %vm813_vm5, %v800_v8, %v802_v18 }
 0x113   : > { %850 = vmatpush.bf16.msra.mxu0 %v815_v20  ;;  %v816_v21 = vsel %vm813_vm5, %v802_v18, %v804_v19 }
 0x114   : > { %864 = vmatpush.bf16.msra.mxu1 %v816_v21  ;;  %v1014_v31 = vpop.permute.xlu2 %1013 }
 0x116   : > { %1477 = vmatmul.msk.bf16.vlgmr.msra.gmra.mxu0 %vm413_vm1, %v1556_v10 }
 0x117   : > { %1478 = vmatmul.msk.bf16.vlgmr.msra.gmra.mxu1 %vm413_vm1, %v1556_v10  ;;  %1518 = vmatmul.msk.bf16.vlgmr.msra.gmra.mxu3 %vm413_vm1, %v1565_v17 }
 0x119   : > { %v1024_v22 = vpop.permute.xlu0 %1023 }
 0x11a   : > { %v1026_v23 = vpop.permute.xlu1 %1025 }
 0x11b   : > { %v1034_v24 = vsel %vm1029_vm7, %v1024_v22, %v1026_v23 }
 0x11c   : > { %1065 = vmatpush.bf16.msrb.mxu2 %v1034_v24  ;;  %v1116_v39 = vpop.permute.xlu2 %1115 }
 0x121   : > { %v940_v26 = vpop.permute.xlu0 %939 }
 0x122   : > { %v947_v27 = vsel %vm941_vm6, %v938_v5, %v940_v26  ;;  %v1016_v28 = vpop.permute.xlu1 %1015 }
 0x123   : > { %991 = vmatpush.bf16.msrb.mxu0 %v947_v27  ;;  %v1031_v29 = vsel %vm1029_vm7, %v1016_v28, %v1018_v25  ;;  %v1030_v36 = vsel %vm1029_vm7, %v1014_v31, %v1016_v28 }
 0x124   : > { %1066 = vmatpush.bf16.msrb.mxu2 %v1031_v29  ;;  %v1108_v48 = vpop.permute.xlu2 %1107 }
 0x127   : > { %1527 = vmatmul.msk.bf16.vlgmr.msrb.gmra.mxu2 %vm413_vm1, %v1566_v30 }
 0x129   : > { %v1022_v32 = vpop.permute.xlu0 %1021 }
 0x12a   : > { %v1033_v33 = vsel %vm1029_vm7, %v1022_v32, %v1024_v22 }
 0x12b   : > { %v932_v34 = vpop.permute.xlu1 %931  ;;  %1051 = vmatpush.bf16.msrb.mxu1 %v1033_v33 }
 0x12c   : > { %v944_v35 = vsel %vm941_vm6, %v930_v11, %v932_v34  ;;  %v1102_v4 = vpop.permute.xlu2 %1101 }
 0x12d   : > { %992 = vmatpush.bf16.msrb.mxu0 %v944_v35 }
 0x12f   : > { %1052 = vmatpush.bf16.msrb.mxu1 %v1030_v36 }
 0x130   : > { %1519 = vmatmul.msk.bf16.vlgmr.msrb.gmra.mxu0 %vm413_vm1, %v1565_v17 }
 0x131   : > { %v1028_v40 = vpop.permute.xlu0 %1027 }
 0x132   : > { %v1035_v41 = vsel %vm1029_vm7, %v1026_v23, %v1028_v40  ;;  %1526 = vmatmul.msk.bf16.vlgmr.msrb.gmra.mxu1 %vm413_vm1, %v1566_v30 }
 0x133   : > { %v1114_v42 = vpop.permute.xlu1 %1113  ;;  %1079 = vmatpush.bf16.msrb.mxu3 %v1035_v41 }
 0x134   : > { %v1123_v38 = vsel %vm1117_vm8, %v1114_v42, %v1116_v39  ;;  %v426_v43 = vpop.f32.mrf.mxu0 }
 0x135   : > { %1167 = vmatpush.bf16.msra.mxu2 %v1123_v38  ;;  %v454_v45 = vpop.f32.mrf.mxu2  ;;  %v493_v46 = vadd.f32 %v492_v37, %v426_v43 }
 0x136   : > { %v440_v44 = vpop.f32.mrf.mxu1 }
 0x139   : > { %v1020_v47 = vpop.permute.xlu0 %1019 }
 0x13a   : > { %v1032_v50 = vsel %vm1029_vm7, %v1018_v25, %v1020_v47 }
 0x13b   : > { %v1106_v49 = vpop.permute.xlu1 %1105  ;;  %1080 = vmatpush.bf16.msrb.mxu3 %v1032_v50 }
 0x13c   : > { %v1120_v51 = vsel %vm1117_vm8, %v1106_v49, %v1108_v48  ;;  %v428_v53 = vpop.f32.mrf.mxu0 }
 0x13d   : > { %1168 = vmatpush.bf16.msra.mxu2 %v1120_v51  ;;  %v456_v55 = vpop.f32.mrf.mxu2  ;;  %v495_v57 = vadd.f32 %v494_v54, %v428_v53 }
 0x13e   : > { %v442_v56 = vpop.f32.mrf.mxu1  ;;  %1528 = vmatmul.msk.bf16.vlgmr.msrb.gmra.mxu3 %vm413_vm1, %v1566_v30 }
 0x140   : > { %1537 = vmatmul.msk.bf16.vlgmr.msra.gmra.mxu2 %vm413_vm1, %v1567_v52 }
 0x141   : > { %v1110_v58 = vpop.permute.xlu0 %1109 }
 0x143   : > { %v1112_v59 = vpop.permute.xlu1 %1111 }
 0x144   : > { %v1121_v60 = vsel %vm1117_vm8, %v1110_v58, %v1112_v59  ;;  %v1122_v61 = vsel %vm1117_vm8, %v1112_v59, %v1114_v42  ;;  %v506_v62 = vpop.f32.mrf.mxu0 }
 0x145   : > { %1139 = vmatpush.bf16.msra.mxu0 %v1121_v60  ;;  %1153 = vmatpush.bf16.msra.mxu1 %v1122_v61  ;;  %v574_v63 = vpop.f32.mrf.mxu2  ;;  %v507_v0 = vadd.f32 %v506_v62, %v440_v44  ;;  %v1181_v62 = vld [vmem:[%s2098_s2] sm:$0x7] }
 0x146   : > { %v520_v1 = vpop.f32.mrf.mxu1  ;;  %v607_v2 = vadd.f32 %v574_v63, %v493_v46 }
 0x147   : > { %v521_v3 = vadd.f32 %v520_v1, %v454_v45 }
 0x149   : > { %v1104_v5 = vpop.permute.xlu0 %1103 }
 0x14a   : > { %v1118_v6 = vsel %vm1117_vm8, %v1102_v4, %v1104_v5  ;;  %v1119_v7 = vsel %vm1117_vm8, %v1104_v5, %v1106_v49 }
 0x14b   : > { %1140 = vmatpush.bf16.msra.mxu0 %v1118_v6  ;;  %1154 = vmatpush.bf16.msra.mxu1 %v1119_v7  ;;  %v1185_v7 = vperm.slane %v1181_v62, 2 }
 0x14c   : > { %v508_v8 = vpop.f32.mrf.mxu0 }
 0x14d   : > { %v576_v9 = vpop.f32.mrf.mxu2  ;;  %v509_v10 = vadd.f32 %v508_v8, %v442_v56 }
 0x14e   : > { %v522_v11 = vpop.f32.mrf.mxu1  ;;  %1535 = vmatmul.msk.bf16.vlgmr.msra.gmra.mxu0 %vm413_vm1, %v1567_v52  ;;  %1536 = vmatmul.msk.bf16.vlgmr.msra.gmra.mxu1 %vm413_vm1, %v1567_v52  ;;  %v610_v12 = vadd.f32 %v576_v9, %v495_v57 }
 0x14f   : > { %v523_v13 = vadd.f32 %v522_v11, %v456_v55  ;;  %v1184_v11 = vperm.slane %v1181_v62, 1 }
 0x151   : > { %v588_v14 = vpop.f32.mrf.mxu3 }
 0x152   : > { %v608_v44 = vadd.f32 %v588_v14, %v507_v0 }
 0x154   : > { %v602_v16 = vpop.f32.mrf.mxu0 }
 0x155   : > { %v609_v42 = vadd.f32 %v602_v16, %v521_v3 }
 0x159   : > { %v676_v15 = vpop.f32.mrf.mxu2  ;;  %v590_v18 = vpop.f32.mrf.mxu3 }
 0x15a   : > { %v696_v47 = vadd.f32 %v676_v15, %v608_v44  ;;  %v611_v56 = vadd.f32 %v590_v18, %v509_v10  ;;  %v1183_v10 = vperm.slane %v1181_v62, 0 }
 0x15b   : > { %v662_v17 = vpop.f32.mrf.mxu1 }
 0x15c   : > { %v604_v20 = vpop.f32.mrf.mxu0  ;;  %v695_v49 = vadd.f32 %v662_v17, %v607_v2 }
 0x15d   : > { %v612_v52 = vadd.f32 %v604_v20, %v523_v13 }
 0x161   : > { %v678_v19 = vpop.f32.mrf.mxu2 }
 0x162   : > { %v699_v2 = vadd.f32 %v678_v19, %v611_v56 }
 0x163   : > { %v664_v21 = vpop.f32.mrf.mxu1 }
 0x164   : > { %v698_v4 = vadd.f32 %v664_v21, %v610_v12 }
 0x16a   : > { %v690_v22 = vpop.f32.mrf.mxu3 }
 0x16b   : > { %v697_v45 = vadd.f32 %v690_v22, %v609_v42 }
 0x171   : > { %v778_v23 = vpop.f32.mrf.mxu2 }
 0x172   : > { %v692_v26 = vpop.f32.mrf.mxu3  ;;  %v785_v48 = vadd.f32 %v778_v23, %v697_v45 }
 0x173   : > { %v700_v63 = vadd.f32 %v692_v26, %v612_v52 }
 0x174   : > { %v750_v24 = vpop.f32.mrf.mxu0  ;;  %v764_v25 = vpop.f32.mrf.mxu1 }
 0x175   : > { %v784_v53 = vadd.f32 %v764_v25, %v696_v47  ;;  %v783_v57 = vadd.f32 %v750_v24, %v695_v49 }
 0x179   : > { %v780_v27 = vpop.f32.mrf.mxu2 }
 0x17a   : > { %v788_v5 = vadd.f32 %v780_v27, %v700_v63 }
 0x17c   : > { %v752_v29 = vpop.f32.mrf.mxu0  ;;  %v766_v30 = vpop.f32.mrf.mxu1 }
 0x17d   : > { %v786_v13 = vadd.f32 %v752_v29, %v698_v4  ;;  %v787_v14 = vadd.f32 %v766_v30, %v699_v2 }
 0x18a   : > { %v838_v28 = vpop.f32.mrf.mxu3 }
 0x18b   : > { %v871_v60 = vadd.f32 %v838_v28, %v783_v57 }
 0x192   : > { %v966_v31 = vpop.f32.mrf.mxu2  ;;  %v840_v33 = vpop.f32.mrf.mxu3 }
 0x193   : > { %v852_v32 = vpop.f32.mrf.mxu0  ;;  %v999_v3 = vadd.f32 %v966_v31, %v871_v60  ;;  %v874_v19 = vadd.f32 %v840_v33, %v786_v13 }
 0x194   : > { %v866_v34 = vpop.f32.mrf.mxu1  ;;  %v872_v59 = vadd.f32 %v852_v32, %v784_v53 }
 0x195   : > { %v873_v50 = vadd.f32 %v866_v34, %v785_v48 }
 0x19a   : > { %v968_v35 = vpop.f32.mrf.mxu2  ;;  %v980_v39 = vpop.f32.mrf.mxu3 }
 0x19b   : > { %v854_v36 = vpop.f32.mrf.mxu0  ;;  %v1000_v0 = vadd.f32 %v980_v39, %v872_v59  ;;  %v1002_v26 = vadd.f32 %v968_v35, %v874_v19 }
 0x19c   : > { %v868_v40 = vpop.f32.mrf.mxu1  ;;  %v875_v22 = vadd.f32 %v854_v36, %v787_v14 }
 0x19d   : > { %v876_v17 = vadd.f32 %v868_v40, %v788_v5 }
 0x1a2   : > { %v982_v43 = vpop.f32.mrf.mxu3 }
 0x1a3   : > { %v1003_v27 = vadd.f32 %v982_v43, %v875_v22 }
 0x1aa   : > { %v1068_v41 = vpop.f32.mrf.mxu2 }
 0x1ab   : > { %v1088_v6 = vadd.f32 %v1068_v41, %v1000_v0 }
 0x1ad   : > { %v994_v37 = vpop.f32.mrf.mxu0 }
 0x1ae   : > { %v1001_v58 = vadd.f32 %v994_v37, %v873_v50 }
 0x1af   : > { %v1054_v38 = vpop.f32.mrf.mxu1 }
 0x1b0   : > { %v1087_v8 = vadd.f32 %v1054_v38, %v999_v3 }
 0x1b2   : > { %v1070_v46 = vpop.f32.mrf.mxu2 }
 0x1b3   : > { %v1091_v32 = vadd.f32 %v1070_v46, %v1003_v27 }
 0x1b5   : > { %v996_v51 = vpop.f32.mrf.mxu0 }
 0x1b6   : > { %v1004_v21 = vadd.f32 %v996_v51, %v876_v17 }
 0x1b7   : > { %v1056_v54 = vpop.f32.mrf.mxu1 }
 0x1b8   : > { %v1090_v39 = vadd.f32 %v1056_v54, %v1002_v26 }
 0x1c1   : > { %v1082_v55 = vpop.f32.mrf.mxu3 }
 0x1c2   : > { %v1089_v61 = vadd.f32 %v1082_v55, %v1001_v58 }
 0x1c3   : > { %v1170_v1 = vpop.f32.mrf.mxu2 }
 0x1c4   : > { %v2046_v9 = vadd.f32 %v1170_v1, %v1089_v61 }
 0x1c6   : > { %v1191_v23 = vmul.f32 %v1185_v7, %v2046_v9 }
 0x1c8   : > { %v1207_v33 = vmul.f32 %v1191_v23, %v1191_v23 }
 0x1c9   : > { %v1084_v12 = vpop.f32.mrf.mxu3 }
 0x1ca   : > { %v1092_v28 = vadd.f32 %v1084_v12, %v1004_v21 }
 0x1cb   : > { %v1142_v15 = vpop.f32.mrf.mxu0  ;;  %v1156_v16 = vpop.f32.mrf.mxu1 }
 0x1cc   : > { %v2048_v18 = vadd.f32 %v1142_v15, %v1087_v8  ;;  %v2050_v20 = vadd.f32 %v1156_v16, %v1088_v6  ;;  %v1172_v34 = vpop.f32.mrf.mxu2 }
 0x1cd   : > { %v2055_v37 = vadd.f32 %v1172_v34, %v1092_v28 }
 0x1ce   : > { %v1189_v24 = vmul.f32 %v1183_v10, %v2048_v18  ;;  %v1190_v25 = vmul.f32 %v1184_v11, %v2050_v20 }
 0x1cf   : > { %v1194_v46 = vmul.f32 %v1185_v7, %v2055_v37 }
 0x1d0   : > { %v1205_v29 = vmul.f32 %v1189_v24, %v1189_v24  ;;  %v1206_v30 = vmul.f32 %v1190_v25, %v1190_v25  ;;  %v1195_v31 = vadd.f32 %v1190_v25, %v1189_v24 }
 0x1d1   : > { %v1210_v52 = vmul.f32 %v1194_v46, %v1194_v46 }
 0x1d2   : > { %v1196_v40 = vadd.f32 %v1195_v31, %v1191_v23  ;;  %v1211_v36 = vadd.f32 %v1206_v30, %v1205_v29 }
 0x1d3   : > { %v1144_v41 = vpop.f32.mrf.mxu0  ;;  %v1158_v42 = vpop.f32.mrf.mxu1 }
 0x1d4   : > { %v2057_v38 = vadd.f32 %v1144_v41, %v1090_v39  ;;  %v2059_v45 = vadd.f32 %v1158_v42, %v1091_v32  ;;  %1197 = vadd.xlane.f32.xlu1 %v1196_v40  ;;  %v1212_v35 = vadd.f32 %v1211_v36, %v1207_v33 }
 0x1d6   : > { %v1192_v43 = vmul.f32 %v1183_v10, %v2057_v38  ;;  %v1193_v44 = vmul.f32 %v1184_v11, %v2059_v45  ;;  %1213 = vadd.xlane.f32.xlu0 %v1212_v35 }
 0x1d8   : > { %v1199_v48 = vadd.f32 %v1193_v44, %v1192_v43  ;;  %v1208_v47 = vmul.f32 %v1192_v43, %v1192_v43  ;;  %v1209_v49 = vmul.f32 %v1193_v44, %v1193_v44 }
 0x1da   : > { %v1200_v50 = vadd.f32 %v1199_v48, %v1194_v46  ;;  %v1215_v51 = vadd.f32 %v1209_v49, %v1208_v47 }
 0x1dc   : > { %1201 = vadd.xlane.f32.xlu2 %v1200_v50  ;;  %v1216_v53 = vadd.f32 %v1215_v51, %v1210_v52 }
 0x1e4   : > { %1217 = vadd.xlane.f32.xlu2 %v1216_v53 }
 0x247   : > { %v1198_v54 = vpop.xlane.xlu1 %1197 }
 0x248   : > { %v1203_v55 = vmul.f32 0.00390625, %v1198_v54 }
 0x249   : > { %v1214_v56 = vpop.xlane.xlu0 %1213 }
 0x24a   : > { %v1219_v57 = vmul.f32 0.00390625, %v1214_v56  ;;  %v1221_v58 = vmul.f32 %v1203_v55, %v1203_v55  ;;  %v1225_v14 = vsub.f32 %v2048_v18, %v1203_v55  ;;  %v1226_v15 = vsub.f32 %v2050_v20, %v1203_v55 }
 0x24b   : > { %v1227_v16 = vsub.f32 %v2046_v9, %v1203_v55 }
 0x24c   : > { %v1223_v59 = vsub.f32 %v1219_v57, %v1221_v58 }
 0x24e   : > { %v1231_v60 = vmax.f32 %v1223_v59, 0.0 }
 0x24f   : > { %v1202_v61 = vpop.xlane.xlu2 %1201 }
 0x250   : > { %v1233_v62 = vadd.f32 1e-05, %v1231_v60  ;;  %v1204_v63 = vmul.f32 0.00390625, %v1202_v61 }
 0x252   : > { %1637 = vrsqrt.f32 %v1233_v62  ;;  %v1222_v1 = vmul.f32 %v1204_v63, %v1204_v63  ;;  %vm1241_vm10 = vweird.f32 %v1233_v62  ;;  %v1228_v27 = vsub.f32 %v2057_v38, %v1204_v63 }
 0x253   : > { %v1229_v28 = vsub.f32 %v2059_v45, %v1204_v63  ;;  %v1230_v29 = vsub.f32 %v2055_v37, %v1204_v63 }
 0x257   : > { %v1218_v0 = vpop.xlane.xlu2 %1217 }
 0x258   : > { %v1220_v2 = vmul.f32 0.00390625, %v1218_v0  ;;  %v1638_v3 = vpop.eup %1637 }
 0x259   : > { %v1236_v4 = vmul.f32 %v1638_v3, %v1233_v62  ;;  %vm1242_vm9 = vweird.f32 %v1638_v3 }
 0x25a   : > { %v1224_v5 = vsub.f32 %v1220_v2, %v1222_v1  ;;  %vm1243_vm11 = vmor %vm1241_vm10, %vm1242_vm9 }
 0x25b   : > { %v1237_v6 = vmul.f32 %v1638_v3, %v1236_v4 }
 0x25c   : > { %v1232_v7 = vmax.f32 %v1224_v5, 0.0 }
 0x25d   : > { %v1238_v8 = vmul.f32 0.5, %v1237_v6 }
 0x25e   : > { %v1234_v10 = vadd.f32 1e-05, %v1232_v7 }
 0x25f   : > { %v1239_v11 = vsub.f32 1.5, %v1238_v8 }
 0x260   : > { %1639 = vrsqrt.f32 %v1234_v10  ;;  %vm1251_vm13 = vweird.f32 %v1234_v10 }
 0x261   : > { %v1240_v13 = vmul.f32 %v1638_v3, %v1239_v11 }
 0x263   : > { %v1244_v17 = vsel %vm1243_vm11, %v1638_v3, %v1240_v13 }
 0x264   : > { %v1255_v19 = vmul.f32 %v1244_v17, %v1225_v14  ;;  %v1256_v22 = vmul.f32 %v1244_v17, %v1226_v15  ;;  %v1257_v12 = vmul.f32 %v1244_v17, %v1227_v16 }
 0x266   : > { %v1640_v21 = vpop.eup %1639  ;;  %v1261_v23 = vpack.c.bf16 %v1256_v22, %v1255_v19  ;;  %v1262_v24 = vpack.c.bf16 %v1257_v12, %v1257_v12 }
 0x267   : > { %v1246_v25 = vmul.f32 %v1640_v21, %v1234_v10  ;;  %vm1252_vm12 = vweird.f32 %v1640_v21 }
 0x268   : > { %1265 = vst [vmem:[%s327_s8] sm:$0xff] %v1261_v23  ;;  %vm1253_vm14 = vmor %vm1251_vm13, %vm1252_vm12 }
 0x269   : > { %v1247_v18 = vmul.f32 %v1640_v21, %v1246_v25  ;;  %1266 = vst [vmem:[%s327_s8 + $0x8] sm:$0xf] %v1262_v24 }
 0x26b   : > { %v1248_v20 = vmul.f32 0.5, %v1247_v18 }
 0x26d   : > { %v1249_v26 = vsub.f32 1.5, %v1248_v20 }
 0x26f   : > { %v1250_v9 = vmul.f32 %v1640_v21, %v1249_v26 }
 0x271   : > { %v1254_v30 = vsel %vm1253_vm14, %v1640_v21, %v1250_v9 }
 0x272   : > { %v1258_v31 = vmul.f32 %v1254_v30, %v1228_v27  ;;  %v1259_v32 = vmul.f32 %v1254_v30, %v1229_v28  ;;  %v1260_v34 = vmul.f32 %v1254_v30, %v1230_v29 }
 0x274   : > { %v1263_v39 = vpack.c.bf16 %v1259_v32, %v1258_v31  ;;  %v1264_v40 = vpack.c.bf16 %v1260_v34, %v1260_v34 }
 0x276   : > { %1267 = vst [vmem:[%s327_s8 + $0xc] sm:$0xff] %v1263_v39 }
 0x277   : > { %1268 = vst [vmem:[%s327_s8 + $0x14] sm:$0xf] %v1264_v40 }
 0x278 PF: > { %s13_s18 = sadd.s32 1, %s1695_s18   ;;  %s2100_s12 = smov %s1675_s13 }
 0x279   : > { %p10_p12 = scmp.ge.s32.totalorder %s13_s18, 6   ;;  %s2101_s13 = smov %s1774_s23 }
 0x27a   : > { %s2102_s14 = smov %s1687_s16  ;;  %s2103_s15 = smov %s1691_s17 }
 0x27b   : > { %s2104_s16 = smov %s2107_s19  ;;  %s2105_s17 = smov %s2111_s20 }
 0x27c   :  { %12 = sbr.rel (!%p10_p12) target bundleno = 4 (0x4), region = 119 }

// kernel: resnet_block_forward.7
= control target key start
LH: loop header
LB: loop body
LE: loop exit
PB: predicated region body
PF: predicated region fallthrough
CT: control target
= control target key end

     0   :  { %s1664_s12 = smov 0   ;;  %s1666_s13 = smov 0   ;;  %s2024_s0 = inlined_call_operand.vmem [shape: bf16[2,32,422], index: 0, kind: input, shape index: {}]   ;;  %s2025_s1 = inlined_call_operand.vmem [shape: bf16[9,32,32], index: 1, kind: input, shape index: {}]   ;;  %s2026_s2 = inlined_call_operand.vmem [shape: f32[1,384], index: 2, kind: input, shape index: {}]   ;;  %s2027_s3 = inlined_call_operand.vmem [shape: bf16[2,32,384], index: 3, kind: output, shape index: {}]  }
   0x1   :  { %s1668_s14 = smov 0   ;;  %s1670_s15 = smov 0  }
   0x2   :  { %s1672_s16 = smov 0   ;;  %s1674_s17 = smov 0  }
   0x3   :  { %s1676_s18 = smov 0  }
   0x4 LB: > { %s22_s19 = sadd.s32 1, %s1626_s16  ;;  %s25_s20 = sadd.s32 1, %s1630_s17  ;;  %s1634_s18 = sphi %s1676_s18, %s13_s18   ;;  %s1630_s17 = sphi %s1674_s17, %s2033_s17   ;;  %s1626_s16 = sphi %s1672_s16, %s2032_s16   ;;  %s1622_s15 = sphi %s1670_s15, %s2031_s15   ;;  %s1618_s14 = sphi %s1668_s14, %s2030_s14   ;;  %s1614_s13 = sphi %s1666_s13, %s2029_s13   ;;  %s1610_s12 = sphi %s1664_s12, %s2028_s12  }
   0x5   : > { %p23_p0 = scmp.ge.s32.totalorder %s22_s19, 2  ;;  %s58_s21 = sadd.s32 1, %s1614_s13 }
   0x6   : > { %p65_p1 = scmp.ne.s32.totalorder %s1614_s13, %s1610_s12  ;;  %p66_p2 = scmp.eq.s32.totalorder %s1634_s18, 0 }
   0x7   : > { %s2035_s19 = smov (%p23_p0, %s22_s19), 0  ;;  %s2037_s20 = smov (!%p23_p0, %s25_s20), %s1630_s17 }
   0x8   : > { %s55_s22 = ssub.s32 %s1626_s16, %s2035_s19  ;;  %p67_p3 = por %p66_p2, %p65_p1 }
   0x9   : > { %p27_p4 = scmp.ge.s32.totalorder %s2037_s20, 2  ;;  %p56_p5 = scmp.eq.s32.totalorder %s55_s22, 0 }
   0xa   : > { %p1358_p6 = scmp.ge.s32.totalorder %s1634_s18, 4 }
   0xb   : > { %s2039_s20 = smov (%p27_p4, %s2037_s20), 0 }
   0xc   : > { %s1713_s23 = scalar_select %p56_p5, %s1614_s13, %s58_s21  }
   0xd   : > { %143 = sbr.rel (%p1358_p6) target bundleno = 31 (0x1f), region = 20 }
  0x12   : > { %154 = sbr.rel (!%p67_p3) target bundleno = 31 (0x1f), region = 28  ;;  %s156_s24 = sand.u32 (%p67_p3), 1, %s1614_s13  }
  0x13   : > { %s1487_s25 = sshll.u32 (%p67_p3), %s1626_s16, 3  ;;  %s1508_s26 = smul.u32 (%p67_p3), 72, %s156_s24 }
  0x14   : > { %s161_s29 = scalar_lea.vmem (%p67_p3), %s2025_s1, %s1487_s25 }
  0x15   : > { %v178_v0 = vld [vmem:[%s161_s29] sm:$0xff] (%p67_p3)   ;;  %v182_v1 = vld [vmem:[%s161_s29 + $0x10] sm:$0xff] (%p67_p3)   ;;  %s158_s30 = scalar_lea.vmem (%p67_p3), [#allocation2], %s1508_s26 }
  0x16   : > { %v186_v2 = vld [vmem:[%s161_s29 + $0x20] sm:$0xff] (%p67_p3)   ;;  %179 = vst [vmem:[%s158_s30] sm:$0xff] (%p67_p3), %v178_v0   ;;  %v190_v3 = vld [vmem:[%s161_s29 + $0x30] sm:$0xff] (%p67_p3)  }
  0x17   : > { %183 = vst [vmem:[%s158_s30 + $0x8] sm:$0xff] %v182_v1   ;;  %v194_v4 = vld [vmem:[%s161_s29 + $0x40] sm:$0xff]   ;;  %v198_v5 = vld [vmem:[%s161_s29 + $0x50] sm:$0xff]  }
  0x18   : > { %187 = vst [vmem:[%s158_s30 + $0x10] sm:$0xff] %v186_v2   ;;  %v202_v6 = vld [vmem:[%s161_s29 + $0x60] sm:$0xff]   ;;  %v206_v7 = vld [vmem:[%s161_s29 + $0x70] sm:$0xff]  }
  0x19   : > { %191 = vst [vmem:[%s158_s30 + $0x18] sm:$0xff] %v190_v3   ;;  %v210_v8 = vld [vmem:[%s161_s29 + $0x80] sm:$0xff]  }
  0x1a   : > { %195 = vst [vmem:[%s158_s30 + $0x20] sm:$0xff] %v194_v4  }
  0x1b   : > { %199 = vst [vmem:[%s158_s30 + $0x28] sm:$0xff] %v198_v5  }
  0x1c   : > { %203 = vst [vmem:[%s158_s30 + $0x30] sm:$0xff] %v202_v6  }
  0x1d   : > { %207 = vst [vmem:[%s158_s30 + $0x38] sm:$0xff] %v206_v7  }
  0x1e   : > { %211 = vst [vmem:[%s158_s30 + $0x40] sm:$0xff] %v210_v8  }
  0x1f PF: > { %p1361_p7 = scmp.ge.s32.totalorder %s1634_s18, 1  ;;  %p272_p8 = scmp.lt.s32.totalorder %s1634_s18, 5 }
  0x21   : > { %p273_p9 = pnand %p1361_p7, %p272_p8 }
  0x22   : > { %p312_p10 = scmp.lt.s32.totalorder (!%p273_p9), %s1622_s15, 1  ;;  %s1636_s8 = smov (!%p273_p9), 127  }
  0x23   : > { %276 = sbr.rel (%p273_p9) target bundleno = 635 (0x27b), region = 69  ;;  %s1637_s9 = smov (!%p273_p9), 126  }
  0x24   : > { %s1638_s10 = smov (!%p273_p9), 110   ;;  %s1639_s11 = smov (!%p273_p9), 109  }
  0x25   : > { %s1640_s21 = smov (!%p273_p9), 108   ;;  %s1641_s22 = smov (!%p273_p9), 92  }
  0x26   : > { %s279_s24 = sand.u32 (!%p273_p9), 1, %s1610_s12   ;;  %s1642_s12 = smov (!%p273_p9), 91  }
  0x27   : > { %s1509_s25 = smul.u32 (!%p273_p9), 72, %s279_s24  ;;  %s1643_s27 = smov (!%p273_p9), 90  }
  0x28   : > { %s2041_s15 = smov (!%p312_p10, %s1622_s15), 1  ;;  %vm400_vm0 = vcmask 1039360   ;;  %vm413_vm1 = vcmask 261120   ;;  %vm549_vm2 = vcmask 1031168   ;;  %vm637_vm3 = vcmask 900096   ;;  %s1364_s30 = sshll.u32 %s1618_s14, 1 }
  0x29   : > { %s1488_s4 = sshll.u32 %s2041_s15, 6  ;;  %s1822_s26 = scalar_lea.vmem [#allocation2], %s1509_s25  ;;  %vm725_vm4 = vcmask 891904   ;;  %vm813_vm5 = vcmask 883712   ;;  %vm901_vm6 = vcmask 752640   ;;  %vm989_vm7 = vcmask 744448  }
  0x2a   : > { %s1731_s7 = scalar_lea.vmem %s2024_s0, %s1488_s4  ;;  %v1825_v41 = vld [vmem:[%s1822_s26] sm:$0xff]  ;;  %v1500_v47 = vld [vmem:[%s1822_s26 + $0x8] sm:$0xff]  ;;  %v1501_v0 = vld [vmem:[%s1822_s26 + $0x10] sm:$0xff]  ;;  %vm1077_vm8 = vcmask 736256   ;;  %p321_p11 = scmp.lt.s32.totalorder %s1364_s30, 3 }
  0x2b   : > { %v1398_v9 = vld [vmem:[%s1731_s7 + $0x28] sm:$0xf]  ;;  %v1499_v10 = vld [vmem:[%s1731_s7 + $0x34] sm:$0xf0]  ;;  %v1390_v15 = vld [vmem:[%s1731_s7 + $0x20] sm:$0xf] }
  0x2c   : > { %v1382_v11 = vld [vmem:[%s1731_s7 + $0x8] sm:$0xf]  ;;  %v1736_v12 = vor.u32 %v1499_v10, %v1398_v9  ;;  %v1497_v13 = vld [vmem:[%s1731_s7 + $0x14] sm:$0xf0]  ;;  %v1493_v16 = vld [vmem:[%s1731_s7 + $0x2c] sm:$0xf0] }
  0x2d   : > { %v1739_v14 = vor.u32 %v1497_v13, %v1382_v11  ;;  %v1498_v17 = vld [vmem:[%s1731_s7 + $0x2c] sm:$0xf]  ;;  %v1400_v18 = vld [vmem:[%s1731_s7 + $0x38] sm:$0xf0]  ;;  %v1748_v20 = vor.u32 %v1493_v16, %v1390_v15  ;;  %v1374_v22 = vld [vmem:[%s1731_s7] sm:$0xf] }
  0x2e   : > { %396 = vrot.lane.b32.xlu0 %v1736_v12, %s1636_s8  ;;  %v1496_v19 = vld [vmem:[%s1731_s7 + $0xc] sm:$0xf]  ;;  %v1384_v21 = vld [vmem:[%s1731_s7 + $0x18] sm:$0xf0]  ;;  %v1490_v23 = vld [vmem:[%s1731_s7 + $0xc] sm:$0xf0]  ;;  %v1755_v24 = vor.u32 %v1498_v17, %v1400_v18 }
  0x2f   : > { %388 = vrot.lane.b32.xlu1 %v1739_v14, %s1636_s8  ;;  %392 = vrot.lane.b32.xlu2 %v1748_v20, %s1636_s8  ;;  %v1492_v25 = vld [vmem:[%s1731_s7 + $0x24] sm:$0xf]  ;;  %v1392_v26 = vld [vmem:[%s1731_s7 + $0x30] sm:$0xf0]  ;;  %v1759_v27 = vor.u32 %v1496_v19, %v1384_v21  ;;  %v1761_v28 = vor.u32 %v1490_v23, %v1374_v22  ;;  %s2043_s30 = smov (!%p321_p11, %s1364_s30), 3  ;;  %s1511_s4 = smul.u32 12, %s2041_s15 }
  0x30   : > { %489 = vmatpush.bf16.msra.mxu3 %v1748_v20  ;;  %v1763_v29 = vor.u32 %v1492_v25, %v1392_v26  ;;  %v1489_v30 = vld [vmem:[%s1731_s7 + $0x4] sm:$0xf]  ;;  %v1376_v31 = vld [vmem:[%s1731_s7 + $0x10] sm:$0xf0]  ;;  %v1417_v48 = vld [vmem:[%s1731_s7 + $0x28] sm:$0xf] }
  0x31   : > { %v1771_v32 = vor.u32 %v1489_v30, %v1376_v31  ;;  %v1494_v49 = vld [vmem:[%s1731_s7 + $0x34] sm:$0xf0]  ;;  %v1413_v53 = vld [vmem:[%s1731_s7 + $0x8] sm:$0xf]  ;;  %s1510_s5 = smul.u32 3, %s2043_s30 }
  0x32   : > { %v1418_v51 = vor.u32 %v1494_v49, %v1417_v48  ;;  %v1491_v54 = vld [vmem:[%s1731_s7 + $0x14] sm:$0xf0] }
  0x33   : > { %v1414_v58 = vor.u32 %v1491_v54, %v1413_v53  ;;  %v1502_v15 = vld [vmem:[%s1822_s26 + $0x18] sm:$0xff]  ;;  %s325_s14 = sadd.s32 %s1511_s4, %s1510_s5 }
  0x34   : > { %490 = vmatpush.bf16.msra.mxu3 %v1761_v28  ;;  %s1365_s15 = sshll.u32 %s325_s14, 2 }
  0x36   : > { %398 = vrot.lane.b32.xlu0 %v1755_v24, %s1636_s8 }
  0x37   : > { %390 = vrot.lane.b32.xlu1 %v1759_v27, %s1636_s8  ;;  %394 = vrot.lane.b32.xlu2 %v1763_v29, %s1636_s8 }
  0x38   : > { %1419 = vmatmul.msk.bf16.vlgmr.msra.gmra.mxu3 %vm413_vm1, %v1825_v41 }
  0x3e   : > { %384 = vrot.lane.b32.xlu0 %v1761_v28, %s1636_s8 }
  0x3f   : > { %386 = vrot.lane.b32.xlu1 %v1771_v32, %s1636_s8  ;;  %541 = vrot.lane.b32.xlu2 %v1748_v20, %s1637_s9  ;;  %s1994_s8 = scalar_lea.vmem %s2027_s3, %s1365_s15 }
  0x46   : > { %543 = vrot.lane.b32.xlu0 %v1763_v29, %s1637_s9 }
  0x47   : > { %533 = vrot.lane.b32.xlu1 %v1761_v28, %s1637_s9  ;;  %535 = vrot.lane.b32.xlu2 %v1771_v32, %s1637_s9 }
  0x4e   : > { %545 = vrot.lane.b32.xlu0 %v1736_v12, %s1637_s9 }
  0x4f   : > { %631 = vrot.lane.b32.xlu1 %v1763_v29, %s1638_s10  ;;  %633 = vrot.lane.b32.xlu2 %v1736_v12, %s1638_s10 }
  0x56   : > { %537 = vrot.lane.b32.xlu0 %v1739_v14, %s1637_s9 }
  0x57   : > { %547 = vrot.lane.b32.xlu1 %v1755_v24, %s1637_s9  ;;  %623 = vrot.lane.b32.xlu2 %v1771_v32, %s1638_s10 }
  0x5e   : > { %625 = vrot.lane.b32.xlu0 %v1739_v14, %s1638_s10 }
  0x5f   : > { %629 = vrot.lane.b32.xlu1 %v1748_v20, %s1638_s10  ;;  %539 = vrot.lane.b32.xlu2 %v1759_v27, %s1637_s9 }
  0x66   : > { %621 = vrot.lane.b32.xlu0 %v1761_v28, %s1638_s10 }
  0x67   : > { %635 = vrot.lane.b32.xlu1 %v1755_v24, %s1638_s10  ;;  %721 = vrot.lane.b32.xlu2 %v1736_v12, %s1639_s11 }
  0x6e   : > { %723 = vrot.lane.b32.xlu0 %v1755_v24, %s1639_s11 }
  0x6f   : > { %627 = vrot.lane.b32.xlu1 %v1759_v27, %s1638_s10  ;;  %713 = vrot.lane.b32.xlu2 %v1739_v14, %s1639_s11 }
  0x76   : > { %715 = vrot.lane.b32.xlu0 %v1759_v27, %s1639_s11 }
  0x77   : > { %717 = vrot.lane.b32.xlu1 %v1748_v20, %s1639_s11  ;;  %719 = vrot.lane.b32.xlu2 %v1763_v29, %s1639_s11 }
  0x7e   : > { %709 = vrot.lane.b32.xlu0 %v1761_v28, %s1639_s11 }
  0x7f   : > { %711 = vrot.lane.b32.xlu1 %v1771_v32, %s1639_s11  ;;  %805 = vrot.lane.b32.xlu2 %v1748_v20, %s1640_s21 }
  0x86   : > { %807 = vrot.lane.b32.xlu0 %v1763_v29, %s1640_s21 }
  0x87   : > { %893 = vrot.lane.b32.xlu1 %v1748_v20, %s1641_s22  ;;  %895 = vrot.lane.b32.xlu2 %v1763_v29, %s1641_s22 }
  0x89   : > { %v393_v33 = vpop.permute.xlu2 %392 }
  0x8e   : > { %797 = vrot.lane.b32.xlu0 %v1761_v28, %s1640_s21 }
  0x8f   : > { %799 = vrot.lane.b32.xlu1 %v1771_v32, %s1640_s21  ;;  %809 = vrot.lane.b32.xlu2 %v1736_v12, %s1640_s21 }
  0x91   : > { %v395_v34 = vpop.permute.xlu2 %394 }
  0x92   : > { %v404_v35 = vsel %vm400_vm0, %v393_v33, %v395_v34 }
  0x93   : > { %423 = vmatpush.bf16.msra.mxu0 %v404_v35 }
  0x96   : > { %811 = vrot.lane.b32.xlu0 %v1755_v24, %s1640_s21 }
  0x97   : > { %885 = vrot.lane.b32.xlu1 %v1761_v28, %s1641_s22  ;;  %887 = vrot.lane.b32.xlu2 %v1771_v32, %s1641_s22 }
  0x99   : > { %v542_v36 = vpop.permute.xlu2 %541 }
  0x9e   : > { %801 = vrot.lane.b32.xlu0 %v1739_v14, %s1640_s21 }
  0x9f   : > { %803 = vrot.lane.b32.xlu1 %v1759_v27, %s1640_s21  ;;  %897 = vrot.lane.b32.xlu2 %v1736_v12, %s1641_s22 }
  0xa0   : > { %v397_v37 = vpop.permute.xlu0 %396 }
  0xa1   : > { %v389_v38 = vpop.permute.xlu1 %388  ;;  %v405_v39 = vsel %vm400_vm0, %v395_v34, %v397_v37  ;;  %v1820_v40 = vpop.permute.xlu2 %535 }
  0xa2   : > { %437 = vmatpush.bf16.msra.mxu1 %v405_v39 }
  0xa6   : > { %983 = vrot.lane.b32.xlu0 %v1763_v29, %s1642_s12 }
  0xa7   : > { %985 = vrot.lane.b32.xlu1 %v1736_v12, %s1642_s12  ;;  %889 = vrot.lane.b32.xlu2 %v1739_v14, %s1641_s22 }
  0xa8   : > { %v399_v42 = vpop.permute.xlu0 %398 }
  0xa9   : > { %v391_v43 = vpop.permute.xlu1 %390  ;;  %v406_v44 = vsel %vm400_vm0, %v397_v37, %v399_v42  ;;  %v1836_v45 = vpop.permute.xlu2 %633 }
  0xaa   : > { %451 = vmatpush.bf16.msra.mxu2 %v406_v44  ;;  %v403_v46 = vsel %vm400_vm0, %v389_v38, %v391_v43 }
  0xae   : > { %452 = vmatpush.bf16.msra.mxu2 %v403_v46  ;;  %899 = vrot.lane.b32.xlu0 %v1755_v24, %s1641_s22 }
  0xaf   : > { %975 = vrot.lane.b32.xlu1 %v1771_v32, %s1642_s12  ;;  %977 = vrot.lane.b32.xlu2 %v1739_v14, %s1642_s12 }
  0xb0   : > { %v385_v50 = vpop.permute.xlu0 %384 }
  0xb1   : > { %v387_v52 = vpop.permute.xlu1 %386  ;;  %1406 = vmatmul.msk.bf16.vlgmr.msra.gmra.mxu2 %vm413_vm1, %v1500_v47  ;;  %v1853_v57 = vpop.permute.xlu2 %623 }
  0xb2   : > { %v401_v55 = vsel %vm400_vm0, %v385_v50, %v387_v52  ;;  %v402_v56 = vsel %vm400_vm0, %v387_v52, %v389_v38  ;;  %v1504_v50 = vld [vmem:[%s1822_s26 + $0x28] sm:$0xff] }
  0xb3   : > { %424 = vmatpush.bf16.msra.mxu0 %v401_v55  ;;  %438 = vmatpush.bf16.msra.mxu1 %v402_v56 }
  0xb6   : > { %981 = vrot.lane.b32.xlu0 %v1748_v20, %s1642_s12  ;;  %1404 = vmatmul.msk.bf16.vlgmr.msra.gmra.mxu0 %vm413_vm1, %v1500_v47 }
  0xb7   : > { %503 = vmatpush.bf16.msrb.mxu0 %v1763_v29  ;;  %517 = vmatpush.bf16.msrb.mxu1 %v1418_v51 }
  0xb8   : > { %891 = vrot.lane.b32.xlu1 %v1759_v27, %s1641_s22  ;;  %1405 = vmatmul.msk.bf16.vlgmr.msra.gmra.mxu1 %vm413_vm1, %v1500_v47  ;;  %v544_v59 = vpop.permute.xlu0 %543 }
  0xb9   : > { %v534_v60 = vpop.permute.xlu1 %533  ;;  %v553_v61 = vsel %vm549_vm2, %v542_v36, %v544_v59  ;;  %973 = vrot.lane.b32.xlu2 %v1761_v28, %s1642_s12  ;;  %v540_v63 = vpop.permute.xlu2 %539 }
  0xba   : > { %571 = vmatpush.bf16.msrb.mxu2 %v553_v61  ;;  %v550_v62 = vsel %vm549_vm2, %v534_v60, %v1820_v40 }
  0xbb   : > { %504 = vmatpush.bf16.msrb.mxu0 %v1771_v32  ;;  %518 = vmatpush.bf16.msrb.mxu1 %v1414_v58 }
  0xbe   : > { %987 = vrot.lane.b32.xlu0 %v1755_v24, %s1642_s12  ;;  %572 = vmatpush.bf16.msrb.mxu2 %v550_v62 }
  0xc0   : > { %1073 = vrot.lane.b32.xlu1 %v1736_v12, %s1643_s27  ;;  %v546_v1 = vpop.permute.xlu0 %545 }
  0xc1   : > { %v632_v2 = vpop.permute.xlu1 %631  ;;  %v554_v3 = vsel %vm549_vm2, %v544_v59, %v546_v1  ;;  %1428 = vmatmul.msk.bf16.vlgmr.msrb.gmra.mxu2 %vm413_vm1, %v1501_v0  ;;  %1075 = vrot.lane.b32.xlu2 %v1755_v24, %s1643_s27  ;;  %v722_v5 = vpop.permute.xlu2 %721 }
  0xc2   : > { %v642_v4 = vsel %vm637_vm3, %v632_v2, %v1836_v45  ;;  %585 = vmatpush.bf16.msrb.mxu3 %v554_v3 }
  0xc3   : > { %673 = vmatpush.bf16.msra.mxu2 %v642_v4 }
  0xc6   : > { %979 = vrot.lane.b32.xlu0 %v1759_v27, %s1642_s12  ;;  %1420 = vmatmul.msk.bf16.vlgmr.msrb.gmra.mxu0 %vm413_vm1, %v1825_v41 }
  0xc8   : > { %1065 = vrot.lane.b32.xlu1 %v1739_v14, %s1643_s27  ;;  %1421 = vmatmul.msk.bf16.vlgmr.msrb.gmra.mxu1 %vm413_vm1, %v1825_v41  ;;  %v538_v6 = vpop.permute.xlu0 %537 }
  0xc9   : > { %v548_v7 = vpop.permute.xlu1 %547  ;;  %v551_v8 = vsel %vm549_vm2, %v1820_v40, %v538_v6  ;;  %1067 = vrot.lane.b32.xlu2 %v1759_v27, %s1643_s27  ;;  %v714_v10 = vpop.permute.xlu2 %713  ;;  %v552_v11 = vsel %vm549_vm2, %v538_v6, %v540_v63  ;;  %v1506_v6 = vld [vmem:[%s1822_s26 + $0x38] sm:$0xff] }
  0xca   : > { %v555_v9 = vsel %vm549_vm2, %v546_v1, %v548_v7  ;;  %586 = vmatpush.bf16.msrb.mxu3 %v551_v8 }
  0xcb   : > { %599 = vmatpush.bf16.msra.mxu0 %v555_v9 }
  0xcd   : > { %1429 = vmatmul.msk.bf16.vlgmr.msrb.gmra.mxu3 %vm413_vm1, %v1501_v0 }
  0xce   : > { %1069 = vrot.lane.b32.xlu0 %v1748_v20, %s1643_s27 }
  0xcf   : > { %600 = vmatpush.bf16.msra.mxu0 %v552_v11 }
  0xd0   : > { %1071 = vrot.lane.b32.xlu1 %v1763_v29, %s1643_s27  ;;  %v626_v12 = vpop.permute.xlu0 %625 }
  0xd1   : > { %v630_v13 = vpop.permute.xlu1 %629  ;;  %v639_v14 = vsel %vm637_vm3, %v1853_v57, %v626_v12  ;;  %1061 = vrot.lane.b32.xlu2 %v1761_v28, %s1643_s27  ;;  %v720_v17 = vpop.permute.xlu2 %719 }
  0xd2   : > { %v641_v16 = vsel %vm637_vm3, %v630_v13, %v632_v2  ;;  %674 = vmatpush.bf16.msra.mxu2 %v639_v14  ;;  %v730_v19 = vsel %vm725_vm4, %v720_v17, %v722_v5 }
  0xd3   : > { %659 = vmatpush.bf16.msra.mxu1 %v641_v16 }
  0xd5   : > { %1438 = vmatmul.msk.bf16.vlgmr.msra.gmra.mxu2 %vm413_vm1, %v1502_v15 }
  0xd6   : > { %1063 = vrot.lane.b32.xlu0 %v1771_v32, %s1643_s27  ;;  %1430 = vmatmul.msk.bf16.vlgmr.msra.gmra.mxu0 %vm413_vm1, %v1501_v0  ;;  %v1503_v32 = vld [vmem:[%s1822_s26 + $0x20] sm:$0xff] }
  0xd8   : > { %v622_v18 = vpop.permute.xlu0 %621 }
  0xd9   : > { %v636_v20 = vpop.permute.xlu1 %635  ;;  %v638_v21 = vsel %vm637_vm3, %v622_v18, %v1853_v57  ;;  %v806_v23 = vpop.permute.xlu2 %805  ;;  %v1505_v57 = vld [vmem:[%s1822_s26 + $0x30] sm:$0xff] }
  0xda   : > { %v643_v22 = vsel %vm637_vm3, %v1836_v45, %v636_v20  ;;  %660 = vmatpush.bf16.msra.mxu1 %v638_v21 }
  0xdb   : > { %687 = vmatpush.bf16.msra.mxu3 %v643_v22 }
  0xdd   : > { %1437 = vmatmul.msk.bf16.vlgmr.msra.gmra.mxu1 %vm413_vm1, %v1502_v15 }
  0xde   : > { %761 = vmatpush.bf16.msrb.mxu1 %v730_v19 }
  0xe0   : > { %v724_v24 = vpop.permute.xlu0 %723 }
  0xe1   : > { %v731_v25 = vsel %vm725_vm4, %v722_v5, %v724_v24  ;;  %v628_v26 = vpop.permute.xlu1 %627  ;;  %v896_v28 = vpop.permute.xlu2 %895 }
  0xe2   : > { %v640_v27 = vsel %vm637_vm3, %v626_v12, %v628_v26  ;;  %775 = vmatpush.bf16.msrb.mxu2 %v731_v25 }
  0xe3   : > { %688 = vmatpush.bf16.msra.mxu3 %v640_v27 }
  0xe6   : > { %1439 = vmatmul.msk.bf16.vlgmr.msra.gmra.mxu3 %vm413_vm1, %v1502_v15 }
  0xe8   : > { %v716_v29 = vpop.permute.xlu0 %715 }
  0xe9   : > { %v718_v30 = vpop.permute.xlu1 %717  ;;  %v728_v31 = vsel %vm725_vm4, %v714_v10, %v716_v29  ;;  %v810_v34 = vpop.permute.xlu2 %809 }
  0xea   : > { %v729_v33 = vsel %vm725_vm4, %v718_v30, %v720_v17  ;;  %776 = vmatpush.bf16.msrb.mxu2 %v728_v31  ;;  %v492_v17 = vpop.f32.mrf.mxu3 }
  0xeb   : > { %747 = vmatpush.bf16.msrb.mxu0 %v729_v33 }
  0xed   : > { %1448 = vmatmul.msk.bf16.vlgmr.msrb.gmra.mxu2 %vm413_vm1, %v1503_v32 }
  0xf0   : > { %v710_v35 = vpop.permute.xlu0 %709 }
  0xf1   : > { %v712_v36 = vpop.permute.xlu1 %711  ;;  %v888_v39 = vpop.permute.xlu2 %887 }
  0xf2   : > { %v726_v37 = vsel %vm725_vm4, %v710_v35, %v712_v36  ;;  %v727_v38 = vsel %vm725_vm4, %v712_v36, %v714_v10  ;;  %v494_v30 = vpop.f32.mrf.mxu3 }
  0xf3   : > { %748 = vmatpush.bf16.msrb.mxu0 %v726_v37  ;;  %762 = vmatpush.bf16.msrb.mxu1 %v727_v38 }
  0xf6   : > { %1446 = vmatmul.msk.bf16.vlgmr.msrb.gmra.mxu0 %vm413_vm1, %v1503_v32  ;;  %1447 = vmatmul.msk.bf16.vlgmr.msrb.gmra.mxu1 %vm413_vm1, %v1503_v32 }
  0xf8   : > { %v808_v40 = vpop.permute.xlu0 %807 }
  0xf9   : > { %v817_v41 = vsel %vm813_vm5, %v806_v23, %v808_v40  ;;  %v818_v42 = vsel %vm813_vm5, %v808_v40, %v810_v34  ;;  %v894_v43 = vpop.permute.xlu1 %893  ;;  %v898_v45 = vpop.permute.xlu2 %897 }
  0xfa   : > { %v905_v44 = vsel %vm901_vm6, %v894_v43, %v896_v28  ;;  %835 = vmatpush.bf16.msrb.mxu3 %v817_v41  ;;  %849 = vmatpush.bf16.msra.mxu0 %v818_v42  ;;  %v906_v47 = vsel %vm901_vm6, %v896_v28, %v898_v45  ;;  %v1507_v28 = vld [vmem:[%s1822_s26 + $0x40] sm:$0xff] }
  0xfb   : > { %923 = vmatpush.bf16.msra.mxu2 %v905_v44 }
 0x100   : > { %v798_v46 = vpop.permute.xlu0 %797 }
 0x101   : > { %v800_v48 = vpop.permute.xlu1 %799  ;;  %v890_v51 = vpop.permute.xlu2 %889 }
 0x102   : > { %v814_v49 = vsel %vm813_vm5, %v798_v46, %v800_v48  ;;  %v903_v52 = vsel %vm901_vm6, %v888_v39, %v890_v51 }
 0x103   : > { %836 = vmatpush.bf16.msrb.mxu3 %v814_v49 }
 0x106   : > { %1455 = vmatmul.msk.bf16.vlgmr.msrb.gmra.mxu3 %vm413_vm1, %v1504_v50 }
 0x107   : > { %937 = vmatpush.bf16.msra.mxu3 %v906_v47 }
 0x108   : > { %v812_v53 = vpop.permute.xlu0 %811 }
 0x109   : > { %v819_v54 = vsel %vm813_vm5, %v810_v34, %v812_v53  ;;  %v886_v55 = vpop.permute.xlu1 %885  ;;  %v978_v1 = vpop.permute.xlu2 %977 }
 0x10a   : > { %863 = vmatpush.bf16.msra.mxu1 %v819_v54  ;;  %v902_v56 = vsel %vm901_vm6, %v886_v55, %v888_v39 }
 0x10b   : > { %938 = vmatpush.bf16.msra.mxu3 %v903_v52  ;;  %924 = vmatpush.bf16.msra.mxu2 %v902_v56 }
 0x10e   : > { %1464 = vmatmul.msk.bf16.vlgmr.msra.gmra.mxu2 %vm413_vm1, %v1505_v57 }
 0x110   : > { %v802_v58 = vpop.permute.xlu0 %801 }
 0x111   : > { %v804_v59 = vpop.permute.xlu1 %803  ;;  %v815_v60 = vsel %vm813_vm5, %v800_v48, %v802_v58 }
 0x112   : > { %850 = vmatpush.bf16.msra.mxu0 %v815_v60  ;;  %v816_v61 = vsel %vm813_vm5, %v802_v58, %v804_v59 }
 0x113   : > { %864 = vmatpush.bf16.msra.mxu1 %v816_v61  ;;  %v974_v7 = vpop.permute.xlu2 %973 }
 0x115   : > { %1456 = vmatmul.msk.bf16.vlgmr.msra.gmra.mxu0 %vm413_vm1, %v1504_v50 }
 0x116   : > { %1457 = vmatmul.msk.bf16.vlgmr.msra.gmra.mxu1 %vm413_vm1, %v1504_v50  ;;  %1465 = vmatmul.msk.bf16.vlgmr.msra.gmra.mxu3 %vm413_vm1, %v1505_v57 }
 0x118   : > { %v984_v62 = vpop.permute.xlu0 %983 }
 0x119   : > { %v986_v63 = vpop.permute.xlu1 %985 }
 0x11a   : > { %v994_v0 = vsel %vm989_vm7, %v984_v62, %v986_v63 }
 0x11b   : > { %1025 = vmatpush.bf16.msrb.mxu2 %v994_v0  ;;  %v1076_v13 = vpop.permute.xlu2 %1075 }
 0x120   : > { %v900_v2 = vpop.permute.xlu0 %899 }
 0x121   : > { %v907_v3 = vsel %vm901_vm6, %v898_v45, %v900_v2  ;;  %v976_v4 = vpop.permute.xlu1 %975 }
 0x122   : > { %951 = vmatpush.bf16.msrb.mxu0 %v907_v3  ;;  %v991_v5 = vsel %vm989_vm7, %v976_v4, %v978_v1  ;;  %v990_v12 = vsel %vm989_vm7, %v974_v7, %v976_v4 }
 0x123   : > { %1026 = vmatpush.bf16.msrb.mxu2 %v991_v5  ;;  %v1068_v23 = vpop.permute.xlu2 %1067 }
 0x126   : > { %1474 = vmatmul.msk.bf16.vlgmr.msrb.gmra.mxu2 %vm413_vm1, %v1506_v6 }
 0x128   : > { %v982_v8 = vpop.permute.xlu0 %981 }
 0x129   : > { %v993_v9 = vsel %vm989_vm7, %v982_v8, %v984_v62 }
 0x12a   : > { %v892_v10 = vpop.permute.xlu1 %891  ;;  %1011 = vmatpush.bf16.msrb.mxu1 %v993_v9 }
 0x12b   : > { %v904_v11 = vsel %vm901_vm6, %v890_v51, %v892_v10  ;;  %v1062_v44 = vpop.permute.xlu2 %1061 }
 0x12c   : > { %952 = vmatpush.bf16.msrb.mxu0 %v904_v11 }
 0x12e   : > { %1012 = vmatpush.bf16.msrb.mxu1 %v990_v12 }
 0x12f   : > { %1466 = vmatmul.msk.bf16.vlgmr.msrb.gmra.mxu0 %vm413_vm1, %v1505_v57 }
 0x130   : > { %v988_v14 = vpop.permute.xlu0 %987 }
 0x131   : > { %v995_v15 = vsel %vm989_vm7, %v986_v63, %v988_v14  ;;  %1473 = vmatmul.msk.bf16.vlgmr.msrb.gmra.mxu1 %vm413_vm1, %v1506_v6 }
 0x132   : > { %v1074_v16 = vpop.permute.xlu1 %1073  ;;  %1039 = vmatpush.bf16.msrb.mxu3 %v995_v15 }
 0x133   : > { %v1083_v18 = vsel %vm1077_vm8, %v1074_v16, %v1076_v13  ;;  %v426_v19 = vpop.f32.mrf.mxu0 }
 0x134   : > { %1127 = vmatpush.bf16.msra.mxu2 %v1083_v18  ;;  %v454_v20 = vpop.f32.mrf.mxu2  ;;  %v493_v22 = vadd.f32 %v492_v17, %v426_v19 }
 0x135   : > { %v440_v21 = vpop.f32.mrf.mxu1 }
 0x138   : > { %v980_v24 = vpop.permute.xlu0 %979 }
 0x139   : > { %v992_v26 = vsel %vm989_vm7, %v978_v1, %v980_v24 }
 0x13a   : > { %v1066_v25 = vpop.permute.xlu1 %1065  ;;  %1040 = vmatpush.bf16.msrb.mxu3 %v992_v26 }
 0x13b   : > { %v1080_v27 = vsel %vm1077_vm8, %v1066_v25, %v1068_v23  ;;  %v428_v29 = vpop.f32.mrf.mxu0 }
 0x13c   : > { %1128 = vmatpush.bf16.msra.mxu2 %v1080_v27  ;;  %v456_v31 = vpop.f32.mrf.mxu2  ;;  %v495_v33 = vadd.f32 %v494_v30, %v428_v29 }
 0x13d   : > { %v442_v32 = vpop.f32.mrf.mxu1  ;;  %1475 = vmatmul.msk.bf16.vlgmr.msrb.gmra.mxu3 %vm413_vm1, %v1506_v6 }
 0x13f   : > { %1484 = vmatmul.msk.bf16.vlgmr.msra.gmra.mxu2 %vm413_vm1, %v1507_v28 }
 0x140   : > { %v1070_v34 = vpop.permute.xlu0 %1069 }
 0x142   : > { %v1072_v35 = vpop.permute.xlu1 %1071 }
 0x143   : > { %v1081_v36 = vsel %vm1077_vm8, %v1070_v34, %v1072_v35  ;;  %v1082_v37 = vsel %vm1077_vm8, %v1072_v35, %v1074_v16  ;;  %v506_v38 = vpop.f32.mrf.mxu0 }
 0x144   : > { %1099 = vmatpush.bf16.msra.mxu0 %v1081_v36  ;;  %1113 = vmatpush.bf16.msra.mxu1 %v1082_v37  ;;  %v574_v39 = vpop.f32.mrf.mxu2  ;;  %v507_v40 = vadd.f32 %v506_v38, %v440_v21  ;;  %v1141_v38 = vld [vmem:[%s2026_s2] sm:$0x7] }
 0x145   : > { %v520_v41 = vpop.f32.mrf.mxu1  ;;  %v607_v42 = vadd.f32 %v574_v39, %v493_v22 }
 0x146   : > { %v521_v43 = vadd.f32 %v520_v41, %v454_v20 }
 0x148   : > { %v1064_v45 = vpop.permute.xlu0 %1063 }
 0x149   : > { %v1078_v46 = vsel %vm1077_vm8, %v1062_v44, %v1064_v45  ;;  %v1079_v47 = vsel %vm1077_vm8, %v1064_v45, %v1066_v25 }
 0x14a   : > { %1100 = vmatpush.bf16.msra.mxu0 %v1078_v46  ;;  %1114 = vmatpush.bf16.msra.mxu1 %v1079_v47  ;;  %v1145_v47 = vperm.slane %v1141_v38, 2 }
 0x14b   : > { %v508_v48 = vpop.f32.mrf.mxu0 }
 0x14c   : > { %v576_v49 = vpop.f32.mrf.mxu2  ;;  %v509_v50 = vadd.f32 %v508_v48, %v442_v32 }
 0x14d   : > { %v522_v51 = vpop.f32.mrf.mxu1  ;;  %1482 = vmatmul.msk.bf16.vlgmr.msra.gmra.mxu0 %vm413_vm1, %v1507_v28  ;;  %1483 = vmatmul.msk.bf16.vlgmr.msra.gmra.mxu1 %vm413_vm1, %v1507_v28  ;;  %v610_v52 = vadd.f32 %v576_v49, %v495_v33 }
 0x14e   : > { %v523_v53 = vadd.f32 %v522_v51, %v456_v31  ;;  %v1144_v51 = vperm.slane %v1141_v38, 1 }
 0x150   : > { %v588_v54 = vpop.f32.mrf.mxu3 }
 0x151   : > { %v608_v21 = vadd.f32 %v588_v54, %v507_v40 }
 0x153   : > { %v602_v56 = vpop.f32.mrf.mxu0 }
 0x154   : > { %v609_v16 = vadd.f32 %v602_v56, %v521_v43 }
 0x158   : > { %v676_v55 = vpop.f32.mrf.mxu2  ;;  %v590_v58 = vpop.f32.mrf.mxu3 }
 0x159   : > { %v696_v24 = vadd.f32 %v676_v55, %v608_v21  ;;  %v611_v32 = vadd.f32 %v590_v58, %v509_v50  ;;  %v1143_v50 = vperm.slane %v1141_v38, 0 }
 0x15a   : > { %v662_v57 = vpop.f32.mrf.mxu1 }
 0x15b   : > { %v604_v60 = vpop.f32.mrf.mxu0  ;;  %v695_v25 = vadd.f32 %v662_v57, %v607_v42 }
 0x15c   : > { %v612_v28 = vadd.f32 %v604_v60, %v523_v53 }
 0x160   : > { %v678_v59 = vpop.f32.mrf.mxu2 }
 0x161   : > { %v699_v42 = vadd.f32 %v678_v59, %v611_v32 }
 0x162   : > { %v664_v61 = vpop.f32.mrf.mxu1 }
 0x163   : > { %v698_v44 = vadd.f32 %v664_v61, %v610_v52 }
 0x169   : > { %v690_v62 = vpop.f32.mrf.mxu3 }
 0x16a   : > { %v697_v20 = vadd.f32 %v690_v62, %v609_v16 }
 0x170   : > { %v778_v63 = vpop.f32.mrf.mxu2 }
 0x171   : > { %v692_v2 = vpop.f32.mrf.mxu3  ;;  %v785_v23 = vadd.f32 %v778_v63, %v697_v20 }
 0x172   : > { %v700_v39 = vadd.f32 %v692_v2, %v612_v28 }
 0x173   : > { %v750_v0 = vpop.f32.mrf.mxu0  ;;  %v764_v1 = vpop.f32.mrf.mxu1 }
 0x174   : > { %v784_v29 = vadd.f32 %v764_v1, %v696_v24  ;;  %v783_v33 = vadd.f32 %v750_v0, %v695_v25 }
 0x178   : > { %v780_v3 = vpop.f32.mrf.mxu2 }
 0x179   : > { %v788_v45 = vadd.f32 %v780_v3, %v700_v39 }
 0x17b   : > { %v752_v5 = vpop.f32.mrf.mxu0  ;;  %v766_v6 = vpop.f32.mrf.mxu1 }
 0x17c   : > { %v786_v53 = vadd.f32 %v752_v5, %v698_v44  ;;  %v787_v54 = vadd.f32 %v766_v6, %v699_v42 }
 0x189   : > { %v838_v4 = vpop.f32.mrf.mxu3 }
 0x18a   : > { %v871_v36 = vadd.f32 %v838_v4, %v783_v33 }
 0x191   : > { %v926_v7 = vpop.f32.mrf.mxu2  ;;  %v840_v9 = vpop.f32.mrf.mxu3 }
 0x192   : > { %v852_v8 = vpop.f32.mrf.mxu0  ;;  %v959_v43 = vadd.f32 %v926_v7, %v871_v36  ;;  %v874_v59 = vadd.f32 %v840_v9, %v786_v53 }
 0x193   : > { %v866_v10 = vpop.f32.mrf.mxu1  ;;  %v872_v35 = vadd.f32 %v852_v8, %v784_v29 }
 0x194   : > { %v873_v26 = vadd.f32 %v866_v10, %v785_v23 }
 0x199   : > { %v928_v11 = vpop.f32.mrf.mxu2  ;;  %v940_v13 = vpop.f32.mrf.mxu3 }
 0x19a   : > { %v854_v12 = vpop.f32.mrf.mxu0  ;;  %v960_v40 = vadd.f32 %v940_v13, %v872_v35  ;;  %v962_v2 = vadd.f32 %v928_v11, %v874_v59 }
 0x19b   : > { %v868_v14 = vpop.f32.mrf.mxu1  ;;  %v875_v62 = vadd.f32 %v854_v12, %v787_v54 }
 0x19c   : > { %v876_v57 = vadd.f32 %v868_v14, %v788_v45 }
 0x1a1   : > { %v942_v19 = vpop.f32.mrf.mxu3 }
 0x1a2   : > { %v963_v3 = vadd.f32 %v942_v19, %v875_v62 }
 0x1a9   : > { %v1028_v15 = vpop.f32.mrf.mxu2 }
 0x1aa   : > { %v1048_v46 = vadd.f32 %v1028_v15, %v960_v40 }
 0x1ac   : > { %v954_v17 = vpop.f32.mrf.mxu0 }
 0x1ad   : > { %v961_v34 = vadd.f32 %v954_v17, %v873_v26 }
 0x1ae   : > { %v1014_v18 = vpop.f32.mrf.mxu1 }
 0x1af   : > { %v1047_v48 = vadd.f32 %v1014_v18, %v959_v43 }
 0x1b1   : > { %v1030_v22 = vpop.f32.mrf.mxu2 }
 0x1b2   : > { %v1051_v8 = vadd.f32 %v1030_v22, %v963_v3 }
 0x1b4   : > { %v956_v27 = vpop.f32.mrf.mxu0 }
 0x1b5   : > { %v964_v61 = vadd.f32 %v956_v27, %v876_v57 }
 0x1b6   : > { %v1016_v30 = vpop.f32.mrf.mxu1 }
 0x1b7   : > { %v1050_v13 = vadd.f32 %v1016_v30, %v962_v2 }
 0x1c0   : > { %v1042_v31 = vpop.f32.mrf.mxu3 }
 0x1c1   : > { %v1049_v37 = vadd.f32 %v1042_v31, %v961_v34 }
 0x1c2   : > { %v1130_v41 = vpop.f32.mrf.mxu2 }
 0x1c3   : > { %v1968_v49 = vadd.f32 %v1130_v41, %v1049_v37 }
 0x1c5   : > { %v1151_v63 = vmul.f32 %v1145_v47, %v1968_v49 }
 0x1c7   : > { %v1167_v9 = vmul.f32 %v1151_v63, %v1151_v63 }
 0x1c8   : > { %v1044_v52 = vpop.f32.mrf.mxu3 }
 0x1c9   : > { %v1052_v4 = vadd.f32 %v1044_v52, %v964_v61 }
 0x1ca   : > { %v1102_v55 = vpop.f32.mrf.mxu0  ;;  %v1116_v56 = vpop.f32.mrf.mxu1 }
 0x1cb   : > { %v1970_v58 = vadd.f32 %v1102_v55, %v1047_v48  ;;  %v1972_v60 = vadd.f32 %v1116_v56, %v1048_v46  ;;  %v1132_v10 = vpop.f32.mrf.mxu2 }
 0x1cc   : > { %v1977_v17 = vadd.f32 %v1132_v10, %v1052_v4 }
 0x1cd   : > { %v1149_v0 = vmul.f32 %v1143_v50, %v1970_v58  ;;  %v1150_v1 = vmul.f32 %v1144_v51, %v1972_v60 }
 0x1ce   : > { %v1154_v22 = vmul.f32 %v1145_v47, %v1977_v17 }
 0x1cf   : > { %v1165_v5 = vmul.f32 %v1149_v0, %v1149_v0  ;;  %v1166_v6 = vmul.f32 %v1150_v1, %v1150_v1  ;;  %v1155_v7 = vadd.f32 %v1150_v1, %v1149_v0 }
 0x1d0   : > { %v1170_v28 = vmul.f32 %v1154_v22, %v1154_v22 }
 0x1d1   : > { %v1156_v14 = vadd.f32 %v1155_v7, %v1151_v63  ;;  %v1171_v12 = vadd.f32 %v1166_v6, %v1165_v5 }
 0x1d2   : > { %v1104_v15 = vpop.f32.mrf.mxu0  ;;  %v1118_v16 = vpop.f32.mrf.mxu1 }
 0x1d3   : > { %v1979_v18 = vadd.f32 %v1104_v15, %v1050_v13  ;;  %v1981_v20 = vadd.f32 %v1118_v16, %v1051_v8  ;;  %1157 = vadd.xlane.f32.xlu1 %v1156_v14  ;;  %v1172_v11 = vadd.f32 %v1171_v12, %v1167_v9 }
 0x1d5   : > { %v1152_v19 = vmul.f32 %v1143_v50, %v1979_v18  ;;  %v1153_v21 = vmul.f32 %v1144_v51, %v1981_v20  ;;  %1173 = vadd.xlane.f32.xlu0 %v1172_v11 }
 0x1d7   : > { %v1159_v23 = vadd.f32 %v1153_v21, %v1152_v19  ;;  %v1168_v24 = vmul.f32 %v1152_v19, %v1152_v19  ;;  %v1169_v25 = vmul.f32 %v1153_v21, %v1153_v21 }
 0x1d9   : > { %v1160_v26 = vadd.f32 %v1159_v23, %v1154_v22  ;;  %v1175_v27 = vadd.f32 %v1169_v25, %v1168_v24 }
 0x1db   : > { %1161 = vadd.xlane.f32.xlu2 %v1160_v26  ;;  %v1176_v29 = vadd.f32 %v1175_v27, %v1170_v28 }
 0x1e3   : > { %1177 = vadd.xlane.f32.xlu2 %v1176_v29 }
 0x246   : > { %v1158_v30 = vpop.xlane.xlu1 %1157 }
 0x247   : > { %v1163_v31 = vmul.f32 0.00390625, %v1158_v30 }
 0x248   : > { %v1174_v32 = vpop.xlane.xlu0 %1173 }
 0x249   : > { %v1179_v33 = vmul.f32 0.00390625, %v1174_v32  ;;  %v1181_v34 = vmul.f32 %v1163_v31, %v1163_v31  ;;  %v1185_v54 = vsub.f32 %v1970_v58, %v1163_v31  ;;  %v1186_v55 = vsub.f32 %v1972_v60, %v1163_v31 }
 0x24a   : > { %v1187_v56 = vsub.f32 %v1968_v49, %v1163_v31 }
 0x24b   : > { %v1183_v35 = vsub.f32 %v1179_v33, %v1181_v34 }
 0x24d   : > { %v1191_v36 = vmax.f32 %v1183_v35, 0.0 }
 0x24e   : > { %v1162_v37 = vpop.xlane.xlu2 %1161 }
 0x24f   : > { %v1193_v38 = vadd.f32 1e-05, %v1191_v36  ;;  %v1164_v39 = vmul.f32 0.00390625, %v1162_v37 }
 0x251   : > { %1576 = vrsqrt.f32 %v1193_v38  ;;  %v1182_v41 = vmul.f32 %v1164_v39, %v1164_v39  ;;  %vm1201_vm10 = vweird.f32 %v1193_v38  ;;  %v1188_v10 = vsub.f32 %v1979_v18, %v1164_v39 }
 0x252   : > { %v1189_v13 = vsub.f32 %v1981_v20, %v1164_v39  ;;  %v1190_v14 = vsub.f32 %v1977_v17, %v1164_v39 }
 0x256   : > { %v1178_v40 = vpop.xlane.xlu2 %1177 }
 0x257   : > { %v1180_v42 = vmul.f32 0.00390625, %v1178_v40  ;;  %v1577_v43 = vpop.eup %1576 }
 0x258   : > { %v1196_v44 = vmul.f32 %v1577_v43, %v1193_v38  ;;  %vm1202_vm9 = vweird.f32 %v1577_v43 }
 0x259   : > { %v1184_v45 = vsub.f32 %v1180_v42, %v1182_v41  ;;  %vm1203_vm11 = vmor %vm1201_vm10, %vm1202_vm9 }
 0x25a   : > { %v1197_v46 = vmul.f32 %v1577_v43, %v1196_v44 }
 0x25b   : > { %v1192_v47 = vmax.f32 %v1184_v45, 0.0 }
 0x25c   : > { %v1198_v48 = vmul.f32 0.5, %v1197_v46 }
 0x25d   : > { %v1194_v50 = vadd.f32 1e-05, %v1192_v47 }
 0x25e   : > { %v1199_v51 = vsub.f32 1.5, %v1198_v48 }
 0x25f   : > { %1578 = vrsqrt.f32 %v1194_v50  ;;  %vm1211_vm0 = vweird.f32 %v1194_v50 }
 0x260   : > { %v1200_v53 = vmul.f32 %v1577_v43, %v1199_v51 }
 0x262   : > { %v1204_v57 = vsel %vm1203_vm11, %v1577_v43, %v1200_v53 }
 0x263   : > { %v1215_v59 = vmul.f32 %v1204_v57, %v1185_v54  ;;  %v1216_v62 = vmul.f32 %v1204_v57, %v1186_v55  ;;  %v1217_v52 = vmul.f32 %v1204_v57, %v1187_v56 }
 0x265   : > { %v1579_v61 = vpop.eup %1578  ;;  %vm1221_vm12 = vcmp.gt.f32.partialorder %v1215_v59, 0.0  ;;  %vm1222_vm13 = vcmp.gt.f32.partialorder %v1216_v62, 0.0  ;;  %vm1223_vm14 = vcmp.gt.f32.partialorder %v1217_v52, 0.0  ;;  %v1227_v63 = vmul.f32 0.1, %v1215_v59 }
 0x266   : > { %v1228_v0 = vmul.f32 0.1, %v1216_v62  ;;  %v1229_v1 = vmul.f32 0.1, %v1217_v52  ;;  %v1206_v2 = vmul.f32 %v1579_v61, %v1194_v50  ;;  %vm1212_vm15 = vweird.f32 %v1579_v61 }
 0x267   : > { %v1233_v58 = vsel %vm1221_vm12, %v1215_v59, %v1227_v63  ;;  %vm1213_vm1 = vmor %vm1211_vm0, %vm1212_vm15 }
 0x268   : > { %v1234_v49 = vsel %vm1222_vm13, %v1216_v62, %v1228_v0  ;;  %v1235_v60 = vsel %vm1223_vm14, %v1217_v52, %v1229_v1  ;;  %v1207_v3 = vmul.f32 %v1579_v61, %v1206_v2 }
 0x269   : > { %v1239_v4 = vpack.c.bf16 %v1234_v49, %v1233_v58  ;;  %v1240_v5 = vpack.c.bf16 %v1235_v60, %v1235_v60 }
 0x26a   : > { %v1208_v6 = vmul.f32 0.5, %v1207_v3 }
 0x26b   : > { %1243 = vst [vmem:[%s1994_s8] sm:$0xff] %v1239_v4 }
 0x26c   : > { %1244 = vst [vmem:[%s1994_s8 + $0x8] sm:$0xf] %v1240_v5  ;;  %v1209_v7 = vsub.f32 1.5, %v1208_v6 }
 0x26e   : > { %v1210_v8 = vmul.f32 %v1579_v61, %v1209_v7 }
 0x270   : > { %v1214_v9 = vsel %vm1213_vm1, %v1579_v61, %v1210_v8 }
 0x271   : > { %v1218_v12 = vmul.f32 %v1214_v9, %v1188_v10  ;;  %v1219_v15 = vmul.f32 %v1214_v9, %v1189_v13  ;;  %v1220_v16 = vmul.f32 %v1214_v9, %v1190_v14 }
 0x273   : > { %vm1224_vm2 = vcmp.gt.f32.partialorder %v1218_v12, 0.0  ;;  %vm1225_vm3 = vcmp.gt.f32.partialorder %v1219_v15, 0.0  ;;  %vm1226_vm4 = vcmp.gt.f32.partialorder %v1220_v16, 0.0  ;;  %v1230_v11 = vmul.f32 0.1, %v1218_v12 }
 0x274   : > { %v1231_v19 = vmul.f32 0.1, %v1219_v15  ;;  %v1232_v21 = vmul.f32 0.1, %v1220_v16 }
 0x275   : > { %v1236_v22 = vsel %vm1224_vm2, %v1218_v12, %v1230_v11 }
 0x276   : > { %v1237_v23 = vsel %vm1225_vm3, %v1219_v15, %v1231_v19  ;;  %v1238_v18 = vsel %vm1226_vm4, %v1220_v16, %v1232_v21 }
 0x277   : > { %v1241_v24 = vpack.c.bf16 %v1237_v23, %v1236_v22  ;;  %v1242_v20 = vpack.c.bf16 %v1238_v18, %v1238_v18 }
 0x279   : > { %1245 = vst [vmem:[%s1994_s8 + $0xc] sm:$0xff] %v1241_v24 }
 0x27a   : > { %1246 = vst [vmem:[%s1994_s8 + $0x14] sm:$0xf] %v1242_v20 }
 0x27b PF: > { %s13_s18 = sadd.s32 1, %s1634_s18   ;;  %s2028_s12 = smov %s1614_s13 }
 0x27c   : > { %p10_p12 = scmp.ge.s32.totalorder %s13_s18, 6   ;;  %s2029_s13 = smov %s1713_s23 }
 0x27d   : > { %s2030_s14 = smov %s1626_s16  ;;  %s2031_s15 = smov %s1630_s17 }
 0x27e   : > { %s2032_s16 = smov %s2035_s19  ;;  %s2033_s17 = smov %s2039_s20 }
 0x27f   :  { %12 = sbr.rel (!%p10_p12) target bundleno = 4 (0x4), region = 119 }

// kernel: resnet_block_forward.8
= control target key start
LH: loop header
LB: loop body
LE: loop exit
PB: predicated region body
PF: predicated region fallthrough
CT: control target
= control target key end

     0   :  { %s1646_s12 = smov 0   ;;  %s1648_s13 = smov 0   ;;  %s2000_s0 = inlined_call_operand.vmem [shape: bf16[2,32,422], index: 0, kind: input, shape index: {}]   ;;  %s2001_s1 = inlined_call_operand.vmem [shape: bf16[9,32,32], index: 1, kind: input, shape index: {}]   ;;  %s2002_s2 = inlined_call_operand.vmem [shape: f32[1,384], index: 2, kind: input, shape index: {}]   ;;  %s2003_s3 = inlined_call_operand.vmem [shape: bf16[2,32,384], index: 3, kind: output, shape index: {}]  }
   0x1   :  { %s1650_s14 = smov 0   ;;  %s1652_s15 = smov 0  }
   0x2   :  { %s1654_s16 = smov 0   ;;  %s1656_s17 = smov 0  }
   0x3   :  { %s1658_s18 = smov 0  }
   0x4 LB: > { %s22_s19 = sadd.s32 1, %s1608_s16  ;;  %s25_s20 = sadd.s32 1, %s1612_s17  ;;  %s1616_s18 = sphi %s1658_s18, %s13_s18   ;;  %s1612_s17 = sphi %s1656_s17, %s2009_s17   ;;  %s1608_s16 = sphi %s1654_s16, %s2008_s16   ;;  %s1604_s15 = sphi %s1652_s15, %s2007_s15   ;;  %s1600_s14 = sphi %s1650_s14, %s2006_s14   ;;  %s1596_s13 = sphi %s1648_s13, %s2005_s13   ;;  %s1592_s12 = sphi %s1646_s12, %s2004_s12  }
   0x5   : > { %p23_p0 = scmp.ge.s32.totalorder %s22_s19, 2  ;;  %s58_s21 = sadd.s32 1, %s1596_s13 }
   0x6   : > { %p65_p1 = scmp.ne.s32.totalorder %s1596_s13, %s1592_s12  ;;  %p66_p2 = scmp.eq.s32.totalorder %s1616_s18, 0 }
   0x7   : > { %s2011_s19 = smov (%p23_p0, %s22_s19), 0  ;;  %s2013_s20 = smov (!%p23_p0, %s25_s20), %s1612_s17 }
   0x8   : > { %s55_s22 = ssub.s32 %s1608_s16, %s2011_s19  ;;  %p67_p3 = por %p66_p2, %p65_p1 }
   0x9   : > { %p27_p4 = scmp.ge.s32.totalorder %s2013_s20, 2  ;;  %p56_p5 = scmp.eq.s32.totalorder %s55_s22, 0 }
   0xa   : > { %p1340_p6 = scmp.ge.s32.totalorder %s1616_s18, 4 }
   0xb   : > { %s2015_s20 = smov (%p27_p4, %s2013_s20), 0 }
   0xc   : > { %s1695_s23 = scalar_select %p56_p5, %s1596_s13, %s58_s21  }
   0xd   : > { %143 = sbr.rel (%p1340_p6) target bundleno = 31 (0x1f), region = 20 }
  0x12   : > { %154 = sbr.rel (!%p67_p3) target bundleno = 31 (0x1f), region = 28  ;;  %s156_s24 = sand.u32 (%p67_p3), 1, %s1596_s13  }
  0x13   : > { %s1469_s25 = sshll.u32 (%p67_p3), %s1608_s16, 3  ;;  %s1490_s26 = smul.u32 (%p67_p3), 72, %s156_s24 }
  0x14   : > { %s161_s29 = scalar_lea.vmem (%p67_p3), %s2001_s1, %s1469_s25 }
  0x15   : > { %v178_v0 = vld [vmem:[%s161_s29] sm:$0xff] (%p67_p3)   ;;  %v182_v1 = vld [vmem:[%s161_s29 + $0x10] sm:$0xff] (%p67_p3)   ;;  %s158_s30 = scalar_lea.vmem (%p67_p3), [#allocation2], %s1490_s26 }
  0x16   : > { %v186_v2 = vld [vmem:[%s161_s29 + $0x20] sm:$0xff] (%p67_p3)   ;;  %179 = vst [vmem:[%s158_s30] sm:$0xff] (%p67_p3), %v178_v0   ;;  %v190_v3 = vld [vmem:[%s161_s29 + $0x30] sm:$0xff] (%p67_p3)  }
  0x17   : > { %183 = vst [vmem:[%s158_s30 + $0x8] sm:$0xff] %v182_v1   ;;  %v194_v4 = vld [vmem:[%s161_s29 + $0x40] sm:$0xff]   ;;  %v198_v5 = vld [vmem:[%s161_s29 + $0x50] sm:$0xff]  }
  0x18   : > { %187 = vst [vmem:[%s158_s30 + $0x10] sm:$0xff] %v186_v2   ;;  %v202_v6 = vld [vmem:[%s161_s29 + $0x60] sm:$0xff]   ;;  %v206_v7 = vld [vmem:[%s161_s29 + $0x70] sm:$0xff]  }
  0x19   : > { %191 = vst [vmem:[%s158_s30 + $0x18] sm:$0xff] %v190_v3   ;;  %v210_v8 = vld [vmem:[%s161_s29 + $0x80] sm:$0xff]  }
  0x1a   : > { %195 = vst [vmem:[%s158_s30 + $0x20] sm:$0xff] %v194_v4  }
  0x1b   : > { %199 = vst [vmem:[%s158_s30 + $0x28] sm:$0xff] %v198_v5  }
  0x1c   : > { %203 = vst [vmem:[%s158_s30 + $0x30] sm:$0xff] %v202_v6  }
  0x1d   : > { %207 = vst [vmem:[%s158_s30 + $0x38] sm:$0xff] %v206_v7  }
  0x1e   : > { %211 = vst [vmem:[%s158_s30 + $0x40] sm:$0xff] %v210_v8  }
  0x1f PF: > { %p1343_p7 = scmp.ge.s32.totalorder %s1616_s18, 1  ;;  %p272_p8 = scmp.lt.s32.totalorder %s1616_s18, 5 }
  0x21   : > { %p273_p9 = pnand %p1343_p7, %p272_p8 }
  0x22   : > { %p312_p10 = scmp.lt.s32.totalorder (!%p273_p9), %s1604_s15, 1  ;;  %s1618_s8 = smov (!%p273_p9), 127  }
  0x23   : > { %276 = sbr.rel (%p273_p9) target bundleno = 631 (0x277), region = 69  ;;  %s1619_s9 = smov (!%p273_p9), 126  }
  0x24   : > { %s1620_s10 = smov (!%p273_p9), 110   ;;  %s1621_s11 = smov (!%p273_p9), 109  }
  0x25   : > { %s1622_s21 = smov (!%p273_p9), 108   ;;  %s1623_s22 = smov (!%p273_p9), 92  }
  0x26   : > { %s279_s24 = sand.u32 (!%p273_p9), 1, %s1592_s12   ;;  %s1624_s12 = smov (!%p273_p9), 91  }
  0x27   : > { %s1491_s25 = smul.u32 (!%p273_p9), 72, %s279_s24  ;;  %s1625_s27 = smov (!%p273_p9), 90  }
  0x28   : > { %s2017_s15 = smov (!%p312_p10, %s1604_s15), 1  ;;  %vm400_vm0 = vcmask 1039360   ;;  %vm413_vm1 = vcmask 261120   ;;  %vm549_vm2 = vcmask 1031168   ;;  %vm637_vm3 = vcmask 900096   ;;  %s1346_s30 = sshll.u32 %s1600_s14, 1 }
  0x29   : > { %s1470_s4 = sshll.u32 %s2017_s15, 6  ;;  %s1804_s26 = scalar_lea.vmem [#allocation2], %s1491_s25  ;;  %vm725_vm4 = vcmask 891904   ;;  %vm813_vm5 = vcmask 883712   ;;  %vm901_vm6 = vcmask 752640   ;;  %vm989_vm7 = vcmask 744448  }
  0x2a   : > { %s1713_s7 = scalar_lea.vmem %s2000_s0, %s1470_s4  ;;  %v1807_v41 = vld [vmem:[%s1804_s26] sm:$0xff]  ;;  %v1482_v47 = vld [vmem:[%s1804_s26 + $0x8] sm:$0xff]  ;;  %v1483_v0 = vld [vmem:[%s1804_s26 + $0x10] sm:$0xff]  ;;  %vm1077_vm8 = vcmask 736256   ;;  %p321_p11 = scmp.lt.s32.totalorder %s1346_s30, 3 }
  0x2b   : > { %v1380_v9 = vld [vmem:[%s1713_s7 + $0x28] sm:$0xf]  ;;  %v1481_v10 = vld [vmem:[%s1713_s7 + $0x34] sm:$0xf0]  ;;  %v1372_v15 = vld [vmem:[%s1713_s7 + $0x20] sm:$0xf] }
  0x2c   : > { %v1364_v11 = vld [vmem:[%s1713_s7 + $0x8] sm:$0xf]  ;;  %v1718_v12 = vor.u32 %v1481_v10, %v1380_v9  ;;  %v1479_v13 = vld [vmem:[%s1713_s7 + $0x14] sm:$0xf0]  ;;  %v1475_v16 = vld [vmem:[%s1713_s7 + $0x2c] sm:$0xf0] }
  0x2d   : > { %v1721_v14 = vor.u32 %v1479_v13, %v1364_v11  ;;  %v1480_v17 = vld [vmem:[%s1713_s7 + $0x2c] sm:$0xf]  ;;  %v1382_v18 = vld [vmem:[%s1713_s7 + $0x38] sm:$0xf0]  ;;  %v1730_v20 = vor.u32 %v1475_v16, %v1372_v15  ;;  %v1356_v22 = vld [vmem:[%s1713_s7] sm:$0xf] }
  0x2e   : > { %396 = vrot.lane.b32.xlu0 %v1718_v12, %s1618_s8  ;;  %v1478_v19 = vld [vmem:[%s1713_s7 + $0xc] sm:$0xf]  ;;  %v1366_v21 = vld [vmem:[%s1713_s7 + $0x18] sm:$0xf0]  ;;  %v1472_v23 = vld [vmem:[%s1713_s7 + $0xc] sm:$0xf0]  ;;  %v1737_v24 = vor.u32 %v1480_v17, %v1382_v18 }
  0x2f   : > { %388 = vrot.lane.b32.xlu1 %v1721_v14, %s1618_s8  ;;  %392 = vrot.lane.b32.xlu2 %v1730_v20, %s1618_s8  ;;  %v1474_v25 = vld [vmem:[%s1713_s7 + $0x24] sm:$0xf]  ;;  %v1374_v26 = vld [vmem:[%s1713_s7 + $0x30] sm:$0xf0]  ;;  %v1741_v27 = vor.u32 %v1478_v19, %v1366_v21  ;;  %v1743_v28 = vor.u32 %v1472_v23, %v1356_v22  ;;  %s2019_s30 = smov (!%p321_p11, %s1346_s30), 3  ;;  %s1493_s4 = smul.u32 12, %s2017_s15 }
  0x30   : > { %489 = vmatpush.bf16.msra.mxu3 %v1730_v20  ;;  %v1745_v29 = vor.u32 %v1474_v25, %v1374_v26  ;;  %v1471_v30 = vld [vmem:[%s1713_s7 + $0x4] sm:$0xf]  ;;  %v1358_v31 = vld [vmem:[%s1713_s7 + $0x10] sm:$0xf0]  ;;  %v1399_v48 = vld [vmem:[%s1713_s7 + $0x28] sm:$0xf] }
  0x31   : > { %v1753_v32 = vor.u32 %v1471_v30, %v1358_v31  ;;  %v1476_v49 = vld [vmem:[%s1713_s7 + $0x34] sm:$0xf0]  ;;  %v1395_v53 = vld [vmem:[%s1713_s7 + $0x8] sm:$0xf]  ;;  %s1492_s5 = smul.u32 3, %s2019_s30 }
  0x32   : > { %v1400_v51 = vor.u32 %v1476_v49, %v1399_v48  ;;  %v1473_v54 = vld [vmem:[%s1713_s7 + $0x14] sm:$0xf0] }
  0x33   : > { %v1396_v58 = vor.u32 %v1473_v54, %v1395_v53  ;;  %v1484_v15 = vld [vmem:[%s1804_s26 + $0x18] sm:$0xff]  ;;  %s325_s6 = sadd.s32 %s1493_s4, %s1492_s5 }
  0x34   : > { %490 = vmatpush.bf16.msra.mxu3 %v1743_v28  ;;  %s1347_s14 = sshll.u32 %s325_s6, 2 }
  0x36   : > { %398 = vrot.lane.b32.xlu0 %v1737_v24, %s1618_s8 }
  0x37   : > { %390 = vrot.lane.b32.xlu1 %v1741_v27, %s1618_s8  ;;  %394 = vrot.lane.b32.xlu2 %v1745_v29, %s1618_s8 }
  0x38   : > { %1401 = vmatmul.msk.bf16.vlgmr.msra.gmra.mxu3 %vm413_vm1, %v1807_v41 }
  0x3e   : > { %384 = vrot.lane.b32.xlu0 %v1743_v28, %s1618_s8 }
  0x3f   : > { %386 = vrot.lane.b32.xlu1 %v1753_v32, %s1618_s8  ;;  %541 = vrot.lane.b32.xlu2 %v1730_v20, %s1619_s9  ;;  %s327_s8 = scalar_lea.vmem %s2003_s3, %s1347_s14 }
  0x46   : > { %543 = vrot.lane.b32.xlu0 %v1745_v29, %s1619_s9 }
  0x47   : > { %533 = vrot.lane.b32.xlu1 %v1743_v28, %s1619_s9  ;;  %535 = vrot.lane.b32.xlu2 %v1753_v32, %s1619_s9 }
  0x4e   : > { %545 = vrot.lane.b32.xlu0 %v1718_v12, %s1619_s9 }
  0x4f   : > { %631 = vrot.lane.b32.xlu1 %v1745_v29, %s1620_s10  ;;  %633 = vrot.lane.b32.xlu2 %v1718_v12, %s1620_s10 }
  0x56   : > { %537 = vrot.lane.b32.xlu0 %v1721_v14, %s1619_s9 }
  0x57   : > { %547 = vrot.lane.b32.xlu1 %v1737_v24, %s1619_s9  ;;  %623 = vrot.lane.b32.xlu2 %v1753_v32, %s1620_s10 }
  0x5e   : > { %625 = vrot.lane.b32.xlu0 %v1721_v14, %s1620_s10 }
  0x5f   : > { %629 = vrot.lane.b32.xlu1 %v1730_v20, %s1620_s10  ;;  %539 = vrot.lane.b32.xlu2 %v1741_v27, %s1619_s9 }
  0x66   : > { %621 = vrot.lane.b32.xlu0 %v1743_v28, %s1620_s10 }
  0x67   : > { %635 = vrot.lane.b32.xlu1 %v1737_v24, %s1620_s10  ;;  %721 = vrot.lane.b32.xlu2 %v1718_v12, %s1621_s11 }
  0x6e   : > { %723 = vrot.lane.b32.xlu0 %v1737_v24, %s1621_s11 }
  0x6f   : > { %627 = vrot.lane.b32.xlu1 %v1741_v27, %s1620_s10  ;;  %713 = vrot.lane.b32.xlu2 %v1721_v14, %s1621_s11 }
  0x76   : > { %715 = vrot.lane.b32.xlu0 %v1741_v27, %s1621_s11 }
  0x77   : > { %717 = vrot.lane.b32.xlu1 %v1730_v20, %s1621_s11  ;;  %719 = vrot.lane.b32.xlu2 %v1745_v29, %s1621_s11 }
  0x7e   : > { %709 = vrot.lane.b32.xlu0 %v1743_v28, %s1621_s11 }
  0x7f   : > { %711 = vrot.lane.b32.xlu1 %v1753_v32, %s1621_s11  ;;  %805 = vrot.lane.b32.xlu2 %v1730_v20, %s1622_s21 }
  0x86   : > { %807 = vrot.lane.b32.xlu0 %v1745_v29, %s1622_s21 }
  0x87   : > { %893 = vrot.lane.b32.xlu1 %v1730_v20, %s1623_s22  ;;  %895 = vrot.lane.b32.xlu2 %v1745_v29, %s1623_s22 }
  0x89   : > { %v393_v33 = vpop.permute.xlu2 %392 }
  0x8e   : > { %797 = vrot.lane.b32.xlu0 %v1743_v28, %s1622_s21 }
  0x8f   : > { %799 = vrot.lane.b32.xlu1 %v1753_v32, %s1622_s21  ;;  %809 = vrot.lane.b32.xlu2 %v1718_v12, %s1622_s21 }
  0x91   : > { %v395_v34 = vpop.permute.xlu2 %394 }
  0x92   : > { %v404_v35 = vsel %vm400_vm0, %v393_v33, %v395_v34 }
  0x93   : > { %423 = vmatpush.bf16.msra.mxu0 %v404_v35 }
  0x96   : > { %811 = vrot.lane.b32.xlu0 %v1737_v24, %s1622_s21 }
  0x97   : > { %885 = vrot.lane.b32.xlu1 %v1743_v28, %s1623_s22  ;;  %887 = vrot.lane.b32.xlu2 %v1753_v32, %s1623_s22 }
  0x99   : > { %v542_v36 = vpop.permute.xlu2 %541 }
  0x9e   : > { %801 = vrot.lane.b32.xlu0 %v1721_v14, %s1622_s21 }
  0x9f   : > { %803 = vrot.lane.b32.xlu1 %v1741_v27, %s1622_s21  ;;  %897 = vrot.lane.b32.xlu2 %v1718_v12, %s1623_s22 }
  0xa0   : > { %v397_v37 = vpop.permute.xlu0 %396 }
  0xa1   : > { %v389_v38 = vpop.permute.xlu1 %388  ;;  %v405_v39 = vsel %vm400_vm0, %v395_v34, %v397_v37  ;;  %v1802_v40 = vpop.permute.xlu2 %535 }
  0xa2   : > { %437 = vmatpush.bf16.msra.mxu1 %v405_v39 }
  0xa6   : > { %983 = vrot.lane.b32.xlu0 %v1745_v29, %s1624_s12 }
  0xa7   : > { %985 = vrot.lane.b32.xlu1 %v1718_v12, %s1624_s12  ;;  %889 = vrot.lane.b32.xlu2 %v1721_v14, %s1623_s22 }
  0xa8   : > { %v399_v42 = vpop.permute.xlu0 %398 }
  0xa9   : > { %v391_v43 = vpop.permute.xlu1 %390  ;;  %v406_v44 = vsel %vm400_vm0, %v397_v37, %v399_v42  ;;  %v1818_v45 = vpop.permute.xlu2 %633 }
  0xaa   : > { %451 = vmatpush.bf16.msra.mxu2 %v406_v44  ;;  %v403_v46 = vsel %vm400_vm0, %v389_v38, %v391_v43 }
  0xae   : > { %452 = vmatpush.bf16.msra.mxu2 %v403_v46  ;;  %899 = vrot.lane.b32.xlu0 %v1737_v24, %s1623_s22 }
  0xaf   : > { %975 = vrot.lane.b32.xlu1 %v1753_v32, %s1624_s12  ;;  %977 = vrot.lane.b32.xlu2 %v1721_v14, %s1624_s12 }
  0xb0   : > { %v385_v50 = vpop.permute.xlu0 %384 }
  0xb1   : > { %v387_v52 = vpop.permute.xlu1 %386  ;;  %1388 = vmatmul.msk.bf16.vlgmr.msra.gmra.mxu2 %vm413_vm1, %v1482_v47  ;;  %v1835_v57 = vpop.permute.xlu2 %623 }
  0xb2   : > { %v401_v55 = vsel %vm400_vm0, %v385_v50, %v387_v52  ;;  %v402_v56 = vsel %vm400_vm0, %v387_v52, %v389_v38  ;;  %v1486_v50 = vld [vmem:[%s1804_s26 + $0x28] sm:$0xff] }
  0xb3   : > { %424 = vmatpush.bf16.msra.mxu0 %v401_v55  ;;  %438 = vmatpush.bf16.msra.mxu1 %v402_v56 }
  0xb6   : > { %981 = vrot.lane.b32.xlu0 %v1730_v20, %s1624_s12  ;;  %1386 = vmatmul.msk.bf16.vlgmr.msra.gmra.mxu0 %vm413_vm1, %v1482_v47 }
  0xb7   : > { %503 = vmatpush.bf16.msrb.mxu0 %v1745_v29  ;;  %517 = vmatpush.bf16.msrb.mxu1 %v1400_v51 }
  0xb8   : > { %891 = vrot.lane.b32.xlu1 %v1741_v27, %s1623_s22  ;;  %1387 = vmatmul.msk.bf16.vlgmr.msra.gmra.mxu1 %vm413_vm1, %v1482_v47  ;;  %v544_v59 = vpop.permute.xlu0 %543 }
  0xb9   : > { %v534_v60 = vpop.permute.xlu1 %533  ;;  %v553_v61 = vsel %vm549_vm2, %v542_v36, %v544_v59  ;;  %973 = vrot.lane.b32.xlu2 %v1743_v28, %s1624_s12  ;;  %v540_v63 = vpop.permute.xlu2 %539 }
  0xba   : > { %571 = vmatpush.bf16.msrb.mxu2 %v553_v61  ;;  %v550_v62 = vsel %vm549_vm2, %v534_v60, %v1802_v40 }
  0xbb   : > { %504 = vmatpush.bf16.msrb.mxu0 %v1753_v32  ;;  %518 = vmatpush.bf16.msrb.mxu1 %v1396_v58 }
  0xbe   : > { %987 = vrot.lane.b32.xlu0 %v1737_v24, %s1624_s12  ;;  %572 = vmatpush.bf16.msrb.mxu2 %v550_v62 }
  0xc0   : > { %1073 = vrot.lane.b32.xlu1 %v1718_v12, %s1625_s27  ;;  %v546_v1 = vpop.permute.xlu0 %545 }
  0xc1   : > { %v632_v2 = vpop.permute.xlu1 %631  ;;  %v554_v3 = vsel %vm549_vm2, %v544_v59, %v546_v1  ;;  %1410 = vmatmul.msk.bf16.vlgmr.msrb.gmra.mxu2 %vm413_vm1, %v1483_v0  ;;  %1075 = vrot.lane.b32.xlu2 %v1737_v24, %s1625_s27  ;;  %v722_v5 = vpop.permute.xlu2 %721 }
  0xc2   : > { %v642_v4 = vsel %vm637_vm3, %v632_v2, %v1818_v45  ;;  %585 = vmatpush.bf16.msrb.mxu3 %v554_v3 }
  0xc3   : > { %673 = vmatpush.bf16.msra.mxu2 %v642_v4 }
  0xc6   : > { %979 = vrot.lane.b32.xlu0 %v1741_v27, %s1624_s12  ;;  %1402 = vmatmul.msk.bf16.vlgmr.msrb.gmra.mxu0 %vm413_vm1, %v1807_v41 }
  0xc8   : > { %1065 = vrot.lane.b32.xlu1 %v1721_v14, %s1625_s27  ;;  %1403 = vmatmul.msk.bf16.vlgmr.msrb.gmra.mxu1 %vm413_vm1, %v1807_v41  ;;  %v538_v6 = vpop.permute.xlu0 %537 }
  0xc9   : > { %v548_v7 = vpop.permute.xlu1 %547  ;;  %v551_v8 = vsel %vm549_vm2, %v1802_v40, %v538_v6  ;;  %1067 = vrot.lane.b32.xlu2 %v1741_v27, %s1625_s27  ;;  %v714_v10 = vpop.permute.xlu2 %713  ;;  %v552_v11 = vsel %vm549_vm2, %v538_v6, %v540_v63  ;;  %v1488_v6 = vld [vmem:[%s1804_s26 + $0x38] sm:$0xff] }
  0xca   : > { %v555_v9 = vsel %vm549_vm2, %v546_v1, %v548_v7  ;;  %586 = vmatpush.bf16.msrb.mxu3 %v551_v8 }
  0xcb   : > { %599 = vmatpush.bf16.msra.mxu0 %v555_v9 }
  0xcd   : > { %1411 = vmatmul.msk.bf16.vlgmr.msrb.gmra.mxu3 %vm413_vm1, %v1483_v0 }
  0xce   : > { %1069 = vrot.lane.b32.xlu0 %v1730_v20, %s1625_s27 }
  0xcf   : > { %600 = vmatpush.bf16.msra.mxu0 %v552_v11 }
  0xd0   : > { %1071 = vrot.lane.b32.xlu1 %v1745_v29, %s1625_s27  ;;  %v626_v12 = vpop.permute.xlu0 %625 }
  0xd1   : > { %v630_v13 = vpop.permute.xlu1 %629  ;;  %v639_v14 = vsel %vm637_vm3, %v1835_v57, %v626_v12  ;;  %1061 = vrot.lane.b32.xlu2 %v1743_v28, %s1625_s27  ;;  %v720_v17 = vpop.permute.xlu2 %719 }
  0xd2   : > { %v641_v16 = vsel %vm637_vm3, %v630_v13, %v632_v2  ;;  %674 = vmatpush.bf16.msra.mxu2 %v639_v14  ;;  %v730_v19 = vsel %vm725_vm4, %v720_v17, %v722_v5 }
  0xd3   : > { %659 = vmatpush.bf16.msra.mxu1 %v641_v16 }
  0xd5   : > { %1420 = vmatmul.msk.bf16.vlgmr.msra.gmra.mxu2 %vm413_vm1, %v1484_v15 }
  0xd6   : > { %1063 = vrot.lane.b32.xlu0 %v1753_v32, %s1625_s27  ;;  %1412 = vmatmul.msk.bf16.vlgmr.msra.gmra.mxu0 %vm413_vm1, %v1483_v0  ;;  %v1485_v32 = vld [vmem:[%s1804_s26 + $0x20] sm:$0xff] }
  0xd8   : > { %v622_v18 = vpop.permute.xlu0 %621 }
  0xd9   : > { %v636_v20 = vpop.permute.xlu1 %635  ;;  %v638_v21 = vsel %vm637_vm3, %v622_v18, %v1835_v57  ;;  %v806_v23 = vpop.permute.xlu2 %805  ;;  %v1487_v57 = vld [vmem:[%s1804_s26 + $0x30] sm:$0xff] }
  0xda   : > { %v643_v22 = vsel %vm637_vm3, %v1818_v45, %v636_v20  ;;  %660 = vmatpush.bf16.msra.mxu1 %v638_v21 }
  0xdb   : > { %687 = vmatpush.bf16.msra.mxu3 %v643_v22 }
  0xdd   : > { %1419 = vmatmul.msk.bf16.vlgmr.msra.gmra.mxu1 %vm413_vm1, %v1484_v15 }
  0xde   : > { %761 = vmatpush.bf16.msrb.mxu1 %v730_v19 }
  0xe0   : > { %v724_v24 = vpop.permute.xlu0 %723 }
  0xe1   : > { %v731_v25 = vsel %vm725_vm4, %v722_v5, %v724_v24  ;;  %v628_v26 = vpop.permute.xlu1 %627  ;;  %v896_v28 = vpop.permute.xlu2 %895 }
  0xe2   : > { %v640_v27 = vsel %vm637_vm3, %v626_v12, %v628_v26  ;;  %775 = vmatpush.bf16.msrb.mxu2 %v731_v25 }
  0xe3   : > { %688 = vmatpush.bf16.msra.mxu3 %v640_v27 }
  0xe6   : > { %1421 = vmatmul.msk.bf16.vlgmr.msra.gmra.mxu3 %vm413_vm1, %v1484_v15 }
  0xe8   : > { %v716_v29 = vpop.permute.xlu0 %715 }
  0xe9   : > { %v718_v30 = vpop.permute.xlu1 %717  ;;  %v728_v31 = vsel %vm725_vm4, %v714_v10, %v716_v29  ;;  %v810_v34 = vpop.permute.xlu2 %809 }
  0xea   : > { %v729_v33 = vsel %vm725_vm4, %v718_v30, %v720_v17  ;;  %776 = vmatpush.bf16.msrb.mxu2 %v728_v31  ;;  %v492_v17 = vpop.f32.mrf.mxu3 }
  0xeb   : > { %747 = vmatpush.bf16.msrb.mxu0 %v729_v33 }
  0xed   : > { %1430 = vmatmul.msk.bf16.vlgmr.msrb.gmra.mxu2 %vm413_vm1, %v1485_v32 }
  0xf0   : > { %v710_v35 = vpop.permute.xlu0 %709 }
  0xf1   : > { %v712_v36 = vpop.permute.xlu1 %711  ;;  %v888_v39 = vpop.permute.xlu2 %887 }
  0xf2   : > { %v726_v37 = vsel %vm725_vm4, %v710_v35, %v712_v36  ;;  %v727_v38 = vsel %vm725_vm4, %v712_v36, %v714_v10  ;;  %v494_v30 = vpop.f32.mrf.mxu3 }
  0xf3   : > { %748 = vmatpush.bf16.msrb.mxu0 %v726_v37  ;;  %762 = vmatpush.bf16.msrb.mxu1 %v727_v38 }
  0xf6   : > { %1428 = vmatmul.msk.bf16.vlgmr.msrb.gmra.mxu0 %vm413_vm1, %v1485_v32  ;;  %1429 = vmatmul.msk.bf16.vlgmr.msrb.gmra.mxu1 %vm413_vm1, %v1485_v32 }
  0xf8   : > { %v808_v40 = vpop.permute.xlu0 %807 }
  0xf9   : > { %v817_v41 = vsel %vm813_vm5, %v806_v23, %v808_v40  ;;  %v818_v42 = vsel %vm813_vm5, %v808_v40, %v810_v34  ;;  %v894_v43 = vpop.permute.xlu1 %893  ;;  %v898_v45 = vpop.permute.xlu2 %897 }
  0xfa   : > { %v905_v44 = vsel %vm901_vm6, %v894_v43, %v896_v28  ;;  %835 = vmatpush.bf16.msrb.mxu3 %v817_v41  ;;  %849 = vmatpush.bf16.msra.mxu0 %v818_v42  ;;  %v906_v47 = vsel %vm901_vm6, %v896_v28, %v898_v45  ;;  %v1489_v28 = vld [vmem:[%s1804_s26 + $0x40] sm:$0xff] }
  0xfb   : > { %923 = vmatpush.bf16.msra.mxu2 %v905_v44 }
 0x100   : > { %v798_v46 = vpop.permute.xlu0 %797 }
 0x101   : > { %v800_v48 = vpop.permute.xlu1 %799  ;;  %v890_v51 = vpop.permute.xlu2 %889 }
 0x102   : > { %v814_v49 = vsel %vm813_vm5, %v798_v46, %v800_v48  ;;  %v903_v52 = vsel %vm901_vm6, %v888_v39, %v890_v51 }
 0x103   : > { %836 = vmatpush.bf16.msrb.mxu3 %v814_v49 }
 0x106   : > { %1437 = vmatmul.msk.bf16.vlgmr.msrb.gmra.mxu3 %vm413_vm1, %v1486_v50 }
 0x107   : > { %937 = vmatpush.bf16.msra.mxu3 %v906_v47 }
 0x108   : > { %v812_v53 = vpop.permute.xlu0 %811 }
 0x109   : > { %v819_v54 = vsel %vm813_vm5, %v810_v34, %v812_v53  ;;  %v886_v55 = vpop.permute.xlu1 %885  ;;  %v978_v1 = vpop.permute.xlu2 %977 }
 0x10a   : > { %863 = vmatpush.bf16.msra.mxu1 %v819_v54  ;;  %v902_v56 = vsel %vm901_vm6, %v886_v55, %v888_v39 }
 0x10b   : > { %938 = vmatpush.bf16.msra.mxu3 %v903_v52  ;;  %924 = vmatpush.bf16.msra.mxu2 %v902_v56 }
 0x10e   : > { %1446 = vmatmul.msk.bf16.vlgmr.msra.gmra.mxu2 %vm413_vm1, %v1487_v57 }
 0x110   : > { %v802_v58 = vpop.permute.xlu0 %801 }
 0x111   : > { %v804_v59 = vpop.permute.xlu1 %803  ;;  %v815_v60 = vsel %vm813_vm5, %v800_v48, %v802_v58 }
 0x112   : > { %850 = vmatpush.bf16.msra.mxu0 %v815_v60  ;;  %v816_v61 = vsel %vm813_vm5, %v802_v58, %v804_v59 }
 0x113   : > { %864 = vmatpush.bf16.msra.mxu1 %v816_v61  ;;  %v974_v7 = vpop.permute.xlu2 %973 }
 0x115   : > { %1438 = vmatmul.msk.bf16.vlgmr.msra.gmra.mxu0 %vm413_vm1, %v1486_v50 }
 0x116   : > { %1439 = vmatmul.msk.bf16.vlgmr.msra.gmra.mxu1 %vm413_vm1, %v1486_v50  ;;  %1447 = vmatmul.msk.bf16.vlgmr.msra.gmra.mxu3 %vm413_vm1, %v1487_v57 }
 0x118   : > { %v984_v62 = vpop.permute.xlu0 %983 }
 0x119   : > { %v986_v63 = vpop.permute.xlu1 %985 }
 0x11a   : > { %v994_v0 = vsel %vm989_vm7, %v984_v62, %v986_v63 }
 0x11b   : > { %1025 = vmatpush.bf16.msrb.mxu2 %v994_v0  ;;  %v1076_v13 = vpop.permute.xlu2 %1075 }
 0x120   : > { %v900_v2 = vpop.permute.xlu0 %899 }
 0x121   : > { %v907_v3 = vsel %vm901_vm6, %v898_v45, %v900_v2  ;;  %v976_v4 = vpop.permute.xlu1 %975 }
 0x122   : > { %951 = vmatpush.bf16.msrb.mxu0 %v907_v3  ;;  %v991_v5 = vsel %vm989_vm7, %v976_v4, %v978_v1  ;;  %v990_v12 = vsel %vm989_vm7, %v974_v7, %v976_v4 }
 0x123   : > { %1026 = vmatpush.bf16.msrb.mxu2 %v991_v5  ;;  %v1068_v23 = vpop.permute.xlu2 %1067 }
 0x126   : > { %1456 = vmatmul.msk.bf16.vlgmr.msrb.gmra.mxu2 %vm413_vm1, %v1488_v6 }
 0x128   : > { %v982_v8 = vpop.permute.xlu0 %981 }
 0x129   : > { %v993_v9 = vsel %vm989_vm7, %v982_v8, %v984_v62 }
 0x12a   : > { %v892_v10 = vpop.permute.xlu1 %891  ;;  %1011 = vmatpush.bf16.msrb.mxu1 %v993_v9 }
 0x12b   : > { %v904_v11 = vsel %vm901_vm6, %v890_v51, %v892_v10  ;;  %v1062_v44 = vpop.permute.xlu2 %1061 }
 0x12c   : > { %952 = vmatpush.bf16.msrb.mxu0 %v904_v11 }
 0x12e   : > { %1012 = vmatpush.bf16.msrb.mxu1 %v990_v12 }
 0x12f   : > { %1448 = vmatmul.msk.bf16.vlgmr.msrb.gmra.mxu0 %vm413_vm1, %v1487_v57 }
 0x130   : > { %v988_v14 = vpop.permute.xlu0 %987 }
 0x131   : > { %v995_v15 = vsel %vm989_vm7, %v986_v63, %v988_v14  ;;  %1455 = vmatmul.msk.bf16.vlgmr.msrb.gmra.mxu1 %vm413_vm1, %v1488_v6 }
 0x132   : > { %v1074_v16 = vpop.permute.xlu1 %1073  ;;  %1039 = vmatpush.bf16.msrb.mxu3 %v995_v15 }
 0x133   : > { %v1083_v18 = vsel %vm1077_vm8, %v1074_v16, %v1076_v13  ;;  %v426_v19 = vpop.f32.mrf.mxu0 }
 0x134   : > { %1127 = vmatpush.bf16.msra.mxu2 %v1083_v18  ;;  %v454_v20 = vpop.f32.mrf.mxu2  ;;  %v493_v22 = vadd.f32 %v492_v17, %v426_v19 }
 0x135   : > { %v440_v21 = vpop.f32.mrf.mxu1 }
 0x138   : > { %v980_v24 = vpop.permute.xlu0 %979 }
 0x139   : > { %v992_v26 = vsel %vm989_vm7, %v978_v1, %v980_v24 }
 0x13a   : > { %v1066_v25 = vpop.permute.xlu1 %1065  ;;  %1040 = vmatpush.bf16.msrb.mxu3 %v992_v26 }
 0x13b   : > { %v1080_v27 = vsel %vm1077_vm8, %v1066_v25, %v1068_v23  ;;  %v428_v29 = vpop.f32.mrf.mxu0 }
 0x13c   : > { %1128 = vmatpush.bf16.msra.mxu2 %v1080_v27  ;;  %v456_v31 = vpop.f32.mrf.mxu2  ;;  %v495_v33 = vadd.f32 %v494_v30, %v428_v29 }
 0x13d   : > { %v442_v32 = vpop.f32.mrf.mxu1  ;;  %1457 = vmatmul.msk.bf16.vlgmr.msrb.gmra.mxu3 %vm413_vm1, %v1488_v6 }
 0x13f   : > { %1466 = vmatmul.msk.bf16.vlgmr.msra.gmra.mxu2 %vm413_vm1, %v1489_v28 }
 0x140   : > { %v1070_v34 = vpop.permute.xlu0 %1069 }
 0x142   : > { %v1072_v35 = vpop.permute.xlu1 %1071 }
 0x143   : > { %v1081_v36 = vsel %vm1077_vm8, %v1070_v34, %v1072_v35  ;;  %v1082_v37 = vsel %vm1077_vm8, %v1072_v35, %v1074_v16  ;;  %v506_v38 = vpop.f32.mrf.mxu0 }
 0x144   : > { %1099 = vmatpush.bf16.msra.mxu0 %v1081_v36  ;;  %1113 = vmatpush.bf16.msra.mxu1 %v1082_v37  ;;  %v574_v39 = vpop.f32.mrf.mxu2  ;;  %v507_v40 = vadd.f32 %v506_v38, %v440_v21  ;;  %v1141_v38 = vld [vmem:[%s2002_s2] sm:$0x7] }
 0x145   : > { %v520_v41 = vpop.f32.mrf.mxu1  ;;  %v607_v42 = vadd.f32 %v574_v39, %v493_v22 }
 0x146   : > { %v521_v43 = vadd.f32 %v520_v41, %v454_v20 }
 0x148   : > { %v1064_v45 = vpop.permute.xlu0 %1063 }
 0x149   : > { %v1078_v46 = vsel %vm1077_vm8, %v1062_v44, %v1064_v45  ;;  %v1079_v47 = vsel %vm1077_vm8, %v1064_v45, %v1066_v25 }
 0x14a   : > { %1100 = vmatpush.bf16.msra.mxu0 %v1078_v46  ;;  %1114 = vmatpush.bf16.msra.mxu1 %v1079_v47  ;;  %v1145_v47 = vperm.slane %v1141_v38, 2 }
 0x14b   : > { %v508_v48 = vpop.f32.mrf.mxu0 }
 0x14c   : > { %v576_v49 = vpop.f32.mrf.mxu2  ;;  %v509_v50 = vadd.f32 %v508_v48, %v442_v32 }
 0x14d   : > { %v522_v51 = vpop.f32.mrf.mxu1  ;;  %1464 = vmatmul.msk.bf16.vlgmr.msra.gmra.mxu0 %vm413_vm1, %v1489_v28  ;;  %1465 = vmatmul.msk.bf16.vlgmr.msra.gmra.mxu1 %vm413_vm1, %v1489_v28  ;;  %v610_v52 = vadd.f32 %v576_v49, %v495_v33 }
 0x14e   : > { %v523_v53 = vadd.f32 %v522_v51, %v456_v31  ;;  %v1144_v51 = vperm.slane %v1141_v38, 1 }
 0x150   : > { %v588_v54 = vpop.f32.mrf.mxu3 }
 0x151   : > { %v608_v21 = vadd.f32 %v588_v54, %v507_v40 }
 0x153   : > { %v602_v56 = vpop.f32.mrf.mxu0 }
 0x154   : > { %v609_v16 = vadd.f32 %v602_v56, %v521_v43 }
 0x158   : > { %v676_v55 = vpop.f32.mrf.mxu2  ;;  %v590_v58 = vpop.f32.mrf.mxu3 }
 0x159   : > { %v696_v24 = vadd.f32 %v676_v55, %v608_v21  ;;  %v611_v32 = vadd.f32 %v590_v58, %v509_v50  ;;  %v1143_v50 = vperm.slane %v1141_v38, 0 }
 0x15a   : > { %v662_v57 = vpop.f32.mrf.mxu1 }
 0x15b   : > { %v604_v60 = vpop.f32.mrf.mxu0  ;;  %v695_v25 = vadd.f32 %v662_v57, %v607_v42 }
 0x15c   : > { %v612_v28 = vadd.f32 %v604_v60, %v523_v53 }
 0x160   : > { %v678_v59 = vpop.f32.mrf.mxu2 }
 0x161   : > { %v699_v42 = vadd.f32 %v678_v59, %v611_v32 }
 0x162   : > { %v664_v61 = vpop.f32.mrf.mxu1 }
 0x163   : > { %v698_v44 = vadd.f32 %v664_v61, %v610_v52 }
 0x169   : > { %v690_v62 = vpop.f32.mrf.mxu3 }
 0x16a   : > { %v697_v20 = vadd.f32 %v690_v62, %v609_v16 }
 0x170   : > { %v778_v63 = vpop.f32.mrf.mxu2 }
 0x171   : > { %v692_v2 = vpop.f32.mrf.mxu3  ;;  %v785_v23 = vadd.f32 %v778_v63, %v697_v20 }
 0x172   : > { %v700_v39 = vadd.f32 %v692_v2, %v612_v28 }
 0x173   : > { %v750_v0 = vpop.f32.mrf.mxu0  ;;  %v764_v1 = vpop.f32.mrf.mxu1 }
 0x174   : > { %v784_v29 = vadd.f32 %v764_v1, %v696_v24  ;;  %v783_v33 = vadd.f32 %v750_v0, %v695_v25 }
 0x178   : > { %v780_v3 = vpop.f32.mrf.mxu2 }
 0x179   : > { %v788_v45 = vadd.f32 %v780_v3, %v700_v39 }
 0x17b   : > { %v752_v5 = vpop.f32.mrf.mxu0  ;;  %v766_v6 = vpop.f32.mrf.mxu1 }
 0x17c   : > { %v786_v53 = vadd.f32 %v752_v5, %v698_v44  ;;  %v787_v54 = vadd.f32 %v766_v6, %v699_v42 }
 0x189   : > { %v838_v4 = vpop.f32.mrf.mxu3 }
 0x18a   : > { %v871_v36 = vadd.f32 %v838_v4, %v783_v33 }
 0x191   : > { %v926_v7 = vpop.f32.mrf.mxu2  ;;  %v840_v9 = vpop.f32.mrf.mxu3 }
 0x192   : > { %v852_v8 = vpop.f32.mrf.mxu0  ;;  %v959_v43 = vadd.f32 %v926_v7, %v871_v36  ;;  %v874_v59 = vadd.f32 %v840_v9, %v786_v53 }
 0x193   : > { %v866_v10 = vpop.f32.mrf.mxu1  ;;  %v872_v35 = vadd.f32 %v852_v8, %v784_v29 }
 0x194   : > { %v873_v26 = vadd.f32 %v866_v10, %v785_v23 }
 0x199   : > { %v928_v11 = vpop.f32.mrf.mxu2  ;;  %v940_v13 = vpop.f32.mrf.mxu3 }
 0x19a   : > { %v854_v12 = vpop.f32.mrf.mxu0  ;;  %v960_v40 = vadd.f32 %v940_v13, %v872_v35  ;;  %v962_v2 = vadd.f32 %v928_v11, %v874_v59 }
 0x19b   : > { %v868_v14 = vpop.f32.mrf.mxu1  ;;  %v875_v62 = vadd.f32 %v854_v12, %v787_v54 }
 0x19c   : > { %v876_v57 = vadd.f32 %v868_v14, %v788_v45 }
 0x1a1   : > { %v942_v19 = vpop.f32.mrf.mxu3 }
 0x1a2   : > { %v963_v3 = vadd.f32 %v942_v19, %v875_v62 }
 0x1a9   : > { %v1028_v15 = vpop.f32.mrf.mxu2 }
 0x1aa   : > { %v1048_v46 = vadd.f32 %v1028_v15, %v960_v40 }
 0x1ac   : > { %v954_v17 = vpop.f32.mrf.mxu0 }
 0x1ad   : > { %v961_v34 = vadd.f32 %v954_v17, %v873_v26 }
 0x1ae   : > { %v1014_v18 = vpop.f32.mrf.mxu1 }
 0x1af   : > { %v1047_v48 = vadd.f32 %v1014_v18, %v959_v43 }
 0x1b1   : > { %v1030_v22 = vpop.f32.mrf.mxu2 }
 0x1b2   : > { %v1051_v8 = vadd.f32 %v1030_v22, %v963_v3 }
 0x1b4   : > { %v956_v27 = vpop.f32.mrf.mxu0 }
 0x1b5   : > { %v964_v61 = vadd.f32 %v956_v27, %v876_v57 }
 0x1b6   : > { %v1016_v30 = vpop.f32.mrf.mxu1 }
 0x1b7   : > { %v1050_v13 = vadd.f32 %v1016_v30, %v962_v2 }
 0x1c0   : > { %v1042_v31 = vpop.f32.mrf.mxu3 }
 0x1c1   : > { %v1049_v37 = vadd.f32 %v1042_v31, %v961_v34 }
 0x1c2   : > { %v1130_v41 = vpop.f32.mrf.mxu2 }
 0x1c3   : > { %v1950_v49 = vadd.f32 %v1130_v41, %v1049_v37 }
 0x1c5   : > { %v1151_v63 = vmul.f32 %v1145_v47, %v1950_v49 }
 0x1c7   : > { %v1167_v9 = vmul.f32 %v1151_v63, %v1151_v63 }
 0x1c8   : > { %v1044_v52 = vpop.f32.mrf.mxu3 }
 0x1c9   : > { %v1052_v4 = vadd.f32 %v1044_v52, %v964_v61 }
 0x1ca   : > { %v1102_v55 = vpop.f32.mrf.mxu0  ;;  %v1116_v56 = vpop.f32.mrf.mxu1 }
 0x1cb   : > { %v1952_v58 = vadd.f32 %v1102_v55, %v1047_v48  ;;  %v1954_v60 = vadd.f32 %v1116_v56, %v1048_v46  ;;  %v1132_v10 = vpop.f32.mrf.mxu2 }
 0x1cc   : > { %v1959_v17 = vadd.f32 %v1132_v10, %v1052_v4 }
 0x1cd   : > { %v1149_v0 = vmul.f32 %v1143_v50, %v1952_v58  ;;  %v1150_v1 = vmul.f32 %v1144_v51, %v1954_v60 }
 0x1ce   : > { %v1154_v22 = vmul.f32 %v1145_v47, %v1959_v17 }
 0x1cf   : > { %v1165_v5 = vmul.f32 %v1149_v0, %v1149_v0  ;;  %v1166_v6 = vmul.f32 %v1150_v1, %v1150_v1  ;;  %v1155_v7 = vadd.f32 %v1150_v1, %v1149_v0 }
 0x1d0   : > { %v1170_v28 = vmul.f32 %v1154_v22, %v1154_v22 }
 0x1d1   : > { %v1156_v14 = vadd.f32 %v1155_v7, %v1151_v63  ;;  %v1171_v12 = vadd.f32 %v1166_v6, %v1165_v5 }
 0x1d2   : > { %v1104_v15 = vpop.f32.mrf.mxu0  ;;  %v1118_v16 = vpop.f32.mrf.mxu1 }
 0x1d3   : > { %v1961_v18 = vadd.f32 %v1104_v15, %v1050_v13  ;;  %v1963_v20 = vadd.f32 %v1118_v16, %v1051_v8  ;;  %1157 = vadd.xlane.f32.xlu1 %v1156_v14  ;;  %v1172_v11 = vadd.f32 %v1171_v12, %v1167_v9 }
 0x1d5   : > { %v1152_v19 = vmul.f32 %v1143_v50, %v1961_v18  ;;  %v1153_v21 = vmul.f32 %v1144_v51, %v1963_v20  ;;  %1173 = vadd.xlane.f32.xlu0 %v1172_v11 }
 0x1d7   : > { %v1159_v23 = vadd.f32 %v1153_v21, %v1152_v19  ;;  %v1168_v24 = vmul.f32 %v1152_v19, %v1152_v19  ;;  %v1169_v25 = vmul.f32 %v1153_v21, %v1153_v21 }
 0x1d9   : > { %v1160_v26 = vadd.f32 %v1159_v23, %v1154_v22  ;;  %v1175_v27 = vadd.f32 %v1169_v25, %v1168_v24 }
 0x1db   : > { %1161 = vadd.xlane.f32.xlu2 %v1160_v26  ;;  %v1176_v29 = vadd.f32 %v1175_v27, %v1170_v28 }
 0x1e3   : > { %1177 = vadd.xlane.f32.xlu2 %v1176_v29 }
 0x246   : > { %v1158_v30 = vpop.xlane.xlu1 %1157 }
 0x247   : > { %v1163_v31 = vmul.f32 0.00390625, %v1158_v30 }
 0x248   : > { %v1174_v32 = vpop.xlane.xlu0 %1173 }
 0x249   : > { %v1179_v33 = vmul.f32 0.00390625, %v1174_v32  ;;  %v1181_v34 = vmul.f32 %v1163_v31, %v1163_v31  ;;  %v1185_v54 = vsub.f32 %v1952_v58, %v1163_v31  ;;  %v1186_v55 = vsub.f32 %v1954_v60, %v1163_v31 }
 0x24a   : > { %v1187_v56 = vsub.f32 %v1950_v49, %v1163_v31 }
 0x24b   : > { %v1183_v35 = vsub.f32 %v1179_v33, %v1181_v34 }
 0x24d   : > { %v1191_v36 = vmax.f32 %v1183_v35, 0.0 }
 0x24e   : > { %v1162_v37 = vpop.xlane.xlu2 %1161 }
 0x24f   : > { %v1193_v38 = vadd.f32 1e-05, %v1191_v36  ;;  %v1164_v39 = vmul.f32 0.00390625, %v1162_v37 }
 0x251   : > { %1558 = vrsqrt.f32 %v1193_v38  ;;  %v1182_v41 = vmul.f32 %v1164_v39, %v1164_v39  ;;  %vm1201_vm10 = vweird.f32 %v1193_v38  ;;  %v1188_v3 = vsub.f32 %v1961_v18, %v1164_v39 }
 0x252   : > { %v1189_v4 = vsub.f32 %v1963_v20, %v1164_v39  ;;  %v1190_v5 = vsub.f32 %v1959_v17, %v1164_v39 }
 0x256   : > { %v1178_v40 = vpop.xlane.xlu2 %1177 }
 0x257   : > { %v1180_v42 = vmul.f32 0.00390625, %v1178_v40  ;;  %v1559_v43 = vpop.eup %1558 }
 0x258   : > { %v1196_v44 = vmul.f32 %v1559_v43, %v1193_v38  ;;  %vm1202_vm9 = vweird.f32 %v1559_v43 }
 0x259   : > { %v1184_v45 = vsub.f32 %v1180_v42, %v1182_v41  ;;  %vm1203_vm11 = vmor %vm1201_vm10, %vm1202_vm9 }
 0x25a   : > { %v1197_v46 = vmul.f32 %v1559_v43, %v1196_v44 }
 0x25b   : > { %v1192_v47 = vmax.f32 %v1184_v45, 0.0 }
 0x25c   : > { %v1198_v48 = vmul.f32 0.5, %v1197_v46 }
 0x25d   : > { %v1194_v50 = vadd.f32 1e-05, %v1192_v47 }
 0x25e   : > { %v1199_v51 = vsub.f32 1.5, %v1198_v48 }
 0x25f   : > { %1560 = vrsqrt.f32 %v1194_v50  ;;  %vm1211_vm13 = vweird.f32 %v1194_v50 }
 0x260   : > { %v1200_v53 = vmul.f32 %v1559_v43, %v1199_v51 }
 0x262   : > { %v1204_v57 = vsel %vm1203_vm11, %v1559_v43, %v1200_v53 }
 0x263   : > { %v1215_v59 = vmul.f32 %v1204_v57, %v1185_v54  ;;  %v1216_v62 = vmul.f32 %v1204_v57, %v1186_v55  ;;  %v1217_v52 = vmul.f32 %v1204_v57, %v1187_v56 }
 0x265   : > { %v1561_v61 = vpop.eup %1560  ;;  %v1221_v63 = vpack.c.bf16 %v1216_v62, %v1215_v59  ;;  %v1222_v0 = vpack.c.bf16 %v1217_v52, %v1217_v52 }
 0x266   : > { %v1206_v1 = vmul.f32 %v1561_v61, %v1194_v50  ;;  %vm1212_vm12 = vweird.f32 %v1561_v61 }
 0x267   : > { %1225 = vst [vmem:[%s327_s8] sm:$0xff] %v1221_v63  ;;  %vm1213_vm14 = vmor %vm1211_vm13, %vm1212_vm12 }
 0x268   : > { %v1207_v58 = vmul.f32 %v1561_v61, %v1206_v1  ;;  %1226 = vst [vmem:[%s327_s8 + $0x8] sm:$0xf] %v1222_v0 }
 0x26a   : > { %v1208_v60 = vmul.f32 0.5, %v1207_v58 }
 0x26c   : > { %v1209_v2 = vsub.f32 1.5, %v1208_v60 }
 0x26e   : > { %v1210_v49 = vmul.f32 %v1561_v61, %v1209_v2 }
 0x270   : > { %v1214_v6 = vsel %vm1213_vm14, %v1561_v61, %v1210_v49 }
 0x271   : > { %v1218_v7 = vmul.f32 %v1214_v6, %v1188_v3  ;;  %v1219_v8 = vmul.f32 %v1214_v6, %v1189_v4  ;;  %v1220_v10 = vmul.f32 %v1214_v6, %v1190_v5 }
 0x273   : > { %v1223_v13 = vpack.c.bf16 %v1219_v8, %v1218_v7  ;;  %v1224_v14 = vpack.c.bf16 %v1220_v10, %v1220_v10 }
 0x275   : > { %1227 = vst [vmem:[%s327_s8 + $0xc] sm:$0xff] %v1223_v13 }
 0x276   : > { %1228 = vst [vmem:[%s327_s8 + $0x14] sm:$0xf] %v1224_v14 }
 0x277 PF: > { %s13_s18 = sadd.s32 1, %s1616_s18   ;;  %s2004_s12 = smov %s1596_s13 }
 0x278   : > { %p10_p12 = scmp.ge.s32.totalorder %s13_s18, 6   ;;  %s2005_s13 = smov %s1695_s23 }
 0x279   : > { %s2006_s14 = smov %s1608_s16  ;;  %s2007_s15 = smov %s1612_s17 }
 0x27a   : > { %s2008_s16 = smov %s2011_s19  ;;  %s2009_s17 = smov %s2015_s20 }
 0x27b   :  { %12 = sbr.rel (!%p10_p12) target bundleno = 4 (0x4), region = 119 }

// kernel: resnet_block_forward.13
= control target key start
LH: loop header
LB: loop body
LE: loop exit
PB: predicated region body
PF: predicated region fallthrough
CT: control target
= control target key end

     0   :  { %s2391_s15 = smov 0   ;;  %s2393_s16 = smov 0   ;;  %s3471_s0 = inlined_call_operand.vmem [shape: bf16[2,96,422], index: 0, kind: input, shape index: {}]   ;;  %s3472_s1 = inlined_call_operand.vmem [shape: f32[2,32,384], index: 1, kind: input, shape index: {}]   ;;  %s3473_s2 = inlined_call_operand.vmem [shape: bf16[9,32,96], index: 2, kind: input, shape index: {}]   ;;  %s3474_s3 = inlined_call_operand.vmem [shape: f32[32,1], index: 3, kind: input, shape index: {}]   ;;  %s3475_s4 = inlined_call_operand.vmem [shape: f32[2,32,384], index: 4, kind: output, shape index: {}]  }
   0x1   :  { %s2395_s17 = smov 0   ;;  %s2397_s18 = smov 0  }
   0x2   :  { %s2399_s19 = smov 0   ;;  %s2401_s20 = smov 0  }
   0x3   :  { %s2403_s21 = smov 0  }
   0x4 LB: > { %s23_s22 = sadd.s32 1, %s2347_s19  ;;  %s26_s23 = sadd.s32 1, %s2351_s20  ;;  %s2355_s21 = sphi %s2403_s21, %s14_s21   ;;  %s2351_s20 = sphi %s2401_s20, %s3481_s20   ;;  %s2347_s19 = sphi %s2399_s19, %s3480_s19   ;;  %s2343_s18 = sphi %s2397_s18, %s3479_s18   ;;  %s2339_s17 = sphi %s2395_s17, %s3478_s17   ;;  %s2335_s16 = sphi %s2393_s16, %s3477_s16   ;;  %s2331_s15 = sphi %s2391_s15, %s3476_s15  }
   0x5   : > { %p24_p0 = scmp.ge.s32.totalorder %s23_s22, 2  ;;  %s87_s24 = sadd.s32 1, %s2335_s16 }
   0x6   : > { %p94_p1 = scmp.ne.s32.totalorder %s2335_s16, %s2331_s15  ;;  %p95_p2 = scmp.eq.s32.totalorder %s2355_s21, 0 }
   0x7   : > { %s3483_s22 = smov (%p24_p0, %s23_s22), 0  ;;  %s3485_s23 = smov (!%p24_p0, %s26_s23), %s2351_s20 }
   0x8   : > { %s84_s25 = ssub.s32 %s2347_s19, %s3483_s22  ;;  %p96_p3 = por %p95_p2, %p94_p1 }
   0x9   : > { %p28_p4 = scmp.ge.s32.totalorder %s3485_s23, 2  ;;  %p85_p5 = scmp.eq.s32.totalorder %s84_s25, 0 }
   0xa   : > { %p1977_p6 = scmp.ge.s32.totalorder %s2355_s21, 4 }
   0xb   : > { %s3487_s23 = smov (%p28_p4, %s3485_s23), 0 }
   0xc   : > { %s2440_s26 = scalar_select %p85_p5, %s2335_s16, %s87_s24  }
   0xd   : > { %174 = sbr.rel (%p1977_p6) target bundleno = 31 (0x1f), region = 16 }
  0x12   : > { %199 = sbr.rel (!%p96_p3) target bundleno = 31 (0x1f), region = 28  ;;  %s201_s27 = sand.u32 (%p96_p3), 1, %s2335_s16  }
  0x13   : > { %s2189_s28 = sshll.u32 (%p96_p3), %s2347_s19, 3  ;;  %s2229_s29 = smul.u32 (%p96_p3), 72, %s201_s27 }
  0x14   : > { %s206_s6 = scalar_lea.vmem (%p96_p3), %s3473_s2, %s2189_s28 }
  0x15   : > { %v223_v0 = vld [vmem:[%s206_s6] sm:$0xff] (%p96_p3)   ;;  %v227_v1 = vld [vmem:[%s206_s6 + $0x10] sm:$0xff] (%p96_p3)   ;;  %s203_s7 = scalar_lea.vmem (%p96_p3), [#allocation2], %s2229_s29 }
  0x16   : > { %v231_v2 = vld [vmem:[%s206_s6 + $0x20] sm:$0xff] (%p96_p3)   ;;  %224 = vst [vmem:[%s203_s7] sm:$0xff] (%p96_p3), %v223_v0   ;;  %v235_v3 = vld [vmem:[%s206_s6 + $0x30] sm:$0xff] (%p96_p3)  }
  0x17   : > { %228 = vst [vmem:[%s203_s7 + $0x8] sm:$0xff] %v227_v1   ;;  %v239_v4 = vld [vmem:[%s206_s6 + $0x40] sm:$0xff]   ;;  %v243_v5 = vld [vmem:[%s206_s6 + $0x50] sm:$0xff]  }
  0x18   : > { %232 = vst [vmem:[%s203_s7 + $0x10] sm:$0xff] %v231_v2   ;;  %v247_v6 = vld [vmem:[%s206_s6 + $0x60] sm:$0xff]   ;;  %v251_v7 = vld [vmem:[%s206_s6 + $0x70] sm:$0xff]  }
  0x19   : > { %236 = vst [vmem:[%s203_s7 + $0x18] sm:$0xff] %v235_v3   ;;  %v255_v8 = vld [vmem:[%s206_s6 + $0x80] sm:$0xff]  }
  0x1a   : > { %240 = vst [vmem:[%s203_s7 + $0x20] sm:$0xff] %v239_v4  }
  0x1b   : > { %244 = vst [vmem:[%s203_s7 + $0x28] sm:$0xff] %v243_v5  }
  0x1c   : > { %248 = vst [vmem:[%s203_s7 + $0x30] sm:$0xff] %v247_v6  }
  0x1d   : > { %252 = vst [vmem:[%s203_s7 + $0x38] sm:$0xff] %v251_v7  }
  0x1e   : > { %256 = vst [vmem:[%s203_s7 + $0x40] sm:$0xff] %v255_v8  }
  0x1f PF: > { %p1980_p7 = scmp.ge.s32.totalorder %s2355_s21, 1  ;;  %p326_p8 = scmp.lt.s32.totalorder %s2355_s21, 5 }
  0x21   : > { %p327_p9 = pnand %p1980_p7, %p326_p8 }
  0x22   : > { %p383_p10 = scmp.lt.s32.totalorder (!%p327_p9), %s2343_s18, 1  ;;  %s2357_s12 = smov (!%p327_p9), 127  }
  0x23   : > { %330 = sbr.rel (%p327_p9) target bundleno = 818 (0x332), region = 73  ;;  %s2358_s13 = smov (!%p327_p9), 126  }
  0x24   : > { %s2359_s14 = smov (!%p327_p9), 110   ;;  %s2360_s24 = smov (!%p327_p9), 109  }
  0x25   : > { %s333_s25 = sand.u32 (!%p327_p9), 1, %s2331_s15   ;;  %s2361_s28 = smov (!%p327_p9), 108  }
  0x26   : > { %s2230_s27 = smul.u32 (!%p327_p9), 72, %s333_s25  ;;  %s2362_s29 = smov (!%p327_p9), 92  }
  0x27   : > { %s2363_s30 = smov (!%p327_p9), 91   ;;  %s2364_s5 = smov (!%p327_p9), 90  }
  0x28   : > { %s3489_s18 = smov (!%p383_p10, %s2343_s18), 1  ;;  %vm608_vm0 = vcmask 1039360   ;;  %s2776_s15 = scalar_lea.vmem [#allocation2], %s2230_s27  ;;  %vm645_vm1 = vcmask 785408   ;;  %vm845_vm2 = vcmask 1031168   ;;  %vm989_vm3 = vcmask 900096  }
  0x29   : > { %s2231_s8 = smul.u32 192, %s3489_s18  ;;  %vm1133_vm4 = vcmask 891904   ;;  %vm1277_vm5 = vcmask 883712   ;;  %vm1421_vm6 = vcmask 752640   ;;  %vm1565_vm7 = vcmask 744448   ;;  %s1982_s6 = sshll.u32 %s2339_s17, 1 }
  0x2a   : > { %vm1709_vm8 = vcmask 736256   ;;  %p391_p11 = scmp.lt.s32.totalorder %s1982_s6, 3  ;;  %s2233_s10 = smul.u32 12, %s3489_s18 }
  0x2b   : > { %s2458_s11 = scalar_lea.vmem %s3471_s0, %s2231_s8 }
  0x2c   : > { %v2004_v9 = vld [vmem:[%s2458_s11 + $0x8] sm:$0xf]  ;;  %v2210_v10 = vld [vmem:[%s2458_s11 + $0x14] sm:$0xf0]  ;;  %v2012_v11 = vld [vmem:[%s2458_s11 + $0x20] sm:$0xf] }
  0x2d   : > { %v2463_v12 = vor.u32 %v2210_v10, %v2004_v9  ;;  %v2194_v13 = vld [vmem:[%s2458_s11 + $0x2c] sm:$0xf0]  ;;  %v1996_v14 = vld [vmem:[%s2458_s11] sm:$0xf]  ;;  %v2209_v18 = vld [vmem:[%s2458_s11 + $0xc] sm:$0xf] }
  0x2e   : > { %v2191_v15 = vld [vmem:[%s2458_s11 + $0xc] sm:$0xf0]  ;;  %v2468_v16 = vor.u32 %v2194_v13, %v2012_v11  ;;  %v2006_v19 = vld [vmem:[%s2458_s11 + $0x18] sm:$0xf0]  ;;  %v2193_v20 = vld [vmem:[%s2458_s11 + $0x24] sm:$0xf] }
  0x2f   : > { %v2470_v17 = vor.u32 %v2191_v15, %v1996_v14  ;;  %564 = vrot.lane.b32.xlu1 %v2463_v12, %s2357_s12  ;;  %v2014_v21 = vld [vmem:[%s2458_s11 + $0x30] sm:$0xf0]  ;;  %v2190_v22 = vld [vmem:[%s2458_s11 + $0x4] sm:$0xf]  ;;  %v2484_v24 = vor.u32 %v2209_v18, %v2006_v19  ;;  %v2211_v27 = vld [vmem:[%s2458_s11 + $0x2c] sm:$0xf] }
  0x30   : > { %568 = vrot.lane.b32.xlu2 %v2468_v16, %s2357_s12  ;;  %v1998_v23 = vld [vmem:[%s2458_s11 + $0x10] sm:$0xf0]  ;;  %v2486_v25 = vor.u32 %v2193_v20, %v2014_v21  ;;  %v2022_v28 = vld [vmem:[%s2458_s11 + $0x38] sm:$0xf0]  ;;  %v2028_v29 = vld [vmem:[%s2458_s11 + $0x40] sm:$0xf] }
  0x31   : > { %560 = vrot.lane.b32.xlu0 %v2470_v17, %s2357_s12  ;;  %v2488_v26 = vor.u32 %v2190_v22, %v1998_v23  ;;  %v2197_v30 = vld [vmem:[%s2458_s11 + $0x4c] sm:$0xf0]  ;;  %v2020_v31 = vld [vmem:[%s2458_s11 + $0x28] sm:$0xf]  ;;  %v2212_v32 = vld [vmem:[%s2458_s11 + $0x34] sm:$0xf0]  ;;  %v2502_v33 = vor.u32 %v2211_v27, %v2022_v28 }
  0x32   : > { %v2504_v34 = vor.u32 %v2197_v30, %v2028_v29  ;;  %v2506_v35 = vor.u32 %v2212_v32, %v2020_v31  ;;  %v2076_v36 = vld [vmem:[%s2458_s11 + $0xa0] sm:$0xf]  ;;  %v2206_v37 = vld [vmem:[%s2458_s11 + $0xac] sm:$0xf0]  ;;  %v2036_v38 = vld [vmem:[%s2458_s11 + $0x48] sm:$0xf] }
  0x33   : > { %v2214_v39 = vld [vmem:[%s2458_s11 + $0x54] sm:$0xf0]  ;;  %v2213_v40 = vld [vmem:[%s2458_s11 + $0x4c] sm:$0xf]  ;;  %v2515_v41 = vor.u32 %v2206_v37, %v2076_v36  ;;  %v2060_v42 = vld [vmem:[%s2458_s11 + $0x80] sm:$0xf] }
  0x34   : > { %v2203_v43 = vld [vmem:[%s2458_s11 + $0x8c] sm:$0xf0]  ;;  %v2038_v44 = vld [vmem:[%s2458_s11 + $0x58] sm:$0xf0]  ;;  %v2196_v45 = vld [vmem:[%s2458_s11 + $0x44] sm:$0xf]  ;;  %v2527_v47 = vor.u32 %v2214_v39, %v2036_v38 }
  0x35   : > { %v2030_v46 = vld [vmem:[%s2458_s11 + $0x50] sm:$0xf0]  ;;  %749 = vmatpush.bf16.msra.mxu3 %v2515_v41  ;;  %v2529_v48 = vor.u32 %v2203_v43, %v2060_v42  ;;  %v2531_v49 = vor.u32 %v2213_v40, %v2038_v44  ;;  %v2044_v51 = vld [vmem:[%s2458_s11 + $0x60] sm:$0xf]  ;;  %v2200_v52 = vld [vmem:[%s2458_s11 + $0x6c] sm:$0xf0] }
  0x36   : > { %v2533_v50 = vor.u32 %v2196_v45, %v2030_v46  ;;  %v2540_v53 = vor.u32 %v2200_v52, %v2044_v51  ;;  %v2199_v54 = vld [vmem:[%s2458_s11 + $0x64] sm:$0xf]  ;;  %v2046_v55 = vld [vmem:[%s2458_s11 + $0x70] sm:$0xf0]  ;;  %v2052_v56 = vld [vmem:[%s2458_s11 + $0x68] sm:$0xf] }
  0x37   : > { %566 = vrot.lane.b32.xlu1 %v2484_v24, %s2357_s12  ;;  %v2216_v57 = vld [vmem:[%s2458_s11 + $0x74] sm:$0xf0]  ;;  %v2551_v58 = vor.u32 %v2199_v54, %v2046_v55  ;;  %v2202_v60 = vld [vmem:[%s2458_s11 + $0x84] sm:$0xf]  ;;  %v2062_v61 = vld [vmem:[%s2458_s11 + $0x90] sm:$0xf0] }
  0x38   : > { %570 = vrot.lane.b32.xlu2 %v2486_v25, %s2357_s12  ;;  %v2553_v59 = vor.u32 %v2216_v57, %v2052_v56  ;;  %v2215_v62 = vld [vmem:[%s2458_s11 + $0x6c] sm:$0xf]  ;;  %v2054_v63 = vld [vmem:[%s2458_s11 + $0x78] sm:$0xf0]  ;;  %v2567_v0 = vor.u32 %v2202_v60, %v2062_v61  ;;  %v2068_v4 = vld [vmem:[%s2458_s11 + $0x88] sm:$0xf] }
  0x39   : > { %562 = vrot.lane.b32.xlu0 %v2488_v26, %s2357_s12  ;;  %750 = vmatpush.bf16.msra.mxu3 %v2529_v48  ;;  %v2569_v1 = vor.u32 %v2215_v62, %v2054_v63  ;;  %v2217_v2 = vld [vmem:[%s2458_s11 + $0x8c] sm:$0xf]  ;;  %v2070_v3 = vld [vmem:[%s2458_s11 + $0x98] sm:$0xf0]  ;;  %v2218_v5 = vld [vmem:[%s2458_s11 + $0x94] sm:$0xf0] }
  0x3a   : > { %v2582_v6 = vor.u32 %v2217_v2, %v2070_v3  ;;  %v2584_v7 = vor.u32 %v2218_v5, %v2068_v4  ;;  %v2084_v8 = vld [vmem:[%s2458_s11 + $0xa8] sm:$0xf]  ;;  %v2220_v9 = vld [vmem:[%s2458_s11 + $0xb4] sm:$0xf0]  ;;  %v2219_v10 = vld [vmem:[%s2458_s11 + $0xac] sm:$0xf] }
  0x3b   : > { %v2086_v11 = vld [vmem:[%s2458_s11 + $0xb8] sm:$0xf0]  ;;  %v2205_v13 = vld [vmem:[%s2458_s11 + $0xa4] sm:$0xf]  ;;  %v2078_v14 = vld [vmem:[%s2458_s11 + $0xb0] sm:$0xf0]  ;;  %v2598_v15 = vor.u32 %v2220_v9, %v2084_v8 }
  0x3c   : > { %v2600_v18 = vor.u32 %v2219_v10, %v2086_v11  ;;  %v2602_v19 = vor.u32 %v2205_v13, %v2078_v14  ;;  %s3491_s6 = smov (!%p391_p11, %s1982_s6), 3 }
  0x3d   : > { %751 = vmatpush.bf16.msra.mxu3 %v2540_v53  ;;  %s1985_s7 = sshll.u32 %s3491_s6, 3 }
  0x3e   : > { %s404_s9 = scalar_lea.vmem %s3474_s3, %s1985_s7 }
  0x3f   : > { %574 = vrot.lane.b32.xlu1 %v2502_v33, %s2357_s12 }
  0x40   : > { %576 = vrot.lane.b32.xlu2 %v2504_v34, %s2357_s12 }
  0x41   : > { %572 = vrot.lane.b32.xlu0 %v2506_v35, %s2357_s12  ;;  %752 = vmatpush.bf16.msra.mxu3 %v2504_v34 }
  0x45   : > { %753 = vmatpush.bf16.msra.mxu3 %v2468_v16 }
  0x47   : > { %580 = vrot.lane.b32.xlu1 %v2527_v47, %s2357_s12 }
  0x48   : > { %582 = vrot.lane.b32.xlu2 %v2531_v49, %s2357_s12 }
  0x49   : > { %578 = vrot.lane.b32.xlu0 %v2533_v50, %s2357_s12  ;;  %754 = vmatpush.bf16.msra.mxu3 %v2470_v17 }
  0x4f   : > { %586 = vrot.lane.b32.xlu1 %v2551_v58, %s2357_s12 }
  0x50   : > { %588 = vrot.lane.b32.xlu2 %v2553_v59, %s2357_s12 }
  0x51   : > { %584 = vrot.lane.b32.xlu0 %v2540_v53, %s2357_s12 }
  0x57   : > { %592 = vrot.lane.b32.xlu1 %v2529_v48, %s2357_s12 }
  0x58   : > { %594 = vrot.lane.b32.xlu2 %v2567_v0, %s2357_s12 }
  0x59   : > { %590 = vrot.lane.b32.xlu0 %v2569_v1, %s2357_s12 }
  0x5f   : > { %598 = vrot.lane.b32.xlu1 %v2582_v6, %s2357_s12 }
  0x60   : > { %600 = vrot.lane.b32.xlu2 %v2515_v41, %s2357_s12 }
  0x61   : > { %596 = vrot.lane.b32.xlu0 %v2584_v7, %s2357_s12 }
  0x67   : > { %604 = vrot.lane.b32.xlu1 %v2598_v15, %s2357_s12 }
  0x68   : > { %606 = vrot.lane.b32.xlu2 %v2600_v18, %s2357_s12 }
  0x69   : > { %602 = vrot.lane.b32.xlu0 %v2602_v19, %s2357_s12 }
  0x6f   : > { %799 = vrot.lane.b32.xlu1 %v2488_v26, %s2358_s13 }
  0x70   : > { %801 = vrot.lane.b32.xlu2 %v2463_v12, %s2358_s13 }
  0x71   : > { %797 = vrot.lane.b32.xlu0 %v2470_v17, %s2358_s13 }
  0x77   : > { %805 = vrot.lane.b32.xlu1 %v2468_v16, %s2358_s13 }
  0x78   : > { %807 = vrot.lane.b32.xlu2 %v2486_v25, %s2358_s13 }
  0x79   : > { %803 = vrot.lane.b32.xlu0 %v2484_v24, %s2358_s13 }
  0x7f   : > { %811 = vrot.lane.b32.xlu1 %v2502_v33, %s2358_s13 }
  0x80   : > { %813 = vrot.lane.b32.xlu2 %v2504_v34, %s2358_s13 }
  0x81   : > { %809 = vrot.lane.b32.xlu0 %v2506_v35, %s2358_s13 }
  0x87   : > { %817 = vrot.lane.b32.xlu1 %v2527_v47, %s2358_s13 }
  0x88   : > { %819 = vrot.lane.b32.xlu2 %v2531_v49, %s2358_s13 }
  0x89   : > { %815 = vrot.lane.b32.xlu0 %v2533_v50, %s2358_s13 }
  0x8a   : > { %v2622_v20 = vpop.permute.xlu2 %568 }
  0x8f   : > { %823 = vrot.lane.b32.xlu1 %v2551_v58, %s2358_s13 }
  0x90   : > { %825 = vrot.lane.b32.xlu2 %v2553_v59, %s2358_s13 }
  0x91   : > { %821 = vrot.lane.b32.xlu0 %v2540_v53, %s2358_s13 }
  0x92   : > { %v2627_v21 = vpop.permute.xlu2 %570 }
  0x97   : > { %829 = vrot.lane.b32.xlu1 %v2529_v48, %s2358_s13 }
  0x98   : > { %831 = vrot.lane.b32.xlu2 %v2567_v0, %s2358_s13 }
  0x99   : > { %827 = vrot.lane.b32.xlu0 %v2569_v1, %s2358_s13 }
  0x9a   : > { %v2632_v22 = vpop.permute.xlu2 %576 }
  0x9f   : > { %835 = vrot.lane.b32.xlu1 %v2582_v6, %s2358_s13 }
  0xa0   : > { %837 = vrot.lane.b32.xlu2 %v2515_v41, %s2358_s13 }
  0xa1   : > { %833 = vrot.lane.b32.xlu0 %v2584_v7, %s2358_s13  ;;  %v2637_v23 = vpop.permute.xlu1 %564 }
  0xa2   : > { %v2639_v27 = vpop.permute.xlu2 %582 }
  0xa3   : > { %v2641_v28 = vpop.permute.xlu0 %560 }
  0xa7   : > { %841 = vrot.lane.b32.xlu1 %v2598_v15, %s2358_s13 }
  0xa8   : > { %843 = vrot.lane.b32.xlu2 %v2600_v18, %s2358_s13 }
  0xa9   : > { %839 = vrot.lane.b32.xlu0 %v2602_v19, %s2358_s13  ;;  %v2646_v29 = vpop.permute.xlu1 %566 }
  0xaa   : > { %v589_v30 = vpop.permute.xlu2 %588 }
  0xab   : > { %v2648_v31 = vpop.permute.xlu0 %562 }
  0xaf   : > { %943 = vrot.lane.b32.xlu1 %v2488_v26, %s2359_s14 }
  0xb0   : > { %945 = vrot.lane.b32.xlu2 %v2463_v12, %s2359_s14 }
  0xb1   : > { %941 = vrot.lane.b32.xlu0 %v2470_v17, %s2359_s14  ;;  %v2656_v32 = vpop.permute.xlu1 %574 }
  0xb2   : > { %v595_v36 = vpop.permute.xlu2 %594 }
  0xb3   : > { %v2658_v37 = vpop.permute.xlu0 %572 }
  0xb7   : > { %949 = vrot.lane.b32.xlu1 %v2468_v16, %s2359_s14 }
  0xb8   : > { %951 = vrot.lane.b32.xlu2 %v2486_v25, %s2359_s14 }
  0xb9   : > { %947 = vrot.lane.b32.xlu0 %v2484_v24, %s2359_s14  ;;  %v581_v38 = vpop.permute.xlu1 %580 }
  0xba   : > { %v601_v39 = vpop.permute.xlu2 %600  ;;  %v617_v14 = vsel %vm608_vm0, %v581_v38, %v2639_v27 }
  0xbb   : > { %v579_v40 = vpop.permute.xlu0 %578 }
  0xbf   : > { %955 = vrot.lane.b32.xlu1 %v2502_v33, %s2359_s14 }
  0xc0   : > { %957 = vrot.lane.b32.xlu2 %v2504_v34, %s2359_s14 }
  0xc1   : > { %953 = vrot.lane.b32.xlu0 %v2506_v35, %s2359_s14  ;;  %v587_v42 = vpop.permute.xlu1 %586 }
  0xc2   : > { %v607_v43 = vpop.permute.xlu2 %606  ;;  %v619_v13 = vsel %vm608_vm0, %v587_v42, %v589_v30 }
  0xc3   : > { %v585_v44 = vpop.permute.xlu0 %584 }
  0xc4   : > { %v618_v11 = vsel %vm608_vm0, %v585_v44, %v587_v42  ;;  %v2221_v44 = vld [vmem:[%s2776_s15 + $0x8] sm:$0xff] }
  0xc7   : > { %961 = vrot.lane.b32.xlu1 %v2527_v47, %s2359_s14 }
  0xc8   : > { %963 = vrot.lane.b32.xlu2 %v2531_v49, %s2359_s14 }
  0xc9   : > { %959 = vrot.lane.b32.xlu0 %v2533_v50, %s2359_s14  ;;  %v593_v45 = vpop.permute.xlu1 %592 }
  0xca   : > { %v2678_v46 = vpop.permute.xlu2 %801  ;;  %v621_v3 = vsel %vm608_vm0, %v593_v45, %v595_v36 }
  0xcb   : > { %v591_v51 = vpop.permute.xlu0 %590 }
  0xcc   : > { %v620_v10 = vsel %vm608_vm0, %v589_v30, %v591_v51  ;;  %v616_v30 = vsel %vm608_vm0, %v579_v40, %v581_v38  ;;  %v613_v38 = vsel %vm608_vm0, %v2627_v21, %v2658_v37 }
  0xcf   : > { %967 = vrot.lane.b32.xlu1 %v2551_v58, %s2359_s14 }
  0xd0   : > { %969 = vrot.lane.b32.xlu2 %v2553_v59, %s2359_s14 }
  0xd1   : > { %965 = vrot.lane.b32.xlu0 %v2540_v53, %s2359_s14  ;;  %v599_v52 = vpop.permute.xlu1 %598 }
  0xd2   : > { %v2686_v54 = vpop.permute.xlu2 %807 }
  0xd3   : > { %v597_v55 = vpop.permute.xlu0 %596 }
  0xd4   : > { %v623_v2 = vsel %vm608_vm0, %v597_v55, %v599_v52  ;;  %v622_v4 = vsel %vm608_vm0, %v595_v36, %v597_v55  ;;  %v615_v36 = vsel %vm608_vm0, %v2632_v22, %v579_v40  ;;  %v612_v22 = vsel %vm608_vm0, %v2622_v20, %v2627_v21 }
  0xd5   : > { %v611_v40 = vsel %vm608_vm0, %v2637_v23, %v2646_v29  ;;  %v609_v20 = vsel %vm608_vm0, %v2641_v28, %v2648_v31  ;;  %v610_v21 = vsel %vm608_vm0, %v2648_v31, %v2637_v23 }
  0xd7   : > { %973 = vrot.lane.b32.xlu1 %v2529_v48, %s2359_s14 }
  0xd8   : > { %975 = vrot.lane.b32.xlu2 %v2567_v0, %s2359_s14 }
  0xd9   : > { %971 = vrot.lane.b32.xlu0 %v2569_v1, %s2359_s14  ;;  %v605_v56 = vpop.permute.xlu1 %604 }
  0xda   : > { %v2694_v57 = vpop.permute.xlu2 %813  ;;  %v626_v61 = vsel %vm608_vm0, %v605_v56, %v607_v43  ;;  %v614_v43 = vsel %vm608_vm0, %v2658_v37, %v2656_v32 }
  0xdb   : > { %v603_v60 = vpop.permute.xlu0 %602  ;;  %679 = vmatpush.bf16.msra.mxu2 %v626_v61 }
  0xdc   : > { %v624_v62 = vsel %vm608_vm0, %v601_v39, %v603_v60  ;;  %v625_v63 = vsel %vm608_vm0, %v603_v60, %v605_v56 }
  0xdd   : > { %651 = vmatpush.bf16.msra.mxu0 %v624_v62  ;;  %665 = vmatpush.bf16.msra.mxu1 %v625_v63 }
  0xdf   : > { %979 = vrot.lane.b32.xlu1 %v2582_v6, %s2359_s14  ;;  %680 = vmatpush.bf16.msra.mxu2 %v623_v2 }
  0xe0   : > { %981 = vrot.lane.b32.xlu2 %v2515_v41, %s2359_s14 }
  0xe1   : > { %977 = vrot.lane.b32.xlu0 %v2584_v7, %s2359_s14  ;;  %652 = vmatpush.bf16.msra.mxu0 %v621_v3  ;;  %v2708_v5 = vpop.permute.xlu1 %799 }
  0xe2   : > { %666 = vmatpush.bf16.msra.mxu1 %v622_v4  ;;  %v2710_v8 = vpop.permute.xlu2 %819 }
  0xe3   : > { %v2712_v9 = vpop.permute.xlu0 %797  ;;  %681 = vmatpush.bf16.msra.mxu2 %v620_v10 }
  0xe5   : > { %653 = vmatpush.bf16.msra.mxu0 %v618_v11 }
  0xe6   : > { %667 = vmatpush.bf16.msra.mxu1 %v619_v13 }
  0xe7   : > { %985 = vrot.lane.b32.xlu1 %v2598_v15, %s2359_s14  ;;  %682 = vmatpush.bf16.msra.mxu2 %v617_v14 }
  0xe8   : > { %987 = vrot.lane.b32.xlu2 %v2600_v18, %s2359_s14 }
  0xe9   : > { %983 = vrot.lane.b32.xlu0 %v2602_v19, %s2359_s14  ;;  %654 = vmatpush.bf16.msra.mxu0 %v615_v36  ;;  %v2728_v39 = vpop.permute.xlu1 %805 }
  0xea   : > { %668 = vmatpush.bf16.msra.mxu1 %v616_v30  ;;  %v2730_v27 = vpop.permute.xlu2 %825 }
  0xeb   : > { %v2732_v42 = vpop.permute.xlu0 %803  ;;  %683 = vmatpush.bf16.msra.mxu2 %v614_v43 }
  0xed   : > { %655 = vmatpush.bf16.msra.mxu0 %v612_v22 }
  0xee   : > { %669 = vmatpush.bf16.msra.mxu1 %v613_v38 }
  0xef   : > { %1087 = vrot.lane.b32.xlu1 %v2488_v26, %s2360_s24  ;;  %684 = vmatpush.bf16.msra.mxu2 %v611_v40 }
  0xf0   : > { %1089 = vrot.lane.b32.xlu2 %v2463_v12, %s2360_s24 }
  0xf1   : > { %1085 = vrot.lane.b32.xlu0 %v2470_v17, %s2360_s24  ;;  %656 = vmatpush.bf16.msra.mxu0 %v609_v20  ;;  %v2759_v29 = vpop.permute.xlu1 %811  ;;  %v2119_v20 = vld [vmem:[%s2458_s11 + $0xa8] sm:$0xf] }
  0xf2   : > { %670 = vmatpush.bf16.msra.mxu1 %v610_v21  ;;  %v832_v32 = vpop.permute.xlu2 %831  ;;  %2092 = vmatmul.msk.bf16.vlgmr.msra.gmra.mxu2 %vm645_vm1, %v2221_v44  ;;  %v2207_v21 = vld [vmem:[%s2458_s11 + $0xb4] sm:$0xf0] }
  0xf3   : > { %v2761_v37 = vpop.permute.xlu0 %809 }
  0xf4   : > { %2090 = vmatmul.msk.bf16.vlgmr.msra.gmra.mxu0 %vm645_vm1, %v2221_v44 }
  0xf5   : > { %763 = vmatpush.bf16.msrb.mxu0 %v2602_v19  ;;  %2091 = vmatmul.msk.bf16.vlgmr.msra.gmra.mxu1 %vm645_vm1, %v2221_v44  ;;  %v2120_v44 = vor.u32 %v2207_v21, %v2119_v20  ;;  %v2192_v21 = vld [vmem:[%s2458_s11 + $0x14] sm:$0xf0] }
  0xf7   : > { %1093 = vrot.lane.b32.xlu1 %v2468_v16, %s2360_s24  ;;  %777 = vmatpush.bf16.msrb.mxu1 %v2120_v44 }
  0xf8   : > { %1095 = vrot.lane.b32.xlu2 %v2486_v25, %s2360_s24 }
  0xf9   : > { %764 = vmatpush.bf16.msrb.mxu0 %v2567_v0  ;;  %1091 = vrot.lane.b32.xlu0 %v2484_v24, %s2360_s24  ;;  %v2771_v23 = vpop.permute.xlu1 %817 }
  0xfa   : > { %v838_v28 = vpop.permute.xlu2 %837 }
  0xfb   : > { %v2773_v31 = vpop.permute.xlu0 %815 }
  0xfd   : > { %765 = vmatpush.bf16.msrb.mxu0 %v2551_v58 }
  0xff   : > { %1099 = vrot.lane.b32.xlu1 %v2502_v33, %s2360_s24 }
 0x100   : > { %1101 = vrot.lane.b32.xlu2 %v2504_v34, %s2360_s24 }
 0x101   : > { %766 = vmatpush.bf16.msrb.mxu0 %v2533_v50  ;;  %1097 = vrot.lane.b32.xlu0 %v2506_v35, %s2360_s24  ;;  %v824_v45 = vpop.permute.xlu1 %823 }
 0x102   : > { %v844_v51 = vpop.permute.xlu2 %843 }
 0x103   : > { %v822_v52 = vpop.permute.xlu0 %821 }
 0x105   : > { %767 = vmatpush.bf16.msrb.mxu0 %v2486_v25 }
 0x107   : > { %1105 = vrot.lane.b32.xlu1 %v2527_v47, %s2360_s24 }
 0x108   : > { %1107 = vrot.lane.b32.xlu2 %v2531_v49, %s2360_s24 }
 0x109   : > { %768 = vmatpush.bf16.msrb.mxu0 %v2488_v26  ;;  %1103 = vrot.lane.b32.xlu0 %v2533_v50, %s2360_s24  ;;  %v830_v55 = vpop.permute.xlu1 %829 }
 0x10a   : > { %v2797_v56 = vpop.permute.xlu2 %945  ;;  %v858_v36 = vsel %vm845_vm2, %v830_v55, %v832_v32  ;;  %v856_v55 = vsel %vm845_vm2, %v824_v45, %v2730_v27 }
 0x10b   : > { %v828_v60 = vpop.permute.xlu0 %827 }
 0x10c   : > { %v857_v40 = vsel %vm845_vm2, %v2730_v27, %v828_v60  ;;  %v854_v60 = vsel %vm845_vm2, %v2771_v23, %v2710_v8  ;;  %v852_v27 = vsel %vm845_vm2, %v2694_v57, %v2773_v31  ;;  %v853_v8 = vsel %vm845_vm2, %v2773_v31, %v2771_v23  ;;  %v2201_v23 = vld [vmem:[%s2458_s11 + $0x74] sm:$0xf0] }
 0x10f   : > { %1111 = vrot.lane.b32.xlu1 %v2551_v58, %s2360_s24 }
 0x110   : > { %1113 = vrot.lane.b32.xlu2 %v2553_v59, %s2360_s24 }
 0x111   : > { %1109 = vrot.lane.b32.xlu0 %v2540_v53, %s2360_s24  ;;  %v836_v61 = vpop.permute.xlu1 %835 }
 0x112   : > { %v2805_v62 = vpop.permute.xlu2 %951 }
 0x113   : > { %v834_v63 = vpop.permute.xlu0 %833 }
 0x114   : > { %v860_v14 = vsel %vm845_vm2, %v834_v63, %v836_v61  ;;  %v859_v30 = vsel %vm845_vm2, %v832_v32, %v834_v63  ;;  %v2204_v61 = vld [vmem:[%s2458_s11 + $0x94] sm:$0xf0] }
 0x117   : > { %1117 = vrot.lane.b32.xlu1 %v2529_v48, %s2360_s24 }
 0x118   : > { %1119 = vrot.lane.b32.xlu2 %v2567_v0, %s2360_s24 }
 0x119   : > { %1115 = vrot.lane.b32.xlu0 %v2569_v1, %s2360_s24  ;;  %v842_v2 = vpop.permute.xlu1 %841 }
 0x11a   : > { %v2813_v3 = vpop.permute.xlu2 %957  ;;  %v863_v10 = vsel %vm845_vm2, %v842_v2, %v844_v51  ;;  %v855_v51 = vsel %vm845_vm2, %v822_v52, %v824_v45  ;;  %v2115_v52 = vld [vmem:[%s2458_s11 + $0x88] sm:$0xf] }
 0x11b   : > { %v840_v4 = vpop.permute.xlu0 %839  ;;  %915 = vmatpush.bf16.msra.mxu0 %v863_v10  ;;  %v2116_v10 = vor.u32 %v2204_v61, %v2115_v52 }
 0x11c   : > { %v861_v11 = vsel %vm845_vm2, %v838_v28, %v840_v4  ;;  %v862_v13 = vsel %vm845_vm2, %v840_v4, %v842_v2  ;;  %v851_v4 = vsel %vm845_vm2, %v2761_v37, %v2759_v29  ;;  %v850_v29 = vsel %vm845_vm2, %v2686_v54, %v2761_v37  ;;  %v2107_v37 = vld [vmem:[%s2458_s11 + $0x48] sm:$0xf] }
 0x11d   : > { %887 = vmatpush.bf16.msrb.mxu2 %v861_v11  ;;  %901 = vmatpush.bf16.msrb.mxu3 %v862_v13  ;;  %v2111_v11 = vld [vmem:[%s2458_s11 + $0x68] sm:$0xf]  ;;  %v849_v13 = vsel %vm845_vm2, %v2728_v39, %v2686_v54  ;;  %v846_v54 = vsel %vm845_vm2, %v2712_v9, %v2708_v5  ;;  %v847_v39 = vsel %vm845_vm2, %v2708_v5, %v2678_v46  ;;  %v2195_v9 = vld [vmem:[%s2458_s11 + $0x34] sm:$0xf0] }
 0x11e   : > { %778 = vmatpush.bf16.msrb.mxu1 %v2116_v10  ;;  %v2099_v5 = vld [vmem:[%s2458_s11 + $0x8] sm:$0xf] }
 0x11f   : > { %1123 = vrot.lane.b32.xlu1 %v2582_v6, %s2360_s24  ;;  %916 = vmatpush.bf16.msra.mxu0 %v860_v14  ;;  %v848_v14 = vsel %vm845_vm2, %v2678_v46, %v2732_v42 }
 0x120   : > { %1125 = vrot.lane.b32.xlu2 %v2515_v41, %s2360_s24 }
 0x121   : > { %1121 = vrot.lane.b32.xlu0 %v2584_v7, %s2360_s24  ;;  %888 = vmatpush.bf16.msrb.mxu2 %v858_v36  ;;  %v944_v43 = vpop.permute.xlu1 %943  ;;  %v2112_v36 = vor.u32 %v2201_v23, %v2111_v11 }
 0x122   : > { %902 = vmatpush.bf16.msrb.mxu3 %v859_v30  ;;  %v2827_v22 = vpop.permute.xlu2 %963  ;;  %v2835_v28 = vsel %vm989_vm3, %v944_v43, %v2797_v56 }
 0x123   : > { %v942_v38 = vpop.permute.xlu0 %941  ;;  %917 = vmatpush.bf16.msra.mxu0 %v857_v40  ;;  %779 = vmatpush.bf16.msrb.mxu1 %v2112_v36  ;;  %v2103_v40 = vld [vmem:[%s2458_s11 + $0x28] sm:$0xf] }
 0x124   : > { %v2838_v32 = vsel %vm989_vm3, %v942_v38, %v944_v43  ;;  %v2104_v20 = vor.u32 %v2195_v9, %v2103_v40 }
 0x125   : > { %889 = vmatpush.bf16.msrb.mxu2 %v855_v51 }
 0x126   : > { %903 = vmatpush.bf16.msrb.mxu3 %v856_v55  ;;  %v2100_v55 = vor.u32 %v2192_v21, %v2099_v5 }
 0x127   : > { %1129 = vrot.lane.b32.xlu1 %v2598_v15, %s2360_s24  ;;  %918 = vmatpush.bf16.msra.mxu0 %v854_v60  ;;  %v2208_v60 = vld [vmem:[%s2776_s15] sm:$0xff] }
 0x128   : > { %1131 = vrot.lane.b32.xlu2 %v2600_v18, %s2360_s24  ;;  %2121 = vmatmul.msk.bf16.vlgmr.msra.gmra.mxu3 %vm645_vm1, %v2208_v60 }
 0x129   : > { %1127 = vrot.lane.b32.xlu0 %v2602_v19, %s2360_s24  ;;  %890 = vmatpush.bf16.msrb.mxu2 %v852_v27  ;;  %v950_v45 = vpop.permute.xlu1 %949 }
 0x12a   : > { %904 = vmatpush.bf16.msrb.mxu3 %v853_v8  ;;  %v2860_v63 = vpop.permute.xlu2 %969  ;;  %v2867_v57 = vsel %vm989_vm3, %v950_v45, %v2805_v62  ;;  %2122 = vmatmul.msk.bf16.vlgmr.msrb.gmra.mxu0 %vm645_vm1, %v2208_v60 }
 0x12b   : > { %v948_v2 = vpop.permute.xlu0 %947  ;;  %919 = vmatpush.bf16.msra.mxu0 %v851_v4 }
 0x12c   : > { %v2873_v31 = vsel %vm989_vm3, %v2797_v56, %v948_v2  ;;  %v2198_v56 = vld [vmem:[%s2458_s11 + $0x54] sm:$0xf0]  ;;  %s2232_s11 = smul.u32 3, %s3491_s6 }
 0x12d   : > { %891 = vmatpush.bf16.msrb.mxu2 %v849_v13  ;;  %v2108_v38 = vor.u32 %v2198_v56, %v2107_v37 }
 0x12e   : > { %905 = vmatpush.bf16.msrb.mxu3 %v850_v29  ;;  %s395_s12 = sadd.s32 %s2233_s10, %s2232_s11 }
 0x12f   : > { %1231 = vrot.lane.b32.xlu1 %v2488_v26, %s2361_s28  ;;  %920 = vmatpush.bf16.msra.mxu0 %v848_v14  ;;  %s1983_s13 = sshll.u32 %s395_s12, 3 }
 0x130   : > { %1233 = vrot.lane.b32.xlu2 %v2463_v12, %s2361_s28  ;;  %780 = vmatpush.bf16.msrb.mxu1 %v2108_v38  ;;  %s3429_s24 = scalar_lea.vmem %s3472_s1, %s1983_s13 }
 0x131   : > { %1229 = vrot.lane.b32.xlu0 %v2470_v17, %s2361_s28  ;;  %892 = vmatpush.bf16.msrb.mxu2 %v846_v54  ;;  %v2896_v42 = vpop.permute.xlu1 %955 }
 0x132   : > { %906 = vmatpush.bf16.msrb.mxu3 %v847_v39  ;;  %v976_v30 = vpop.permute.xlu2 %975 }
 0x133   : > { %v2900_v43 = vpop.permute.xlu0 %953 }
 0x134   : > { %781 = vmatpush.bf16.msrb.mxu1 %v2104_v20 }
 0x137   : > { %1237 = vrot.lane.b32.xlu1 %v2468_v16, %s2361_s28 }
 0x138   : > { %1239 = vrot.lane.b32.xlu2 %v2486_v25, %s2361_s28  ;;  %782 = vmatpush.bf16.msrb.mxu1 %v2100_v55 }
 0x139   : > { %1235 = vrot.lane.b32.xlu0 %v2484_v24, %s2361_s28  ;;  %v2910_v46 = vpop.permute.xlu1 %961 }
 0x13a   : > { %v982_v44 = vpop.permute.xlu2 %981  ;;  %v998_v55 = vsel %vm989_vm3, %v2910_v46, %v2827_v22 }
 0x13b   : > { %v2914_v51 = vpop.permute.xlu0 %959  ;;  %2123 = vmatmul.msk.bf16.vlgmr.msrb.gmra.mxu1 %vm645_vm1, %v2208_v60 }
 0x13c   : > { %v997_v60 = vsel %vm989_vm3, %v2914_v51, %v2910_v46  ;;  %v994_v46 = vsel %vm989_vm3, %v2805_v62, %v2900_v43 }
 0x13f   : > { %1243 = vrot.lane.b32.xlu1 %v2502_v33, %s2361_s28 }
 0x140   : > { %1245 = vrot.lane.b32.xlu2 %v2504_v34, %s2361_s28 }
 0x141   : > { %1241 = vrot.lane.b32.xlu0 %v2506_v35, %s2361_s28  ;;  %v968_v27 = vpop.permute.xlu1 %967 }
 0x142   : > { %v988_v8 = vpop.permute.xlu2 %987 }
 0x143   : > { %v966_v45 = vpop.permute.xlu0 %965 }
 0x147   : > { %1249 = vrot.lane.b32.xlu1 %v2527_v47, %s2361_s28 }
 0x148   : > { %1251 = vrot.lane.b32.xlu2 %v2531_v49, %s2361_s28 }
 0x149   : > { %1247 = vrot.lane.b32.xlu0 %v2533_v50, %s2361_s28  ;;  %v974_v52 = vpop.permute.xlu1 %973 }
 0x14a   : > { %v1090_v61 = vpop.permute.xlu2 %1089  ;;  %v1002_v37 = vsel %vm989_vm3, %v974_v52, %v976_v30 }
 0x14b   : > { %v972_v2 = vpop.permute.xlu0 %971 }
 0x14c   : > { %v1001_v20 = vsel %vm989_vm3, %v2860_v63, %v972_v2 }
 0x14f   : > { %1255 = vrot.lane.b32.xlu1 %v2551_v58, %s2361_s28 }
 0x150   : > { %1257 = vrot.lane.b32.xlu2 %v2553_v59, %s2361_s28 }
 0x151   : > { %1253 = vrot.lane.b32.xlu0 %v2540_v53, %s2361_s28  ;;  %v980_v4 = vpop.permute.xlu1 %979 }
 0x152   : > { %v2938_v10 = vpop.permute.xlu2 %1095 }
 0x153   : > { %v978_v11 = vpop.permute.xlu0 %977 }
 0x154   : > { %v1004_v39 = vsel %vm989_vm3, %v978_v11, %v980_v4  ;;  %v1003_v56 = vsel %vm989_vm3, %v976_v30, %v978_v11  ;;  %v1000_v30 = vsel %vm989_vm3, %v968_v27, %v2860_v63  ;;  %v996_v63 = vsel %vm989_vm3, %v2813_v3, %v2914_v51 }
 0x157   : > { %1261 = vrot.lane.b32.xlu1 %v2529_v48, %s2361_s28 }
 0x158   : > { %1263 = vrot.lane.b32.xlu2 %v2567_v0, %s2361_s28 }
 0x159   : > { %1259 = vrot.lane.b32.xlu0 %v2569_v1, %s2361_s28  ;;  %v986_v23 = vpop.permute.xlu1 %985 }
 0x15a   : > { %v2946_v13 = vpop.permute.xlu2 %1101  ;;  %v1007_v29 = vsel %vm989_vm3, %v986_v23, %v988_v8 }
 0x15b   : > { %v984_v14 = vpop.permute.xlu0 %983  ;;  %1059 = vmatpush.bf16.msra.mxu3 %v1007_v29 }
 0x15c   : > { %v1005_v36 = vsel %vm989_vm3, %v982_v44, %v984_v14  ;;  %v1006_v54 = vsel %vm989_vm3, %v984_v14, %v986_v23  ;;  %v999_v44 = vsel %vm989_vm3, %v966_v45, %v968_v27  ;;  %v995_v45 = vsel %vm989_vm3, %v2900_v43, %v2896_v42 }
 0x15d   : > { %1031 = vmatpush.bf16.msra.mxu1 %v1005_v36  ;;  %1045 = vmatpush.bf16.msra.mxu2 %v1006_v54 }
 0x15f   : > { %1269 = vrot.lane.b32.xlu1 %v2515_v41, %s2361_s28  ;;  %1060 = vmatpush.bf16.msra.mxu3 %v1004_v39 }
 0x160   : > { %1271 = vrot.lane.b32.xlu2 %v2602_v19, %s2361_s28 }
 0x161   : > { %1265 = vrot.lane.b32.xlu0 %v2584_v7, %s2361_s28  ;;  %1032 = vmatpush.bf16.msra.mxu1 %v1002_v37  ;;  %v1088_v38 = vpop.permute.xlu1 %1087 }
 0x162   : > { %1046 = vmatpush.bf16.msra.mxu2 %v1003_v56  ;;  %v2960_v40 = vpop.permute.xlu2 %1107  ;;  %v2965_v5 = vsel %vm1133_vm4, %v1088_v38, %v1090_v61 }
 0x163   : > { %v1086_v9 = vpop.permute.xlu0 %1085  ;;  %1061 = vmatpush.bf16.msra.mxu3 %v1001_v20 }
 0x164   : > { %v2968_v21 = vsel %vm1133_vm4, %v1086_v9, %v1088_v38 }
 0x165   : > { %1033 = vmatpush.bf16.msra.mxu1 %v999_v44 }
 0x166   : > { %1047 = vmatpush.bf16.msra.mxu2 %v1000_v30 }
 0x167   : > { %1415 = vrot.lane.b32.xlu1 %v2602_v19, %s2362_s29  ;;  %1062 = vmatpush.bf16.msra.mxu3 %v998_v55 }
 0x168   : > { %1405 = vrot.lane.b32.xlu2 %v2529_v48, %s2362_s29 }
 0x169   : > { %1413 = vrot.lane.b32.xlu0 %v2515_v41, %s2362_s29  ;;  %1034 = vmatpush.bf16.msra.mxu1 %v996_v63  ;;  %v1094_v22 = vpop.permute.xlu1 %1093 }
 0x16a   : > { %1048 = vmatpush.bf16.msra.mxu2 %v997_v60  ;;  %v2988_v27 = vpop.permute.xlu2 %1113  ;;  %v2995_v52 = vsel %vm1133_vm4, %v1094_v22, %v2938_v10 }
 0x16b   : > { %v1092_v8 = vpop.permute.xlu0 %1091  ;;  %1063 = vmatpush.bf16.msra.mxu3 %v995_v45 }
 0x16c   : > { %v2998_v3 = vsel %vm1133_vm4, %v1090_v61, %v1092_v8 }
 0x16d   : > { %1035 = vmatpush.bf16.msra.mxu1 %v2867_v57 }
 0x16e   : > { %1049 = vmatpush.bf16.msra.mxu2 %v994_v46 }
 0x16f   : > { %1273 = vrot.lane.b32.xlu1 %v2598_v15, %s2361_s28  ;;  %1064 = vmatpush.bf16.msra.mxu3 %v2873_v31 }
 0x170   : > { %1275 = vrot.lane.b32.xlu2 %v2600_v18, %s2361_s28 }
 0x171   : > { %1407 = vrot.lane.b32.xlu0 %v2567_v0, %s2362_s29  ;;  %1036 = vmatpush.bf16.msra.mxu1 %v2838_v32  ;;  %v3013_v62 = vpop.permute.xlu1 %1099 }
 0x172   : > { %1050 = vmatpush.bf16.msra.mxu2 %v2835_v28  ;;  %v1120_v57 = vpop.permute.xlu2 %1119  ;;  %v2222_v28 = vld [vmem:[%s2776_s15 + $0x10] sm:$0xff] }
 0x173   : > { %v3015_v42 = vpop.permute.xlu0 %1097  ;;  %2130 = vmatmul.msk.bf16.vlgmr.msrb.gmra.mxu2 %vm645_vm1, %v2222_v28  ;;  %2131 = vmatmul.msk.bf16.vlgmr.msrb.gmra.mxu3 %vm645_vm1, %v2222_v28 }
 0x174   : > { %2132 = vmatmul.msk.bf16.vlgmr.msra.gmra.mxu0 %vm645_vm1, %v2222_v28 }
 0x177   : > { %1399 = vrot.lane.b32.xlu1 %v2551_v58, %s2362_s29 }
 0x178   : > { %1267 = vrot.lane.b32.xlu2 %v2582_v6, %s2361_s28 }
 0x179   : > { %1397 = vrot.lane.b32.xlu0 %v2540_v53, %s2362_s29  ;;  %v3023_v31 = vpop.permute.xlu1 %1105 }
 0x17a   : > { %v1126_v43 = vpop.permute.xlu2 %1125 }
 0x17b   : > { %v3025_v32 = vpop.permute.xlu0 %1103 }
 0x17c   : > { %v1141_v28 = vsel %vm1133_vm4, %v3025_v32, %v3023_v31 }
 0x17f   : > { %1391 = vrot.lane.b32.xlu1 %v2533_v50, %s2362_s29 }
 0x180   : > { %1417 = vrot.lane.b32.xlu2 %v2598_v15, %s2362_s29 }
 0x181   : > { %1389 = vrot.lane.b32.xlu0 %v2504_v34, %s2362_s29  ;;  %v1112_v51 = vpop.permute.xlu1 %1111 }
 0x182   : > { %v1132_v61 = vpop.permute.xlu2 %1131 }
 0x183   : > { %v1110_v2 = vpop.permute.xlu0 %1109 }
 0x184   : > { %v1143_v46 = vsel %vm1133_vm4, %v1110_v2, %v1112_v51  ;;  %v1139_v2 = vsel %vm1133_vm4, %v3015_v42, %v3013_v62 }
 0x187   : > { %1383 = vrot.lane.b32.xlu1 %v2486_v25, %s2362_s29 }
 0x188   : > { %1559 = vrot.lane.b32.xlu2 %v2602_v19, %s2363_s30 }
 0x189   : > { %1381 = vrot.lane.b32.xlu0 %v2468_v16, %s2362_s29  ;;  %v1118_v4 = vpop.permute.xlu1 %1117 }
 0x18a   : > { %v1234_v11 = vpop.permute.xlu2 %1233  ;;  %v1146_v44 = vsel %vm1133_vm4, %v1118_v4, %v1120_v57 }
 0x18b   : > { %v1116_v23 = vpop.permute.xlu0 %1115 }
 0x18c   : > { %v1145_v22 = vsel %vm1133_vm4, %v2988_v27, %v1116_v23 }
 0x18f   : > { %1409 = vrot.lane.b32.xlu1 %v2584_v7, %s2362_s29 }
 0x190   : > { %1373 = vrot.lane.b32.xlu2 %v2470_v17, %s2362_s29 }
 0x191   : > { %1561 = vrot.lane.b32.xlu0 %v2598_v15, %s2363_s30  ;;  %v1124_v29 = vpop.permute.xlu1 %1123 }
 0x192   : > { %v3049_v14 = vpop.permute.xlu2 %1239 }
 0x193   : > { %v1122_v36 = vpop.permute.xlu0 %1121 }
 0x194   : > { %v1148_v20 = vsel %vm1133_vm4, %v1122_v36, %v1124_v29  ;;  %v1147_v30 = vsel %vm1133_vm4, %v1120_v57, %v1122_v36  ;;  %v1144_v57 = vsel %vm1133_vm4, %v1112_v51, %v2988_v27  ;;  %v1140_v27 = vsel %vm1133_vm4, %v2946_v13, %v3025_v32  ;;  %v2223_v32 = vld [vmem:[%s2776_s15 + $0x18] sm:$0xff] }
 0x195   : > { %v1138_v13 = vsel %vm1133_vm4, %v2938_v10, %v3015_v42  ;;  %2140 = vmatmul.msk.bf16.vlgmr.msra.gmra.mxu2 %vm645_vm1, %v2223_v32  ;;  %2139 = vmatmul.msk.bf16.vlgmr.msra.gmra.mxu1 %vm645_vm1, %v2223_v32 }
 0x196   : > { %2141 = vmatmul.msk.bf16.vlgmr.msra.gmra.mxu3 %vm645_vm1, %v2223_v32 }
 0x197   : > { %1551 = vrot.lane.b32.xlu1 %v2567_v0, %s2363_s30 }
 0x198   : > { %1553 = vrot.lane.b32.xlu2 %v2584_v7, %s2363_s30 }
 0x199   : > { %1375 = vrot.lane.b32.xlu0 %v2488_v26, %s2362_s29  ;;  %v1130_v54 = vpop.permute.xlu1 %1129 }
 0x19a   : > { %v3057_v39 = vpop.permute.xlu2 %1245  ;;  %v1151_v37 = vsel %vm1133_vm4, %v1130_v54, %v1132_v61 }
 0x19b   : > { %v1128_v56 = vpop.permute.xlu0 %1127  ;;  %1203 = vmatpush.bf16.msrb.mxu2 %v1151_v37 }
 0x19c   : > { %v1149_v38 = vsel %vm1133_vm4, %v1126_v43, %v1128_v56  ;;  %v1150_v9 = vsel %vm1133_vm4, %v1128_v56, %v1130_v54  ;;  %v1142_v43 = vsel %vm1133_vm4, %v3023_v31, %v2960_v40 }
 0x19d   : > { %1175 = vmatpush.bf16.msrb.mxu0 %v1149_v38  ;;  %1189 = vmatpush.bf16.msrb.mxu1 %v1150_v9 }
 0x19f   : > { %1419 = vrot.lane.b32.xlu1 %v2600_v18, %s2362_s29  ;;  %1204 = vmatpush.bf16.msrb.mxu2 %v1148_v20 }
 0x1a0   : > { %1557 = vrot.lane.b32.xlu2 %v2515_v41, %s2363_s30 }
 0x1a1   : > { %1401 = vrot.lane.b32.xlu0 %v2553_v59, %s2362_s29  ;;  %1176 = vmatpush.bf16.msrb.mxu0 %v1146_v44  ;;  %v1232_v55 = vpop.permute.xlu1 %1231 }
 0x1a2   : > { %1190 = vmatpush.bf16.msrb.mxu1 %v1147_v30  ;;  %v3071_v63 = vpop.permute.xlu2 %1251  ;;  %v3076_v8 = vsel %vm1277_vm5, %v1232_v55, %v1234_v11 }
 0x1a3   : > { %v1230_v60 = vpop.permute.xlu0 %1229  ;;  %1205 = vmatpush.bf16.msrb.mxu2 %v1145_v22 }
 0x1a4   : > { %v3079_v45 = vsel %vm1277_vm5, %v1230_v60, %v1232_v55 }
 0x1a5   : > { %1177 = vmatpush.bf16.msrb.mxu0 %v1143_v46  ;;  %v2224_v46 = vld [vmem:[%s2776_s15 + $0x20] sm:$0xff] }
 0x1a6   : > { %1191 = vmatpush.bf16.msrb.mxu1 %v1144_v57 }
 0x1a7   : > { %1545 = vrot.lane.b32.xlu1 %v2553_v59, %s2363_s30  ;;  %1206 = vmatpush.bf16.msrb.mxu2 %v1142_v43 }
 0x1a8   : > { %1393 = vrot.lane.b32.xlu2 %v2527_v47, %s2362_s29 }
 0x1a9   : > { %1543 = vrot.lane.b32.xlu0 %v2551_v58, %s2363_s30  ;;  %1178 = vmatpush.bf16.msrb.mxu0 %v1140_v27  ;;  %v3099_v40 = vpop.permute.xlu1 %1237 }
 0x1aa   : > { %1192 = vmatpush.bf16.msrb.mxu1 %v1141_v28  ;;  %v3101_v51 = vpop.permute.xlu2 %1257  ;;  %v1281_v28 = vsel %vm1277_vm5, %v3099_v40, %v3049_v14 }
 0x1ab   : > { %v1236_v61 = vpop.permute.xlu0 %1235  ;;  %1207 = vmatpush.bf16.msrb.mxu2 %v1139_v2 }
 0x1ac   : > { %v3107_v4 = vsel %vm1277_vm5, %v1234_v11, %v1236_v61 }
 0x1ad   : > { %1179 = vmatpush.bf16.msrb.mxu0 %v2995_v52 }
 0x1ae   : > { %1193 = vmatpush.bf16.msrb.mxu1 %v1138_v13 }
 0x1af   : > { %1549 = vrot.lane.b32.xlu1 %v2529_v48, %s2363_s30  ;;  %1208 = vmatpush.bf16.msrb.mxu2 %v2998_v3 }
 0x1b0   : > { %1535 = vrot.lane.b32.xlu2 %v2533_v50, %s2363_s30 }
 0x1b1   : > { %1411 = vrot.lane.b32.xlu0 %v2582_v6, %s2362_s29  ;;  %1180 = vmatpush.bf16.msrb.mxu0 %v2968_v21  ;;  %v1244_v10 = vpop.permute.xlu1 %1243 }
 0x1b2   : > { %1194 = vmatpush.bf16.msrb.mxu1 %v2965_v5  ;;  %v3122_v62 = vpop.permute.xlu2 %1263  ;;  %2150 = vmatmul.msk.bf16.vlgmr.msrb.gmra.mxu2 %vm645_vm1, %v2224_v46 }
 0x1b3   : > { %v1242_v52 = vpop.permute.xlu0 %1241 }
 0x1b4   : > { %v3126_v42 = vsel %vm1277_vm5, %v3049_v14, %v1242_v52  ;;  %v3129_v3 = vsel %vm1277_vm5, %v1242_v52, %v1244_v10  ;;  %2148 = vmatmul.msk.bf16.vlgmr.msrb.gmra.mxu0 %vm645_vm1, %v2224_v46 }
 0x1b5   : > { %2149 = vmatmul.msk.bf16.vlgmr.msrb.gmra.mxu1 %vm645_vm1, %v2224_v46 }
 0x1b7   : > { %1385 = vrot.lane.b32.xlu1 %v2506_v35, %s2362_s29 }
 0x1b8   : > { %1403 = vrot.lane.b32.xlu2 %v2569_v1, %s2362_s29 }
 0x1b9   : > { %1537 = vrot.lane.b32.xlu0 %v2527_v47, %s2363_s30  ;;  %v3137_v5 = vpop.permute.xlu1 %1249 }
 0x1ba   : > { %v1272_v21 = vpop.permute.xlu2 %1271 }
 0x1bb   : > { %v3139_v31 = vpop.permute.xlu0 %1247 }
 0x1bc   : > { %v1284_v22 = vsel %vm1277_vm5, %v3057_v39, %v3139_v31  ;;  %v1285_v52 = vsel %vm1277_vm5, %v3139_v31, %v3137_v5 }
 0x1bf   : > { %1563 = vrot.lane.b32.xlu1 %v2600_v18, %s2363_s30 }
 0x1c0   : > { %1527 = vrot.lane.b32.xlu2 %v2486_v25, %s2363_s30 }
 0x1c1   : > { %1541 = vrot.lane.b32.xlu0 %v2540_v53, %s2363_s30  ;;  %v3151_v11 = vpop.permute.xlu1 %1255 }
 0x1c2   : > { %v1406_v23 = vpop.permute.xlu2 %1405  ;;  %v1288_v10 = vsel %vm1277_vm5, %v3151_v11, %v3101_v51 }
 0x1c3   : > { %v1254_v29 = vpop.permute.xlu0 %1253 }
 0x1c4   : > { %v1287_v55 = vsel %vm1277_vm5, %v1254_v29, %v3151_v11 }
 0x1c7   : > { %1705 = vrot.lane.b32.xlu1 %v2598_v15, %s2364_s5 }
 0x1c8   : > { %1707 = vrot.lane.b32.xlu2 %v2600_v18, %s2364_s5 }
 0x1c9   : > { %1529 = vrot.lane.b32.xlu0 %v2506_v35, %s2363_s30  ;;  %v1262_v36 = vpop.permute.xlu1 %1261 }
 0x1ca   : > { %v1276_v54 = vpop.permute.xlu2 %1275  ;;  %v1290_v9 = vsel %vm1277_vm5, %v1262_v36, %v3122_v62  ;;  %v2225_v36 = vld [vmem:[%s2776_s15 + $0x28] sm:$0xff] }
 0x1cb   : > { %v1260_v37 = vpop.permute.xlu0 %1259 }
 0x1cf   : > { %1395 = vrot.lane.b32.xlu1 %v2531_v49, %s2362_s29 }
 0x1d0   : > { %1533 = vrot.lane.b32.xlu2 %v2504_v34, %s2363_s30 }
 0x1d1   : > { %1377 = vrot.lane.b32.xlu0 %v2463_v12, %s2362_s29  ;;  %v1270_v56 = vpop.permute.xlu1 %1269 }
 0x1d2   : > { %v1268_v15 = vpop.permute.xlu2 %1267  ;;  %v1293_v38 = vsel %vm1277_vm5, %v1270_v56, %v1272_v21 }
 0x1d3   : > { %v1266_v18 = vpop.permute.xlu0 %1265  ;;  %1319 = vmatpush.bf16.msrb.mxu3 %v1293_v38 }
 0x1d4   : > { %v1291_v14 = vsel %vm1277_vm5, %v3122_v62, %v1266_v18  ;;  %v1292_v40 = vsel %vm1277_vm5, %v1266_v18, %v1268_v15  ;;  %v1289_v62 = vsel %vm1277_vm5, %v3101_v51, %v1260_v37  ;;  %v1286_v51 = vsel %vm1277_vm5, %v3137_v5, %v3071_v63  ;;  %v3288_v15 = vld [vmem:[%s2776_s15 + $0x30] sm:$0xff] }
 0x1d7   : > { %1519 = vrot.lane.b32.xlu1 %v2488_v26, %s2363_s30  ;;  %1320 = vmatpush.bf16.msrb.mxu3 %v1290_v9 }
 0x1d8   : > { %1521 = vrot.lane.b32.xlu2 %v2463_v12, %s2363_s30 }
 0x1d9   : > { %1555 = vrot.lane.b32.xlu0 %v2582_v6, %s2363_s30  ;;  %v1416_v20 = vpop.permute.xlu1 %1415 }
 0x1da   : > { %v3174_v44 = vpop.permute.xlu2 %1417 }
 0x1db   : > { %v1414_v30 = vpop.permute.xlu0 %1413  ;;  %1321 = vmatpush.bf16.msrb.mxu3 %v1287_v55  ;;  %v1438_v61 = vsel %vm1421_vm6, %v1416_v20, %v3174_v44 }
 0x1dc   : > { %v1437_v60 = vsel %vm1421_vm6, %v1414_v30, %v1416_v20 }
 0x1dd   : > { %1463 = vmatpush.bf16.msra.mxu2 %v1437_v60 }
 0x1df   : > { %1699 = vrot.lane.b32.xlu1 %v2582_v6, %s2364_s5  ;;  %1322 = vmatpush.bf16.msrb.mxu3 %v1284_v22 }
 0x1e0   : > { %1387 = vrot.lane.b32.xlu2 %v2502_v33, %s2362_s29 }
 0x1e1   : > { %1697 = vrot.lane.b32.xlu0 %v2584_v7, %s2364_s5  ;;  %v1274_v57 = vpop.permute.xlu1 %1273 }
 0x1e2   : > { %v3191_v43 = vpop.permute.xlu2 %1559  ;;  %v1294_v39 = vsel %vm1277_vm5, %v1272_v21, %v1274_v57  ;;  %v1295_v27 = vsel %vm1277_vm5, %v1274_v57, %v1276_v54 }
 0x1e3   : > { %v1408_v6 = vpop.permute.xlu0 %1407  ;;  %1323 = vmatpush.bf16.msrb.mxu3 %v1281_v28  ;;  %1333 = vmatpush.bf16.msra.mxu0 %v1294_v39 }
 0x1e4   : > { %v1434_v7 = vsel %vm1421_vm6, %v1406_v23, %v1408_v6  ;;  %1347 = vmatpush.bf16.msra.mxu1 %v1295_v27 }
 0x1e5   : > { %1464 = vmatpush.bf16.msra.mxu2 %v1434_v7 }
 0x1e7   : > { %1547 = vrot.lane.b32.xlu1 %v2569_v1, %s2363_s30  ;;  %1324 = vmatpush.bf16.msrb.mxu3 %v3079_v45 }
 0x1e8   : > { %1701 = vrot.lane.b32.xlu2 %v2515_v41, %s2364_s5  ;;  %1334 = vmatpush.bf16.msra.mxu0 %v1291_v14 }
 0x1e9   : > { %1525 = vrot.lane.b32.xlu0 %v2468_v16, %s2363_s30  ;;  %1348 = vmatpush.bf16.msra.mxu1 %v1292_v40  ;;  %v3212_v2 = vpop.permute.xlu1 %1399 }
 0x1ea   : > { %v1374_v45 = vpop.permute.xlu2 %1373  ;;  %2157 = vmatmul.msk.bf16.vlgmr.msrb.gmra.mxu3 %vm645_vm1, %v2225_v36 }
 0x1eb   : > { %1477 = vmatpush.bf16.msra.mxu3 %v1438_v61  ;;  %v1398_v13 = vpop.permute.xlu0 %1397 }
 0x1ec   : > { %v1431_v41 = vsel %vm1421_vm6, %v1398_v13, %v3212_v2  ;;  %1335 = vmatpush.bf16.msra.mxu0 %v1288_v10 }
 0x1ed   : > { %1465 = vmatpush.bf16.msra.mxu2 %v1431_v41  ;;  %1349 = vmatpush.bf16.msra.mxu1 %v1289_v62  ;;  %v3350_v62 = vld [vmem:[%s2776_s15 + $0x38] sm:$0xff] }
 0x1ef   : > { %1689 = vrot.lane.b32.xlu1 %v2553_v59, %s2364_s5 }
 0x1f0   : > { %1691 = vrot.lane.b32.xlu2 %v2569_v1, %s2364_s5  ;;  %1336 = vmatpush.bf16.msra.mxu0 %v1285_v52 }
 0x1f1   : > { %1703 = vrot.lane.b32.xlu0 %v2602_v19, %s2364_s5  ;;  %1350 = vmatpush.bf16.msra.mxu1 %v1286_v51  ;;  %v1392_v21 = vpop.permute.xlu1 %1391 }
 0x1f2   : > { %v3233_v32 = vpop.permute.xlu2 %1553 }
 0x1f3   : > { %v1390_v59 = vpop.permute.xlu0 %1389 }
 0x1f4   : > { %v1428_v11 = vsel %vm1421_vm6, %v1390_v59, %v1392_v21  ;;  %1337 = vmatpush.bf16.msra.mxu0 %v3126_v42 }
 0x1f5   : > { %1466 = vmatpush.bf16.msra.mxu2 %v1428_v11  ;;  %1351 = vmatpush.bf16.msra.mxu1 %v3129_v3 }
 0x1f7   : > { %1517 = vrot.lane.b32.xlu1 %v2470_v17, %s2363_s30 }
 0x1f8   : > { %1539 = vrot.lane.b32.xlu2 %v2531_v49, %s2363_s30  ;;  %1338 = vmatpush.bf16.msra.mxu0 %v3076_v8 }
 0x1f9   : > { %1379 = vrot.lane.b32.xlu0 %v2484_v24, %s2362_s29  ;;  %1352 = vmatpush.bf16.msra.mxu1 %v3107_v4  ;;  %v3246_v1 = vpop.permute.xlu1 %1383 }
 0x1fa   : > { %v1558_v19 = vpop.permute.xlu2 %1557 }
 0x1fb   : > { %v1382_v63 = vpop.permute.xlu0 %1381  ;;  %v1581_v42 = vsel %vm1565_vm7, %v1558_v19, %v3191_v43  ;;  %2158 = vmatmul.msk.bf16.vlgmr.msra.gmra.mxu0 %vm645_vm1, %v2225_v36  ;;  %v658_v19 = vpop.f32.mrf.mxu0 }
 0x1fc   : > { %v1425_v3 = vsel %vm1421_vm6, %v1382_v63, %v3246_v1  ;;  %2159 = vmatmul.msk.bf16.vlgmr.msra.gmra.mxu1 %vm645_vm1, %v2225_v36  ;;  %v3358_v63 = vpop.f32.mrf.mxu2 }
 0x1fd   : > { %1467 = vmatpush.bf16.msra.mxu2 %v1425_v3  ;;  %1607 = vmatpush.bf16.msrb.mxu1 %v1581_v42 }
 0x1ff   : > { %1695 = vrot.lane.b32.xlu1 %v2567_v0, %s2364_s5 }
 0x200   : > { %1681 = vrot.lane.b32.xlu2 %v2527_v47, %s2364_s5 }
 0x201   : > { %1693 = vrot.lane.b32.xlu0 %v2529_v48, %s2364_s5  ;;  %v1410_v8 = vpop.permute.xlu1 %1409 }
 0x202   : > { %v3258_v4 = vpop.permute.xlu2 %1393  ;;  %v1435_v31 = vsel %vm1421_vm6, %v1408_v6, %v1410_v8 }
 0x203   : > { %v3260_v5 = vpop.permute.xlu0 %1561  ;;  %1478 = vmatpush.bf16.msra.mxu3 %v1435_v31 }
 0x204   : > { %v1582_v29 = vsel %vm1565_vm7, %v3191_v43, %v3260_v5  ;;  %v3364_v31 = vpop.f32.mrf.mxu2 }
 0x207   : > { %1531 = vrot.lane.b32.xlu1 %v2502_v33, %s2363_s30 }
 0x208   : > { %1685 = vrot.lane.b32.xlu2 %v2540_v53, %s2364_s5 }
 0x209   : > { %1683 = vrot.lane.b32.xlu0 %v2531_v49, %s2364_s5  ;;  %v1552_v48 = vpop.permute.xlu1 %1551 }
 0x20a   : > { %v1536_v47 = vpop.permute.xlu2 %1535  ;;  %v1579_v49 = vsel %vm1565_vm7, %v1552_v48, %v3233_v32 }
 0x20b   : > { %v3269_v0 = vpop.permute.xlu0 %1375 }
 0x20c   : > { %v1422_v23 = vsel %vm1421_vm6, %v1374_v45, %v3269_v0 }
 0x20d   : > { %1468 = vmatpush.bf16.msra.mxu2 %v1422_v23 }
 0x20f   : > { %1673 = vrot.lane.b32.xlu1 %v2506_v35, %s2364_s5 }
 0x210   : > { %1675 = vrot.lane.b32.xlu2 %v2502_v33, %s2364_s5  ;;  %2166 = vmatmul.msk.bf16.vlgmr.msra.gmra.mxu2 %vm645_vm1, %v3288_v15  ;;  %v1429_v33 = vsel %vm1421_vm6, %v1392_v21, %v3258_v4 }
 0x211   : > { %1621 = vmatpush.bf16.msrb.mxu2 %v1582_v29  ;;  %1687 = vrot.lane.b32.xlu0 %v2551_v58, %s2364_s5  ;;  %v1420_v53 = vpop.permute.xlu1 %1419 }
 0x212   : > { %v1404_v54 = vpop.permute.xlu2 %1403  ;;  %v1439_v37 = vsel %vm1421_vm6, %v3174_v44, %v1420_v53 }
 0x213   : > { %v1402_v56 = vpop.permute.xlu0 %1401  ;;  %1491 = vmatpush.bf16.msrb.mxu0 %v1439_v37  ;;  %v894_v37 = vpop.f32.mrf.mxu2 }
 0x214   : > { %v1432_v38 = vsel %vm1421_vm6, %v3212_v2, %v1402_v56  ;;  %v1433_v55 = vsel %vm1421_vm6, %v1402_v56, %v1404_v54 }
 0x215   : > { %1622 = vmatpush.bf16.msrb.mxu2 %v1579_v49  ;;  %1479 = vmatpush.bf16.msra.mxu3 %v1432_v38  ;;  %v756_v49 = vpop.f32.mrf.mxu3 }
 0x216   : > { %v757_v36 = vadd.f32 %v756_v49, %v658_v19  ;;  %v2228_v19 = vld [vmem:[%s2776_s15 + $0x40] sm:$0xff]  ;;  %s3435_s15 = scalar_lea.vmem %s3475_s4, %s1983_s13 }
 0x217   : > { %1677 = vrot.lane.b32.xlu1 %v2504_v34, %s2364_s5 }
 0x218   : > { %1679 = vrot.lane.b32.xlu2 %v2533_v50, %s2364_s5  ;;  %v3370_v38 = vadd.f32 %v894_v37, %v757_v36 }
 0x219   : > { %1523 = vrot.lane.b32.xlu0 %v2484_v24, %s2363_s30  ;;  %1480 = vmatpush.bf16.msra.mxu3 %v1429_v33  ;;  %v3303_v35 = vpop.permute.xlu1 %1545 }
 0x21a   : > { %v3307_v58 = vpop.permute.xlu2 %1527 }
 0x21b   : > { %v1544_v18 = vpop.permute.xlu0 %1543 }
 0x21c   : > { %v1576_v9 = vsel %vm1565_vm7, %v1544_v18, %v3303_v35 }
 0x21d   : > { %1623 = vmatpush.bf16.msrb.mxu2 %v1576_v9 }
 0x21f   : > { %1667 = vrot.lane.b32.xlu1 %v2484_v24, %s2364_s5 }
 0x220   : > { %1669 = vrot.lane.b32.xlu2 %v2468_v16, %s2364_s5 }
 0x221   : > { %1665 = vrot.lane.b32.xlu0 %v2463_v12, %s2364_s5  ;;  %v1550_v34 = vpop.permute.xlu1 %1549 }
 0x222   : > { %v1708_v20 = vpop.permute.xlu2 %1707  ;;  %v1578_v50 = vsel %vm1565_vm7, %v1550_v34, %v1552_v48 }
 0x223   : > { %v1412_v44 = vpop.permute.xlu0 %1411  ;;  %1608 = vmatpush.bf16.msrb.mxu1 %v1578_v50 }
 0x224   : > { %v1436_v30 = vsel %vm1421_vm6, %v1410_v8, %v1412_v44  ;;  %v758_v44 = vpop.f32.mrf.mxu3 }
 0x225   : > { %1492 = vmatpush.bf16.msrb.mxu0 %v1436_v30 }
 0x227   : > { %1661 = vrot.lane.b32.xlu1 %v2470_v17, %s2364_s5 }
 0x228   : > { %1663 = vrot.lane.b32.xlu2 %v2488_v26, %s2364_s5 }
 0x229   : > { %1671 = vrot.lane.b32.xlu0 %v2486_v25, %s2364_s5  ;;  %1493 = vmatpush.bf16.msrb.mxu0 %v1433_v55  ;;  %v1386_v12 = vpop.permute.xlu1 %1385 }
 0x22a   : > { %v1534_v16 = vpop.permute.xlu2 %1533  ;;  %v1426_v60 = vsel %vm1421_vm6, %v3246_v1, %v1386_v12 }
 0x22b   : > { %v1538_v24 = vpop.permute.xlu0 %1537  ;;  %1481 = vmatpush.bf16.msra.mxu3 %v1426_v60  ;;  %v1572_v43 = vsel %vm1565_vm7, %v1534_v16, %v1536_v47 }
 0x22c   : > { %v1573_v22 = vsel %vm1565_vm7, %v1536_v47, %v1538_v24 }
 0x22d   : > { %1624 = vmatpush.bf16.msrb.mxu2 %v1573_v22 }
 0x231   : > { %v1564_v46 = vpop.permute.xlu1 %1563 }
 0x232   : > { %v3329_v17 = vpop.permute.xlu2 %1521  ;;  %v1583_v61 = vsel %vm1565_vm7, %v3260_v5, %v1564_v46  ;;  %v660_v5 = vpop.f32.mrf.mxu0 }
 0x233   : > { %v1542_v57 = vpop.permute.xlu0 %1541  ;;  %v759_v30 = vadd.f32 %v758_v44, %v660_v5 }
 0x234   : > { %v1575_v25 = vsel %vm1565_vm7, %v1542_v57, %v1544_v18 }
 0x235   : > { %1609 = vmatpush.bf16.msrb.mxu1 %v1575_v25 }
 0x239   : > { %1610 = vmatpush.bf16.msrb.mxu1 %v1572_v43  ;;  %v1706_v26 = vpop.permute.xlu1 %1705 }
 0x23a   : > { %v1388_v6 = vpop.permute.xlu2 %1387  ;;  %v1727_v52 = vsel %vm1709_vm8, %v1706_v26, %v1708_v20  ;;  %v770_v53 = vpop.f32.mrf.mxu0 }
 0x23b   : > { %v3333_v39 = vpop.permute.xlu0 %1529  ;;  %v1427_v2 = vsel %vm1421_vm6, %v1386_v12, %v1388_v6  ;;  %v896_v12 = vpop.f32.mrf.mxu2 }
 0x23c   : > { %v1570_v27 = vsel %vm1565_vm7, %v3307_v58, %v3333_v39  ;;  %v3382_v16 = vadd.f32 %v896_v12, %v759_v30 }
 0x23d   : > { %1625 = vmatpush.bf16.msrb.mxu2 %v1570_v27 }
 0x241   : > { %v1396_v28 = vpop.permute.xlu1 %1395 }
 0x242   : > { %v1430_v14 = vsel %vm1421_vm6, %v3258_v4, %v1396_v28  ;;  %v1702_v45 = vpop.permute.xlu2 %1701  ;;  %v772_v50 = vpop.f32.mrf.mxu0 }
 0x243   : > { %v1378_v7 = vpop.permute.xlu0 %1377  ;;  %1494 = vmatpush.bf16.msrb.mxu0 %v1430_v14 }
 0x244   : > { %v1423_v40 = vsel %vm1421_vm6, %v3269_v0, %v1378_v7  ;;  %v672_v0 = vpop.f32.mrf.mxu1 }
 0x245   : > { %1482 = vmatpush.bf16.msra.mxu3 %v1423_v40  ;;  %v3368_v54 = vadd.f32 %v770_v53, %v672_v0  ;;  %v1052_v0 = vpop.f32.mrf.mxu2 }
 0x247   : > { %1495 = vmatpush.bf16.msrb.mxu0 %v1427_v2 }
 0x248   : > { %2167 = vmatmul.msk.bf16.vlgmr.msra.gmra.mxu3 %vm645_vm1, %v3288_v15 }
 0x249   : > { %1635 = vmatpush.bf16.msrb.mxu3 %v1583_v61  ;;  %v1520_v13 = vpop.permute.xlu1 %1519  ;;  %v1797_v61 = vld [vmem:[%s404_s9] sm:$0xff] }
 0x24a   : > { %v1567_v10 = vsel %vm1565_vm7, %v1520_v13, %v3329_v17  ;;  %v1692_v21 = vpop.permute.xlu2 %1691 }
 0x24b   : > { %v1556_v41 = vpop.permute.xlu0 %1555  ;;  %1626 = vmatpush.bf16.msrb.mxu2 %v1567_v10 }
 0x24c   : > { %v1580_v51 = vsel %vm1565_vm7, %v3233_v32, %v1556_v41  ;;  %v674_v34 = vpop.f32.mrf.mxu1 }
 0x24d   : > { %1636 = vmatpush.bf16.msrb.mxu3 %v1580_v51  ;;  %v3376_v55 = vadd.f32 %v772_v50, %v674_v34  ;;  %v1054_v53 = vpop.f32.mrf.mxu2 }
 0x24e   : > { %2176 = vmatmul.msk.bf16.vlgmr.msrb.gmra.mxu2 %vm645_vm1, %v3350_v62 }
 0x24f   : > { %1779 = vmatpush.bf16.msra.mxu2 %v1727_v52 }
 0x251   : > { %v1700_v59 = vpop.permute.xlu1 %1699 }
 0x252   : > { %v1540_v32 = vpop.permute.xlu2 %1539 }
 0x253   : > { %v1698_v11 = vpop.permute.xlu0 %1697  ;;  %v1574_v48 = vsel %vm1565_vm7, %v1538_v24, %v1540_v32 }
 0x254   : > { %v1724_v1 = vsel %vm1709_vm8, %v1698_v11, %v1700_v59  ;;  %v784_v5 = vpop.f32.mrf.mxu1 }
 0x255   : > { %1780 = vmatpush.bf16.msra.mxu2 %v1724_v1 }
 0x259   : > { %v1548_v42 = vpop.permute.xlu1 %1547 }
 0x25a   : > { %v1577_v8 = vsel %vm1565_vm7, %v3303_v35, %v1548_v42  ;;  %v1682_v56 = vpop.permute.xlu2 %1681 }
 0x25b   : > { %v1526_v3 = vpop.permute.xlu0 %1525  ;;  %1637 = vmatpush.bf16.msrb.mxu3 %v1577_v8 }
 0x25c   : > { %v1569_v4 = vsel %vm1565_vm7, %v1526_v3, %v3307_v58 }
 0x25d   : > { %1611 = vmatpush.bf16.msrb.mxu1 %v1569_v4 }
 0x25f   : > { %1638 = vmatpush.bf16.msrb.mxu3 %v1574_v48  ;;  %v908_v48 = vpop.f32.mrf.mxu3 }
 0x261   : > { %v1690_v47 = vpop.permute.xlu1 %1689 }
 0x262   : > { %v1721_v29 = vsel %vm1709_vm8, %v1690_v47, %v1692_v21  ;;  %v1686_v24 = vpop.permute.xlu2 %1685 }
 0x263   : > { %v1704_v23 = vpop.permute.xlu0 %1703  ;;  %1781 = vmatpush.bf16.msra.mxu2 %v1721_v29  ;;  %v922_v29 = vpop.f32.mrf.mxu0 }
 0x264   : > { %v1726_v18 = vsel %vm1709_vm8, %v1704_v23, %v1706_v26  ;;  %v1725_v20 = vsel %vm1709_vm8, %v1702_v45, %v1704_v23  ;;  %v2365_v45 = vmov 0  }
 0x265   : > { %2299 = vset.pattern.permute.xlu0 %v2365_v45  ;;  %2300 = vset.pattern.permute.xlu1 %v2365_v45 }
 0x266   : > { %1801 = vperm.xlu0 %2299, %v1797_v61  }
 0x267   : > { %v910_v23 = vpop.f32.mrf.mxu3 }
 0x269   : > { %v1518_v33 = vpop.permute.xlu1 %1517 }
 0x26a   : > { %v1566_v58 = vsel %vm1565_vm7, %v1518_v33, %v1520_v13  ;;  %v1676_v43 = vpop.permute.xlu2 %1675  ;;  %v1210_v33 = vpop.f32.mrf.mxu2 }
 0x26b   : > { %v1380_v35 = vpop.permute.xlu0 %1379  ;;  %1612 = vmatpush.bf16.msrb.mxu1 %v1566_v58  ;;  %v924_v37 = vpop.f32.mrf.mxu0 }
 0x26c   : > { %v1424_v9 = vsel %vm1421_vm6, %v1378_v7, %v1380_v35 }
 0x26d   : > { %1496 = vmatpush.bf16.msrb.mxu0 %v1424_v9 }
 0x26e   : > { %2175 = vmatmul.msk.bf16.vlgmr.msrb.gmra.mxu1 %vm645_vm1, %v3350_v62 }
 0x26f   : > { %1765 = vmatpush.bf16.msra.mxu1 %v1726_v18  ;;  %v1066_v36 = vpop.f32.mrf.mxu3 }
 0x270   : > { %2168 = vmatmul.msk.bf16.vlgmr.msrb.gmra.mxu0 %vm645_vm1, %v3288_v15 }
 0x271   : > { %1751 = vmatpush.bf16.msra.mxu0 %v1725_v20  ;;  %v1696_v60 = vpop.permute.xlu1 %1695 }
 0x272   : > { %v1723_v46 = vsel %vm1709_vm8, %v1696_v60, %v1698_v11  ;;  %v1680_v2 = vpop.permute.xlu2 %1679  ;;  %v1212_v9 = vpop.f32.mrf.mxu2 }
 0x273   : > { %v1694_v22 = vpop.permute.xlu0 %1693  ;;  %1766 = vmatpush.bf16.msra.mxu1 %v1723_v46  ;;  %v1717_v13 = vsel %vm1709_vm8, %v1680_v2, %v1682_v56  ;;  %v1182_v58 = vpop.f32.mrf.mxu0  ;;  %v785_v46 = vadd.f32 %v784_v5, %v3358_v63 }
 0x274   : > { %v1722_v57 = vsel %vm1709_vm8, %v1694_v22, %v1696_v60 }
 0x275   : > { %1752 = vmatpush.bf16.msra.mxu0 %v1722_v57 }
 0x277   : > { %v1068_v35 = vpop.f32.mrf.mxu3 }
 0x279   : > { %v1532_v25 = vpop.permute.xlu1 %1531 }
 0x27a   : > { %v1571_v15 = vsel %vm1565_vm7, %v3333_v39, %v1532_v25  ;;  %v1798_v39 = vld [vmem:[%s404_s9 + $0x8] sm:$0xff]  ;;  %v1670_v59 = vpop.permute.xlu2 %1669 }
 0x27b   : > { %v1684_v26 = vpop.permute.xlu0 %1683  ;;  %1639 = vmatpush.bf16.msrb.mxu3 %v1571_v15  ;;  %1806 = vperm.xlu1 %2300, %v1798_v39   ;;  %v1184_v20 = vpop.f32.mrf.mxu0 }
 0x27c   : > { %v1718_v27 = vsel %vm1709_vm8, %v1682_v56, %v1684_v26  ;;  %v929_v26 = vadd.f32 %v922_v29, %v785_v46 }
 0x27d   : > { %1782 = vmatpush.bf16.msra.mxu2 %v1718_v27 }
 0x27f   : > { %v1326_v34 = vpop.f32.mrf.mxu3 }
 0x281   : > { %v1674_v6 = vpop.permute.xlu1 %1673 }
 0x282   : > { %v1715_v7 = vsel %vm1709_vm8, %v1674_v6, %v1676_v43  ;;  %v1664_v32 = vpop.permute.xlu2 %1663 }
 0x283   : > { %v1688_v28 = vpop.permute.xlu0 %1687  ;;  %1783 = vmatpush.bf16.msra.mxu2 %v1715_v7  ;;  %v1340_v12 = vpop.f32.mrf.mxu0 }
 0x284   : > { %v1719_v14 = vsel %vm1709_vm8, %v1686_v24, %v1688_v28  ;;  %v1720_v40 = vsel %vm1709_vm8, %v1688_v28, %v1690_v47  ;;  %v786_v47 = vpop.f32.mrf.mxu1 }
 0x285   : > { %1753 = vmatpush.bf16.msra.mxu0 %v1719_v14  ;;  %1767 = vmatpush.bf16.msra.mxu1 %v1720_v40  ;;  %v787_v27 = vadd.f32 %v786_v47, %v3364_v31  ;;  %v928_v14 = vadd.f32 %v908_v48, %v3368_v54  ;;  %v931_v31 = vadd.f32 %v910_v23, %v3376_v55 }
 0x287   : > { %v1328_v30 = vpop.f32.mrf.mxu3  ;;  %v932_v61 = vadd.f32 %v924_v37, %v787_v27 }
 0x289   : > { %1768 = vmatpush.bf16.msra.mxu1 %v1717_v13  ;;  %v1678_v41 = vpop.permute.xlu1 %1677 }
 0x28a   : > { %v1716_v52 = vsel %vm1709_vm8, %v1678_v41, %v1680_v2  ;;  %v1072_v2 = vadd.f32 %v1052_v0, %v928_v14  ;;  %v1076_v41 = vadd.f32 %v1068_v35, %v932_v61  ;;  %v1818_v14 = vld [vmem:[%s3429_s24 + $0x18] sm:$0xff] }
 0x28b   : > { %v1524_v10 = vpop.permute.xlu0 %1523  ;;  %1754 = vmatpush.bf16.msra.mxu0 %v1716_v52  ;;  %v1342_v57 = vpop.f32.mrf.mxu0 }
 0x28c   : > { %v1568_v51 = vsel %vm1565_vm7, %v3329_v17, %v1524_v10  ;;  %v1038_v49 = vpop.f32.mrf.mxu1 }
 0x28d   : > { %1640 = vmatpush.bf16.msrb.mxu3 %v1568_v51  ;;  %v1071_v40 = vadd.f32 %v1038_v49, %v3370_v38  ;;  %v1220_v38 = vadd.f32 %v1212_v9, %v1076_v41 }
 0x28f   : > { %v1215_v13 = vadd.f32 %v1182_v58, %v1071_v40  ;;  %v1815_v58 = vld [vmem:[%s3429_s24] sm:$0xff] }
 0x290   : > { %2177 = vmatmul.msk.bf16.vlgmr.msrb.gmra.mxu3 %vm645_vm1, %v3350_v62  ;;  %v1819_v40 = vld [vmem:[%s3429_s24 + $0x20] sm:$0xff] }
 0x291   : > { %v1668_v21 = vpop.permute.xlu1 %1667 }
 0x293   : > { %v1666_v11 = vpop.permute.xlu0 %1665  ;;  %v1470_v50 = vpop.f32.mrf.mxu2 }
 0x294   : > { %v1712_v1 = vsel %vm1709_vm8, %v1666_v11, %v1668_v21  ;;  %v1711_v4 = vsel %vm1709_vm8, %v1664_v32, %v1666_v11  ;;  %v1040_v56 = vpop.f32.mrf.mxu1  ;;  %v1359_v11 = vadd.f32 %v1326_v34, %v1215_v13 }
 0x295   : > { %1784 = vmatpush.bf16.msra.mxu2 %v1712_v1  ;;  %v1074_v21 = vadd.f32 %v1040_v56, %v3382_v16 }
 0x298   : > { %2186 = vmatmul.msk.bf16.vlgmr.msra.gmra.mxu2 %vm645_vm1, %v2228_v19 }
 0x299   : > { %v1662_v3 = vpop.permute.xlu1 %1661 }
 0x29a   : > { %v1710_v62 = vsel %vm1709_vm8, %v1662_v3, %v1664_v32  ;;  %v1817_v32 = vld [vmem:[%s3429_s24 + $0x10] sm:$0xff] }
 0x29b   : > { %v1672_v42 = vpop.permute.xlu0 %1671  ;;  %v3414_v60 = vpop.f32.mrf.mxu2 }
 0x29c   : > { %v1713_v8 = vsel %vm1709_vm8, %v1670_v59, %v1672_v42  ;;  %v1714_v17 = vsel %vm1709_vm8, %v1672_v42, %v1674_v6  ;;  %v1196_v18 = vpop.f32.mrf.mxu1  ;;  %v1073_v6 = vadd.f32 %v1066_v36, %v929_v26 }
 0x29d   : > { %1755 = vmatpush.bf16.msra.mxu0 %v1713_v8  ;;  %1769 = vmatpush.bf16.msra.mxu1 %v1714_v17  ;;  %v1216_v52 = vadd.f32 %v1196_v18, %v1072_v2  ;;  %v1218_v17 = vadd.f32 %v1184_v20, %v1074_v21  ;;  %v1816_v18 = vld [vmem:[%s3429_s24 + $0x8] sm:$0xff] }
 0x29e   : > { %v1217_v39 = vadd.f32 %v1210_v33, %v1073_v6 }
 0x29f   : > { %v1360_v55 = vadd.f32 %v1340_v12, %v1216_v52 }
 0x2a1   : > { %1756 = vmatpush.bf16.msra.mxu0 %v1710_v62  ;;  %1770 = vmatpush.bf16.msra.mxu1 %v1711_v4  ;;  %v1503_v62 = vadd.f32 %v1470_v50, %v1359_v11 }
 0x2a4   : > { %2184 = vmatmul.msk.bf16.vlgmr.msra.gmra.mxu0 %vm645_vm1, %v2228_v19  ;;  %2185 = vmatmul.msk.bf16.vlgmr.msra.gmra.mxu1 %vm645_vm1, %v2228_v19  ;;  %v1198_v44 = vpop.f32.mrf.mxu1  ;;  %v1075_v19 = vadd.f32 %v1054_v53, %v931_v31  ;;  %v1362_v53 = vadd.f32 %v1328_v30, %v1218_v17 }
 0x2a6   : > { %v1219_v48 = vadd.f32 %v1198_v44, %v1075_v19  ;;  %v1506_v30 = vadd.f32 %v3414_v60, %v1362_v53 }
 0x2a8   : > { %v1363_v20 = vadd.f32 %v1342_v57, %v1219_v48 }
 0x2ac   : > { %v1354_v24 = vpop.f32.mrf.mxu1 }
 0x2ad   : > { %v1361_v10 = vadd.f32 %v1354_v24, %v1217_v39  ;;  %v1820_v24 = vld [vmem:[%s3429_s24 + $0x28] sm:$0xff] }
 0x2b4   : > { %v1356_v25 = vpop.f32.mrf.mxu1 }
 0x2b5   : > { %v1364_v16 = vadd.f32 %v1356_v25, %v1220_v38 }
 0x2cb   : > { %v1484_v22 = vpop.f32.mrf.mxu3 }
 0x2cc   : > { %v1504_v4 = vadd.f32 %v1484_v22, %v1360_v55 }
 0x2d1   : > { %v1628_v43 = vpop.f32.mrf.mxu2 }
 0x2d2   : > { %v1648_v0 = vadd.f32 %v1628_v43, %v1504_v4 }
 0x2d3   : > { %v3417_v15 = vpop.f32.mrf.mxu3 }
 0x2d4   : > { %v1507_v22 = vadd.f32 %v3417_v15, %v1363_v20 }
 0x2d8   : > { %v1802_v3 = vpop.permute.xlu0 %1801 }
 0x2d9   : > { %v1630_v63 = vpop.f32.mrf.mxu2 }
 0x2da   : > { %v1651_v26 = vadd.f32 %v1630_v63, %v1507_v22 }
 0x2eb   : > { %v1614_v7 = vpop.f32.mrf.mxu1 }
 0x2ec   : > { %v1647_v23 = vadd.f32 %v1614_v7, %v1503_v62 }
 0x2ed   : > { %v1498_v28 = vpop.f32.mrf.mxu0  ;;  %v1807_v34 = vpop.permute.xlu1 %1806 }
 0x2ee   : > { %v1505_v51 = vadd.f32 %v1498_v28, %v1361_v10 }
 0x2f3   : > { %v1616_v59 = vpop.f32.mrf.mxu1 }
 0x2f4   : > { %v1650_v27 = vadd.f32 %v1616_v59, %v1506_v30 }
 0x2f5   : > { %v1500_v54 = vpop.f32.mrf.mxu0 }
 0x2f6   : > { %v1508_v29 = vadd.f32 %v1500_v54, %v1364_v16 }
 0x313   : > { %v1642_v45 = vpop.f32.mrf.mxu3 }
 0x314   : > { %v1649_v1 = vadd.f32 %v1642_v45, %v1505_v51 }
 0x31b   : > { %v1786_v42 = vpop.f32.mrf.mxu2  ;;  %v1644_v47 = vpop.f32.mrf.mxu3 }
 0x31c   : > { %v1793_v8 = vadd.f32 %v1786_v42, %v1649_v1  ;;  %v1652_v56 = vadd.f32 %v1644_v47, %v1508_v29 }
 0x31e   : > { %v1811_v5 = vadd.f32 %v1802_v3, %v1793_v8 }
 0x320   : > { %v1823_v49 = vadd.f32 %v1817_v32, %v1811_v5 }
 0x321   : > { %v1758_v36 = vpop.f32.mrf.mxu0  ;;  %v1772_v37 = vpop.f32.mrf.mxu1 }
 0x322   : > { %1829 = vst [vmem:[%s3435_s15 + $0x10] sm:$0xff] %v1823_v49  ;;  %v1791_v33 = vadd.f32 %v1758_v36, %v1647_v23  ;;  %v1792_v35 = vadd.f32 %v1772_v37, %v1648_v0 }
 0x323   : > { %v1788_v9 = vpop.f32.mrf.mxu2 }
 0x324   : > { %v1809_v44 = vadd.f32 %v1802_v3, %v1791_v33  ;;  %v1810_v50 = vadd.f32 %v1802_v3, %v1792_v35  ;;  %v1796_v12 = vadd.f32 %v1788_v9, %v1652_v56 }
 0x326   : > { %v1821_v46 = vadd.f32 %v1815_v58, %v1809_v44  ;;  %v1822_v25 = vadd.f32 %v1816_v18, %v1810_v50  ;;  %v1814_v43 = vadd.f32 %v1807_v34, %v1796_v12 }
 0x328   : > { %1827 = vst [vmem:[%s3435_s15] sm:$0xff] %v1821_v46  ;;  %v1826_v57 = vadd.f32 %v1820_v24, %v1814_v43 }
 0x329   : > { %1828 = vst [vmem:[%s3435_s15 + $0x8] sm:$0xff] %v1822_v25  ;;  %v1760_v6 = vpop.f32.mrf.mxu0  ;;  %v1774_v28 = vpop.f32.mrf.mxu1 }
 0x32a   : > { %1832 = vst [vmem:[%s3435_s15 + $0x28] sm:$0xff] %v1826_v57  ;;  %v1794_v7 = vadd.f32 %v1760_v6, %v1650_v27  ;;  %v1795_v60 = vadd.f32 %v1774_v28, %v1651_v26 }
 0x32c   : > { %v1812_v61 = vadd.f32 %v1807_v34, %v1794_v7  ;;  %v1813_v39 = vadd.f32 %v1807_v34, %v1795_v60 }
 0x32e   : > { %v1824_v15 = vadd.f32 %v1818_v14, %v1812_v61  ;;  %v1825_v2 = vadd.f32 %v1819_v40, %v1813_v39 }
 0x330   : > { %1830 = vst [vmem:[%s3435_s15 + $0x18] sm:$0xff] %v1824_v15 }
 0x331   : > { %1831 = vst [vmem:[%s3435_s15 + $0x20] sm:$0xff] %v1825_v2 }
 0x332 PF: > { %s14_s21 = sadd.s32 1, %s2355_s21   ;;  %s3476_s15 = smov %s2335_s16 }
 0x333   : > { %p11_p12 = scmp.ge.s32.totalorder %s14_s21, 6   ;;  %s3477_s16 = smov %s2440_s26 }
 0x334   : > { %s3478_s17 = smov %s2347_s19  ;;  %s3479_s18 = smov %s2351_s20 }
 0x335   : > { %s3480_s19 = smov %s3483_s22  ;;  %s3481_s20 = smov %s3487_s23 }
 0x336   :  { %13 = sbr.rel (!%p11_p12) target bundleno = 4 (0x4), region = 129 }

</bundles_post_ra>
